<compile_context>
chip_gen: v7x
topology: tpu7x:2x2x1
jax: 0.10.0
libtpu: 0.0.40
codegen_flags: <defaults>
</compile_context>

<pallas_src>
import math
from functools import partial

import jax
import jax.numpy as jnp
import numpy as np
from jax.experimental import pallas as pl
from jax.experimental.pallas import tpu as pltpu


# ----------------------------------------------------------------------------
# Fused forward kernel: one grid step == Bt batch elements.
# ----------------------------------------------------------------------------
def _fused_kernel(inp_ref, slab_ref, out_ref, *, offs, conv_dims, attn_dims,
                  fin, num_heads, compute_dtype):
    f32 = jnp.float32
    Bt, S, _ = inp_ref.shape
    N = Bt * S

    def getp(name):                          # static slice of the packed slab
        o, r, c = offs[name]
        return slab_ref[o:o + r, 0:c]

    def mm(a, w):                            # MXU dot; optional bf16 operands
        return jnp.dot(a.astype(compute_dtype), w.astype(compute_dtype),
                       preferred_element_type=f32)

    def center(z):                           # subtract per-set (per-batch) mean
        c = z.shape[-1]
        z3 = z.reshape(Bt, S, c)
        z3 = z3 - jnp.mean(z3, axis=1, keepdims=True)
        return z3.reshape(N, c)

    inp2 = inp_ref[...].reshape(N, fin)      # (Bt*S, Fin), channels on lanes

    # ---------------- DeepSet conv stack (branches fused via block-diag) -----
    x = None
    n_conv = len(conv_dims)
    for i, (outf, do_pool) in enumerate(conv_dims):
        z = inp2 if i == 0 else jnp.concatenate([inp2, x], axis=-1)
        zz = jnp.concatenate([z, center(z)], axis=-1)            # [z | z_c]
        h = jnp.maximum(mm(zz, getp(f"c{i}_w1")) + getp(f"c{i}_b1"), 0.0)
        y2 = jnp.tanh(mm(h, getp(f"c{i}_w2")) + getp(f"c{i}_b2"))
        y = y2[:, :outf] + y2[:, outf:]                          # branch a + b
        # per-position L2 norm over channels (no eps, matching the reference)
        y = y * jax.lax.rsqrt(jnp.sum(y * y, axis=-1, keepdims=True))
        if do_pool:
            # W2/b2 columns were pre-permuted offline so max_pool1d(4,4) is a
            # max over four contiguous quarter-width lane slices.
            q = outf // 4
            y = jnp.maximum(jnp.maximum(y[:, 0:q], y[:, q:2 * q]),
                            jnp.maximum(y[:, 2 * q:3 * q], y[:, 3 * q:4 * q]))
        x = jnp.maximum(y, 0.0) if i < n_conv - 1 else y

    # ---------------- attention stack (attention maps stay resident) ---------
    prev_attn = None
    for k, E in enumerate(attn_dims):
        hd = E // num_heads
        xin = jnp.concatenate([x, inp2], axis=-1)                # (Bt*S, E+Fin)
        qkv = mm(xin, getp(f"a{k}_wqkv")) + getp(f"a{k}_bqkv")   # Q|K|V layout
        qkv3 = qkv.reshape(Bt, S, 3 * E)
        scale = 1.0 / math.sqrt(hd)
        new_attn, hv = [], []
        for h in range(num_heads):                               # static loop
            qh = qkv3[:, :, h * hd:(h + 1) * hd]
            kh = qkv3[:, :, E + h * hd:E + (h + 1) * hd]
            vh = qkv3[:, :, 2 * E + h * hd:2 * E + (h + 1) * hd]
            logits = jnp.einsum("bqd,bkd->bqk",
                                qh.astype(compute_dtype), kh.astype(compute_dtype),
                                preferred_element_type=f32) * scale
            if prev_attn is not None:        # first layer has no mask -> skip
                logits = jnp.where(prev_attn[h] == 0.0, -9e15, logits)
            logits = logits - jnp.max(logits, axis=-1, keepdims=True)
            ex = jnp.exp(logits)
            a = ex / jnp.sum(ex, axis=-1, keepdims=True)         # exact softmax
            new_attn.append(a)
            hv.append(jnp.einsum("bqk,bkd->bqd",
                                 a.astype(compute_dtype), vh.astype(compute_dtype),
                                 preferred_element_type=f32))
        hvc = jnp.concatenate(hv, axis=-1).reshape(N, E)         # head concat
        x = mm(hvc, getp(f"a{k}_wo")) + getp(f"a{k}_bo")
        prev_attn = new_attn

    # ---------------- final sum over the set axis ----------------------------
    # TODO(synk): for very large B the (Bt, E) store could be re-packed as
    # (1, Bt*E) for a fully lane-dense store; low absolute cost at these sizes.
    out_ref[...] = jnp.sum(x.reshape(Bt, S, -1), axis=1)


# ----------------------------------------------------------------------------
# Wrapper: grid over batch blocks, params as one resident slab.
# ----------------------------------------------------------------------------
def deepset_forward(inp, slab, *, offs, conv_dims, attn_dims, fin, num_heads,
                    e_out, bt, compute_dtype=jnp.bfloat16):
    B, S, _ = inp.shape
    assert B % bt == 0, "batch must be divisible by the batch block"
    grid = (B // bt,)
    kern = partial(_fused_kernel, offs=offs, conv_dims=conv_dims,
                   attn_dims=attn_dims, fin=fin, num_heads=num_heads,
                   compute_dtype=compute_dtype)
    return pl.pallas_call(
        kern,
        out_shape=jax.ShapeDtypeStruct((B, e_out), jnp.float32),
        grid=grid,
        in_specs=[pl.BlockSpec((bt, S, fin), lambda b: (b, 0, 0)),
                  pl.BlockSpec(slab.shape, lambda b: (0, 0))],   # resident params
        out_specs=pl.BlockSpec((bt, e_out), lambda b: (b, 0)),
        compiler_params=pltpu.CompilerParams(
            dimension_semantics=("parallel",)),                  # megacore / 2 TCs
    )(inp, slab)


def _pick_bt(B, S, target_rows=256, min_grid=2):
    """Largest divisor of B with bt*S <= target rows, keeping >=2 grid steps."""
    divs = [d for d in range(1, B + 1) if B % d == 0]
    want = max(1, target_rows // S)
    cands = [d for d in divs if d <= want] or [1]
    bt = max(cands)
    if B // bt < min_grid:
        smaller = [d for d in cands if B // d >= min_grid]
        if smaller:
            bt = max(smaller)
    return bt


# ----------------------------------------------------------------------------
# Offline parameter re-layout + packing into one slab.
# ----------------------------------------------------------------------------
def _blockdiag(a, b):
    ra, ca = a.shape
    rb, cb = b.shape
    out = jnp.zeros((ra + rb, ca + cb), jnp.float32)
    out = out.at[:ra, :ca].set(a)
    out = out.at[ra:, ca:].set(b)
    return out


def _pack_slab(arrs):
    width = max(int(a.shape[1]) for _, a in arrs)
    width = ((width + 127) // 128) * 128          # lane-aligned slab width
    offs, blocks, row = {}, [], 0
    for name, a in arrs:
        a = jnp.asarray(a, jnp.float32)
        r, c = a.shape
        offs[name] = (row, r, c)
        pr = ((r + 7) // 8) * 8                   # 8-row-aligned sections
        blk = jnp.zeros((pr, width), jnp.float32).at[:r, :c].set(a)
        blocks.append(blk)
        row += pr
    return jnp.concatenate(blocks, axis=0), offs


def prepare_packed(params, num_heads):
    conv_p, attn_p = params["conv"], params["attn"]
    n_conv = len(conv_p)
    arrs, conv_dims, attn_dims = [], [], []
    for i, p in enumerate(conv_p):
        outf = int(p["w2a"].shape[1])
        do_pool = (0 < i < n_conv - 1)
        w2a, b2a, w2b, b2b = p["w2a"], p["b2a"], p["w2b"], p["b2b"]
        if do_pool:
            assert outf % 4 == 0
            q = outf // 4
            # new column m*q+j holds original column 4j+m  =>  strided maxpool
            perm = np.array([4 * j + m for m in range(4) for j in range(q)])
            w2a, b2a = w2a[:, perm], b2a[:, perm]
            w2b, b2b = w2b[:, perm], b2b[:, perm]
        arrs.append((f"c{i}_w1", _blockdiag(p["w1a"], p["w1b"])))
        arrs.append((f"c{i}_b1", jnp.concatenate([p["b1a"], p["b1b"]], axis=1)))
        arrs.append((f"c{i}_w2", _blockdiag(w2a, w2b)))
        arrs.append((f"c{i}_b2", jnp.concatenate([b2a, b2b], axis=1)))
        conv_dims.append((outf, do_pool))
    for k, p in enumerate(attn_p):
        E = int(p["wo"].shape[1])
        hd = E // num_heads
        # interleaved per-head layout -> Q|K|V blocks (heads contiguous per block)
        perm = np.array([3 * hd * h + blk * hd + d
                         for blk in range(3) for h in range(num_heads) for d in range(hd)])
        arrs.append((f"a{k}_wqkv", p["wqkv"][:, perm]))
        arrs.append((f"a{k}_bqkv", p["bqkv"][:, perm]))
        arrs.append((f"a{k}_wo", p["wo"]))
        arrs.append((f"a{k}_bo", p["bo"]))
        attn_dims.append(E)
    slab, offs = _pack_slab(arrs)
    return slab, offs, tuple(conv_dims), tuple(attn_dims)


# ----------------------------------------------------------------------------
# Deterministic parameter init (weights stored pre-transposed as (in, out)).
# ----------------------------------------------------------------------------
def init_params(key, in_features, conv_feats, attn_feats, num_heads):
    conv_params = []
    layer_specs = [(in_features, 0, conv_feats[0])]
    for c in conv_feats:
        layer_specs.append((in_features, c, c))
    for (orig, inf, outf) in layer_specs:
        cin = orig + inf
        mid = int((orig + inf + outf) / 2)
        key, *ks = jax.random.split(key, 9)
        w = lambda k, i, o: jax.random.normal(k, (i, o), jnp.float32) / math.sqrt(i)
        b = lambda k, o: jax.random.normal(k, (1, o), jnp.float32) * 0.01
        conv_params.append(dict(
            w1a=w(ks[0], cin, mid), b1a=b(ks[1], mid),
            w2a=w(ks[2], mid, outf), b2a=b(ks[3], outf),
            w1b=w(ks[4], cin, mid), b1b=b(ks[5], mid),
            w2b=w(ks[6], mid, outf), b2b=b(ks[7], outf)))
    attn_params = []
    for e in attn_feats:
        din = e + in_features
        key, k1, k2 = jax.random.split(key, 3)
        attn_params.append(dict(
            wqkv=jax.random.normal(k1, (din, 3 * e), jnp.float32) * math.sqrt(2.0 / (din + 3 * e)),
            bqkv=jnp.zeros((1, 3 * e), jnp.float32),   # zero qkv bias (matches _reset_parameters)
            wo=jax.random.normal(k2, (e, e), jnp.float32) * math.sqrt(1.0 / e),
            bo=jnp.zeros((1, e), jnp.float32)))
    return dict(conv=conv_params, attn=attn_params)


# ----------------------------------------------------------------------------
# Pure-JAX reference (mirrors the PyTorch forward) for a sanity check.
# ----------------------------------------------------------------------------
def _ref_deepset_layer(x, p):
    def branch(z, w1, b1, w2, b2):
        return jnp.tanh(jnp.maximum(z @ w1 + b1, 0.0) @ w2 + b2)
    y1 = branch(x, p["w1a"], p["b1a"], p["w2a"], p["b2a"])
    xc = x - jnp.mean(x, axis=1, keepdims=True)
    y2 = branch(xc, p["w1b"], p["b1b"], p["w2b"], p["b2b"])
    y = y1 + y2
    return y / jnp.sqrt(jnp.sum(y * y, axis=-1, keepdims=True))


def _ref_mha(x, inp, mask, p, num_heads):
    B, S, E = x.shape
    hd = E // num_heads
    qkv = jnp.concatenate([x, inp], axis=-1) @ p["wqkv"] + p["bqkv"]
    qkv = qkv.reshape(B, S, num_heads, 3 * hd).transpose(0, 2, 1, 3)
    q, k, v = qkv[..., :hd], qkv[..., hd:2 * hd], qkv[..., 2 * hd:]
    logits = jnp.einsum("bhqd,bhkd->bhqk", q, k) / math.sqrt(hd)
    logits = jnp.where(mask == 0.0, -9e15, logits)
    attn = jax.nn.softmax(logits, axis=-1)
    vals = jnp.einsum("bhqk,bhkd->bhqd", attn, v)
    vals = vals.transpose(0, 2, 1, 3).reshape(B, S, E)
    return vals @ p["wo"] + p["bo"], attn


def ref_forward(inp, params, num_heads):
    B, S, _ = inp.shape
    x = inp
    n_conv = len(params["conv"])
    for i, p in enumerate(params["conv"]):
        x = _ref_deepset_layer(x, p)
        if not (i == 0 or i == n_conv - 1):
            C = x.shape[-1]
            x = x[..., :(C // 4) * 4].reshape(B, S, C // 4, 4).max(axis=-1)
        if i < n_conv - 1:
            x = jnp.maximum(x, 0.0)
            x = jnp.concatenate([inp, x], axis=2)
    attn = None
    for p in params["attn"]:
        mask = jnp.ones((B, num_heads, S, S), jnp.float32) if attn is None else attn
        x, attn = _ref_mha(x, inp, mask, p, num_heads)
    return jnp.sum(x, axis=1)


if __name__ == "__main__":
    key = jax.random.PRNGKey(0)
    B, S, Fin = 16, 16, 8
    # conv_feats[i+1] must equal conv_feats[i] // 4 where maxpool(4,4) applies,
    # otherwise the original torch model's shapes don't line up.
    conv_feats = [32, 8]
    attn_feats = [8, 8]
    num_heads = 2

    pkey, xkey = jax.random.split(key)
    params = init_params(pkey, Fin, conv_feats, attn_feats, num_heads)
    inp = jax.random.normal(xkey, (B, S, Fin), jnp.float32)

    slab, offs, conv_dims, attn_dims = prepare_packed(params, num_heads)
    e_out = attn_dims[-1]
    bt = _pick_bt(B, S)            # -> 8 : 128 rows per step, 2 parallel steps

    common = dict(offs=offs, conv_dims=conv_dims, attn_dims=attn_dims,
                  fin=Fin, num_heads=num_heads, e_out=e_out, bt=bt)
    ref = ref_forward(inp, params, num_heads)

    # f32 MXU-input path: strict semantic check vs the pure-JAX reference.
    fwd_f32 = jax.jit(partial(deepset_forward, compute_dtype=jnp.float32, **common))
    out = jax.block_until_ready(fwd_f32(inp, slab))
    assert out.shape == (B, e_out)
    np.testing.assert_allclose(np.asarray(out), np.asarray(ref), rtol=2e-2, atol=2e-2)

    # bf16 MXU-input fast path (recommended for v6e/v7x); element-wise math
    # stays f32, so only dot-operand rounding differs -> looser tolerance.
    fwd_bf16 = jax.jit(partial(deepset_forward, compute_dtype=jnp.bfloat16, **common))
    out_bf = jax.block_until_ready(fwd_bf16(inp, slab))
    np.testing.assert_allclose(np.asarray(out_bf), np.asarray(ref), rtol=1e-1, atol=3e-1)

    print("KERNEL_OK")
</pallas_src>

<mosaic_0001>
module attributes {stable_mosaic.version = 11 : i64} {
  func.func @_fused_kernel(%arg0: i32, %arg1: memref<8x16x8xf32, #tpu.memory_space<vmem>>, %arg2: memref<392x128xf32, #tpu.memory_space<vmem>>, %arg3: memref<8x8xf32, #tpu.memory_space<vmem>>) attributes {dimension_semantics = [#tpu.dimension_semantics<parallel>], iteration_bounds = array<i64: 2>, scalar_prefetch = 0 : i64, scratch_operands = 0 : i64, tpu.core_type = #tpu.core_type<tc>, window_params = [{transform_indices = @transform_0, window_bounds = array<i64: 8, 16, 8>}, {pipeline_mode = #tpu.pipeline_mode<synchronous>, transform_indices = @transform_1, window_bounds = array<i64: 392, 128>}, {transform_indices = @transform_2, window_bounds = array<i64: 8, 8>}]} {
    %c0 = arith.constant 0 : index
    %c0_0 = arith.constant 0 : index
    %c0_1 = arith.constant 0 : index
    %0 = vector.load %arg1[%c0, %c0_0, %c0_1] : memref<8x16x8xf32, #tpu.memory_space<vmem>>, vector<8x16x8xf32>
    %1 = vector.shape_cast %0 : vector<8x16x8xf32> to vector<128x8xf32>
    %2 = vector.shape_cast %1 : vector<128x8xf32> to vector<8x16x8xf32>
    %cst = arith.constant dense<0.000000e+00> : vector<8x8xf32>
    %3 = vector.multi_reduction <add>, %2, %cst [1] : vector<8x16x8xf32> to vector<8x8xf32>
    %4 = vector.shape_cast %3 : vector<8x8xf32> to vector<8x1x8xf32>
    %cst_2 = arith.constant 1.600000e+01 : f32
    %5 = vector.broadcast %cst_2 : f32 to vector<8x1x8xf32>
    %6 = arith.divf %4, %5 : vector<8x1x8xf32>
    %7 = vector.broadcast %6 : vector<8x1x8xf32> to vector<8x16x8xf32>
    %8 = arith.subf %2, %7 : vector<8x16x8xf32>
    %9 = vector.shape_cast %8 : vector<8x16x8xf32> to vector<128x8xf32>
    %10 = tpu.concatenate %1, %9 in 1 : vector<128x8xf32>, vector<128x8xf32> -> vector<128x16xf32>
    %c0_3 = arith.constant 0 : index
    %c0_4 = arith.constant 0 : index
    %11 = vector.load %arg2[%c0_3, %c0_4] : memref<392x128xf32, #tpu.memory_space<vmem>>, vector<16x40xf32>
    %cst_5 = arith.constant dense<0.000000e+00> : vector<128x40xf32>
    %12 = tpu.matmul %10, %11, %cst_5 {dimension_numbers = #tpu.dot_dimension_numbers<[1], [0], [0], [1], [0, 0, 1, 1], [], []>} : vector<128x16xf32>, vector<16x40xf32>, vector<128x40xf32> -> vector<128x40xf32>
    %c16 = arith.constant 16 : index
    %c0_6 = arith.constant 0 : index
    %13 = vector.load %arg2[%c16, %c0_6] : memref<392x128xf32, #tpu.memory_space<vmem>>, vector<1x40xf32>
    %14 = vector.broadcast %13 : vector<1x40xf32> to vector<128x40xf32>
    %15 = arith.addf %12, %14 : vector<128x40xf32>
    %cst_7 = arith.constant 0.000000e+00 : f32
    %16 = vector.broadcast %cst_7 : f32 to vector<128x40xf32>
    %17 = arith.maximumf %15, %16 : vector<128x40xf32>
    %c24 = arith.constant 24 : index
    %c0_8 = arith.constant 0 : index
    %18 = vector.load %arg2[%c24, %c0_8] : memref<392x128xf32, #tpu.memory_space<vmem>>, vector<40x64xf32>
    %cst_9 = arith.constant dense<0.000000e+00> : vector<128x64xf32>
    %19 = tpu.matmul %17, %18, %cst_9 {dimension_numbers = #tpu.dot_dimension_numbers<[1], [0], [0], [1], [0, 0, 1, 1], [], []>} : vector<128x40xf32>, vector<40x64xf32>, vector<128x64xf32> -> vector<128x64xf32>
    %c64 = arith.constant 64 : index
    %c0_10 = arith.constant 0 : index
    %20 = vector.load %arg2[%c64, %c0_10] : memref<392x128xf32, #tpu.memory_space<vmem>>, vector<1x64xf32>
    %21 = vector.broadcast %20 : vector<1x64xf32> to vector<128x64xf32>
    %22 = arith.addf %19, %21 : vector<128x64xf32>
    %23 = math.tanh %22 : vector<128x64xf32>
    %24 = vector.extract_strided_slice %23 {offsets = [0, 0], sizes = [128, 32], strides = [1, 1]} : vector<128x64xf32> to vector<128x32xf32>
    %25 = vector.extract_strided_slice %23 {offsets = [0, 32], sizes = [128, 32], strides = [1, 1]} : vector<128x64xf32> to vector<128x32xf32>
    %26 = arith.addf %24, %25 : vector<128x32xf32>
    %27 = arith.mulf %26, %26 : vector<128x32xf32>
    %cst_11 = arith.constant dense<0.000000e+00> : vector<128xf32>
    %28 = vector.multi_reduction <add>, %27, %cst_11 [1] : vector<128x32xf32> to vector<128xf32>
    %29 = vector.shape_cast %28 : vector<128xf32> to vector<128x1xf32>
    %30 = math.rsqrt %29 : vector<128x1xf32>
    %31 = vector.broadcast %30 : vector<128x1xf32> to vector<128x32xf32>
    %32 = arith.mulf %26, %31 : vector<128x32xf32>
    %cst_12 = arith.constant 0.000000e+00 : f32
    %33 = vector.broadcast %cst_12 : f32 to vector<128x32xf32>
    %34 = arith.maximumf %32, %33 : vector<128x32xf32>
    %35 = tpu.concatenate %1, %34 in 1 : vector<128x8xf32>, vector<128x32xf32> -> vector<128x40xf32>
    %36 = vector.shape_cast %35 : vector<128x40xf32> to vector<8x16x40xf32>
    %cst_13 = arith.constant dense<0.000000e+00> : vector<8x40xf32>
    %37 = vector.multi_reduction <add>, %36, %cst_13 [1] : vector<8x16x40xf32> to vector<8x40xf32>
    %38 = vector.shape_cast %37 : vector<8x40xf32> to vector<8x1x40xf32>
    %cst_14 = arith.constant 1.600000e+01 : f32
    %39 = vector.broadcast %cst_14 : f32 to vector<8x1x40xf32>
    %40 = arith.divf %38, %39 : vector<8x1x40xf32>
    %41 = vector.broadcast %40 : vector<8x1x40xf32> to vector<8x16x40xf32>
    %42 = arith.subf %36, %41 : vector<8x16x40xf32>
    %43 = vector.shape_cast %42 : vector<8x16x40xf32> to vector<128x40xf32>
    %44 = tpu.concatenate %35, %43 in 1 : vector<128x40xf32>, vector<128x40xf32> -> vector<128x80xf32>
    %c72 = arith.constant 72 : index
    %c0_15 = arith.constant 0 : index
    %45 = vector.load %arg2[%c72, %c0_15] : memref<392x128xf32, #tpu.memory_space<vmem>>, vector<80x72xf32>
    %cst_16 = arith.constant dense<0.000000e+00> : vector<128x72xf32>
    %46 = tpu.matmul %44, %45, %cst_16 {dimension_numbers = #tpu.dot_dimension_numbers<[1], [0], [0], [1], [0, 0, 1, 1], [], []>} : vector<128x80xf32>, vector<80x72xf32>, vector<128x72xf32> -> vector<128x72xf32>
    %c152 = arith.constant 152 : index
    %c0_17 = arith.constant 0 : index
    %47 = vector.load %arg2[%c152, %c0_17] : memref<392x128xf32, #tpu.memory_space<vmem>>, vector<1x72xf32>
    %48 = vector.broadcast %47 : vector<1x72xf32> to vector<128x72xf32>
    %49 = arith.addf %46, %48 : vector<128x72xf32>
    %cst_18 = arith.constant 0.000000e+00 : f32
    %50 = vector.broadcast %cst_18 : f32 to vector<128x72xf32>
    %51 = arith.maximumf %49, %50 : vector<128x72xf32>
    %c160 = arith.constant 160 : index
    %c0_19 = arith.constant 0 : index
    %52 = vector.load %arg2[%c160, %c0_19] : memref<392x128xf32, #tpu.memory_space<vmem>>, vector<72x64xf32>
    %cst_20 = arith.constant dense<0.000000e+00> : vector<128x64xf32>
    %53 = tpu.matmul %51, %52, %cst_20 {dimension_numbers = #tpu.dot_dimension_numbers<[1], [0], [0], [1], [0, 0, 1, 1], [], []>} : vector<128x72xf32>, vector<72x64xf32>, vector<128x64xf32> -> vector<128x64xf32>
    %c232 = arith.constant 232 : index
    %c0_21 = arith.constant 0 : index
    %54 = vector.load %arg2[%c232, %c0_21] : memref<392x128xf32, #tpu.memory_space<vmem>>, vector<1x64xf32>
    %55 = vector.broadcast %54 : vector<1x64xf32> to vector<128x64xf32>
    %56 = arith.addf %53, %55 : vector<128x64xf32>
    %57 = math.tanh %56 : vector<128x64xf32>
    %58 = vector.extract_strided_slice %57 {offsets = [0, 0], sizes = [128, 32], strides = [1, 1]} : vector<128x64xf32> to vector<128x32xf32>
    %59 = vector.extract_strided_slice %57 {offsets = [0, 32], sizes = [128, 32], strides = [1, 1]} : vector<128x64xf32> to vector<128x32xf32>
    %60 = arith.addf %58, %59 : vector<128x32xf32>
    %61 = arith.mulf %60, %60 : vector<128x32xf32>
    %cst_22 = arith.constant dense<0.000000e+00> : vector<128xf32>
    %62 = vector.multi_reduction <add>, %61, %cst_22 [1] : vector<128x32xf32> to vector<128xf32>
    %63 = vector.shape_cast %62 : vector<128xf32> to vector<128x1xf32>
    %64 = math.rsqrt %63 : vector<128x1xf32>
    %65 = vector.broadcast %64 : vector<128x1xf32> to vector<128x32xf32>
    %66 = arith.mulf %60, %65 : vector<128x32xf32>
    %67 = vector.extract_strided_slice %66 {offsets = [0, 0], sizes = [128, 8], strides = [1, 1]} : vector<128x32xf32> to vector<128x8xf32>
    %68 = vector.extract_strided_slice %66 {offsets = [0, 8], sizes = [128, 8], strides = [1, 1]} : vector<128x32xf32> to vector<128x8xf32>
    %69 = arith.maximumf %67, %68 : vector<128x8xf32>
    %70 = vector.extract_strided_slice %66 {offsets = [0, 16], sizes = [128, 8], strides = [1, 1]} : vector<128x32xf32> to vector<128x8xf32>
    %71 = vector.extract_strided_slice %66 {offsets = [0, 24], sizes = [128, 8], strides = [1, 1]} : vector<128x32xf32> to vector<128x8xf32>
    %72 = arith.maximumf %70, %71 : vector<128x8xf32>
    %73 = arith.maximumf %69, %72 : vector<128x8xf32>
    %cst_23 = arith.constant 0.000000e+00 : f32
    %74 = vector.broadcast %cst_23 : f32 to vector<128x8xf32>
    %75 = arith.maximumf %73, %74 : vector<128x8xf32>
    %76 = tpu.concatenate %1, %75 in 1 : vector<128x8xf32>, vector<128x8xf32> -> vector<128x16xf32>
    %77 = vector.shape_cast %76 : vector<128x16xf32> to vector<8x16x16xf32>
    %cst_24 = arith.constant dense<0.000000e+00> : vector<8x16xf32>
    %78 = vector.multi_reduction <add>, %77, %cst_24 [1] : vector<8x16x16xf32> to vector<8x16xf32>
    %79 = vector.shape_cast %78 : vector<8x16xf32> to vector<8x1x16xf32>
    %cst_25 = arith.constant 1.600000e+01 : f32
    %80 = vector.broadcast %cst_25 : f32 to vector<8x1x16xf32>
    %81 = arith.divf %79, %80 : vector<8x1x16xf32>
    %82 = vector.broadcast %81 : vector<8x1x16xf32> to vector<8x16x16xf32>
    %83 = arith.subf %77, %82 : vector<8x16x16xf32>
    %84 = vector.shape_cast %83 : vector<8x16x16xf32> to vector<128x16xf32>
    %85 = tpu.concatenate %76, %84 in 1 : vector<128x16xf32>, vector<128x16xf32> -> vector<128x32xf32>
    %c240 = arith.constant 240 : index
    %c0_26 = arith.constant 0 : index
    %86 = vector.load %arg2[%c240, %c0_26] : memref<392x128xf32, #tpu.memory_space<vmem>>, vector<32x24xf32>
    %cst_27 = arith.constant dense<0.000000e+00> : vector<128x24xf32>
    %87 = tpu.matmul %85, %86, %cst_27 {dimension_numbers = #tpu.dot_dimension_numbers<[1], [0], [0], [1], [0, 0, 1, 1], [], []>} : vector<128x32xf32>, vector<32x24xf32>, vector<128x24xf32> -> vector<128x24xf32>
    %c272 = arith.constant 272 : index
    %c0_28 = arith.constant 0 : index
    %88 = vector.load %arg2[%c272, %c0_28] : memref<392x128xf32, #tpu.memory_space<vmem>>, vector<1x24xf32>
    %89 = vector.broadcast %88 : vector<1x24xf32> to vector<128x24xf32>
    %90 = arith.addf %87, %89 : vector<128x24xf32>
    %cst_29 = arith.constant 0.000000e+00 : f32
    %91 = vector.broadcast %cst_29 : f32 to vector<128x24xf32>
    %92 = arith.maximumf %90, %91 : vector<128x24xf32>
    %c280 = arith.constant 280 : index
    %c0_30 = arith.constant 0 : index
    %93 = vector.load %arg2[%c280, %c0_30] : memref<392x128xf32, #tpu.memory_space<vmem>>, vector<24x16xf32>
    %cst_31 = arith.constant dense<0.000000e+00> : vector<128x16xf32>
    %94 = tpu.matmul %92, %93, %cst_31 {dimension_numbers = #tpu.dot_dimension_numbers<[1], [0], [0], [1], [0, 0, 1, 1], [], []>} : vector<128x24xf32>, vector<24x16xf32>, vector<128x16xf32> -> vector<128x16xf32>
    %c304 = arith.constant 304 : index
    %c0_32 = arith.constant 0 : index
    %95 = vector.load %arg2[%c304, %c0_32] : memref<392x128xf32, #tpu.memory_space<vmem>>, vector<1x16xf32>
    %96 = vector.broadcast %95 : vector<1x16xf32> to vector<128x16xf32>
    %97 = arith.addf %94, %96 : vector<128x16xf32>
    %98 = math.tanh %97 : vector<128x16xf32>
    %99 = vector.extract_strided_slice %98 {offsets = [0, 0], sizes = [128, 8], strides = [1, 1]} : vector<128x16xf32> to vector<128x8xf32>
    %100 = vector.extract_strided_slice %98 {offsets = [0, 8], sizes = [128, 8], strides = [1, 1]} : vector<128x16xf32> to vector<128x8xf32>
    %101 = arith.addf %99, %100 : vector<128x8xf32>
    %102 = arith.mulf %101, %101 : vector<128x8xf32>
    %cst_33 = arith.constant dense<0.000000e+00> : vector<128xf32>
    %103 = vector.multi_reduction <add>, %102, %cst_33 [1] : vector<128x8xf32> to vector<128xf32>
    %104 = vector.shape_cast %103 : vector<128xf32> to vector<128x1xf32>
    %105 = math.rsqrt %104 : vector<128x1xf32>
    %106 = vector.broadcast %105 : vector<128x1xf32> to vector<128x8xf32>
    %107 = arith.mulf %101, %106 : vector<128x8xf32>
    %108 = tpu.concatenate %107, %1 in 1 : vector<128x8xf32>, vector<128x8xf32> -> vector<128x16xf32>
    %c312 = arith.constant 312 : index
    %c0_34 = arith.constant 0 : index
    %109 = vector.load %arg2[%c312, %c0_34] : memref<392x128xf32, #tpu.memory_space<vmem>>, vector<16x24xf32>
    %cst_35 = arith.constant dense<0.000000e+00> : vector<128x24xf32>
    %110 = tpu.matmul %108, %109, %cst_35 {dimension_numbers = #tpu.dot_dimension_numbers<[1], [0], [0], [1], [0, 0, 1, 1], [], []>} : vector<128x16xf32>, vector<16x24xf32>, vector<128x24xf32> -> vector<128x24xf32>
    %c328 = arith.constant 328 : index
    %c0_36 = arith.constant 0 : index
    %111 = vector.load %arg2[%c328, %c0_36] : memref<392x128xf32, #tpu.memory_space<vmem>>, vector<1x24xf32>
    %112 = vector.broadcast %111 : vector<1x24xf32> to vector<128x24xf32>
    %113 = arith.addf %110, %112 : vector<128x24xf32>
    %114 = vector.shape_cast %113 : vector<128x24xf32> to vector<8x16x24xf32>
    %115 = vector.extract_strided_slice %114 {offsets = [0, 0, 0], sizes = [8, 16, 4], strides = [1, 1, 1]} : vector<8x16x24xf32> to vector<8x16x4xf32>
    %116 = vector.extract_strided_slice %114 {offsets = [0, 0, 8], sizes = [8, 16, 4], strides = [1, 1, 1]} : vector<8x16x24xf32> to vector<8x16x4xf32>
    %117 = vector.extract_strided_slice %114 {offsets = [0, 0, 16], sizes = [8, 16, 4], strides = [1, 1, 1]} : vector<8x16x24xf32> to vector<8x16x4xf32>
    "tpu.trace_start"() <{level = 10 : i32, message = "bqd,bkd->bqk"}> : () -> ()
    %cst_37 = arith.constant dense<0.000000e+00> : vector<8x16x16xf32>
    %118 = tpu.matmul %115, %116, %cst_37 {dimension_numbers = #tpu.dot_dimension_numbers<[2], [2], [1], [1], [0, 0, 0, 1, 1, 1], [0], [0]>} : vector<8x16x4xf32>, vector<8x16x4xf32>, vector<8x16x16xf32> -> vector<8x16x16xf32>
    "tpu.trace_stop"() : () -> ()
    %cst_38 = arith.constant 5.000000e-01 : f32
    %119 = vector.broadcast %cst_38 : f32 to vector<8x16x16xf32>
    %120 = arith.mulf %118, %119 : vector<8x16x16xf32>
    %cst_39 = arith.constant dense<0xFF800000> : vector<8x16xf32>
    %121 = vector.multi_reduction <maximumf>, %120, %cst_39 [2] : vector<8x16x16xf32> to vector<8x16xf32>
    %122 = vector.shape_cast %121 : vector<8x16xf32> to vector<8x16x1xf32>
    %123 = vector.broadcast %122 : vector<8x16x1xf32> to vector<8x16x16xf32>
    %124 = arith.subf %120, %123 : vector<8x16x16xf32>
    %125 = math.exp %124 : vector<8x16x16xf32>
    %cst_40 = arith.constant dense<0.000000e+00> : vector<8x16xf32>
    %126 = vector.multi_reduction <add>, %125, %cst_40 [2] : vector<8x16x16xf32> to vector<8x16xf32>
    %127 = vector.shape_cast %126 : vector<8x16xf32> to vector<8x16x1xf32>
    %128 = vector.broadcast %127 : vector<8x16x1xf32> to vector<8x16x16xf32>
    %129 = arith.divf %125, %128 : vector<8x16x16xf32>
    "tpu.trace_start"() <{level = 10 : i32, message = "bqk,bkd->bqd"}> : () -> ()
    %cst_41 = arith.constant dense<0.000000e+00> : vector<8x16x4xf32>
    %130 = tpu.matmul %129, %117, %cst_41 {dimension_numbers = #tpu.dot_dimension_numbers<[2], [1], [1], [2], [0, 0, 0, 1, 1, 2], [0], [0]>} : vector<8x16x16xf32>, vector<8x16x4xf32>, vector<8x16x4xf32> -> vector<8x16x4xf32>
    "tpu.trace_stop"() : () -> ()
    %131 = vector.extract_strided_slice %114 {offsets = [0, 0, 4], sizes = [8, 16, 4], strides = [1, 1, 1]} : vector<8x16x24xf32> to vector<8x16x4xf32>
    %132 = vector.extract_strided_slice %114 {offsets = [0, 0, 12], sizes = [8, 16, 4], strides = [1, 1, 1]} : vector<8x16x24xf32> to vector<8x16x4xf32>
    %133 = vector.extract_strided_slice %114 {offsets = [0, 0, 20], sizes = [8, 16, 4], strides = [1, 1, 1]} : vector<8x16x24xf32> to vector<8x16x4xf32>
    "tpu.trace_start"() <{level = 10 : i32, message = "bqd,bkd->bqk"}> : () -> ()
    %cst_42 = arith.constant dense<0.000000e+00> : vector<8x16x16xf32>
    %134 = tpu.matmul %131, %132, %cst_42 {dimension_numbers = #tpu.dot_dimension_numbers<[2], [2], [1], [1], [0, 0, 0, 1, 1, 1], [0], [0]>} : vector<8x16x4xf32>, vector<8x16x4xf32>, vector<8x16x16xf32> -> vector<8x16x16xf32>
    "tpu.trace_stop"() : () -> ()
    %cst_43 = arith.constant 5.000000e-01 : f32
    %135 = vector.broadcast %cst_43 : f32 to vector<8x16x16xf32>
    %136 = arith.mulf %134, %135 : vector<8x16x16xf32>
    %cst_44 = arith.constant dense<0xFF800000> : vector<8x16xf32>
    %137 = vector.multi_reduction <maximumf>, %136, %cst_44 [2] : vector<8x16x16xf32> to vector<8x16xf32>
    %138 = vector.shape_cast %137 : vector<8x16xf32> to vector<8x16x1xf32>
    %139 = vector.broadcast %138 : vector<8x16x1xf32> to vector<8x16x16xf32>
    %140 = arith.subf %136, %139 : vector<8x16x16xf32>
    %141 = math.exp %140 : vector<8x16x16xf32>
    %cst_45 = arith.constant dense<0.000000e+00> : vector<8x16xf32>
    %142 = vector.multi_reduction <add>, %141, %cst_45 [2] : vector<8x16x16xf32> to vector<8x16xf32>
    %143 = vector.shape_cast %142 : vector<8x16xf32> to vector<8x16x1xf32>
    %144 = vector.broadcast %143 : vector<8x16x1xf32> to vector<8x16x16xf32>
    %145 = arith.divf %141, %144 : vector<8x16x16xf32>
    "tpu.trace_start"() <{level = 10 : i32, message = "bqk,bkd->bqd"}> : () -> ()
    %cst_46 = arith.constant dense<0.000000e+00> : vector<8x16x4xf32>
    %146 = tpu.matmul %145, %133, %cst_46 {dimension_numbers = #tpu.dot_dimension_numbers<[2], [1], [1], [2], [0, 0, 0, 1, 1, 2], [0], [0]>} : vector<8x16x16xf32>, vector<8x16x4xf32>, vector<8x16x4xf32> -> vector<8x16x4xf32>
    "tpu.trace_stop"() : () -> ()
    %147 = tpu.concatenate %130, %146 in 2 : vector<8x16x4xf32>, vector<8x16x4xf32> -> vector<8x16x8xf32>
    %148 = vector.shape_cast %147 : vector<8x16x8xf32> to vector<128x8xf32>
    %c336 = arith.constant 336 : index
    %c0_47 = arith.constant 0 : index
    %149 = vector.load %arg2[%c336, %c0_47] : memref<392x128xf32, #tpu.memory_space<vmem>>, vector<8x8xf32>
    %cst_48 = arith.constant dense<0.000000e+00> : vector<128x8xf32>
    %150 = tpu.matmul %148, %149, %cst_48 {dimension_numbers = #tpu.dot_dimension_numbers<[1], [0], [0], [1], [0, 0, 1, 1], [], []>} : vector<128x8xf32>, vector<8x8xf32>, vector<128x8xf32> -> vector<128x8xf32>
    %c344 = arith.constant 344 : index
    %c0_49 = arith.constant 0 : index
    %151 = vector.load %arg2[%c344, %c0_49] : memref<392x128xf32, #tpu.memory_space<vmem>>, vector<1x8xf32>
    %152 = vector.broadcast %151 : vector<1x8xf32> to vector<128x8xf32>
    %153 = arith.addf %150, %152 : vector<128x8xf32>
    %154 = tpu.concatenate %153, %1 in 1 : vector<128x8xf32>, vector<128x8xf32> -> vector<128x16xf32>
    %c352 = arith.constant 352 : index
    %c0_50 = arith.constant 0 : index
    %155 = vector.load %arg2[%c352, %c0_50] : memref<392x128xf32, #tpu.memory_space<vmem>>, vector<16x24xf32>
    %cst_51 = arith.constant dense<0.000000e+00> : vector<128x24xf32>
    %156 = tpu.matmul %154, %155, %cst_51 {dimension_numbers = #tpu.dot_dimension_numbers<[1], [0], [0], [1], [0, 0, 1, 1], [], []>} : vector<128x16xf32>, vector<16x24xf32>, vector<128x24xf32> -> vector<128x24xf32>
    %c368 = arith.constant 368 : index
    %c0_52 = arith.constant 0 : index
    %157 = vector.load %arg2[%c368, %c0_52] : memref<392x128xf32, #tpu.memory_space<vmem>>, vector<1x24xf32>
    %158 = vector.broadcast %157 : vector<1x24xf32> to vector<128x24xf32>
    %159 = arith.addf %156, %158 : vector<128x24xf32>
    %160 = vector.shape_cast %159 : vector<128x24xf32> to vector<8x16x24xf32>
    %161 = vector.extract_strided_slice %160 {offsets = [0, 0, 0], sizes = [8, 16, 4], strides = [1, 1, 1]} : vector<8x16x24xf32> to vector<8x16x4xf32>
    %162 = vector.extract_strided_slice %160 {offsets = [0, 0, 8], sizes = [8, 16, 4], strides = [1, 1, 1]} : vector<8x16x24xf32> to vector<8x16x4xf32>
    %163 = vector.extract_strided_slice %160 {offsets = [0, 0, 16], sizes = [8, 16, 4], strides = [1, 1, 1]} : vector<8x16x24xf32> to vector<8x16x4xf32>
    "tpu.trace_start"() <{level = 10 : i32, message = "bqd,bkd->bqk"}> : () -> ()
    %cst_53 = arith.constant dense<0.000000e+00> : vector<8x16x16xf32>
    %164 = tpu.matmul %161, %162, %cst_53 {dimension_numbers = #tpu.dot_dimension_numbers<[2], [2], [1], [1], [0, 0, 0, 1, 1, 1], [0], [0]>} : vector<8x16x4xf32>, vector<8x16x4xf32>, vector<8x16x16xf32> -> vector<8x16x16xf32>
    "tpu.trace_stop"() : () -> ()
    %cst_54 = arith.constant 5.000000e-01 : f32
    %165 = vector.broadcast %cst_54 : f32 to vector<8x16x16xf32>
    %166 = arith.mulf %164, %165 : vector<8x16x16xf32>
    %cst_55 = arith.constant 0.000000e+00 : f32
    %167 = vector.broadcast %cst_55 : f32 to vector<8x16x16xf32>
    %168 = arith.cmpf oeq, %129, %167 : vector<8x16x16xf32>
    %cst_56 = arith.constant -9.000000e+15 : f32
    %169 = vector.broadcast %cst_56 : f32 to vector<8x16x16xf32>
    %170 = arith.select %168, %169, %166 : vector<8x16x16xi1>, vector<8x16x16xf32>
    %cst_57 = arith.constant dense<0xFF800000> : vector<8x16xf32>
    %171 = vector.multi_reduction <maximumf>, %170, %cst_57 [2] : vector<8x16x16xf32> to vector<8x16xf32>
    %172 = vector.shape_cast %171 : vector<8x16xf32> to vector<8x16x1xf32>
    %173 = vector.broadcast %172 : vector<8x16x1xf32> to vector<8x16x16xf32>
    %174 = arith.subf %170, %173 : vector<8x16x16xf32>
    %175 = math.exp %174 : vector<8x16x16xf32>
    %cst_58 = arith.constant dense<0.000000e+00> : vector<8x16xf32>
    %176 = vector.multi_reduction <add>, %175, %cst_58 [2] : vector<8x16x16xf32> to vector<8x16xf32>
    %177 = vector.shape_cast %176 : vector<8x16xf32> to vector<8x16x1xf32>
    %178 = vector.broadcast %177 : vector<8x16x1xf32> to vector<8x16x16xf32>
    %179 = arith.divf %175, %178 : vector<8x16x16xf32>
    "tpu.trace_start"() <{level = 10 : i32, message = "bqk,bkd->bqd"}> : () -> ()
    %cst_59 = arith.constant dense<0.000000e+00> : vector<8x16x4xf32>
    %180 = tpu.matmul %179, %163, %cst_59 {dimension_numbers = #tpu.dot_dimension_numbers<[2], [1], [1], [2], [0, 0, 0, 1, 1, 2], [0], [0]>} : vector<8x16x16xf32>, vector<8x16x4xf32>, vector<8x16x4xf32> -> vector<8x16x4xf32>
    "tpu.trace_stop"() : () -> ()
    %181 = vector.extract_strided_slice %160 {offsets = [0, 0, 4], sizes = [8, 16, 4], strides = [1, 1, 1]} : vector<8x16x24xf32> to vector<8x16x4xf32>
    %182 = vector.extract_strided_slice %160 {offsets = [0, 0, 12], sizes = [8, 16, 4], strides = [1, 1, 1]} : vector<8x16x24xf32> to vector<8x16x4xf32>
    %183 = vector.extract_strided_slice %160 {offsets = [0, 0, 20], sizes = [8, 16, 4], strides = [1, 1, 1]} : vector<8x16x24xf32> to vector<8x16x4xf32>
    "tpu.trace_start"() <{level = 10 : i32, message = "bqd,bkd->bqk"}> : () -> ()
    %cst_60 = arith.constant dense<0.000000e+00> : vector<8x16x16xf32>
    %184 = tpu.matmul %181, %182, %cst_60 {dimension_numbers = #tpu.dot_dimension_numbers<[2], [2], [1], [1], [0, 0, 0, 1, 1, 1], [0], [0]>} : vector<8x16x4xf32>, vector<8x16x4xf32>, vector<8x16x16xf32> -> vector<8x16x16xf32>
    "tpu.trace_stop"() : () -> ()
    %cst_61 = arith.constant 5.000000e-01 : f32
    %185 = vector.broadcast %cst_61 : f32 to vector<8x16x16xf32>
    %186 = arith.mulf %184, %185 : vector<8x16x16xf32>
    %cst_62 = arith.constant 0.000000e+00 : f32
    %187 = vector.broadcast %cst_62 : f32 to vector<8x16x16xf32>
    %188 = arith.cmpf oeq, %145, %187 : vector<8x16x16xf32>
    %cst_63 = arith.constant -9.000000e+15 : f32
    %189 = vector.broadcast %cst_63 : f32 to vector<8x16x16xf32>
    %190 = arith.select %188, %189, %186 : vector<8x16x16xi1>, vector<8x16x16xf32>
    %cst_64 = arith.constant dense<0xFF800000> : vector<8x16xf32>
    %191 = vector.multi_reduction <maximumf>, %190, %cst_64 [2] : vector<8x16x16xf32> to vector<8x16xf32>
    %192 = vector.shape_cast %191 : vector<8x16xf32> to vector<8x16x1xf32>
    %193 = vector.broadcast %192 : vector<8x16x1xf32> to vector<8x16x16xf32>
    %194 = arith.subf %190, %193 : vector<8x16x16xf32>
    %195 = math.exp %194 : vector<8x16x16xf32>
    %cst_65 = arith.constant dense<0.000000e+00> : vector<8x16xf32>
    %196 = vector.multi_reduction <add>, %195, %cst_65 [2] : vector<8x16x16xf32> to vector<8x16xf32>
    %197 = vector.shape_cast %196 : vector<8x16xf32> to vector<8x16x1xf32>
    %198 = vector.broadcast %197 : vector<8x16x1xf32> to vector<8x16x16xf32>
    %199 = arith.divf %195, %198 : vector<8x16x16xf32>
    "tpu.trace_start"() <{level = 10 : i32, message = "bqk,bkd->bqd"}> : () -> ()
    %cst_66 = arith.constant dense<0.000000e+00> : vector<8x16x4xf32>
    %200 = tpu.matmul %199, %183, %cst_66 {dimension_numbers = #tpu.dot_dimension_numbers<[2], [1], [1], [2], [0, 0, 0, 1, 1, 2], [0], [0]>} : vector<8x16x16xf32>, vector<8x16x4xf32>, vector<8x16x4xf32> -> vector<8x16x4xf32>
    "tpu.trace_stop"() : () -> ()
    %201 = tpu.concatenate %180, %200 in 2 : vector<8x16x4xf32>, vector<8x16x4xf32> -> vector<8x16x8xf32>
    %202 = vector.shape_cast %201 : vector<8x16x8xf32> to vector<128x8xf32>
    %c376 = arith.constant 376 : index
    %c0_67 = arith.constant 0 : index
    %203 = vector.load %arg2[%c376, %c0_67] : memref<392x128xf32, #tpu.memory_space<vmem>>, vector<8x8xf32>
    %cst_68 = arith.constant dense<0.000000e+00> : vector<128x8xf32>
    %204 = tpu.matmul %202, %203, %cst_68 {dimension_numbers = #tpu.dot_dimension_numbers<[1], [0], [0], [1], [0, 0, 1, 1], [], []>} : vector<128x8xf32>, vector<8x8xf32>, vector<128x8xf32> -> vector<128x8xf32>
    %c384 = arith.constant 384 : index
    %c0_69 = arith.constant 0 : index
    %205 = vector.load %arg2[%c384, %c0_69] : memref<392x128xf32, #tpu.memory_space<vmem>>, vector<1x8xf32>
    %206 = vector.broadcast %205 : vector<1x8xf32> to vector<128x8xf32>
    %207 = arith.addf %204, %206 : vector<128x8xf32>
    %208 = vector.shape_cast %207 : vector<128x8xf32> to vector<8x16x8xf32>
    %cst_70 = arith.constant dense<0.000000e+00> : vector<8x8xf32>
    %209 = vector.multi_reduction <add>, %208, %cst_70 [1] : vector<8x16x8xf32> to vector<8x8xf32>
    %c0_71 = arith.constant 0 : index
    %c0_72 = arith.constant 0 : index
    %210 = vector.load %arg3[%c0_71, %c0_72] : memref<8x8xf32, #tpu.memory_space<vmem>>, vector<8x8xf32>
    tpu.vector_store %arg3[%c0_71, %c0_72], %209 {strides = array<i32>} : memref<8x8xf32, #tpu.memory_space<vmem>>, vector<8x8xf32>,
    return
  }
  func.func @transform_0(%arg0: i32) -> (i32, i32, i32) {
    %c0_i32 = arith.constant 0 : i32
    %c0_i32_0 = arith.constant 0 : i32
    %c0_i32_1 = arith.constant 0 : i32
    return %arg0, %c0_i32, %c0_i32_0 : i32, i32, i32
  }
  func.func @transform_1(%arg0: i32) -> (i32, i32) {
    %c0_i32 = arith.constant 0 : i32
    %c0_i32_0 = arith.constant 0 : i32
    %c0_i32_1 = arith.constant 0 : i32
    return %c0_i32, %c0_i32_0 : i32, i32
  }
  func.func @transform_2(%arg0: i32) -> (i32, i32) {
    %c0_i32 = arith.constant 0 : i32
    %c0_i32_0 = arith.constant 0 : i32
    return %arg0, %c0_i32 : i32, i32
  }
}

</mosaic_0001>

<bundles_post_ra>
// kernel: deepset_forward.1
= control target key start
LH: loop header
LB: loop body
LE: loop exit
PB: predicated region body
PF: predicated region fallthrough
CT: control target
= control target key end

     0   :  { %7 = vsyncpa [#allocation3], 0  ;;  %s13517_s9 = smov 0   ;;  %s16645_s0 = inlined_call_operand.vmem [shape: f32[16,16,8], index: 0, kind: input, shape index: {}]   ;;  %s16646_s1 = inlined_call_operand.hbm [shape: f32[392,128], index: 1, kind: input, shape index: {}]   ;;  %s16647_s2 = inlined_call_operand.vmem [shape: f32[16,8], index: 2, kind: output, shape index: {}]  }
   0x1 LB: > { %s13523_s10 = sadd.s32 4294967295, %s13487_s9   ;;  %p10625_p0 = scmp.ge.s32.totalorder %s13487_s9, 1  ;;  %s13487_s9 = sphi %s13517_s9, %s13_s9  }
   0x2   : > { %p91_p1 = scmp.lt.s32.totalorder %s13487_s9, 3  ;;  %s13489_s11 = smov [#allocation2]  }
   0x3   : > { %s103_s12 = sshll.u32 %s13489_s11, 4  ;;  %p16648_p3 = scmp.eq.s32.totalorder %s13523_s10, 0  ;;  %s104_s12 = int_to_ptr.vmem [resolvable:$true] %s103_s12 }
   0x4   : > { %p13527_p2 = pnand %p10625_p0, %p91_p1  ;;  %s13449_s17 = scalar_lea.hbm %s16646_s1, 6272 }
   0x5   : > { %p13450_p6 = scmp.ne.s32.totalorder %s16646_s1, %s13449_s17  ;;  %p13456_p10 = scmp.lt.u32.totalorder %s13449_s17, %s16646_s1 }
   0x6   : > { %s16680_s13 = scalar_select %p13527_p2, 1, 0 }
   0x7   : > { %p12622_p4 = pneg %p13527_p2 }
   0x9   : > { %p13536_p5 = pnand %p16648_p3, %p12622_p4 }
   0xb   : > { %p13451_p7 = pneg %p13536_p5 }
   0xd   : > { %p13452_p8 = pnand %p13451_p7, %p13450_p6 }
   0xf   : > { %p13453_p9 = pneg %p13452_p8 }
  0x11   : > { %p13458_p11 = pnand %p13456_p10, %p13453_p9 }
  0x13   : > { %13461 = shalt.err (!%p13458_p11)
}
  0x14   : > { %s13462_s22 = scalar_lea.vmem %s104_s12, 6272  ;;  %p13470_p1 = scmp.lt.s32.totalorder %s104_s12, %s104_s12 }
  0x15   : > { %p13463_p12 = scmp.ne.s32.totalorder %s104_s12, %s13462_s22  ;;  %p13471_p4 = scmp.lt.s32.totalorder %s13462_s22, %s13462_s22 }
  0x17   : > { %p13465_p13 = pnand %p13463_p12, %p13451_p7  ;;  %p13472_p3 = por %p13471_p4, %p13470_p1 }
  0x19   : > { %p13466_p0 = pneg %p13465_p13 }
  0x1b   : > { %p13473_p2 = pnand %p13472_p3, %p13466_p0 }
  0x1d   : > { %13476 = shalt.err (!%p13473_p2)
}
  0x1e   : > { %s13490_s23 = smov 128   ;;  %s13491_s24 = smov 8  }
  0x1f   : > { %12625 = dma.hbm_to_vmem [thread:$0]  (!%p13536_p5), %s16646_s1, 6272, %s104_s12, [#allocation3], %s13490_s23, %s13490_s23, %s13491_s24  }
  0x20   : > { %p16682_p6 = scmp.ne.s32.totalorder %s16680_s13, 0 }
  0x22   : > { %129 = sbr.rel (%p16682_p6) target bundleno = 7356 (0x1cbc), region = 28 }
  0x29   : > { %p16683_p8 = scmp.eq.s32.totalorder %s13523_s10, 0 }
  0x2b   : > { %13482 = dma.done.wait (%p16683_p8), [#allocation3], 6272   ;;  %p16684_p7 = pmov %p16683_p8 }
  0x2c   : > { %s10630_s27 = sshll.u32 %s13523_s10, 3  ;;  %vm178_vm0 = vcmask 64512   ;;  %s13492_s4 = smov 8   ;;  %vm363_vm1 = vcmask 130048   ;;  %vm583_vm2 = vcmask 326656   ;;  %vm889_vm3 = vcmask 261120  }
  0x2d   : > { %13484 = vsyncadd (%p16684_p7), [#allocation3], 4294961024  ;;  %p152_p2 = scmp.lt.s32.totalorder %s10630_s27, 15  ;;  %s13493_s5 = smov 96   ;;  %vm1257_vm4 = vcmask 654336   ;;  %vm1481_vm5 = vcmask 588800  }
  0x2e   : > { %s13494_s6 = smov 40   ;;  %s13495_s7 = smov 120   ;;  %vm2525_vm6 = vcmask 195584   ;;  %vm3197_vm7 = vcmask 31744  }
  0x2f   : > { %s16748_s27 = smov (!%p152_p2, %s10630_s27), 15  ;;  %s13496_s8 = smov 112   ;;  %vm14964_vm8 = vmpackc.low %vm3197_vm7, %vm3197_vm7 }
  0x30   : > { %s10998_s28 = sshll.u32 %s16748_s27, 4  ;;  %s13497_s11 = smov 16  }
  0x31   : > { %s13566_s3 = scalar_lea.vmem %s16645_s0, %s10998_s28  ;;  %s13498_s12 = smov 116  }
  0x32   : > { %v13569_v0 = vld [vmem:[%s13566_s3] sm:$0xff]  ;;  %v13572_v1 = vld [vmem:[%s13566_s3 + $0x8] sm:$0xff]  ;;  %v13575_v2 = vld [vmem:[%s13566_s3 + $0x10] sm:$0xff]  ;;  %s13499_s13 = smov 124   ;;  %s13500_s14 = smov 108  }
  0x33   : > { %v179_v3 = vsel %vm178_vm0, %v13569_v0, 0.0  ;;  %v180_v4 = vsel %vm178_vm0, %v13572_v1, 0.0  ;;  %v13582_v5 = vld [vmem:[%s13566_s3 + $0x18] sm:$0xff]  ;;  %v188_v6 = vsel %vm178_vm0, %v13575_v2, 0.0  ;;  %v13587_v7 = vld [vmem:[%s13566_s3 + $0x20] sm:$0xff]  ;;  %v13590_v8 = vld [vmem:[%s13566_s3 + $0x28] sm:$0xff] }
  0x34   : > { %v181_v9 = vadd.f32 %v180_v4, %v179_v3  ;;  %v189_v10 = vsel %vm178_vm0, %v13582_v5, 0.0  ;;  %v197_v11 = vsel %vm178_vm0, %v13587_v7, 0.0  ;;  %v198_v12 = vsel %vm178_vm0, %v13590_v8, 0.0  ;;  %v13599_v13 = vld [vmem:[%s13566_s3 + $0x30] sm:$0xff]  ;;  %v13602_v14 = vld [vmem:[%s13566_s3 + $0x38] sm:$0xff]  ;;  %v13605_v15 = vld [vmem:[%s13566_s3 + $0x40] sm:$0xff] }
  0x35   : > { %v190_v16 = vadd.f32 %v189_v10, %v188_v6  ;;  %v199_v17 = vadd.f32 %v198_v12, %v197_v11  ;;  %v206_v18 = vsel %vm178_vm0, %v13599_v13, 0.0  ;;  %v207_v19 = vsel %vm178_vm0, %v13602_v14, 0.0  ;;  %v13612_v20 = vld [vmem:[%s13566_s3 + $0x48] sm:$0xff]  ;;  %v13615_v21 = vld [vmem:[%s13566_s3 + $0x50] sm:$0xff]  ;;  %v13618_v22 = vld [vmem:[%s13566_s3 + $0x58] sm:$0xff]  ;;  %s13501_s15 = smov 4  }
  0x36   : > { %v182_v23 = vrot.slane %v181_v9, 4  ;;  %v208_v24 = vadd.f32 %v207_v19, %v206_v18  ;;  %v215_v25 = vsel %vm178_vm0, %v13605_v15, 0.0  ;;  %v216_v26 = vsel %vm178_vm0, %v13612_v20, 0.0  ;;  %v13625_v27 = vld [vmem:[%s13566_s3 + $0x60] sm:$0xff]  ;;  %v13630_v32 = vld [vmem:[%s13566_s3 + $0x68] sm:$0xff]  ;;  %v13633_v33 = vld [vmem:[%s13566_s3 + $0x70] sm:$0xff] }
  0x37   : > { %v191_v28 = vrot.slane %v190_v16, 4  ;;  %v200_v29 = vrot.slane %v199_v17, 4  ;;  %v217_v30 = vadd.f32 %v216_v26, %v215_v25  ;;  %v224_v31 = vsel %vm178_vm0, %v13615_v21, 0.0  ;;  %v13640_v42 = vld [vmem:[%s13566_s3 + $0x78] sm:$0xff]  ;;  %v357_v25 = vld [vmem:[#allocation2 + $0x8] sm:$0xff]  ;;  %p158_p3 = scmp.lt.s32.totalorder %s13523_s10, 1 }
  0x38   : > { %v183_v34 = vadd.f32 %v182_v23, %v181_v9  ;;  %v209_v35 = vrot.slane %v208_v24, 4  ;;  %v225_v36 = vsel %vm178_vm0, %v13618_v22, 0.0  ;;  %v233_v37 = vsel %vm178_vm0, %v13625_v27, 0.0 }
  0x39   : > { %v192_v38 = vadd.f32 %v191_v28, %v190_v16  ;;  %v201_v39 = vadd.f32 %v200_v29, %v199_v17  ;;  %v218_v40 = vrot.slane %v217_v30, 4  ;;  %v226_v41 = vadd.f32 %v225_v36, %v224_v31  ;;  %s16750_s10 = smov (!%p158_p3, %s13523_s10), 1 }
  0x3a   : > { %v184_v43 = vrot.slane %v183_v34, 2  ;;  %v210_v44 = vadd.f32 %v209_v35, %v208_v24  ;;  %v234_v45 = vsel %vm178_vm0, %v13630_v32, 0.0  ;;  %v242_v46 = vsel %vm178_vm0, %v13633_v33, 0.0  ;;  %v356_v24 = vld [vmem:[#allocation2] sm:$0xff]  ;;  %s10633_s16 = sshll.u32 %s16750_s10, 3 }
  0x3b   : > { %v193_v47 = vrot.slane %v192_v38, 2  ;;  %v202_v48 = vrot.slane %v201_v39, 2  ;;  %v219_v49 = vadd.f32 %v218_v40, %v217_v30  ;;  %v227_v50 = vrot.slane %v226_v41, 4  ;;  %s161_s19 = scalar_lea.vmem %s16647_s2, %s10633_s16 }
  0x3c   : > { %v185_v51 = vadd.f32 %v184_v43, %v183_v34  ;;  %v211_v52 = vrot.slane %v210_v44, 2  ;;  %v235_v53 = vadd.f32 %v234_v45, %v233_v37  ;;  %v243_v54 = vsel %vm178_vm0, %v13640_v42, 0.0 }
  0x3d   : > { %v194_v55 = vadd.f32 %v193_v47, %v192_v38  ;;  %v203_v56 = vadd.f32 %v202_v48, %v201_v39  ;;  %v220_v57 = vrot.slane %v219_v49, 2  ;;  %v228_v58 = vadd.f32 %v227_v50, %v226_v41 }
  0x3e   : > { %v186_v59 = vrot.slane %v185_v51, 1  ;;  %v212_v60 = vadd.f32 %v211_v52, %v210_v44  ;;  %v236_v61 = vrot.slane %v235_v53, 4  ;;  %v244_v62 = vadd.f32 %v243_v54, %v242_v46 }
  0x3f   : > { %v195_v63 = vrot.slane %v194_v55, 1  ;;  %v204_v3 = vrot.slane %v203_v56, 1  ;;  %v221_v10 = vadd.f32 %v220_v57, %v219_v49  ;;  %v229_v11 = vrot.slane %v228_v58, 2 }
  0x40   : > { %v187_v4 = vadd.f32 %v186_v59, %v185_v51  ;;  %v213_v9 = vrot.slane %v212_v60, 1  ;;  %v237_v17 = vadd.f32 %v236_v61, %v235_v53  ;;  %v245_v18 = vrot.slane %v244_v62, 4 }
  0x41   : > { %v196_v6 = vadd.f32 %v195_v63, %v194_v55  ;;  %v205_v16 = vadd.f32 %v204_v3, %v203_v56  ;;  %v222_v29 = vrot.slane %v221_v10, 1  ;;  %v230_v30 = vadd.f32 %v229_v11, %v228_v58  ;;  %v573_v3 = vld [vmem:[#allocation2 + $0x18] sm:$0xff] }
  0x42   : > { %v252_v12 = vmul.f32 0.0625, %v187_v4  ;;  %v214_v28 = vadd.f32 %v213_v9, %v212_v60  ;;  %v238_v35 = vrot.slane %v237_v17, 2  ;;  %v246_v36 = vadd.f32 %v245_v18, %v244_v62  ;;  %v574_v4 = vld [vmem:[#allocation2 + $0x20] sm:$0xff] }
  0x43   : > { %v253_v19 = vmul.f32 0.0625, %v196_v6  ;;  %v254_v34 = vmul.f32 0.0625, %v205_v16  ;;  %v12220_v38 = vpack.c.bf16 %v357_v25, %v356_v24  ;;  %v223_v40 = vadd.f32 %v222_v29, %v221_v10 }
  0x44   : > { %v260_v23 = vsub.f32 %v13569_v0, %v252_v12  ;;  %v261_v31 = vsub.f32 %v13572_v1, %v252_v12  ;;  %v255_v39 = vmul.f32 0.0625, %v214_v28  ;;  %v231_v43 = vrot.slane %v230_v30, 1 }
  0x45   : > { %v262_v26 = vsub.f32 %v13575_v2, %v253_v19  ;;  %v263_v37 = vsub.f32 %v13582_v5, %v253_v19  ;;  %12221 = vmatprep.subr.bf16.mxu0 %v12220_v38  ;;  %v264_v41 = vsub.f32 %v13587_v7, %v254_v34  ;;  %v239_v44 = vadd.f32 %v238_v35, %v237_v17 }
  0x46   : > { %292 = vrot.lane.b32.xlu0 %v260_v23, %s13492_s4  ;;  %v247_v45 = vrot.slane %v246_v36, 2  ;;  %12223 = vmatpush3.bf16.msra.mxu0 %v12220_v38  ;;  %v265_v46 = vsub.f32 %v13590_v8, %v254_v34  ;;  %v266_v47 = vsub.f32 %v13599_v13, %v255_v39  ;;  %v256_v48 = vmul.f32 0.0625, %v223_v40 }
  0x47   : > { %296 = vrot.lane.b32.xlu1 %v262_v26, %s13492_s4  ;;  %v232_v49 = vadd.f32 %v231_v43, %v230_v30  ;;  %v240_v50 = vrot.slane %v239_v44, 1  ;;  %v267_v52 = vsub.f32 %v13602_v14, %v255_v39  ;;  %v12224_v9 = vpack.c.bf16 %v574_v4, %v573_v3 }
  0x48   : > { %v248_v51 = vadd.f32 %v247_v45, %v246_v36  ;;  %v268_v53 = vsub.f32 %v13605_v15, %v256_v48  ;;  %v269_v57 = vsub.f32 %v13612_v20, %v256_v48 }
  0x49   : > { %v257_v54 = vmul.f32 0.0625, %v232_v49  ;;  %v241_v55 = vadd.f32 %v240_v50, %v239_v44  ;;  %12225 = vmatprep.subr.bf16.mxu1 %v12224_v9  ;;  %v10634_v44 = vld [vmem:[#allocation2 + $0x10] ss:$0 sm:$0xff] }
  0x4a   : > { %294 = vrot.lane.b32.xlu0 %v261_v31, %s13492_s4  ;;  %v249_v56 = vrot.slane %v248_v51, 1  ;;  %12227 = vmatpush3.bf16.msra.mxu1 %v12224_v9 }
  0x4b   : > { %298 = vrot.lane.b32.xlu1 %v263_v37, %s13492_s4  ;;  %v270_v58 = vsub.f32 %v13615_v21, %v257_v54  ;;  %v258_v59 = vmul.f32 0.0625, %v241_v55  ;;  %v271_v61 = vsub.f32 %v13618_v22, %v257_v54 }
  0x4c   : > { %v250_v60 = vadd.f32 %v249_v56, %v248_v51 }
  0x4d   : > { %v272_v62 = vsub.f32 %v13625_v27, %v258_v59  ;;  %v273_v6 = vsub.f32 %v13630_v32, %v258_v59 }
  0x4e   : > { %300 = vrot.lane.b32.xlu0 %v264_v41, %s13492_s4  ;;  %v259_v63 = vmul.f32 0.0625, %v250_v60  ;;  %v576_v41 = vld [vmem:[#allocation2 + $0x30] sm:$0xff] }
  0x4f   : > { %302 = vrot.lane.b32.xlu1 %v265_v46, %s13492_s4 }
  0x50   : > { %v274_v10 = vsub.f32 %v13633_v33, %v259_v63  ;;  %v275_v11 = vsub.f32 %v13640_v42, %v259_v63 }
  0x52   : > { %304 = vrot.lane.b32.xlu0 %v266_v47, %s13492_s4 }
  0x53   : > { %306 = vrot.lane.b32.xlu1 %v267_v52, %s13492_s4 }
  0x56   : > { %308 = vrot.lane.b32.xlu0 %v268_v53, %s13492_s4 }
  0x57   : > { %310 = vrot.lane.b32.xlu1 %v269_v57, %s13492_s4 }
  0x5a   : > { %312 = vrot.lane.b32.xlu0 %v270_v58, %s13492_s4 }
  0x5b   : > { %314 = vrot.lane.b32.xlu1 %v271_v61, %s13492_s4 }
  0x5e   : > { %316 = vrot.lane.b32.xlu0 %v272_v62, %s13492_s4 }
  0x5f   : > { %318 = vrot.lane.b32.xlu1 %v273_v6, %s13492_s4 }
  0x62   : > { %320 = vrot.lane.b32.xlu0 %v274_v10, %s13492_s4 }
  0x63   : > { %322 = vrot.lane.b32.xlu1 %v275_v11, %s13492_s4 }
  0xb8   : > { %v293_v12 = vpop.permute.xlu0 %292 }
  0xb9   : > { %v340_v16 = vsel %vm178_vm0, %v13569_v0, %v293_v12  ;;  %v297_v17 = vpop.permute.xlu1 %296 }
  0xba   : > { %11458 = vmatprep.mubr.msk.f32.mxu0 %vm363_vm1, %v340_v16  ;;  %v342_v18 = vsel %vm178_vm0, %v13575_v2, %v297_v17 }
  0xbc   : > { %v295_v19 = vpop.permute.xlu0 %294 }
  0xbd   : > { %v341_v23 = vsel %vm178_vm0, %v13572_v1, %v295_v19  ;;  %v299_v24 = vpop.permute.xlu1 %298 }
  0xbe   : > { %11459 = vmatmul.mubr.msk.f32.vlgmr.msra.gmra.mrb[0].mxu0 %vm363_vm1, %v341_v23  ;;  %v343_v25 = vsel %vm178_vm0, %v13582_v5, %v299_v24 }
  0xbf   : > { %11461 = vmatprep.mubr.msk.f32.mxu0 %vm363_vm1, %v342_v18 }
  0xc0   : > { %v301_v26 = vpop.permute.xlu0 %300 }
  0xc1   : > { %v344_v0 = vsel %vm178_vm0, %v13587_v7, %v301_v26  ;;  %v303_v28 = vpop.permute.xlu1 %302 }
  0xc2   : > { %11462 = vmatmul.mubr.msk.f32.gmra.mrb[2].mxu0 %vm363_vm1, %v343_v25  ;;  %v345_v2 = vsel %vm178_vm0, %v13590_v8, %v303_v28 }
  0xc3   : > { %11464 = vmatprep.mubr.msk.f32.mxu0 %vm363_vm1, %v344_v0 }
  0xc4   : > { %v305_v1 = vpop.permute.xlu0 %304 }
  0xc5   : > { %v346_v29 = vsel %vm178_vm0, %v13599_v13, %v305_v1  ;;  %v307_v30 = vpop.permute.xlu1 %306 }
  0xc6   : > { %11465 = vmatmul.mubr.msk.f32.gmra.mrb[4].mxu0 %vm363_vm1, %v345_v2  ;;  %v347_v5 = vsel %vm178_vm0, %v13602_v14, %v307_v30 }
  0xc7   : > { %11467 = vmatprep.mubr.msk.f32.mxu0 %vm363_vm1, %v346_v29 }
  0xc8   : > { %v309_v7 = vpop.permute.xlu0 %308 }
  0xc9   : > { %v348_v31 = vsel %vm178_vm0, %v13605_v15, %v309_v7  ;;  %v311_v34 = vpop.permute.xlu1 %310 }
  0xca   : > { %11468 = vmatmul.mubr.msk.f32.gmra.mrb[6].mxu0 %vm363_vm1, %v347_v5  ;;  %v349_v8 = vsel %vm178_vm0, %v13612_v20, %v311_v34 }
  0xcb   : > { %11470 = vmatprep.mubr.msk.f32.mxu0 %vm363_vm1, %v348_v31 }
  0xcc   : > { %v313_v13 = vpop.permute.xlu0 %312 }
  0xcd   : > { %v350_v35 = vsel %vm178_vm0, %v13615_v21, %v313_v13  ;;  %v315_v36 = vpop.permute.xlu1 %314 }
  0xce   : > { %11471 = vmatmul.mubr.msk.f32.gmra.mrb[8].mxu0 %vm363_vm1, %v349_v8  ;;  %v351_v14 = vsel %vm178_vm0, %v13618_v22, %v315_v36 }
  0xcf   : > { %11473 = vmatprep.mubr.msk.f32.mxu0 %vm363_vm1, %v350_v35  ;;  %v13744_v35 = vld [vmem:[#allocation2 + $0x40] ss:$0 sm:$0xff] }
  0xd0   : > { %v317_v15 = vpop.permute.xlu0 %316 }
  0xd1   : > { %v352_v37 = vsel %vm178_vm0, %v13625_v27, %v317_v15  ;;  %v319_v38 = vpop.permute.xlu1 %318  ;;  %v575_v27 = vld [vmem:[#allocation2 + $0x28] sm:$0xff] }
  0xd2   : > { %11474 = vmatmul.mubr.msk.f32.gmra.mrb[10].mxu0 %vm363_vm1, %v351_v14  ;;  %v353_v20 = vsel %vm178_vm0, %v13630_v32, %v319_v38  ;;  %v12228_v43 = vpack.c.bf16 %v576_v41, %v575_v27  ;;  %v577_v32 = vld [vmem:[#allocation2 + $0x38] sm:$0xff] }
  0xd3   : > { %11476 = vmatprep.mubr.msk.f32.mxu0 %vm363_vm1, %v352_v37 }
  0xd4   : > { %v321_v21 = vpop.permute.xlu0 %320  ;;  %12229 = vmatprep.subr.bf16.mxu1 %v12228_v43 }
  0xd5   : > { %v354_v39 = vsel %vm178_vm0, %v13633_v33, %v321_v21  ;;  %v323_v40 = vpop.permute.xlu1 %322  ;;  %12231 = vmatpush3.bf16.msra.mxu1 %v12228_v43 }
  0xd6   : > { %11477 = vmatmul.mubr.msk.f32.gmra.mrb[12].mxu0 %vm363_vm1, %v353_v20  ;;  %v355_v22 = vsel %vm178_vm0, %v13640_v42, %v323_v40  ;;  %11490 = vmatprep.subr.mxu1 %v577_v32 }
  0xd7   : > { %11479 = vmatprep.mubr.msk.f32.mxu0 %vm363_vm1, %v354_v39 }
  0xd9   : > { %11491 = vmatpush3.msra.mxu1 %v577_v32 }
  0xda   : > { %11480 = vmatmul.mubr.msk.f32.gmra.mrb[14].mxu0 %vm363_vm1, %v355_v22 }
 0x191   : > { %v11460_v33 = vpop.f32.mrb[0].mxu0 }
 0x192   : > { %v484_v45 = vadd.f32 %v11460_v33, %v10634_v44  ;;  %v478_v46 = vpop.f32.mrb[1].mxu0 }
 0x193   : > { %v479_v47 = vadd.f32 %v10634_v44, %v478_v46 }
 0x194   : > { %v558_v49 = vmax.f32 %v484_v45, 0.0 }
 0x195   : > { %v557_v48 = vmax.f32 %v479_v47, 0.0  ;;  %v11463_v42 = vpop.f32.mrb[2].mxu0 }
 0x196   : > { %v494_v50 = vadd.f32 %v11463_v42, %v10634_v44  ;;  %v488_v51 = vpop.f32.mrb[3].mxu0 }
 0x197   : > { %v489_v52 = vadd.f32 %v10634_v44, %v488_v51  ;;  %11492 = vmatprep.mubr.msk.f32.mxu1 %vm583_vm2, %v557_v48 }
 0x198   : > { %11493 = vmatmul.mubr.msk.f32.vlgmr.msra.gmra.mrb[0].mxu1 %vm583_vm2, %v558_v49  ;;  %v560_v55 = vmax.f32 %v494_v50, 0.0 }
 0x199   : > { %v559_v53 = vmax.f32 %v489_v52, 0.0  ;;  %v11466_v54 = vpop.f32.mrb[4].mxu0 }
 0x19a   : > { %v504_v56 = vadd.f32 %v11466_v54, %v10634_v44  ;;  %v498_v57 = vpop.f32.mrb[5].mxu0 }
 0x19b   : > { %v499_v58 = vadd.f32 %v10634_v44, %v498_v57  ;;  %11495 = vmatprep.mubr.msk.f32.mxu1 %vm583_vm2, %v559_v53 }
 0x19c   : > { %v562_v59 = vmax.f32 %v504_v56, 0.0  ;;  %11496 = vmatmul.mubr.msk.f32.gmra.mrb[2].mxu1 %vm583_vm2, %v560_v55 }
 0x19d   : > { %v561_v60 = vmax.f32 %v499_v58, 0.0  ;;  %v11469_v61 = vpop.f32.mrb[6].mxu0 }
 0x19e   : > { %v514_v62 = vadd.f32 %v11469_v61, %v10634_v44  ;;  %v508_v63 = vpop.f32.mrb[7].mxu0 }
 0x19f   : > { %v509_v3 = vadd.f32 %v10634_v44, %v508_v63  ;;  %11498 = vmatprep.mubr.msk.f32.mxu1 %vm583_vm2, %v561_v60 }
 0x1a0   : > { %v564_v4 = vmax.f32 %v514_v62, 0.0  ;;  %11499 = vmatmul.mubr.msk.f32.gmra.mrb[4].mxu1 %vm583_vm2, %v562_v59 }
 0x1a1   : > { %v563_v6 = vmax.f32 %v509_v3, 0.0  ;;  %v11472_v9 = vpop.f32.mrb[8].mxu0 }
 0x1a2   : > { %v524_v10 = vadd.f32 %v11472_v9, %v10634_v44  ;;  %v518_v11 = vpop.f32.mrb[9].mxu0 }
 0x1a3   : > { %v519_v12 = vadd.f32 %v10634_v44, %v518_v11  ;;  %11501 = vmatprep.mubr.msk.f32.mxu1 %vm583_vm2, %v563_v6 }
 0x1a4   : > { %v566_v16 = vmax.f32 %v524_v10, 0.0  ;;  %11502 = vmatmul.mubr.msk.f32.gmra.mrb[6].mxu1 %vm583_vm2, %v564_v4 }
 0x1a5   : > { %v565_v17 = vmax.f32 %v519_v12, 0.0  ;;  %v11475_v18 = vpop.f32.mrb[10].mxu0 }
 0x1a6   : > { %v534_v19 = vadd.f32 %v11475_v18, %v10634_v44  ;;  %v528_v23 = vpop.f32.mrb[11].mxu0 }
 0x1a7   : > { %v529_v24 = vadd.f32 %v10634_v44, %v528_v23  ;;  %11504 = vmatprep.mubr.msk.f32.mxu1 %vm583_vm2, %v565_v17 }
 0x1a8   : > { %v568_v25 = vmax.f32 %v534_v19, 0.0  ;;  %11505 = vmatmul.mubr.msk.f32.gmra.mrb[8].mxu1 %vm583_vm2, %v566_v16 }
 0x1a9   : > { %v567_v26 = vmax.f32 %v529_v24, 0.0  ;;  %v11478_v0 = vpop.f32.mrb[12].mxu0 }
 0x1aa   : > { %v544_v28 = vadd.f32 %v11478_v0, %v10634_v44  ;;  %v538_v2 = vpop.f32.mrb[13].mxu0 }
 0x1ab   : > { %v539_v1 = vadd.f32 %v10634_v44, %v538_v2  ;;  %11507 = vmatprep.mubr.msk.f32.mxu1 %vm583_vm2, %v567_v26 }
 0x1ac   : > { %v570_v29 = vmax.f32 %v544_v28, 0.0  ;;  %11508 = vmatmul.mubr.msk.f32.gmra.mrb[10].mxu1 %vm583_vm2, %v568_v25 }
 0x1ad   : > { %v569_v30 = vmax.f32 %v539_v1, 0.0  ;;  %v11481_v5 = vpop.f32.mrb[14].mxu0 }
 0x1ae   : > { %v554_v7 = vadd.f32 %v11481_v5, %v10634_v44  ;;  %v548_v31 = vpop.f32.mrb[15].mxu0 }
 0x1af   : > { %v549_v34 = vadd.f32 %v10634_v44, %v548_v31  ;;  %11510 = vmatprep.mubr.msk.f32.mxu1 %vm583_vm2, %v569_v30 }
 0x1b0   : > { %v572_v8 = vmax.f32 %v554_v7, 0.0  ;;  %11511 = vmatmul.mubr.msk.f32.gmra.mrb[12].mxu1 %vm583_vm2, %v570_v29 }
 0x1b1   : > { %v571_v13 = vmax.f32 %v549_v34, 0.0 }
 0x1b3   : > { %11513 = vmatprep.mubr.msk.f32.mxu1 %vm583_vm2, %v571_v13 }
 0x1b4   : > { %11514 = vmatmul.mubr.msk.f32.gmra.mrb[14].mxu1 %vm583_vm2, %v572_v8 }
 0x26b   : > { %v11494_v36 = vpop.f32.mrb[0].mxu1 }
 0x26c   : > { %v704_v14 = vadd.f32 %v11494_v36, %v13744_v35  ;;  %v698_v15 = vpop.f32.mrb[1].mxu1 }
 0x26d   : > { %v699_v37 = vadd.f32 %v13744_v35, %v698_v15 }
 0x26e   : > { %12969 = vtanh.f32 %v704_v14 }
 0x26f   : > { %12971 = vtanh.f32 %v699_v37  ;;  %v11497_v38 = vpop.f32.mrb[2].mxu1 }
 0x270   : > { %v714_v20 = vadd.f32 %v11497_v38, %v13744_v35  ;;  %v708_v21 = vpop.f32.mrb[3].mxu1 }
 0x271   : > { %v709_v39 = vadd.f32 %v13744_v35, %v708_v21 }
 0x272   : > { %12973 = vtanh.f32 %v714_v20 }
 0x273   : > { %12975 = vtanh.f32 %v709_v39  ;;  %v11500_v40 = vpop.f32.mrb[4].mxu1 }
 0x274   : > { %v724_v22 = vadd.f32 %v11500_v40, %v13744_v35  ;;  %v718_v27 = vpop.f32.mrb[5].mxu1 }
 0x275   : > { %v719_v41 = vadd.f32 %v13744_v35, %v718_v27 }
 0x276   : > { %12977 = vtanh.f32 %v724_v22 }
 0x277   : > { %12979 = vtanh.f32 %v719_v41  ;;  %v11503_v43 = vpop.f32.mrb[6].mxu1 }
 0x278   : > { %v13752_v32 = vpop.eup %12969  ;;  %v734_v44 = vadd.f32 %v11503_v43, %v13744_v35  ;;  %v728_v33 = vpop.f32.mrb[7].mxu1 }
 0x279   : > { %v12972_v45 = vpop.eup %12971  ;;  %v729_v46 = vadd.f32 %v13744_v35, %v728_v33  ;;  %811 = vrot.lane.b32.xlu1 %v13752_v32, %s13493_s5 }
 0x27a   : > { %12981 = vtanh.f32 %v734_v44  ;;  %809 = vrot.lane.b32.xlu0 %v12972_v45, %s13493_s5 }
 0x27b   : > { %12983 = vtanh.f32 %v729_v46  ;;  %v11506_v47 = vpop.f32.mrb[8].mxu1 }
 0x27c   : > { %v12974_v48 = vpop.eup %12973  ;;  %v744_v42 = vadd.f32 %v11506_v47, %v13744_v35  ;;  %v738_v49 = vpop.f32.mrb[9].mxu1 }
 0x27d   : > { %v12976_v50 = vpop.eup %12975  ;;  %v739_v51 = vadd.f32 %v13744_v35, %v738_v49  ;;  %815 = vrot.lane.b32.xlu1 %v12974_v48, %s13493_s5 }
 0x27e   : > { %12985 = vtanh.f32 %v744_v42  ;;  %813 = vrot.lane.b32.xlu0 %v12976_v50, %s13493_s5 }
 0x27f   : > { %12987 = vtanh.f32 %v739_v51  ;;  %v11509_v52 = vpop.f32.mrb[10].mxu1 }
 0x280   : > { %v12978_v53 = vpop.eup %12977  ;;  %v754_v54 = vadd.f32 %v11509_v52, %v13744_v35  ;;  %v748_v55 = vpop.f32.mrb[11].mxu1 }
 0x281   : > { %v12980_v56 = vpop.eup %12979  ;;  %v749_v57 = vadd.f32 %v13744_v35, %v748_v55  ;;  %819 = vrot.lane.b32.xlu1 %v12978_v53, %s13493_s5 }
 0x282   : > { %12989 = vtanh.f32 %v754_v54  ;;  %817 = vrot.lane.b32.xlu0 %v12980_v56, %s13493_s5 }
 0x283   : > { %12991 = vtanh.f32 %v749_v57  ;;  %v11512_v58 = vpop.f32.mrb[12].mxu1 }
 0x284   : > { %v12982_v59 = vpop.eup %12981  ;;  %v764_v60 = vadd.f32 %v11512_v58, %v13744_v35  ;;  %v758_v61 = vpop.f32.mrb[13].mxu1 }
 0x285   : > { %v12984_v62 = vpop.eup %12983  ;;  %v759_v63 = vadd.f32 %v13744_v35, %v758_v61  ;;  %823 = vrot.lane.b32.xlu1 %v12982_v59, %s13493_s5 }
 0x286   : > { %12993 = vtanh.f32 %v764_v60  ;;  %821 = vrot.lane.b32.xlu0 %v12984_v62, %s13493_s5 }
 0x287   : > { %12995 = vtanh.f32 %v759_v63  ;;  %v11515_v3 = vpop.f32.mrb[14].mxu1 }
 0x288   : > { %v12986_v4 = vpop.eup %12985  ;;  %v774_v6 = vadd.f32 %v11515_v3, %v13744_v35  ;;  %v768_v9 = vpop.f32.mrb[15].mxu1 }
 0x289   : > { %v12988_v10 = vpop.eup %12987  ;;  %v769_v11 = vadd.f32 %v13744_v35, %v768_v9  ;;  %827 = vrot.lane.b32.xlu1 %v12986_v4, %s13493_s5 }
 0x28a   : > { %12997 = vtanh.f32 %v774_v6  ;;  %825 = vrot.lane.b32.xlu0 %v12988_v10, %s13493_s5 }
 0x28b   : > { %12999 = vtanh.f32 %v769_v11 }
 0x28c   : > { %v12990_v12 = vpop.eup %12989 }
 0x28d   : > { %v12992_v16 = vpop.eup %12991  ;;  %831 = vrot.lane.b32.xlu1 %v12990_v12, %s13493_s5 }
 0x28e   : > { %829 = vrot.lane.b32.xlu0 %v12992_v16, %s13493_s5 }
 0x290   : > { %v13777_v17 = vpop.eup %12993 }
 0x291   : > { %v13779_v18 = vpop.eup %12995  ;;  %835 = vrot.lane.b32.xlu1 %v13777_v17, %s13493_s5 }
 0x292   : > { %833 = vrot.lane.b32.xlu0 %v13779_v18, %s13493_s5 }
 0x294   : > { %v13785_v19 = vpop.eup %12997 }
 0x295   : > { %v13787_v23 = vpop.eup %12999  ;;  %839 = vrot.lane.b32.xlu1 %v13785_v19, %s13493_s5 }
 0x296   : > { %837 = vrot.lane.b32.xlu0 %v13787_v23, %s13493_s5 }
 0x2eb   : > { %v812_v24 = vpop.permute.xlu1 %811 }
 0x2ec   : > { %v13794_v25 = vadd.f32 %v13752_v32, %v812_v24  ;;  %v810_v26 = vpop.permute.xlu0 %809 }
 0x2ed   : > { %v13796_v0 = vadd.f32 %v12972_v45, %v810_v26 }
 0x2ee   : > { %v874_v28 = vmul.f32 %v13794_v25, %v13794_v25 }
 0x2ef   : > { %v816_v2 = vpop.permute.xlu1 %815  ;;  %v873_v1 = vmul.f32 %v13796_v0, %v13796_v0 }
 0x2f0   : > { %v814_v29 = vpop.permute.xlu0 %813  ;;  %v893_v30 = vsel %vm889_vm3, %v874_v28, 0.0  ;;  %v13803_v5 = vadd.f32 %v12974_v48, %v816_v2 }
 0x2f1   : > { %v13805_v7 = vadd.f32 %v12976_v50, %v814_v29  ;;  %894 = vadd.xlane.f32.xlu1 %v893_v30  ;;  %v890_v31 = vsel %vm889_vm3, %v873_v1, 0.0 }
 0x2f2   : > { %891 = vadd.xlane.f32.xlu0 %v890_v31  ;;  %v876_v15 = vmul.f32 %v13803_v5, %v13803_v5 }
 0x2f3   : > { %v820_v34 = vpop.permute.xlu1 %819  ;;  %v875_v8 = vmul.f32 %v13805_v7, %v13805_v7 }
 0x2f4   : > { %v13810_v13 = vadd.f32 %v12978_v53, %v820_v34  ;;  %v818_v35 = vpop.permute.xlu0 %817  ;;  %v899_v22 = vsel %vm889_vm3, %v876_v15, 0.0 }
 0x2f5   : > { %v13812_v36 = vadd.f32 %v12980_v56, %v818_v35  ;;  %v896_v14 = vsel %vm889_vm3, %v875_v8, 0.0 }
 0x2f6   : > { %897 = vadd.xlane.f32.xlu0 %v896_v14  ;;  %v878_v21 = vmul.f32 %v13810_v13, %v13810_v13 }
 0x2f7   : > { %v824_v37 = vpop.permute.xlu1 %823  ;;  %v877_v38 = vmul.f32 %v13812_v36, %v13812_v36 }
 0x2f8   : > { %v822_v20 = vpop.permute.xlu0 %821  ;;  %v13821_v39 = vadd.f32 %v12982_v59, %v824_v37  ;;  %v905_v44 = vsel %vm889_vm3, %v878_v21, 0.0 }
 0x2f9   : > { %v13823_v40 = vadd.f32 %v12984_v62, %v822_v20  ;;  %v902_v27 = vsel %vm889_vm3, %v877_v38, 0.0 }
 0x2fa   : > { %900 = vadd.xlane.f32.xlu0 %v899_v22  ;;  %903 = vadd.xlane.f32.xlu1 %v902_v27  ;;  %v880_v47 = vmul.f32 %v13821_v39, %v13821_v39 }
 0x2fb   : > { %v828_v41 = vpop.permute.xlu1 %827  ;;  %v879_v43 = vmul.f32 %v13823_v40, %v13823_v40 }
 0x2fc   : > { %v826_v32 = vpop.permute.xlu0 %825  ;;  %v13830_v33 = vadd.f32 %v12986_v4, %v828_v41  ;;  %v911_v52 = vsel %vm889_vm3, %v880_v47, 0.0 }
 0x2fd   : > { %v13832_v45 = vadd.f32 %v12988_v10, %v826_v32  ;;  %v908_v46 = vsel %vm889_vm3, %v879_v43, 0.0 }
 0x2fe   : > { %906 = vadd.xlane.f32.xlu0 %v905_v44  ;;  %909 = vadd.xlane.f32.xlu1 %v908_v46  ;;  %v882_v54 = vmul.f32 %v13830_v33, %v13830_v33 }
 0x2ff   : > { %v832_v48 = vpop.permute.xlu1 %831  ;;  %v881_v42 = vmul.f32 %v13832_v45, %v13832_v45 }
 0x300   : > { %v13839_v49 = vadd.f32 %v12990_v12, %v832_v48  ;;  %v830_v50 = vpop.permute.xlu0 %829  ;;  %v917_v61 = vsel %vm889_vm3, %v882_v54, 0.0 }
 0x301   : > { %v13841_v51 = vadd.f32 %v12992_v16, %v830_v50  ;;  %v914_v53 = vsel %vm889_vm3, %v881_v42, 0.0 }
 0x302   : > { %912 = vadd.xlane.f32.xlu0 %v911_v52  ;;  %915 = vadd.xlane.f32.xlu1 %v914_v53  ;;  %v884_v58 = vmul.f32 %v13839_v49, %v13839_v49 }
 0x303   : > { %v836_v55 = vpop.permute.xlu1 %835  ;;  %v883_v56 = vmul.f32 %v13841_v51, %v13841_v51 }
 0x304   : > { %v834_v57 = vpop.permute.xlu0 %833  ;;  %v13852_v59 = vadd.f32 %v13777_v17, %v836_v55  ;;  %v923_v6 = vsel %vm889_vm3, %v884_v58, 0.0 }
 0x305   : > { %v13855_v60 = vadd.f32 %v13779_v18, %v834_v57  ;;  %v920_v62 = vsel %vm889_vm3, %v883_v56, 0.0 }
 0x306   : > { %918 = vadd.xlane.f32.xlu0 %v917_v61  ;;  %921 = vadd.xlane.f32.xlu1 %v920_v62  ;;  %v886_v12 = vmul.f32 %v13852_v59, %v13852_v59 }
 0x307   : > { %v840_v63 = vpop.permute.xlu1 %839  ;;  %v885_v3 = vmul.f32 %v13855_v60, %v13855_v60 }
 0x308   : > { %v838_v4 = vpop.permute.xlu0 %837  ;;  %v13863_v9 = vadd.f32 %v13785_v19, %v840_v63  ;;  %v929_v17 = vsel %vm889_vm3, %v886_v12, 0.0 }
 0x309   : > { %v13866_v10 = vadd.f32 %v13787_v23, %v838_v4  ;;  %v926_v11 = vsel %vm889_vm3, %v885_v3, 0.0 }
 0x30a   : > { %924 = vadd.xlane.f32.xlu0 %v923_v6  ;;  %927 = vadd.xlane.f32.xlu1 %v926_v11  ;;  %v888_v19 = vmul.f32 %v13863_v9, %v13863_v9 }
 0x30b   : > { %v887_v16 = vmul.f32 %v13866_v10, %v13866_v10 }
 0x30c   : > { %v935_v23 = vsel %vm889_vm3, %v888_v19, 0.0 }
 0x30d   : > { %v932_v18 = vsel %vm889_vm3, %v887_v16, 0.0 }
 0x30e   : > { %930 = vadd.xlane.f32.xlu0 %v929_v17  ;;  %933 = vadd.xlane.f32.xlu1 %v932_v18 }
 0x312   : > { %936 = vadd.xlane.f32.xlu0 %v935_v23 }
 0x37e   : > { %v895_v24 = vpop.xlane.xlu1 %894 }
 0x37f   : > { %13001 = vrsqrt.f32 %v895_v24  ;;  %v892_v26 = vpop.xlane.xlu0 %891 }
 0x380   : > { %13003 = vrsqrt.f32 %v892_v26 }
 0x383   : > { %v898_v28 = vpop.xlane.xlu0 %897 }
 0x384   : > { %13005 = vrsqrt.f32 %v898_v28 }
 0x387   : > { %v904_v2 = vpop.xlane.xlu1 %903  ;;  %v901_v1 = vpop.xlane.xlu0 %900 }
 0x388   : > { %13007 = vrsqrt.f32 %v904_v2  ;;  %v1242_v2 = vld [vmem:[#allocation2 + $0x48] sm:$0xff] }
 0x389   : > { %v13002_v29 = vpop.eup %13001  ;;  %13009 = vrsqrt.f32 %v901_v1  ;;  %v1243_v1 = vld [vmem:[#allocation2 + $0x50] sm:$0xff] }
 0x38a   : > { %v13004_v30 = vpop.eup %13003  ;;  %v955_v31 = vmul.f32 %v13002_v29, %v13794_v25  ;;  %v1244_v29 = vld [vmem:[#allocation2 + $0x58] sm:$0xff] }
 0x38b   : > { %v910_v34 = vpop.xlane.xlu1 %909  ;;  %v907_v8 = vpop.xlane.xlu0 %906  ;;  %v954_v35 = vmul.f32 %v13004_v30, %v13796_v0  ;;  %v1245_v30 = vld [vmem:[#allocation2 + $0x60] sm:$0xff] }
 0x38c   : > { %13011 = vrsqrt.f32 %v910_v34  ;;  %v971_v14 = vmax.f32 %v955_v31, 0.0  ;;  %v12236_v31 = vpack.c.bf16 %v1245_v30, %v1244_v29  ;;  %v1246_v34 = vld [vmem:[#allocation2 + $0x68] sm:$0xff]  ;;  %v13425_v29 = vld [vmem:[%s13566_s3 + $0x40] sm:$0xff] }
 0x38d   : > { %13013 = vrsqrt.f32 %v907_v8  ;;  %v970_v15 = vmax.f32 %v954_v35, 0.0  ;;  %v1248_v35 = vld [vmem:[#allocation2 + $0x78] sm:$0xff] }
 0x38e   : > { %v13006_v37 = vpop.eup %13005  ;;  %1004 = vrot.lane.b32.xlu0 %v971_v14, %s13492_s4 }
 0x38f   : > { %v916_v38 = vpop.xlane.xlu1 %915  ;;  %1002 = vrot.lane.b32.xlu1 %v970_v15, %s13492_s4  ;;  %v913_v20 = vpop.xlane.xlu0 %912  ;;  %v956_v21 = vmul.f32 %v13006_v37, %v13805_v7  ;;  %v1250_v15 = vld [vmem:[#allocation2 + $0x88] sm:$0xff]  ;;  %v1251_v37 = vld [vmem:[#allocation2 + $0x90] sm:$0xff] }
 0x390   : > { %13015 = vrsqrt.f32 %v916_v38  ;;  %v12248_v38 = vpack.c.bf16 %v1251_v37, %v1250_v15 }
 0x391   : > { %13017 = vrsqrt.f32 %v913_v20  ;;  %v972_v25 = vmax.f32 %v956_v21, 0.0  ;;  %v13417_v21 = vld [vmem:[%s13566_s3 + $0x8] sm:$0xff] }
 0x392   : > { %v13008_v22 = vpop.eup %13007 }
 0x393   : > { %v13010_v27 = vpop.eup %13009  ;;  %v922_v41 = vpop.xlane.xlu1 %921  ;;  %1006 = vrot.lane.b32.xlu1 %v972_v25, %s13492_s4  ;;  %v958_v43 = vmul.f32 %v13008_v22, %v13812_v36 }
 0x394   : > { %v919_v0 = vpop.xlane.xlu0 %918  ;;  %13019 = vrsqrt.f32 %v922_v41  ;;  %v957_v32 = vmul.f32 %v13010_v27, %v13803_v5  ;;  %v13418_v41 = vld [vmem:[%s13566_s3] sm:$0xff] }
 0x395   : > { %13021 = vrsqrt.f32 %v919_v0  ;;  %v974_v44 = vmax.f32 %v958_v43, 0.0 }
 0x396   : > { %v13012_v46 = vpop.eup %13011  ;;  %v973_v47 = vmax.f32 %v957_v32, 0.0 }
 0x397   : > { %v13014_v48 = vpop.eup %13013  ;;  %1010 = vrot.lane.b32.xlu0 %v974_v44, %s13492_s4  ;;  %v928_v7 = vpop.xlane.xlu1 %927  ;;  %v960_v50 = vmul.f32 %v13012_v46, %v13823_v40 }
 0x398   : > { %v925_v42 = vpop.xlane.xlu0 %924  ;;  %13023 = vrsqrt.f32 %v928_v7  ;;  %1008 = vrot.lane.b32.xlu1 %v973_v47, %s13492_s4  ;;  %v959_v52 = vmul.f32 %v13014_v48, %v13810_v13  ;;  %v13419_v48 = vld [vmem:[%s13566_s3 + $0x10] sm:$0xff] }
 0x399   : > { %13025 = vrsqrt.f32 %v925_v42  ;;  %v976_v36 = vmax.f32 %v960_v50, 0.0 }
 0x39a   : > { %v13016_v53 = vpop.eup %13015  ;;  %v975_v5 = vmax.f32 %v959_v52, 0.0 }
 0x39b   : > { %v13018_v54 = vpop.eup %13017  ;;  %1014 = vrot.lane.b32.xlu0 %v976_v36, %s13492_s4  ;;  %v934_v55 = vpop.xlane.xlu1 %933  ;;  %v962_v57 = vmul.f32 %v13016_v53, %v13832_v45  ;;  %v13420_v36 = vld [vmem:[%s13566_s3 + $0x18] sm:$0xff] }
 0x39c   : > { %v931_v56 = vpop.xlane.xlu0 %930  ;;  %13027 = vrsqrt.f32 %v934_v55  ;;  %1012 = vrot.lane.b32.xlu1 %v975_v5, %s13492_s4  ;;  %v961_v40 = vmul.f32 %v13018_v54, %v13821_v39 }
 0x39d   : > { %13029 = vrsqrt.f32 %v931_v56  ;;  %v978_v58 = vmax.f32 %v962_v57, 0.0  ;;  %v13421_v57 = vld [vmem:[%s13566_s3 + $0x20] sm:$0xff] }
 0x39e   : > { %v13020_v61 = vpop.eup %13019  ;;  %v977_v13 = vmax.f32 %v961_v40, 0.0 }
 0x39f   : > { %v13022_v62 = vpop.eup %13021  ;;  %1018 = vrot.lane.b32.xlu0 %v978_v58, %s13492_s4  ;;  %v964_v3 = vmul.f32 %v13020_v61, %v13841_v51 }
 0x3a0   : > { %v937_v63 = vpop.xlane.xlu0 %936  ;;  %1016 = vrot.lane.b32.xlu1 %v977_v13, %s13492_s4  ;;  %v963_v45 = vmul.f32 %v13022_v62, %v13830_v33 }
 0x3a1   : > { %13031 = vrsqrt.f32 %v937_v63  ;;  %v980_v4 = vmax.f32 %v964_v3, 0.0  ;;  %v13422_v63 = vld [vmem:[%s13566_s3 + $0x28] sm:$0xff] }
 0x3a2   : > { %v13024_v6 = vpop.eup %13023  ;;  %v979_v11 = vmax.f32 %v963_v45, 0.0 }
 0x3a3   : > { %v13026_v12 = vpop.eup %13025  ;;  %1022 = vrot.lane.b32.xlu0 %v980_v4, %s13492_s4  ;;  %v966_v39 = vmul.f32 %v13024_v6, %v13855_v60 }
 0x3a4   : > { %1020 = vrot.lane.b32.xlu1 %v979_v11, %s13492_s4  ;;  %v965_v16 = vmul.f32 %v13026_v12, %v13839_v49 }
 0x3a5   : > { %v982_v17 = vmax.f32 %v966_v39, 0.0  ;;  %v13423_v39 = vld [vmem:[%s13566_s3 + $0x30] sm:$0xff] }
 0x3a6   : > { %v13028_v18 = vpop.eup %13027  ;;  %v981_v51 = vmax.f32 %v965_v16, 0.0 }
 0x3a7   : > { %v13030_v19 = vpop.eup %13029  ;;  %1026 = vrot.lane.b32.xlu0 %v982_v17, %s13492_s4  ;;  %v968_v33 = vmul.f32 %v13028_v18, %v13866_v10  ;;  %v12232_v10 = vpack.c.bf16 %v1243_v1, %v1242_v2 }
 0x3a8   : > { %1024 = vrot.lane.b32.xlu1 %v981_v51, %s13492_s4  ;;  %v967_v23 = vmul.f32 %v13030_v19, %v13852_v59  ;;  %v1247_v59 = vld [vmem:[#allocation2 + $0x70] sm:$0xff] }
 0x3a9   : > { %v984_v24 = vmax.f32 %v968_v33, 0.0  ;;  %12233 = vmatprep.subr.bf16.mxu0 %v12232_v10  ;;  %v12240_v8 = vpack.c.bf16 %v1247_v59, %v1246_v34 }
 0x3aa   : > { %v983_v28 = vmax.f32 %v967_v23, 0.0  ;;  %12235 = vmatpush3.bf16.msra.mxu0 %v12232_v10  ;;  %v13424_v23 = vld [vmem:[%s13566_s3 + $0x38] sm:$0xff] }
 0x3ab   : > { %v13032_v26 = vpop.eup %13031  ;;  %1030 = vrot.lane.b32.xlu0 %v984_v24, %s13492_s4  ;;  %12237 = vmatprep.subr.bf16.mxu0 %v12236_v31 }
 0x3ac   : > { %v969_v60 = vmul.f32 %v13032_v26, %v13863_v9  ;;  %1028 = vrot.lane.b32.xlu1 %v983_v28, %s13492_s4  ;;  %v1249_v9 = vld [vmem:[#allocation2 + $0x80] sm:$0xff] }
 0x3ad   : > { %v12244_v14 = vpack.c.bf16 %v1249_v9, %v1248_v35  ;;  %v13426_v35 = vld [vmem:[%s13566_s3 + $0x48] sm:$0xff] }
 0x3ae   : > { %v985_v49 = vmax.f32 %v969_v60, 0.0  ;;  %12239 = vmatpush3.bf16.msra.mxu0 %v12236_v31 }
 0x3af   : > { %12241 = vmatprep.subr.bf16.mxu0 %v12240_v8 }
 0x3b0   : > { %1032 = vrot.lane.b32.xlu1 %v985_v49, %s13492_s4 }
 0x3b2   : > { %12243 = vmatpush3.bf16.msra.mxu0 %v12240_v8 }
 0x3b3   : > { %12245 = vmatprep.subr.bf16.mxu0 %v12244_v14 }
 0x3b6   : > { %12247 = vmatpush3.bf16.msra.mxu0 %v12244_v14 }
 0x3b7   : > { %12249 = vmatprep.subr.bf16.mxu0 %v12248_v38 }
 0x3ba   : > { %12251 = vmatpush3.bf16.msra.mxu0 %v12248_v38 }
 0x400   : > { %v1005_v20 = vpop.permute.xlu0 %1004 }
 0x401   : > { %v13912_v25 = vsel %vm178_vm0, %v13417_v21, %v1005_v20  ;;  %v1003_v22 = vpop.permute.xlu1 %1002  ;;  %v13427_v21 = vld [vmem:[%s13566_s3 + $0x50] sm:$0xff] }
 0x402   : > { %v1067_v27 = vsel %vm583_vm2, %v13912_v25, 0.0  ;;  %v13918_v0 = vsel %vm178_vm0, %v13418_v41, %v1003_v22 }
 0x403   : > { %v1066_v43 = vsel %vm583_vm2, %v13918_v0, 0.0 }
 0x404   : > { %v1068_v32 = vadd.f32 %v1067_v27, %v1066_v43 }
 0x405   : > { %v1007_v44 = vpop.permute.xlu1 %1006 }
 0x406   : > { %v1069_v46 = vrot.slane %v1068_v32, 4  ;;  %v13924_v7 = vsel %vm178_vm0, %v13419_v48, %v1007_v44 }
 0x407   : > { %v1075_v5 = vsel %vm583_vm2, %v13924_v7, 0.0 }
 0x408   : > { %v1070_v47 = vadd.f32 %v1069_v46, %v1068_v32 }
 0x409   : > { %v1011_v42 = vpop.permute.xlu0 %1010 }
 0x40a   : > { %v1071_v50 = vrot.slane %v1070_v47, 2  ;;  %v1009_v52 = vpop.permute.xlu1 %1008  ;;  %v13936_v40 = vsel %vm178_vm0, %v13421_v57, %v1011_v42 }
 0x40b   : > { %v13928_v53 = vsel %vm178_vm0, %v13420_v36, %v1009_v52  ;;  %v1084_v45 = vsel %vm583_vm2, %v13936_v40, 0.0 }
 0x40c   : > { %v1076_v54 = vsel %vm583_vm2, %v13928_v53, 0.0  ;;  %v1072_v55 = vadd.f32 %v1071_v50, %v1070_v47  ;;  %v13428_v47 = vld [vmem:[%s13566_s3 + $0x58] sm:$0xff] }
 0x40d   : > { %v1077_v56 = vadd.f32 %v1076_v54, %v1075_v5  ;;  %v1015_v58 = vpop.permute.xlu0 %1014 }
 0x40e   : > { %v1013_v61 = vpop.permute.xlu1 %1012  ;;  %v1073_v13 = vrot.slane %v1072_v55, 1  ;;  %v13948_v16 = vsel %vm178_vm0, %v13423_v39, %v1015_v58 }
 0x40f   : > { %v1078_v62 = vrot.slane %v1077_v56, 4  ;;  %v13940_v3 = vsel %vm178_vm0, %v13422_v63, %v1013_v61  ;;  %v1093_v26 = vsel %vm583_vm2, %v13948_v16, 0.0 }
 0x410   : > { %v1085_v4 = vsel %vm583_vm2, %v13940_v3, 0.0  ;;  %v1074_v6 = vadd.f32 %v1073_v13, %v1072_v55  ;;  %v13429_v55 = vld [vmem:[%s13566_s3 + $0x60] sm:$0xff] }
 0x411   : > { %v1079_v11 = vadd.f32 %v1078_v62, %v1077_v56  ;;  %v1086_v12 = vadd.f32 %v1085_v4, %v1084_v45  ;;  %v1019_v17 = vpop.permute.xlu0 %1018 }
 0x412   : > { %v1017_v18 = vpop.permute.xlu1 %1016  ;;  %v1138_v51 = vmul.f32 0.0625, %v1074_v6  ;;  %v13962_v10 = vsel %vm178_vm0, %v13425_v29, %v1019_v17  ;;  %v13430_v6 = vld [vmem:[%s13566_s3 + $0x68] sm:$0xff] }
 0x413   : > { %v1080_v19 = vrot.slane %v1079_v11, 2  ;;  %v1087_v33 = vrot.slane %v1086_v12, 4  ;;  %v13952_v24 = vsel %vm178_vm0, %v13424_v23, %v1017_v18  ;;  %v1102_v14 = vsel %vm583_vm2, %v13962_v10, 0.0 }
 0x414   : > { %v1094_v28 = vsel %vm583_vm2, %v13952_v24, 0.0  ;;  %v1147_v60 = vsub.f32 %v13912_v25, %v1138_v51  ;;  %v1146_v49 = vsub.f32 %v13918_v0, %v1138_v51 }
 0x415   : > { %v1088_v2 = vadd.f32 %v1087_v33, %v1086_v12  ;;  %v1095_v1 = vadd.f32 %v1094_v28, %v1093_v26  ;;  %v1023_v30 = vpop.permute.xlu0 %1022  ;;  %v1081_v31 = vadd.f32 %v1080_v19, %v1079_v11  ;;  %v13431_v33 = vld [vmem:[%s13566_s3 + $0x70] sm:$0xff] }
 0x416   : > { %v1021_v34 = vpop.permute.xlu1 %1020  ;;  %1180 = vrot.lane.b32.xlu1 %v1147_v60, %s13494_s6  ;;  %1178 = vrot.lane.b32.xlu0 %v1146_v49, %s13494_s6  ;;  %v13976_v22 = vsel %vm178_vm0, %v13427_v21, %v1023_v30  ;;  %v13432_v30 = vld [vmem:[%s13566_s3 + $0x78] sm:$0xff] }
 0x417   : > { %v1089_v59 = vrot.slane %v1088_v2, 2  ;;  %v1096_v8 = vrot.slane %v1095_v1, 4  ;;  %v13968_v9 = vsel %vm178_vm0, %v13426_v35, %v1021_v34  ;;  %v1082_v37 = vrot.slane %v1081_v31, 1 }
 0x418   : > { %v1103_v15 = vsel %vm583_vm2, %v13968_v9, 0.0  ;;  %v1111_v42 = vsel %vm583_vm2, %v13976_v22, 0.0 }
 0x419   : > { %v1097_v38 = vadd.f32 %v1096_v8, %v1095_v1  ;;  %v1104_v20 = vadd.f32 %v1103_v15, %v1102_v14  ;;  %v1027_v27 = vpop.permute.xlu0 %1026  ;;  %v1090_v41 = vadd.f32 %v1089_v59, %v1088_v2  ;;  %v1083_v32 = vadd.f32 %v1082_v37, %v1081_v31 }
 0x41a   : > { %v1025_v43 = vpop.permute.xlu1 %1024  ;;  %v13988_v56 = vsel %vm178_vm0, %v13429_v55, %v1027_v27 }
 0x41b   : > { %v1098_v44 = vrot.slane %v1097_v38, 2  ;;  %v1105_v46 = vrot.slane %v1104_v20, 4  ;;  %v13980_v48 = vsel %vm178_vm0, %v13428_v47, %v1025_v43  ;;  %v1139_v52 = vmul.f32 0.0625, %v1083_v32 }
 0x41c   : > { %v1112_v50 = vsel %vm583_vm2, %v13980_v48, 0.0  ;;  %v1091_v36 = vrot.slane %v1090_v41, 1  ;;  %v1120_v12 = vsel %vm583_vm2, %v13988_v56, 0.0 }
 0x41d   : > { %v1106_v5 = vadd.f32 %v1105_v46, %v1104_v20  ;;  %v1113_v54 = vadd.f32 %v1112_v50, %v1111_v42  ;;  %v1099_v57 = vadd.f32 %v1098_v44, %v1097_v38  ;;  %v1031_v61 = vpop.permute.xlu0 %1030  ;;  %v1149_v13 = vsub.f32 %v13928_v53, %v1139_v52 }
 0x41e   : > { %v1029_v58 = vpop.permute.xlu1 %1028  ;;  %v1148_v62 = vsub.f32 %v13924_v7, %v1139_v52  ;;  %v1092_v63 = vadd.f32 %v1091_v36, %v1090_v41  ;;  %v14004_v23 = vsel %vm178_vm0, %v13431_v33, %v1031_v61  ;;  %v1468_v61 = vld [vmem:[#allocation2 + $0xa8] sm:$0xff] }
 0x41f   : > { %v1107_v45 = vrot.slane %v1106_v5, 2  ;;  %v1114_v4 = vrot.slane %v1113_v54, 4  ;;  %v13994_v11 = vsel %vm178_vm0, %v13430_v6, %v1029_v58  ;;  %1184 = vrot.lane.b32.xlu1 %v1149_v13, %s13494_s6  ;;  %v1100_v18 = vrot.slane %v1099_v57, 1  ;;  %v1467_v58 = vld [vmem:[#allocation2 + $0xa0] sm:$0xff] }
 0x420   : > { %v1121_v39 = vsel %vm583_vm2, %v13994_v11, 0.0  ;;  %1182 = vrot.lane.b32.xlu0 %v1148_v62, %s13494_s6  ;;  %v1140_v17 = vmul.f32 0.0625, %v1092_v63  ;;  %v1129_v59 = vsel %vm583_vm2, %v14004_v23, 0.0  ;;  %v12252_v62 = vpack.c.bf16 %v1468_v61, %v1467_v58  ;;  %v1469_v63 = vld [vmem:[#allocation2 + $0xb0] sm:$0xff] }
 0x421   : > { %v1115_v51 = vadd.f32 %v1114_v4, %v1113_v54  ;;  %v1122_v19 = vadd.f32 %v1121_v39, %v1120_v12  ;;  %v1108_v26 = vadd.f32 %v1107_v45, %v1106_v5  ;;  %v1101_v2 = vadd.f32 %v1100_v18, %v1099_v57  ;;  %v1470_v45 = vld [vmem:[#allocation2 + $0xb8] sm:$0xff] }
 0x422   : > { %v1033_v28 = vpop.permute.xlu1 %1032  ;;  %v1151_v60 = vsub.f32 %v13940_v3, %v1140_v17  ;;  %v1150_v49 = vsub.f32 %v13936_v40, %v1140_v17  ;;  %12253 = vmatprep.subr.bf16.mxu0 %v12252_v62  ;;  %v12256_v39 = vpack.c.bf16 %v1470_v45, %v1469_v63  ;;  %12608 = vmatprep.subr.bf16.mxu1 %v12252_v62 }
 0x423   : > { %v1116_v1 = vrot.slane %v1115_v51, 2  ;;  %v1123_v29 = vrot.slane %v1122_v19, 4  ;;  %v14010_v31 = vsel %vm178_vm0, %v13432_v30, %v1033_v28  ;;  %v1109_v34 = vrot.slane %v1108_v26, 1  ;;  %12613 = vmatpush3.bf16.msra.mxu1 %v12252_v62 }
 0x424   : > { %v1130_v8 = vsel %vm583_vm2, %v14010_v31, 0.0  ;;  %1188 = vrot.lane.b32.xlu1 %v1151_v60, %s13494_s6  ;;  %1186 = vrot.lane.b32.xlu0 %v1150_v49, %s13494_s6  ;;  %v1141_v35 = vmul.f32 0.0625, %v1101_v2 }
 0x425   : > { %v1124_v14 = vadd.f32 %v1123_v29, %v1122_v19  ;;  %v1131_v15 = vadd.f32 %v1130_v8, %v1129_v59  ;;  %v1110_v37 = vadd.f32 %v1109_v34, %v1108_v26  ;;  %v1117_v38 = vadd.f32 %v1116_v1, %v1115_v51  ;;  %v1471_v51 = vld [vmem:[#allocation2 + $0xc0] sm:$0xff]  ;;  %v1472_v19 = vld [vmem:[#allocation2 + $0xc8] sm:$0xff]  ;;  %12609 = vmatprep.subr.bf16.mxu1 %v12256_v39 }
 0x426   : > { %v1153_v20 = vsub.f32 %v13952_v24, %v1141_v35  ;;  %v1152_v21 = vsub.f32 %v13948_v16, %v1141_v35  ;;  %v12260_v60 = vpack.c.bf16 %v1472_v19, %v1471_v51 }
 0x427   : > { %v1125_v27 = vrot.slane %v1124_v14, 2  ;;  %v1132_v41 = vrot.slane %v1131_v15, 4  ;;  %v1142_v43 = vmul.f32 0.0625, %v1110_v37  ;;  %v1118_v32 = vrot.slane %v1117_v38, 1  ;;  %12614 = vmatpush3.bf16.msra.mxu1 %v12256_v39 }
 0x428   : > { %1192 = vrot.lane.b32.xlu1 %v1153_v20, %s13494_s6  ;;  %1190 = vrot.lane.b32.xlu0 %v1152_v21, %s13494_s6 }
 0x429   : > { %v1133_v44 = vadd.f32 %v1132_v41, %v1131_v15  ;;  %v1155_v46 = vsub.f32 %v13968_v9, %v1142_v43  ;;  %v1154_v47 = vsub.f32 %v13962_v10, %v1142_v43  ;;  %v1119_v42 = vadd.f32 %v1118_v32, %v1117_v38  ;;  %12610 = vmatprep.subr.bf16.mxu1 %v12260_v60 }
 0x42a   : > { %v1126_v50 = vadd.f32 %v1125_v27, %v1124_v14 }
 0x42b   : > { %v1134_v52 = vrot.slane %v1133_v44, 2  ;;  %v1143_v36 = vmul.f32 0.0625, %v1119_v42  ;;  %12615 = vmatpush3.bf16.msra.mxu1 %v12260_v60 }
 0x42c   : > { %1196 = vrot.lane.b32.xlu1 %v1155_v46, %s13494_s6  ;;  %1194 = vrot.lane.b32.xlu0 %v1154_v47, %s13494_s6  ;;  %v1127_v5 = vrot.slane %v1126_v50, 1  ;;  %v1474_v46 = vld [vmem:[#allocation2 + $0xd8] sm:$0xff] }
 0x42d   : > { %v1157_v54 = vsub.f32 %v13980_v48, %v1143_v36  ;;  %v1156_v55 = vsub.f32 %v13976_v22, %v1143_v36  ;;  %v1135_v57 = vadd.f32 %v1134_v52, %v1133_v44 }
 0x42e   : > { %v1128_v13 = vadd.f32 %v1127_v5, %v1126_v50 }
 0x42f   : > { %v1136_v4 = vrot.slane %v1135_v57, 1 }
 0x430   : > { %1200 = vrot.lane.b32.xlu1 %v1157_v54, %s13494_s6  ;;  %1198 = vrot.lane.b32.xlu0 %v1156_v55, %s13494_s6  ;;  %v1144_v6 = vmul.f32 0.0625, %v1128_v13 }
 0x431   : > { %v1137_v12 = vadd.f32 %v1136_v4, %v1135_v57 }
 0x432   : > { %v1159_v17 = vsub.f32 %v13994_v11, %v1144_v6  ;;  %v1158_v18 = vsub.f32 %v13988_v56, %v1144_v6 }
 0x433   : > { %v1145_v33 = vmul.f32 0.0625, %v1137_v12 }
 0x434   : > { %1204 = vrot.lane.b32.xlu1 %v1159_v17, %s13494_s6  ;;  %1202 = vrot.lane.b32.xlu0 %v1158_v18, %s13494_s6 }
 0x435   : > { %v1161_v26 = vsub.f32 %v14010_v31, %v1145_v33  ;;  %v1160_v28 = vsub.f32 %v14004_v23, %v1145_v33 }
 0x438   : > { %1208 = vrot.lane.b32.xlu1 %v1161_v26, %s13494_s6  ;;  %1206 = vrot.lane.b32.xlu0 %v1160_v28, %s13494_s6 }
 0x488   : > { %v1181_v49 = vpop.permute.xlu1 %1180  ;;  %v1179_v2 = vpop.permute.xlu0 %1178 }
 0x489   : > { %v1227_v1 = vsel %vm583_vm2, %v13912_v25, %v1181_v49  ;;  %v1226_v29 = vsel %vm583_vm2, %v13918_v0, %v1179_v2 }
 0x48a   : > { %11536 = vmatprep.mubr.msk.f32.mxu0 %vm1257_vm4, %v1226_v29 }
 0x48b   : > { %11537 = vmatmul.mubr.msk.f32.vlgmr.msra.gmra.mrb[16].mxu0 %vm1257_vm4, %v1227_v1 }
 0x48c   : > { %12255 = vmatpush3.bf16.msra.mxu0 %v12252_v62 }
 0x48d   : > { %12257 = vmatprep.subr.bf16.mxu0 %v12256_v39 }
 0x490   : > { %12259 = vmatpush3.bf16.msra.mxu0 %v12256_v39 }
 0x491   : > { %12261 = vmatprep.subr.bf16.mxu0 %v12260_v60  ;;  %v1185_v30 = vpop.permute.xlu1 %1184 }
 0x492   : > { %v1183_v34 = vpop.permute.xlu0 %1182  ;;  %v1229_v59 = vsel %vm583_vm2, %v13928_v53, %v1185_v30 }
 0x493   : > { %v1228_v8 = vsel %vm583_vm2, %v13924_v7, %v1183_v34 }
 0x494   : > { %11539 = vmatprep.mubr.msk.f32.mxu0 %vm1257_vm4, %v1228_v8  ;;  %12263 = vmatpush3.bf16.msra.mxu0 %v12260_v60 }
 0x495   : > { %11540 = vmatmul.mubr.msk.f32.gmra.mrb[18].mxu0 %vm1257_vm4, %v1229_v59 }
 0x496   : > { %v1189_v25 = vpop.permute.xlu1 %1188  ;;  %v1187_v0 = vpop.permute.xlu0 %1186 }
 0x497   : > { %v1231_v35 = vsel %vm583_vm2, %v13940_v3, %v1189_v25  ;;  %v1230_v14 = vsel %vm583_vm2, %v13936_v40, %v1187_v0 }
 0x498   : > { %11542 = vmatprep.mubr.msk.f32.mxu0 %vm1257_vm4, %v1230_v14 }
 0x499   : > { %11543 = vmatmul.mubr.msk.f32.gmra.mrb[20].mxu0 %vm1257_vm4, %v1231_v35 }
 0x49a   : > { %v1193_v53 = vpop.permute.xlu1 %1192  ;;  %v1191_v15 = vpop.permute.xlu0 %1190 }
 0x49b   : > { %v1233_v7 = vsel %vm583_vm2, %v13952_v24, %v1193_v53  ;;  %v1232_v37 = vsel %vm583_vm2, %v13948_v16, %v1191_v15 }
 0x49c   : > { %11545 = vmatprep.mubr.msk.f32.mxu0 %vm1257_vm4, %v1232_v37 }
 0x49d   : > { %11546 = vmatmul.mubr.msk.f32.gmra.mrb[22].mxu0 %vm1257_vm4, %v1233_v7 }
 0x49e   : > { %v1197_v3 = vpop.permute.xlu1 %1196  ;;  %v1195_v38 = vpop.permute.xlu0 %1194 }
 0x49f   : > { %v1235_v40 = vsel %vm583_vm2, %v13968_v9, %v1197_v3  ;;  %v1234_v20 = vsel %vm583_vm2, %v13962_v10, %v1195_v38 }
 0x4a0   : > { %11548 = vmatprep.mubr.msk.f32.mxu0 %vm1257_vm4, %v1234_v20 }
 0x4a1   : > { %11549 = vmatmul.mubr.msk.f32.gmra.mrb[24].mxu0 %vm1257_vm4, %v1235_v40 }
 0x4a2   : > { %v1201_v24 = vpop.permute.xlu1 %1200  ;;  %v1199_v21 = vpop.permute.xlu0 %1198 }
 0x4a3   : > { %v1237_v16 = vsel %vm583_vm2, %v13980_v48, %v1201_v24  ;;  %v1236_v27 = vsel %vm583_vm2, %v13976_v22, %v1199_v21  ;;  %v14102_v21 = vld [vmem:[#allocation2 + $0xe8] ss:$0 sm:$0xff] }
 0x4a4   : > { %11551 = vmatprep.mubr.msk.f32.mxu0 %vm1257_vm4, %v1236_v27 }
 0x4a5   : > { %11552 = vmatmul.mubr.msk.f32.gmra.mrb[26].mxu0 %vm1257_vm4, %v1237_v16 }
 0x4a6   : > { %v1205_v9 = vpop.permute.xlu1 %1204  ;;  %v1203_v41 = vpop.permute.xlu0 %1202 }
 0x4a7   : > { %v1239_v10 = vsel %vm583_vm2, %v13994_v11, %v1205_v9  ;;  %v1238_v43 = vsel %vm583_vm2, %v13988_v56, %v1203_v41  ;;  %v1473_v11 = vld [vmem:[#allocation2 + $0xd0] sm:$0xff]  ;;  %v1475_v56 = vld [vmem:[#allocation2 + $0xe0] sm:$0xff] }
 0x4a8   : > { %11554 = vmatprep.mubr.msk.f32.mxu0 %vm1257_vm4, %v1238_v43  ;;  %v12264_v47 = vpack.c.bf16 %v1474_v46, %v1473_v11 }
 0x4a9   : > { %11555 = vmatmul.mubr.msk.f32.gmra.mrb[28].mxu0 %vm1257_vm4, %v1239_v10 }
 0x4aa   : > { %v1209_v48 = vpop.permute.xlu1 %1208  ;;  %v1207_v32 = vpop.permute.xlu0 %1206  ;;  %12265 = vmatprep.subr.bf16.mxu0 %v12264_v47  ;;  %12611 = vmatprep.subr.bf16.mxu1 %v12264_v47 }
 0x4ab   : > { %v1241_v22 = vsel %vm583_vm2, %v14010_v31, %v1209_v48  ;;  %v1240_v44 = vsel %vm583_vm2, %v14004_v23, %v1207_v32  ;;  %12267 = vmatpush3.bf16.msra.mxu0 %v12264_v47  ;;  %12616 = vmatpush3.bf16.msra.mxu1 %v12264_v47  ;;  %v10668_v31 = vld [vmem:[#allocation2 + $0x98] ss:$0 sm:$0xff] }
 0x4ac   : > { %11557 = vmatprep.mubr.msk.f32.mxu0 %vm1257_vm4, %v1240_v44  ;;  %11576 = vmatprep.subr.mxu0 %v1475_v56 }
 0x4ad   : > { %11558 = vmatmul.mubr.msk.f32.gmra.mrb[30].mxu0 %vm1257_vm4, %v1241_v22  ;;  %12612 = vmatprep.subr.mxu1 %v1475_v56 }
 0x4af   : > { %11577 = vmatpush3.msra.mxu0 %v1475_v56  ;;  %12617 = vmatpush3.msra.mxu1 %v1475_v56 }
 0x55e   : > { %v11538_v42 = vpop.f32.mrb[16].mxu0 }
 0x55f   : > { %v1378_v50 = vadd.f32 %v11538_v42, %v10668_v31  ;;  %v1372_v23 = vpop.f32.mrb[17].mxu0 }
 0x560   : > { %v1373_v52 = vadd.f32 %v10668_v31, %v1372_v23 }
 0x561   : > { %v1452_v5 = vmax.f32 %v1378_v50, 0.0 }
 0x562   : > { %v1451_v36 = vmax.f32 %v1373_v52, 0.0 }
 0x564   : > { %11578 = vmatprep.mubr.msk.f32.mxu0 %vm1481_vm5, %v1451_v36 }
 0x565   : > { %11579 = vmatmul.mubr.msk.f32.vlgmr.msra.gmra.mrb[32].mxu0 %vm1481_vm5, %v1452_v5 }
 0x568   : > { %v11541_v54 = vpop.f32.mrb[18].mxu0 }
 0x569   : > { %v1388_v55 = vadd.f32 %v11541_v54, %v10668_v31  ;;  %v1382_v57 = vpop.f32.mrb[19].mxu0 }
 0x56a   : > { %v1383_v58 = vadd.f32 %v10668_v31, %v1382_v57 }
 0x56b   : > { %v1454_v62 = vmax.f32 %v1388_v55, 0.0 }
 0x56c   : > { %v1453_v61 = vmax.f32 %v1383_v58, 0.0  ;;  %v11544_v13 = vpop.f32.mrb[20].mxu0 }
 0x56d   : > { %v1398_v63 = vadd.f32 %v11544_v13, %v10668_v31  ;;  %v1392_v45 = vpop.f32.mrb[21].mxu0 }
 0x56e   : > { %v1393_v4 = vadd.f32 %v10668_v31, %v1392_v45  ;;  %11581 = vmatprep.mubr.msk.f32.mxu0 %vm1481_vm5, %v1453_v61 }
 0x56f   : > { %11582 = vmatmul.mubr.msk.f32.gmra.mrb[34].mxu0 %vm1481_vm5, %v1454_v62  ;;  %v1456_v39 = vmax.f32 %v1398_v63, 0.0 }
 0x570   : > { %v1455_v6 = vmax.f32 %v1393_v4, 0.0  ;;  %v11547_v12 = vpop.f32.mrb[22].mxu0 }
 0x571   : > { %v1408_v17 = vadd.f32 %v11547_v12, %v10668_v31  ;;  %v1402_v18 = vpop.f32.mrb[23].mxu0 }
 0x572   : > { %v1403_v51 = vadd.f32 %v10668_v31, %v1402_v18  ;;  %11584 = vmatprep.mubr.msk.f32.mxu0 %vm1481_vm5, %v1455_v6 }
 0x573   : > { %11585 = vmatmul.mubr.msk.f32.gmra.mrb[36].mxu0 %vm1481_vm5, %v1456_v39  ;;  %v1458_v26 = vmax.f32 %v1408_v17, 0.0 }
 0x574   : > { %v1457_v19 = vmax.f32 %v1403_v51, 0.0  ;;  %v11550_v33 = vpop.f32.mrb[24].mxu0 }
 0x575   : > { %v1418_v28 = vadd.f32 %v11550_v33, %v10668_v31  ;;  %v1412_v60 = vpop.f32.mrb[25].mxu0 }
 0x576   : > { %v1413_v49 = vadd.f32 %v10668_v31, %v1412_v60  ;;  %11587 = vmatprep.mubr.msk.f32.mxu1 %vm1481_vm5, %v1457_v19 }
 0x577   : > { %11588 = vmatmul.mubr.msk.f32.vlgmr.msra.gmra.mrb[16].mxu1 %vm1481_vm5, %v1458_v26  ;;  %v1460_v29 = vmax.f32 %v1418_v28, 0.0 }
 0x578   : > { %v1459_v2 = vmax.f32 %v1413_v49, 0.0  ;;  %v11553_v1 = vpop.f32.mrb[26].mxu0 }
 0x579   : > { %v1428_v30 = vadd.f32 %v11553_v1, %v10668_v31  ;;  %v1422_v34 = vpop.f32.mrb[27].mxu0 }
 0x57a   : > { %v1423_v59 = vadd.f32 %v10668_v31, %v1422_v34  ;;  %11590 = vmatprep.mubr.msk.f32.mxu1 %vm1481_vm5, %v1459_v2 }
 0x57b   : > { %11591 = vmatmul.mubr.msk.f32.gmra.mrb[18].mxu1 %vm1481_vm5, %v1460_v29  ;;  %v1462_v0 = vmax.f32 %v1428_v30, 0.0 }
 0x57c   : > { %v1461_v8 = vmax.f32 %v1423_v59, 0.0  ;;  %v11556_v25 = vpop.f32.mrb[28].mxu0 }
 0x57d   : > { %v1438_v35 = vadd.f32 %v11556_v25, %v10668_v31  ;;  %v1432_v14 = vpop.f32.mrb[29].mxu0 }
 0x57e   : > { %v1433_v53 = vadd.f32 %v10668_v31, %v1432_v14  ;;  %11593 = vmatprep.mubr.msk.f32.mxu1 %vm1481_vm5, %v1461_v8 }
 0x57f   : > { %11594 = vmatmul.mubr.msk.f32.gmra.mrb[20].mxu1 %vm1481_vm5, %v1462_v0  ;;  %v1464_v37 = vmax.f32 %v1438_v35, 0.0 }
 0x580   : > { %v1463_v15 = vmax.f32 %v1433_v53, 0.0  ;;  %v11559_v7 = vpop.f32.mrb[30].mxu0 }
 0x581   : > { %v1448_v3 = vadd.f32 %v11559_v7, %v10668_v31  ;;  %v1442_v38 = vpop.f32.mrb[31].mxu0 }
 0x582   : > { %v1443_v40 = vadd.f32 %v10668_v31, %v1442_v38  ;;  %11596 = vmatprep.mubr.msk.f32.mxu1 %vm1481_vm5, %v1463_v15 }
 0x583   : > { %11597 = vmatmul.mubr.msk.f32.gmra.mrb[22].mxu1 %vm1481_vm5, %v1464_v37  ;;  %v1466_v24 = vmax.f32 %v1448_v3, 0.0 }
 0x584   : > { %v1465_v20 = vmax.f32 %v1443_v40, 0.0 }
 0x586   : > { %11599 = vmatprep.mubr.msk.f32.mxu1 %vm1481_vm5, %v1465_v20 }
 0x587   : > { %11600 = vmatmul.mubr.msk.f32.gmra.mrb[24].mxu1 %vm1481_vm5, %v1466_v24 }
 0x638   : > { %v11580_v16 = vpop.f32.mrb[32].mxu0 }
 0x639   : > { %v1602_v27 = vadd.f32 %v11580_v16, %v14102_v21  ;;  %v1596_v9 = vpop.f32.mrb[33].mxu0 }
 0x63a   : > { %v1597_v41 = vadd.f32 %v14102_v21, %v1596_v9 }
 0x63b   : > { %13033 = vtanh.f32 %v1602_v27 }
 0x63c   : > { %13035 = vtanh.f32 %v1597_v41 }
 0x642   : > { %v11583_v10 = vpop.f32.mrb[34].mxu0 }
 0x643   : > { %v1612_v43 = vadd.f32 %v11583_v10, %v14102_v21  ;;  %v1606_v48 = vpop.f32.mrb[35].mxu0 }
 0x644   : > { %v1607_v32 = vadd.f32 %v14102_v21, %v1606_v48 }
 0x645   : > { %v14108_v22 = vpop.eup %13033  ;;  %13037 = vtanh.f32 %v1612_v43 }
 0x646   : > { %v14110_v44 = vpop.eup %13035  ;;  %13039 = vtanh.f32 %v1607_v32  ;;  %v11586_v11 = vpop.f32.mrb[36].mxu0  ;;  %1709 = vrot.lane.b32.xlu1 %v14108_v22, %s13493_s5 }
 0x647   : > { %v1622_v46 = vadd.f32 %v11586_v11, %v14102_v21  ;;  %v1616_v47 = vpop.f32.mrb[37].mxu0  ;;  %1707 = vrot.lane.b32.xlu0 %v14110_v44, %s13493_s5 }
 0x648   : > { %v1617_v56 = vadd.f32 %v14102_v21, %v1616_v47 }
 0x649   : > { %13041 = vtanh.f32 %v1622_v46 }
 0x64a   : > { %13043 = vtanh.f32 %v1617_v56  ;;  %v11589_v31 = vpop.f32.mrb[16].mxu1 }
 0x64b   : > { %v1632_v42 = vadd.f32 %v11589_v31, %v14102_v21  ;;  %v1626_v50 = vpop.f32.mrb[17].mxu1 }
 0x64c   : > { %v1627_v23 = vadd.f32 %v14102_v21, %v1626_v50 }
 0x64d   : > { %13045 = vtanh.f32 %v1632_v42 }
 0x64e   : > { %13047 = vtanh.f32 %v1627_v23  ;;  %v11592_v52 = vpop.f32.mrb[18].mxu1 }
 0x64f   : > { %v14120_v36 = vpop.eup %13037  ;;  %v1642_v5 = vadd.f32 %v11592_v52, %v14102_v21  ;;  %v1636_v54 = vpop.f32.mrb[19].mxu1 }
 0x650   : > { %v13040_v55 = vpop.eup %13039  ;;  %v1637_v57 = vadd.f32 %v14102_v21, %v1636_v54  ;;  %1713 = vrot.lane.b32.xlu1 %v14120_v36, %s13493_s5 }
 0x651   : > { %13049 = vtanh.f32 %v1642_v5  ;;  %1711 = vrot.lane.b32.xlu0 %v13040_v55, %s13493_s5 }
 0x652   : > { %13051 = vtanh.f32 %v1637_v57  ;;  %v11595_v58 = vpop.f32.mrb[20].mxu1 }
 0x653   : > { %v13042_v61 = vpop.eup %13041  ;;  %v1652_v13 = vadd.f32 %v11595_v58, %v14102_v21  ;;  %v1646_v62 = vpop.f32.mrb[21].mxu1 }
 0x654   : > { %v13044_v63 = vpop.eup %13043  ;;  %v1647_v45 = vadd.f32 %v14102_v21, %v1646_v62  ;;  %1717 = vrot.lane.b32.xlu1 %v13042_v61, %s13493_s5 }
 0x655   : > { %13053 = vtanh.f32 %v1652_v13  ;;  %1715 = vrot.lane.b32.xlu0 %v13044_v63, %s13493_s5 }
 0x656   : > { %13055 = vtanh.f32 %v1647_v45  ;;  %v11598_v4 = vpop.f32.mrb[22].mxu1 }
 0x657   : > { %v13046_v6 = vpop.eup %13045  ;;  %v1662_v12 = vadd.f32 %v11598_v4, %v14102_v21  ;;  %v1656_v39 = vpop.f32.mrb[23].mxu1 }
 0x658   : > { %v13048_v17 = vpop.eup %13047  ;;  %v1657_v18 = vadd.f32 %v14102_v21, %v1656_v39  ;;  %1721 = vrot.lane.b32.xlu1 %v13046_v6, %s13493_s5 }
 0x659   : > { %13057 = vtanh.f32 %v1662_v12  ;;  %1719 = vrot.lane.b32.xlu0 %v13048_v17, %s13493_s5 }
 0x65a   : > { %13059 = vtanh.f32 %v1657_v18  ;;  %v11601_v51 = vpop.f32.mrb[24].mxu1 }
 0x65b   : > { %v13050_v19 = vpop.eup %13049  ;;  %v1672_v33 = vadd.f32 %v11601_v51, %v14102_v21  ;;  %v1666_v26 = vpop.f32.mrb[25].mxu1 }
 0x65c   : > { %v13052_v28 = vpop.eup %13051  ;;  %v1667_v60 = vadd.f32 %v14102_v21, %v1666_v26  ;;  %1725 = vrot.lane.b32.xlu1 %v13050_v19, %s13493_s5 }
 0x65d   : > { %13061 = vtanh.f32 %v1672_v33  ;;  %1723 = vrot.lane.b32.xlu0 %v13052_v28, %s13493_s5 }
 0x65e   : > { %13063 = vtanh.f32 %v1667_v60 }
 0x65f   : > { %v13054_v49 = vpop.eup %13053 }
 0x660   : > { %v13056_v2 = vpop.eup %13055  ;;  %1729 = vrot.lane.b32.xlu1 %v13054_v49, %s13493_s5 }
 0x661   : > { %1727 = vrot.lane.b32.xlu0 %v13056_v2, %s13493_s5 }
 0x663   : > { %v14141_v1 = vpop.eup %13057 }
 0x664   : > { %v14143_v29 = vpop.eup %13059  ;;  %1733 = vrot.lane.b32.xlu1 %v14141_v1, %s13493_s5 }
 0x665   : > { %1731 = vrot.lane.b32.xlu0 %v14143_v29, %s13493_s5 }
 0x667   : > { %v14149_v30 = vpop.eup %13061 }
 0x668   : > { %v14151_v34 = vpop.eup %13063  ;;  %1737 = vrot.lane.b32.xlu1 %v14149_v30, %s13493_s5 }
 0x669   : > { %1735 = vrot.lane.b32.xlu0 %v14151_v34, %s13493_s5 }
 0x6b8   : > { %v1710_v59 = vpop.permute.xlu1 %1709 }
 0x6b9   : > { %v14158_v8 = vadd.f32 %v14108_v22, %v1710_v59  ;;  %v1708_v25 = vpop.permute.xlu0 %1707 }
 0x6ba   : > { %v14161_v0 = vadd.f32 %v14110_v44, %v1708_v25 }
 0x6bb   : > { %v1772_v35 = vmul.f32 %v14158_v8, %v14158_v8 }
 0x6bc   : > { %v1771_v14 = vmul.f32 %v14161_v0, %v14161_v0 }
 0x6bd   : > { %v1790_v53 = vsel %vm889_vm3, %v1772_v35, 0.0 }
 0x6be   : > { %1791 = vadd.xlane.f32.xlu1 %v1790_v53  ;;  %v1787_v15 = vsel %vm889_vm3, %v1771_v14, 0.0 }
 0x6bf   : > { %1788 = vadd.xlane.f32.xlu0 %v1787_v15 }
 0x6c2   : > { %v1714_v7 = vpop.permute.xlu1 %1713 }
 0x6c3   : > { %v1712_v37 = vpop.permute.xlu0 %1711  ;;  %v14170_v3 = vadd.f32 %v14120_v36, %v1714_v7 }
 0x6c4   : > { %v14172_v38 = vadd.f32 %v13040_v55, %v1712_v37 }
 0x6c5   : > { %v1774_v9 = vmul.f32 %v14170_v3, %v14170_v3 }
 0x6c6   : > { %v1718_v40 = vpop.permute.xlu1 %1717  ;;  %v1773_v20 = vmul.f32 %v14172_v38, %v14172_v38 }
 0x6c7   : > { %v14176_v24 = vadd.f32 %v13042_v61, %v1718_v40  ;;  %v1716_v21 = vpop.permute.xlu0 %1715  ;;  %v1796_v11 = vsel %vm889_vm3, %v1774_v9, 0.0 }
 0x6c8   : > { %v14178_v16 = vadd.f32 %v13044_v63, %v1716_v21  ;;  %v1793_v27 = vsel %vm889_vm3, %v1773_v20, 0.0 }
 0x6c9   : > { %1794 = vadd.xlane.f32.xlu0 %v1793_v27  ;;  %v1776_v48 = vmul.f32 %v14176_v24, %v14176_v24 }
 0x6ca   : > { %v1722_v41 = vpop.permute.xlu1 %1721  ;;  %v1775_v10 = vmul.f32 %v14178_v16, %v14178_v16 }
 0x6cb   : > { %v1720_v43 = vpop.permute.xlu0 %1719  ;;  %v14187_v32 = vadd.f32 %v13046_v6, %v1722_v41  ;;  %v1802_v31 = vsel %vm889_vm3, %v1776_v48, 0.0 }
 0x6cc   : > { %v14189_v22 = vadd.f32 %v13048_v17, %v1720_v43  ;;  %v1799_v44 = vsel %vm889_vm3, %v1775_v10, 0.0 }
 0x6cd   : > { %1800 = vadd.xlane.f32.xlu1 %v1799_v44  ;;  %1797 = vadd.xlane.f32.xlu0 %v1796_v11  ;;  %v1778_v52 = vmul.f32 %v14187_v32, %v14187_v32 }
 0x6ce   : > { %v1726_v46 = vpop.permute.xlu1 %1725  ;;  %v1777_v47 = vmul.f32 %v14189_v22, %v14189_v22 }
 0x6cf   : > { %v1724_v56 = vpop.permute.xlu0 %1723  ;;  %v14196_v42 = vadd.f32 %v13050_v19, %v1726_v46  ;;  %v1808_v61 = vsel %vm889_vm3, %v1778_v52, 0.0 }
 0x6d0   : > { %v14198_v50 = vadd.f32 %v13052_v28, %v1724_v56  ;;  %v1805_v23 = vsel %vm889_vm3, %v1777_v47, 0.0 }
 0x6d1   : > { %1806 = vadd.xlane.f32.xlu1 %v1805_v23  ;;  %1803 = vadd.xlane.f32.xlu0 %v1802_v31  ;;  %v1780_v13 = vmul.f32 %v14196_v42, %v14196_v42 }
 0x6d2   : > { %v1730_v36 = vpop.permute.xlu1 %1729  ;;  %v1779_v5 = vmul.f32 %v14198_v50, %v14198_v50 }
 0x6d3   : > { %v14205_v54 = vadd.f32 %v13054_v49, %v1730_v36  ;;  %v1728_v55 = vpop.permute.xlu0 %1727  ;;  %v1814_v17 = vsel %vm889_vm3, %v1780_v13, 0.0 }
 0x6d4   : > { %v14207_v57 = vadd.f32 %v13056_v2, %v1728_v55  ;;  %v1811_v58 = vsel %vm889_vm3, %v1779_v5, 0.0 }
 0x6d5   : > { %1812 = vadd.xlane.f32.xlu1 %v1811_v58  ;;  %1809 = vadd.xlane.f32.xlu0 %v1808_v61  ;;  %v1782_v4 = vmul.f32 %v14205_v54, %v14205_v54 }
 0x6d6   : > { %v1734_v62 = vpop.permute.xlu1 %1733  ;;  %v1781_v63 = vmul.f32 %v14207_v57, %v14207_v57 }
 0x6d7   : > { %v1732_v45 = vpop.permute.xlu0 %1731  ;;  %v14218_v6 = vadd.f32 %v14141_v1, %v1734_v62  ;;  %v1820_v33 = vsel %vm889_vm3, %v1782_v4, 0.0 }
 0x6d8   : > { %v14221_v12 = vadd.f32 %v14143_v29, %v1732_v45  ;;  %v1817_v39 = vsel %vm889_vm3, %v1781_v63, 0.0 }
 0x6d9   : > { %1818 = vadd.xlane.f32.xlu1 %v1817_v39  ;;  %1815 = vadd.xlane.f32.xlu0 %v1814_v17  ;;  %v1784_v49 = vmul.f32 %v14218_v6, %v14218_v6 }
 0x6da   : > { %v1738_v18 = vpop.permute.xlu1 %1737  ;;  %v1783_v51 = vmul.f32 %v14221_v12, %v14221_v12 }
 0x6db   : > { %v1736_v19 = vpop.permute.xlu0 %1735  ;;  %v14229_v26 = vadd.f32 %v14149_v30, %v1738_v18  ;;  %v1826_v1 = vsel %vm889_vm3, %v1784_v49, 0.0 }
 0x6dc   : > { %v14232_v28 = vadd.f32 %v14151_v34, %v1736_v19  ;;  %v1823_v60 = vsel %vm889_vm3, %v1783_v51, 0.0 }
 0x6dd   : > { %1824 = vadd.xlane.f32.xlu1 %v1823_v60  ;;  %1821 = vadd.xlane.f32.xlu0 %v1820_v33  ;;  %v1786_v30 = vmul.f32 %v14229_v26, %v14229_v26 }
 0x6de   : > { %v1785_v2 = vmul.f32 %v14232_v28, %v14232_v28 }
 0x6df   : > { %v1832_v34 = vsel %vm889_vm3, %v1786_v30, 0.0 }
 0x6e0   : > { %v1829_v29 = vsel %vm889_vm3, %v1785_v2, 0.0 }
 0x6e1   : > { %1827 = vadd.xlane.f32.xlu0 %v1826_v1  ;;  %1830 = vadd.xlane.f32.xlu1 %v1829_v29 }
 0x6e5   : > { %1833 = vadd.xlane.f32.xlu0 %v1832_v34 }
 0x74b   : > { %v1792_v59 = vpop.xlane.xlu1 %1791 }
 0x74c   : > { %13065 = vrsqrt.f32 %v1792_v59  ;;  %v1789_v25 = vpop.xlane.xlu0 %1788 }
 0x74d   : > { %13067 = vrsqrt.f32 %v1789_v25 }
 0x756   : > { %v13066_v35 = vpop.eup %13065  ;;  %v1795_v14 = vpop.xlane.xlu0 %1794 }
 0x757   : > { %v13068_v53 = vpop.eup %13067  ;;  %13069 = vrsqrt.f32 %v1795_v14  ;;  %v14245_v15 = vmul.f32 %v13066_v35, %v14158_v8 }
 0x758   : > { %v14248_v7 = vmul.f32 %v13068_v53, %v14161_v0 }
 0x759   : > { %1885 = vrot.lane.b32.xlu0 %v14245_v15, %s13495_s7 }
 0x75a   : > { %v1801_v37 = vpop.xlane.xlu1 %1800  ;;  %v1798_v40 = vpop.xlane.xlu0 %1797  ;;  %1883 = vrot.lane.b32.xlu1 %v14248_v7, %s13495_s7 }
 0x75b   : > { %13071 = vrsqrt.f32 %v1801_v37 }
 0x75c   : > { %13073 = vrsqrt.f32 %v1798_v40 }
 0x75e   : > { %v1807_v20 = vpop.xlane.xlu1 %1806  ;;  %v1804_v21 = vpop.xlane.xlu0 %1803 }
 0x75f   : > { %13075 = vrsqrt.f32 %v1807_v20 }
 0x760   : > { %13077 = vrsqrt.f32 %v1804_v21 }
 0x761   : > { %v13070_v8 = vpop.eup %13069 }
 0x762   : > { %v1813_v27 = vpop.xlane.xlu1 %1812  ;;  %v1810_v9 = vpop.xlane.xlu0 %1809  ;;  %v14255_v0 = vmul.f32 %v13070_v8, %v14172_v38 }
 0x763   : > { %13079 = vrsqrt.f32 %v1813_v27 }
 0x764   : > { %13081 = vrsqrt.f32 %v1810_v9  ;;  %1887 = vrot.lane.b32.xlu1 %v14255_v0, %s13495_s7 }
 0x765   : > { %v13072_v41 = vpop.eup %13071 }
 0x766   : > { %v13074_v10 = vpop.eup %13073  ;;  %v1819_v43 = vpop.xlane.xlu1 %1818  ;;  %v1855_v44 = vmul.f32 %v13072_v41, %v14178_v16 }
 0x767   : > { %v1816_v48 = vpop.xlane.xlu0 %1815  ;;  %13083 = vrsqrt.f32 %v1819_v43  ;;  %v1854_v11 = vmul.f32 %v13074_v10, %v14170_v3 }
 0x768   : > { %13085 = vrsqrt.f32 %v1816_v48  ;;  %1891 = vrot.lane.b32.xlu0 %v1855_v44, %s13495_s7 }
 0x769   : > { %v13076_v46 = vpop.eup %13075  ;;  %1889 = vrot.lane.b32.xlu1 %v1854_v11, %s13495_s7 }
 0x76a   : > { %v13078_v38 = vpop.eup %13077  ;;  %v1825_v47 = vpop.xlane.xlu1 %1824  ;;  %v1857_v31 = vmul.f32 %v13076_v46, %v14189_v22 }
 0x76b   : > { %v1822_v56 = vpop.xlane.xlu0 %1821  ;;  %13087 = vrsqrt.f32 %v1825_v47  ;;  %v1856_v23 = vmul.f32 %v13078_v38, %v14176_v24 }
 0x76c   : > { %13089 = vrsqrt.f32 %v1822_v56  ;;  %1895 = vrot.lane.b32.xlu0 %v1857_v31, %s13495_s7 }
 0x76d   : > { %v13080_v16 = vpop.eup %13079  ;;  %1893 = vrot.lane.b32.xlu1 %v1856_v23, %s13495_s7 }
 0x76e   : > { %v13082_v3 = vpop.eup %13081  ;;  %v1831_v52 = vpop.xlane.xlu1 %1830  ;;  %v1859_v5 = vmul.f32 %v13080_v16, %v14198_v50 }
 0x76f   : > { %v1828_v36 = vpop.xlane.xlu0 %1827  ;;  %13091 = vrsqrt.f32 %v1831_v52  ;;  %v1858_v55 = vmul.f32 %v13082_v3, %v14187_v32 }
 0x770   : > { %13093 = vrsqrt.f32 %v1828_v36  ;;  %1899 = vrot.lane.b32.xlu0 %v1859_v5, %s13495_s7 }
 0x771   : > { %v13084_v22 = vpop.eup %13083  ;;  %1897 = vrot.lane.b32.xlu1 %v1858_v55, %s13495_s7 }
 0x772   : > { %v13086_v24 = vpop.eup %13085  ;;  %v1861_v61 = vmul.f32 %v13084_v22, %v14207_v57 }
 0x773   : > { %v1834_v58 = vpop.xlane.xlu0 %1833  ;;  %v1860_v13 = vmul.f32 %v13086_v24, %v14196_v42 }
 0x774   : > { %13095 = vrsqrt.f32 %v1834_v58  ;;  %1903 = vrot.lane.b32.xlu0 %v1861_v61, %s13495_s7 }
 0x775   : > { %v13088_v62 = vpop.eup %13087  ;;  %1901 = vrot.lane.b32.xlu1 %v1860_v13, %s13495_s7 }
 0x776   : > { %v13090_v50 = vpop.eup %13089  ;;  %v1863_v32 = vmul.f32 %v13088_v62, %v14221_v12 }
 0x777   : > { %v1862_v63 = vmul.f32 %v13090_v50, %v14205_v54 }
 0x778   : > { %1907 = vrot.lane.b32.xlu0 %v1863_v32, %s13495_s7 }
 0x779   : > { %v13092_v45 = vpop.eup %13091  ;;  %1905 = vrot.lane.b32.xlu1 %v1862_v63, %s13495_s7 }
 0x77a   : > { %v13094_v4 = vpop.eup %13093  ;;  %v1865_v57 = vmul.f32 %v13092_v45, %v14232_v28 }
 0x77b   : > { %v1864_v42 = vmul.f32 %v13094_v4, %v14218_v6 }
 0x77c   : > { %1911 = vrot.lane.b32.xlu0 %v1865_v57, %s13495_s7 }
 0x77d   : > { %1909 = vrot.lane.b32.xlu1 %v1864_v42, %s13495_s7 }
 0x77e   : > { %v13096_v39 = vpop.eup %13095 }
 0x77f   : > { %v1866_v17 = vmul.f32 %v13096_v39, %v14229_v26 }
 0x781   : > { %1913 = vrot.lane.b32.xlu1 %v1866_v17, %s13495_s7 }
 0x7cb   : > { %v1886_v54 = vpop.permute.xlu0 %1885 }
 0x7cc   : > { %v1932_v12 = vmax.f32 %v14245_v15, %v1886_v54  ;;  %v1884_v18 = vpop.permute.xlu1 %1883 }
 0x7cd   : > { %v1931_v51 = vmax.f32 %v14248_v7, %v1884_v18 }
 0x7ce   : > { %1965 = vrot.lane.b32.xlu1 %v1932_v12, %s13496_s8 }
 0x7cf   : > { %1963 = vrot.lane.b32.xlu0 %v1931_v51, %s13496_s8 }
 0x7d6   : > { %v1888_v6 = vpop.permute.xlu1 %1887 }
 0x7d7   : > { %v1933_v19 = vmax.f32 %v14255_v0, %v1888_v6 }
 0x7d9   : > { %1967 = vrot.lane.b32.xlu0 %v1933_v19, %s13496_s8 }
 0x7da   : > { %v1892_v33 = vpop.permute.xlu0 %1891 }
 0x7db   : > { %v1890_v26 = vpop.permute.xlu1 %1889  ;;  %v1935_v28 = vmax.f32 %v1855_v44, %v1892_v33 }
 0x7dc   : > { %v1934_v60 = vmax.f32 %v1854_v11, %v1890_v26 }
 0x7dd   : > { %1971 = vrot.lane.b32.xlu0 %v1935_v28, %s13496_s8 }
 0x7de   : > { %1969 = vrot.lane.b32.xlu1 %v1934_v60, %s13496_s8  ;;  %v1896_v49 = vpop.permute.xlu0 %1895 }
 0x7df   : > { %v1894_v2 = vpop.permute.xlu1 %1893  ;;  %v1937_v1 = vmax.f32 %v1857_v31, %v1896_v49 }
 0x7e0   : > { %v1936_v29 = vmax.f32 %v1856_v23, %v1894_v2 }
 0x7e1   : > { %1975 = vrot.lane.b32.xlu0 %v1937_v1, %s13496_s8 }
 0x7e2   : > { %1973 = vrot.lane.b32.xlu1 %v1936_v29, %s13496_s8  ;;  %v1900_v30 = vpop.permute.xlu0 %1899 }
 0x7e3   : > { %v1898_v34 = vpop.permute.xlu1 %1897  ;;  %v1939_v59 = vmax.f32 %v1859_v5, %v1900_v30 }
 0x7e4   : > { %v1938_v25 = vmax.f32 %v1858_v55, %v1898_v34 }
 0x7e5   : > { %1979 = vrot.lane.b32.xlu0 %v1939_v59, %s13496_s8 }
 0x7e6   : > { %1977 = vrot.lane.b32.xlu1 %v1938_v25, %s13496_s8  ;;  %v1904_v35 = vpop.permute.xlu0 %1903 }
 0x7e7   : > { %v1902_v14 = vpop.permute.xlu1 %1901  ;;  %v1941_v53 = vmax.f32 %v1861_v61, %v1904_v35  ;;  %v2301_v35 = vld [vmem:[#allocation2 + $0x100] sm:$0xff] }
 0x7e8   : > { %v1940_v15 = vmax.f32 %v1860_v13, %v1902_v14 }
 0x7e9   : > { %1983 = vrot.lane.b32.xlu0 %v1941_v53, %s13496_s8 }
 0x7ea   : > { %1981 = vrot.lane.b32.xlu1 %v1940_v15, %s13496_s8  ;;  %v1908_v7 = vpop.permute.xlu0 %1907 }
 0x7eb   : > { %v1906_v37 = vpop.permute.xlu1 %1905  ;;  %v1943_v40 = vmax.f32 %v1863_v32, %v1908_v7 }
 0x7ec   : > { %v1942_v20 = vmax.f32 %v1862_v63, %v1906_v37  ;;  %v14333_v37 = vld [vmem:[%s13566_s3 + $0x8] sm:$0xff] }
 0x7ed   : > { %1987 = vrot.lane.b32.xlu0 %v1943_v40, %s13496_s8 }
 0x7ee   : > { %1985 = vrot.lane.b32.xlu1 %v1942_v20, %s13496_s8  ;;  %v1912_v21 = vpop.permute.xlu0 %1911 }
 0x7ef   : > { %v1910_v8 = vpop.permute.xlu1 %1909  ;;  %v14301_v27 = vmax.f32 %v1865_v57, %v1912_v21 }
 0x7f0   : > { %v14303_v9 = vmax.f32 %v1864_v42, %v1910_v8  ;;  %v14342_v8 = vld [vmem:[%s13566_s3] sm:$0xff] }
 0x7f1   : > { %1991 = vrot.lane.b32.xlu0 %v14301_v27, %s13496_s8 }
 0x7f2   : > { %1989 = vrot.lane.b32.xlu1 %v14303_v9, %s13496_s8 }
 0x7f3   : > { %v1914_v0 = vpop.permute.xlu1 %1913 }
 0x7f4   : > { %v14309_v41 = vmax.f32 %v1866_v17, %v1914_v0 }
 0x7f6   : > { %1993 = vrot.lane.b32.xlu1 %v14309_v41, %s13496_s8 }
 0x840   : > { %v1966_v10 = vpop.permute.xlu1 %1965 }
 0x841   : > { %v2012_v43 = vmax.f32 %v1932_v12, %v1966_v10  ;;  %v1964_v48 = vpop.permute.xlu0 %1963 }
 0x842   : > { %v2011_v44 = vmax.f32 %v1931_v51, %v1964_v48 }
 0x843   : > { %v2028_v11 = vmax.f32 %v2012_v43, 0.0 }
 0x844   : > { %v2027_v46 = vmax.f32 %v2011_v44, 0.0 }
 0x845   : > { %2061 = vrot.lane.b32.xlu1 %v2028_v11, %s13492_s4 }
 0x846   : > { %2059 = vrot.lane.b32.xlu0 %v2027_v46, %s13492_s4  ;;  %v14351_v46 = vld [vmem:[%s13566_s3 + $0x10] sm:$0xff] }
 0x84b   : > { %v1968_v38 = vpop.permute.xlu0 %1967 }
 0x84c   : > { %v2013_v47 = vmax.f32 %v1933_v19, %v1968_v38 }
 0x84e   : > { %v2029_v56 = vmax.f32 %v2013_v47, 0.0 }
 0x84f   : > { %v1972_v31 = vpop.permute.xlu0 %1971 }
 0x850   : > { %v1970_v23 = vpop.permute.xlu1 %1969  ;;  %v2015_v16 = vmax.f32 %v1935_v28, %v1972_v31  ;;  %2063 = vrot.lane.b32.xlu0 %v2029_v56, %s13492_s4 }
 0x851   : > { %v2014_v3 = vmax.f32 %v1934_v60, %v1970_v23  ;;  %v14358_v23 = vld [vmem:[%s13566_s3 + $0x18] sm:$0xff] }
 0x852   : > { %v2031_v52 = vmax.f32 %v2015_v16, 0.0 }
 0x853   : > { %v2030_v36 = vmax.f32 %v2014_v3, 0.0  ;;  %v1976_v5 = vpop.permute.xlu0 %1975 }
 0x854   : > { %v1974_v55 = vpop.permute.xlu1 %1973  ;;  %v2017_v22 = vmax.f32 %v1937_v1, %v1976_v5  ;;  %2067 = vrot.lane.b32.xlu0 %v2031_v52, %s13492_s4 }
 0x855   : > { %v2016_v24 = vmax.f32 %v1936_v29, %v1974_v55  ;;  %2065 = vrot.lane.b32.xlu1 %v2030_v36, %s13492_s4  ;;  %v14369_v55 = vld [vmem:[%s13566_s3 + $0x20] sm:$0xff] }
 0x856   : > { %v2033_v58 = vmax.f32 %v2017_v22, 0.0 }
 0x857   : > { %v2032_v61 = vmax.f32 %v2016_v24, 0.0  ;;  %v1980_v13 = vpop.permute.xlu0 %1979 }
 0x858   : > { %v1978_v62 = vpop.permute.xlu1 %1977  ;;  %v2019_v50 = vmax.f32 %v1939_v59, %v1980_v13  ;;  %2071 = vrot.lane.b32.xlu0 %v2033_v58, %s13492_s4  ;;  %v2299_v59 = vld [vmem:[#allocation2 + $0xf0] sm:$0xff] }
 0x859   : > { %v2018_v32 = vmax.f32 %v1938_v25, %v1978_v62  ;;  %2069 = vrot.lane.b32.xlu1 %v2032_v61, %s13492_s4  ;;  %v2300_v25 = vld [vmem:[#allocation2 + $0xf8] sm:$0xff] }
 0x85a   : > { %v2035_v63 = vmax.f32 %v2019_v50, 0.0  ;;  %v12268_v14 = vpack.c.bf16 %v2300_v25, %v2299_v59  ;;  %v14378_v50 = vld [vmem:[%s13566_s3 + $0x28] sm:$0xff] }
 0x85b   : > { %v2034_v45 = vmax.f32 %v2018_v32, 0.0  ;;  %v1984_v4 = vpop.permute.xlu0 %1983  ;;  %v14416_v25 = vld [vmem:[%s13566_s3 + $0x48] sm:$0xff] }
 0x85c   : > { %v1982_v57 = vpop.permute.xlu1 %1981  ;;  %v2021_v42 = vmax.f32 %v1941_v53, %v1984_v4  ;;  %2075 = vrot.lane.b32.xlu0 %v2035_v63, %s13492_s4  ;;  %v2302_v53 = vld [vmem:[#allocation2 + $0x108] sm:$0xff]  ;;  %12269 = vmatprep.subr.bf16.mxu0 %v12268_v14 }
 0x85d   : > { %v2020_v39 = vmax.f32 %v1940_v15, %v1982_v57  ;;  %2073 = vrot.lane.b32.xlu1 %v2034_v45, %s13492_s4  ;;  %v12272_v15 = vpack.c.bf16 %v2302_v53, %v2301_v35  ;;  %12271 = vmatpush3.bf16.msra.mxu0 %v12268_v14 }
 0x85e   : > { %v2037_v17 = vmax.f32 %v2021_v42, 0.0  ;;  %v14391_v42 = vld [vmem:[%s13566_s3 + $0x30] sm:$0xff] }
 0x85f   : > { %v2036_v54 = vmax.f32 %v2020_v39, 0.0  ;;  %v1988_v12 = vpop.permute.xlu0 %1987  ;;  %12273 = vmatprep.subr.bf16.mxu0 %v12272_v15 }
 0x860   : > { %v1986_v18 = vpop.permute.xlu1 %1985  ;;  %v2023_v51 = vmax.f32 %v1943_v40, %v1988_v12  ;;  %2079 = vrot.lane.b32.xlu0 %v2037_v17, %s13492_s4 }
 0x861   : > { %v2022_v6 = vmax.f32 %v1942_v20, %v1986_v18  ;;  %2077 = vrot.lane.b32.xlu1 %v2036_v54, %s13492_s4  ;;  %12275 = vmatpush3.bf16.msra.mxu0 %v12272_v15 }
 0x862   : > { %v2039_v19 = vmax.f32 %v2023_v51, 0.0  ;;  %v14398_v51 = vld [vmem:[%s13566_s3 + $0x38] sm:$0xff] }
 0x863   : > { %v2038_v33 = vmax.f32 %v2022_v6, 0.0  ;;  %v1992_v26 = vpop.permute.xlu0 %1991 }
 0x864   : > { %v1990_v28 = vpop.permute.xlu1 %1989  ;;  %v2025_v60 = vmax.f32 %v14301_v27, %v1992_v26  ;;  %2083 = vrot.lane.b32.xlu0 %v2039_v19, %s13492_s4 }
 0x865   : > { %v2024_v49 = vmax.f32 %v14303_v9, %v1990_v28  ;;  %2081 = vrot.lane.b32.xlu1 %v2038_v33, %s13492_s4 }
 0x866   : > { %v2041_v2 = vmax.f32 %v2025_v60, 0.0 }
 0x867   : > { %v2040_v1 = vmax.f32 %v2024_v49, 0.0  ;;  %v14409_v49 = vld [vmem:[%s13566_s3 + $0x40] sm:$0xff] }
 0x868   : > { %v1994_v29 = vpop.permute.xlu1 %1993  ;;  %2087 = vrot.lane.b32.xlu0 %v2041_v2, %s13492_s4 }
 0x869   : > { %v2026_v30 = vmax.f32 %v14309_v41, %v1994_v29  ;;  %2085 = vrot.lane.b32.xlu1 %v2040_v1, %s13492_s4 }
 0x86b   : > { %v2042_v34 = vmax.f32 %v2026_v30, 0.0 }
 0x86d   : > { %2089 = vrot.lane.b32.xlu1 %v2042_v34, %s13492_s4 }
 0x8b7   : > { %v2062_v7 = vpop.permute.xlu1 %2061 }
 0x8b8   : > { %v14337_v40 = vsel %vm178_vm0, %v14333_v37, %v2062_v7  ;;  %v2060_v20 = vpop.permute.xlu0 %2059 }
 0x8b9   : > { %v2124_v21 = vsel %vm363_vm1, %v14337_v40, 0.0  ;;  %v14346_v27 = vsel %vm178_vm0, %v14342_v8, %v2060_v20 }
 0x8ba   : > { %v2123_v9 = vsel %vm363_vm1, %v14346_v27, 0.0 }
 0x8bb   : > { %v2125_v0 = vadd.f32 %v2124_v21, %v2123_v9 }
 0x8bd   : > { %v2126_v41 = vrot.slane %v2125_v0, 4 }
 0x8bf   : > { %v2127_v10 = vadd.f32 %v2126_v41, %v2125_v0  ;;  %v14427_v0 = vld [vmem:[%s13566_s3 + $0x50] sm:$0xff] }
 0x8c1   : > { %v2128_v43 = vrot.slane %v2127_v10, 2 }
 0x8c2   : > { %v2064_v48 = vpop.permute.xlu0 %2063 }
 0x8c3   : > { %v2129_v44 = vadd.f32 %v2128_v43, %v2127_v10  ;;  %v14355_v38 = vsel %vm178_vm0, %v14351_v46, %v2064_v48 }
 0x8c4   : > { %v2132_v52 = vsel %vm363_vm1, %v14355_v38, 0.0 }
 0x8c5   : > { %v2130_v11 = vrot.slane %v2129_v44, 1 }
 0x8c6   : > { %v2068_v47 = vpop.permute.xlu0 %2067 }
 0x8c7   : > { %v2131_v56 = vadd.f32 %v2130_v11, %v2129_v44  ;;  %v2066_v31 = vpop.permute.xlu1 %2065  ;;  %v14373_v22 = vsel %vm178_vm0, %v14369_v55, %v2068_v47  ;;  %v14434_v47 = vld [vmem:[%s13566_s3 + $0x58] sm:$0xff] }
 0x8c8   : > { %v14362_v16 = vsel %vm178_vm0, %v14358_v23, %v2066_v31  ;;  %v2141_v63 = vsel %vm363_vm1, %v14373_v22, 0.0 }
 0x8c9   : > { %v2195_v3 = vmul.f32 0.0625, %v2131_v56  ;;  %v2133_v36 = vsel %vm363_vm1, %v14362_v16, 0.0 }
 0x8ca   : > { %v2134_v5 = vadd.f32 %v2133_v36, %v2132_v52  ;;  %v2072_v24 = vpop.permute.xlu0 %2071 }
 0x8cb   : > { %v2203_v58 = vsub.f32 %v14346_v27, %v2195_v3  ;;  %v2070_v61 = vpop.permute.xlu1 %2069  ;;  %v2204_v13 = vsub.f32 %v14337_v40, %v2195_v3  ;;  %v14395_v39 = vsel %vm178_vm0, %v14391_v42, %v2072_v24 }
 0x8cc   : > { %v2135_v62 = vrot.slane %v2134_v5, 4  ;;  %v14382_v32 = vsel %vm178_vm0, %v14378_v50, %v2070_v61  ;;  %v2150_v19 = vsel %vm363_vm1, %v14395_v39, 0.0 }
 0x8cd   : > { %v2142_v45 = vsel %vm363_vm1, %v14382_v32, 0.0  ;;  %2237 = vrot.lane.b32.xlu1 %v2204_v13, %s13497_s11  ;;  %2235 = vrot.lane.b32.xlu0 %v2203_v58, %s13497_s11  ;;  %v14446_v58 = vld [vmem:[%s13566_s3 + $0x60] sm:$0xff] }
 0x8ce   : > { %v2136_v4 = vadd.f32 %v2135_v62, %v2134_v5  ;;  %v2143_v57 = vadd.f32 %v2142_v45, %v2141_v63  ;;  %v2076_v17 = vpop.permute.xlu0 %2075 }
 0x8cf   : > { %v2074_v54 = vpop.permute.xlu1 %2073  ;;  %v14413_v2 = vsel %vm178_vm0, %v14409_v49, %v2076_v17 }
 0x8d0   : > { %v2137_v12 = vrot.slane %v2136_v4, 2  ;;  %v2144_v18 = vrot.slane %v2143_v57, 4  ;;  %v14402_v6 = vsel %vm178_vm0, %v14398_v51, %v2074_v54  ;;  %v2159_v14 = vsel %vm363_vm1, %v14413_v2, 0.0  ;;  %v14455_v54 = vld [vmem:[%s13566_s3 + $0x68] sm:$0xff] }
 0x8d1   : > { %v2151_v33 = vsel %vm363_vm1, %v14402_v6, 0.0 }
 0x8d2   : > { %v2138_v26 = vadd.f32 %v2137_v12, %v2136_v4  ;;  %v2145_v28 = vadd.f32 %v2144_v18, %v2143_v57  ;;  %v2152_v60 = vadd.f32 %v2151_v33, %v2150_v19  ;;  %v2080_v1 = vpop.permute.xlu0 %2079 }
 0x8d3   : > { %v2078_v29 = vpop.permute.xlu1 %2077  ;;  %v14431_v41 = vsel %vm178_vm0, %v14427_v0, %v2080_v1  ;;  %v14468_v1 = vld [vmem:[%s13566_s3 + $0x70] sm:$0xff] }
 0x8d4   : > { %v2139_v30 = vrot.slane %v2138_v26, 1  ;;  %v2146_v34 = vrot.slane %v2145_v28, 2  ;;  %v2153_v59 = vrot.slane %v2152_v60, 4  ;;  %v14420_v35 = vsel %vm178_vm0, %v14416_v25, %v2078_v29 }
 0x8d5   : > { %v2160_v53 = vsel %vm363_vm1, %v14420_v35, 0.0  ;;  %v2168_v5 = vsel %vm363_vm1, %v14431_v41, 0.0 }
 0x8d6   : > { %v2140_v15 = vadd.f32 %v2139_v30, %v2138_v26  ;;  %v2147_v7 = vadd.f32 %v2146_v34, %v2145_v28  ;;  %v2154_v20 = vadd.f32 %v2153_v59, %v2152_v60  ;;  %v2161_v21 = vadd.f32 %v2160_v53, %v2159_v14  ;;  %v2084_v9 = vpop.permute.xlu0 %2083 }
 0x8d7   : > { %v2082_v10 = vpop.permute.xlu1 %2081  ;;  %v14450_v61 = vsel %vm178_vm0, %v14446_v58, %v2084_v9 }
 0x8d8   : > { %v2196_v43 = vmul.f32 0.0625, %v2140_v15  ;;  %v2148_v48 = vrot.slane %v2147_v7, 1  ;;  %v2155_v44 = vrot.slane %v2154_v20, 2  ;;  %v2162_v11 = vrot.slane %v2161_v21, 4 }
 0x8d9   : > { %v14438_v56 = vsel %vm178_vm0, %v14434_v47, %v2082_v10  ;;  %v2177_v28 = vsel %vm363_vm1, %v14450_v61, 0.0 }
 0x8da   : > { %v2206_v31 = vsub.f32 %v14362_v16, %v2196_v43  ;;  %v2149_v3 = vadd.f32 %v2148_v48, %v2147_v7  ;;  %v2156_v52 = vadd.f32 %v2155_v44, %v2154_v20  ;;  %v2163_v36 = vadd.f32 %v2162_v11, %v2161_v21  ;;  %v2088_v17 = vpop.permute.xlu0 %2087  ;;  %v14477_v7 = vld [vmem:[%s13566_s3 + $0x78] sm:$0xff] }
 0x8db   : > { %v2169_v24 = vsel %vm363_vm1, %v14438_v56, 0.0  ;;  %v2086_v13 = vpop.permute.xlu1 %2085  ;;  %v2205_v62 = vsub.f32 %v14355_v38, %v2196_v43  ;;  %v14472_v29 = vsel %vm178_vm0, %v14468_v1, %v2088_v17 }
 0x8dc   : > { %v2197_v63 = vmul.f32 0.0625, %v2149_v3  ;;  %v2157_v45 = vrot.slane %v2156_v52, 1  ;;  %v2164_v4 = vrot.slane %v2163_v36, 2  ;;  %v2170_v57 = vadd.f32 %v2169_v24, %v2168_v5  ;;  %2241 = vrot.lane.b32.xlu1 %v2206_v31, %s13497_s11 }
 0x8dd   : > { %v14459_v12 = vsel %vm178_vm0, %v14455_v54, %v2086_v13  ;;  %2239 = vrot.lane.b32.xlu0 %v2205_v62, %s13497_s11  ;;  %v2186_v48 = vsel %vm363_vm1, %v14472_v29, 0.0 }
 0x8de   : > { %v2208_v18 = vsub.f32 %v14382_v32, %v2197_v63  ;;  %v2158_v19 = vadd.f32 %v2157_v45, %v2156_v52  ;;  %v2165_v33 = vadd.f32 %v2164_v4, %v2163_v36  ;;  %v2171_v26 = vrot.slane %v2170_v57, 4 }
 0x8df   : > { %v2178_v60 = vsel %vm363_vm1, %v14459_v12, 0.0  ;;  %v2090_v30 = vpop.permute.xlu1 %2089  ;;  %v2207_v34 = vsub.f32 %v14373_v22, %v2197_v63 }
 0x8e0   : > { %v2198_v59 = vmul.f32 0.0625, %v2158_v19  ;;  %v2166_v14 = vrot.slane %v2165_v33, 1  ;;  %v2172_v53 = vadd.f32 %v2171_v26, %v2170_v57  ;;  %v2179_v15 = vadd.f32 %v2178_v60, %v2177_v28  ;;  %2245 = vrot.lane.b32.xlu1 %v2208_v18, %s13497_s11 }
 0x8e1   : > { %v14481_v20 = vsel %vm178_vm0, %v14477_v7, %v2090_v30  ;;  %2243 = vrot.lane.b32.xlu0 %v2207_v34, %s13497_s11 }
 0x8e2   : > { %v2210_v21 = vsub.f32 %v14402_v6, %v2198_v59  ;;  %v2167_v9 = vadd.f32 %v2166_v14, %v2165_v33  ;;  %v2173_v10 = vrot.slane %v2172_v53, 2  ;;  %v2180_v43 = vrot.slane %v2179_v15, 4 }
 0x8e3   : > { %v2187_v44 = vsel %vm363_vm1, %v14481_v20, 0.0  ;;  %v2209_v11 = vsub.f32 %v14395_v39, %v2198_v59 }
 0x8e4   : > { %v2199_v31 = vmul.f32 0.0625, %v2167_v9  ;;  %v2174_v3 = vadd.f32 %v2173_v10, %v2172_v53  ;;  %v2181_v52 = vadd.f32 %v2180_v43, %v2179_v15  ;;  %v2188_v36 = vadd.f32 %v2187_v44, %v2186_v48  ;;  %2249 = vrot.lane.b32.xlu1 %v2210_v21, %s13497_s11 }
 0x8e5   : > { %2247 = vrot.lane.b32.xlu0 %v2209_v11, %s13497_s11 }
 0x8e6   : > { %v2212_v5 = vsub.f32 %v14420_v35, %v2199_v31  ;;  %v2175_v24 = vrot.slane %v2174_v3, 1  ;;  %v2182_v13 = vrot.slane %v2181_v52, 2  ;;  %v2189_v62 = vrot.slane %v2188_v36, 4 }
 0x8e7   : > { %v2211_v63 = vsub.f32 %v14413_v2, %v2199_v31 }
 0x8e8   : > { %v2176_v45 = vadd.f32 %v2175_v24, %v2174_v3  ;;  %v2183_v4 = vadd.f32 %v2182_v13, %v2181_v52  ;;  %v2190_v57 = vadd.f32 %v2189_v62, %v2188_v36  ;;  %2253 = vrot.lane.b32.xlu1 %v2212_v5, %s13497_s11  ;;  %v2518_v36 = vld [vmem:[#allocation2 + $0x120] sm:$0xff]  ;;  %v10702_v24 = vld [vmem:[#allocation2 + $0x110] ss:$0 sm:$0xff] }
 0x8e9   : > { %2251 = vrot.lane.b32.xlu0 %v2211_v63, %s13497_s11 }
 0x8ea   : > { %v2200_v17 = vmul.f32 0.0625, %v2176_v45  ;;  %v2184_v18 = vrot.slane %v2183_v4, 1  ;;  %v2191_v19 = vrot.slane %v2190_v57, 2 }
 0x8ec   : > { %v2214_v33 = vsub.f32 %v14438_v56, %v2200_v17  ;;  %v2185_v26 = vadd.f32 %v2184_v18, %v2183_v4  ;;  %v2192_v28 = vadd.f32 %v2191_v19, %v2190_v57  ;;  %v2213_v60 = vsub.f32 %v14431_v41, %v2200_v17 }
 0x8ee   : > { %v2201_v30 = vmul.f32 0.0625, %v2185_v26  ;;  %v2193_v34 = vrot.slane %v2192_v28, 1  ;;  %2257 = vrot.lane.b32.xlu1 %v2214_v33, %s13497_s11  ;;  %2255 = vrot.lane.b32.xlu0 %v2213_v60, %s13497_s11 }
 0x8f0   : > { %v2216_v59 = vsub.f32 %v14459_v12, %v2201_v30  ;;  %v2194_v14 = vadd.f32 %v2193_v34, %v2192_v28  ;;  %v2215_v53 = vsub.f32 %v14450_v61, %v2201_v30 }
 0x8f2   : > { %v2202_v15 = vmul.f32 0.0625, %v2194_v14  ;;  %2261 = vrot.lane.b32.xlu1 %v2216_v59, %s13497_s11  ;;  %2259 = vrot.lane.b32.xlu0 %v2215_v53, %s13497_s11 }
 0x8f4   : > { %v2218_v21 = vsub.f32 %v14481_v20, %v2202_v15  ;;  %v2217_v9 = vsub.f32 %v14472_v29, %v2202_v15 }
 0x8f6   : > { %2265 = vrot.lane.b32.xlu1 %v2218_v21, %s13497_s11  ;;  %2263 = vrot.lane.b32.xlu0 %v2217_v9, %s13497_s11 }
 0x8fa   : > { %2927 = vrot.lane.b32.xlu1 %v14342_v8, %s13492_s4  ;;  %2929 = vrot.lane.b32.xlu0 %v14333_v37, %s13492_s4 }
 0x8fe   : > { %2931 = vrot.lane.b32.xlu1 %v14351_v46, %s13492_s4  ;;  %2933 = vrot.lane.b32.xlu0 %v14358_v23, %s13492_s4 }
 0x902   : > { %2935 = vrot.lane.b32.xlu1 %v14369_v55, %s13492_s4  ;;  %2937 = vrot.lane.b32.xlu0 %v14378_v50, %s13492_s4 }
 0x906   : > { %2939 = vrot.lane.b32.xlu1 %v14391_v42, %s13492_s4  ;;  %2943 = vrot.lane.b32.xlu0 %v14409_v49, %s13492_s4 }
 0x90a   : > { %2941 = vrot.lane.b32.xlu1 %v14398_v51, %s13492_s4  ;;  %2947 = vrot.lane.b32.xlu0 %v14427_v0, %s13492_s4 }
 0x90e   : > { %2945 = vrot.lane.b32.xlu1 %v14416_v25, %s13492_s4 }
 0x912   : > { %2949 = vrot.lane.b32.xlu1 %v14434_v47, %s13492_s4 }
 0x93f   : > { %v2238_v37 = vpop.permute.xlu1 %2237  ;;  %v2236_v8 = vpop.permute.xlu0 %2235 }
 0x940   : > { %v2284_v46 = vsel %vm363_vm1, %v14337_v40, %v2238_v37  ;;  %v2283_v23 = vsel %vm363_vm1, %v14346_v27, %v2236_v8 }
 0x941   : > { %11610 = vmatprep.mubr.msk.f32.mxu0 %vm889_vm3, %v2283_v23 }
 0x942   : > { %11611 = vmatmul.mubr.msk.f32.vlgmr.msra.gmra.mrb[38].mxu0 %vm889_vm3, %v2284_v46 }
 0x94e   : > { %v2242_v55 = vpop.permute.xlu1 %2241 }
 0x94f   : > { %v2286_v50 = vsel %vm363_vm1, %v14362_v16, %v2242_v55  ;;  %v2240_v42 = vpop.permute.xlu0 %2239 }
 0x950   : > { %v2285_v51 = vsel %vm363_vm1, %v14355_v38, %v2240_v42 }
 0x951   : > { %11613 = vmatprep.mubr.msk.f32.mxu0 %vm889_vm3, %v2285_v51 }
 0x952   : > { %11614 = vmatmul.mubr.msk.f32.gmra.mrb[40].mxu0 %vm889_vm3, %v2286_v50  ;;  %v2246_v40 = vpop.permute.xlu1 %2245 }
 0x953   : > { %v2288_v27 = vsel %vm363_vm1, %v14382_v32, %v2246_v40  ;;  %v2244_v49 = vpop.permute.xlu0 %2243 }
 0x954   : > { %v2287_v25 = vsel %vm363_vm1, %v14373_v22, %v2244_v49 }
 0x955   : > { %11616 = vmatprep.mubr.msk.f32.mxu0 %vm889_vm3, %v2287_v25 }
 0x956   : > { %11617 = vmatmul.mubr.msk.f32.gmra.mrb[42].mxu0 %vm889_vm3, %v2288_v27  ;;  %v2250_v16 = vpop.permute.xlu1 %2249 }
 0x957   : > { %v2290_v38 = vsel %vm363_vm1, %v14402_v6, %v2250_v16  ;;  %v2248_v0 = vpop.permute.xlu0 %2247 }
 0x958   : > { %v2289_v47 = vsel %vm363_vm1, %v14395_v39, %v2248_v0 }
 0x959   : > { %11619 = vmatprep.mubr.msk.f32.mxu0 %vm889_vm3, %v2289_v47 }
 0x95a   : > { %11620 = vmatmul.mubr.msk.f32.gmra.mrb[44].mxu0 %vm889_vm3, %v2290_v38  ;;  %v2254_v32 = vpop.permute.xlu1 %2253 }
 0x95b   : > { %v2292_v22 = vsel %vm363_vm1, %v14420_v35, %v2254_v32  ;;  %v2252_v10 = vpop.permute.xlu0 %2251 }
 0x95c   : > { %v2291_v43 = vsel %vm363_vm1, %v14413_v2, %v2252_v10 }
 0x95d   : > { %11622 = vmatprep.mubr.msk.f32.mxu0 %vm889_vm3, %v2291_v43 }
 0x95e   : > { %11623 = vmatmul.mubr.msk.f32.gmra.mrb[46].mxu0 %vm889_vm3, %v2292_v22 }
 0x960   : > { %v2258_v6 = vpop.permute.xlu1 %2257  ;;  %v2256_v48 = vpop.permute.xlu0 %2255 }
 0x961   : > { %v2294_v39 = vsel %vm363_vm1, %v14438_v56, %v2258_v6  ;;  %v2293_v44 = vsel %vm363_vm1, %v14431_v41, %v2256_v48 }
 0x962   : > { %11625 = vmatprep.mubr.msk.f32.mxu0 %vm889_vm3, %v2293_v44 }
 0x963   : > { %11626 = vmatmul.mubr.msk.f32.gmra.mrb[48].mxu0 %vm889_vm3, %v2294_v39 }
 0x964   : > { %v2262_v35 = vpop.permute.xlu1 %2261  ;;  %v2260_v11 = vpop.permute.xlu0 %2259 }
 0x965   : > { %v2296_v2 = vsel %vm363_vm1, %v14459_v12, %v2262_v35  ;;  %v2295_v31 = vsel %vm363_vm1, %v14450_v61, %v2260_v11  ;;  %v2517_v12 = vld [vmem:[#allocation2 + $0x118] sm:$0xff]  ;;  %v2519_v61 = vld [vmem:[#allocation2 + $0x128] sm:$0xff]  ;;  %v14596_v11 = vld [vmem:[#allocation2 + $0x130] ss:$0 sm:$0xff] }
 0x966   : > { %11628 = vmatprep.mubr.msk.f32.mxu0 %vm889_vm3, %v2295_v31  ;;  %v12276_v5 = vpack.c.bf16 %v2518_v36, %v2517_v12 }
 0x967   : > { %11629 = vmatmul.mubr.msk.f32.gmra.mrb[50].mxu0 %vm889_vm3, %v2296_v2 }
 0x968   : > { %v2266_v56 = vpop.permute.xlu1 %2265  ;;  %v2264_v3 = vpop.permute.xlu0 %2263  ;;  %12277 = vmatprep.subr.bf16.mxu1 %v12276_v5 }
 0x969   : > { %v2298_v41 = vsel %vm363_vm1, %v14481_v20, %v2266_v56  ;;  %v2297_v52 = vsel %vm363_vm1, %v14472_v29, %v2264_v3  ;;  %12279 = vmatpush3.bf16.msra.mxu1 %v12276_v5 }
 0x96a   : > { %11631 = vmatprep.mubr.msk.f32.mxu0 %vm889_vm3, %v2297_v52  ;;  %11638 = vmatprep.subr.mxu1 %v2519_v61 }
 0x96b   : > { %11632 = vmatmul.mubr.msk.f32.gmra.mrb[52].mxu0 %vm889_vm3, %v2298_v41 }
 0x96d   : > { %11639 = vmatpush3.msra.mxu1 %v2519_v61 }
 0xa15   : > { %v11612_v13 = vpop.f32.mrb[38].mxu0 }
 0xa16   : > { %v2428_v62 = vadd.f32 %v11612_v13, %v10702_v24  ;;  %v2422_v63 = vpop.f32.mrb[39].mxu0 }
 0xa17   : > { %v2423_v20 = vadd.f32 %v10702_v24, %v2422_v63 }
 0xa18   : > { %v2502_v29 = vmax.f32 %v2428_v62, 0.0 }
 0xa19   : > { %v2501_v45 = vmax.f32 %v2423_v20, 0.0 }
 0xa1b   : > { %11640 = vmatprep.mubr.msk.f32.mxu1 %vm2525_vm6, %v2501_v45 }
 0xa1c   : > { %11641 = vmatmul.mubr.msk.f32.vlgmr.msra.gmra.mrb[26].mxu1 %vm2525_vm6, %v2502_v29 }
 0xa25   : > { %v11615_v4 = vpop.f32.mrb[40].mxu0 }
 0xa26   : > { %v2438_v57 = vadd.f32 %v11615_v4, %v10702_v24  ;;  %v2432_v17 = vpop.f32.mrb[41].mxu0 }
 0xa27   : > { %v2433_v18 = vadd.f32 %v10702_v24, %v2432_v17 }
 0xa28   : > { %v2504_v26 = vmax.f32 %v2438_v57, 0.0 }
 0xa29   : > { %v2503_v19 = vmax.f32 %v2433_v18, 0.0  ;;  %v11618_v33 = vpop.f32.mrb[42].mxu0 }
 0xa2a   : > { %v2448_v28 = vadd.f32 %v11618_v33, %v10702_v24  ;;  %v2442_v60 = vpop.f32.mrb[43].mxu0 }
 0xa2b   : > { %v2443_v30 = vadd.f32 %v10702_v24, %v2442_v60  ;;  %11643 = vmatprep.mubr.msk.f32.mxu1 %vm2525_vm6, %v2503_v19 }
 0xa2c   : > { %11644 = vmatmul.mubr.msk.f32.gmra.mrb[28].mxu1 %vm2525_vm6, %v2504_v26  ;;  %v2506_v14 = vmax.f32 %v2448_v28, 0.0 }
 0xa2d   : > { %v2505_v34 = vmax.f32 %v2443_v30, 0.0  ;;  %v11621_v59 = vpop.f32.mrb[44].mxu0 }
 0xa2e   : > { %v2458_v53 = vadd.f32 %v11621_v59, %v10702_v24  ;;  %v2452_v15 = vpop.f32.mrb[45].mxu0 }
 0xa2f   : > { %v2453_v21 = vadd.f32 %v10702_v24, %v2452_v15  ;;  %11646 = vmatprep.mubr.msk.f32.mxu1 %vm2525_vm6, %v2505_v34 }
 0xa30   : > { %11647 = vmatmul.mubr.msk.f32.gmra.mrb[30].mxu1 %vm2525_vm6, %v2506_v14  ;;  %v2508_v8 = vmax.f32 %v2458_v53, 0.0 }
 0xa31   : > { %v2507_v9 = vmax.f32 %v2453_v21, 0.0  ;;  %v11624_v37 = vpop.f32.mrb[46].mxu0 }
 0xa32   : > { %v2468_v46 = vadd.f32 %v11624_v37, %v10702_v24  ;;  %v2462_v23 = vpop.f32.mrb[47].mxu0 }
 0xa33   : > { %v2463_v55 = vadd.f32 %v10702_v24, %v2462_v23  ;;  %11649 = vmatprep.mubr.msk.f32.mxu1 %vm2525_vm6, %v2507_v9 }
 0xa34   : > { %11650 = vmatmul.mubr.msk.f32.gmra.mrb[32].mxu1 %vm2525_vm6, %v2508_v8  ;;  %v2510_v42 = vmax.f32 %v2468_v46, 0.0 }
 0xa35   : > { %v2509_v50 = vmax.f32 %v2463_v55, 0.0 }
 0xa36   : > { %v11627_v51 = vpop.f32.mrb[48].mxu0 }
 0xa37   : > { %v2478_v40 = vadd.f32 %v11627_v51, %v10702_v24  ;;  %v2472_v27 = vpop.f32.mrb[49].mxu0  ;;  %11652 = vmatprep.mubr.msk.f32.mxu1 %vm2525_vm6, %v2509_v50 }
 0xa38   : > { %v2473_v49 = vadd.f32 %v10702_v24, %v2472_v27  ;;  %11653 = vmatmul.mubr.msk.f32.gmra.mrb[34].mxu1 %vm2525_vm6, %v2510_v42 }
 0xa39   : > { %v2512_v38 = vmax.f32 %v2478_v40, 0.0 }
 0xa3a   : > { %v2511_v25 = vmax.f32 %v2473_v49, 0.0  ;;  %v11630_v16 = vpop.f32.mrb[50].mxu0 }
 0xa3b   : > { %v2488_v0 = vadd.f32 %v11630_v16, %v10702_v24  ;;  %v2482_v47 = vpop.f32.mrb[51].mxu0 }
 0xa3c   : > { %v2483_v32 = vadd.f32 %v10702_v24, %v2482_v47  ;;  %11655 = vmatprep.mubr.msk.f32.mxu1 %vm2525_vm6, %v2511_v25 }
 0xa3d   : > { %11656 = vmatmul.mubr.msk.f32.gmra.mrb[36].mxu1 %vm2525_vm6, %v2512_v38  ;;  %v2514_v43 = vmax.f32 %v2488_v0, 0.0  ;;  %v14678_v0 = vpop.permute.xlu1 %2927 }
 0xa3e   : > { %v2513_v22 = vmax.f32 %v2483_v32, 0.0  ;;  %v11633_v10 = vpop.f32.mrb[52].mxu0 }
 0xa3f   : > { %v2498_v6 = vadd.f32 %v11633_v10, %v10702_v24  ;;  %v2492_v48 = vpop.f32.mrb[53].mxu0 }
 0xa40   : > { %v2493_v39 = vadd.f32 %v10702_v24, %v2492_v48  ;;  %11658 = vmatprep.mubr.msk.f32.mxu1 %vm2525_vm6, %v2513_v22  ;;  %v14684_v22 = vpop.permute.xlu0 %2929 }
 0xa41   : > { %11659 = vmatmul.mubr.msk.f32.gmra.mrb[38].mxu1 %vm2525_vm6, %v2514_v43  ;;  %v2516_v35 = vmax.f32 %v2498_v6, 0.0  ;;  %v14680_v47 = vpop.permute.xlu1 %2931 }
 0xa42   : > { %v2515_v44 = vmax.f32 %v2493_v39, 0.0 }
 0xa44   : > { %11661 = vmatprep.mubr.msk.f32.mxu1 %vm2525_vm6, %v2515_v44  ;;  %v14688_v43 = vpop.permute.xlu0 %2933 }
 0xa45   : > { %11662 = vmatmul.mubr.msk.f32.gmra.mrb[40].mxu1 %vm2525_vm6, %v2516_v35  ;;  %v14682_v32 = vpop.permute.xlu1 %2935 }
 0xa48   : > { %v14692_v48 = vpop.permute.xlu0 %2937 }
 0xa49   : > { %v14686_v10 = vpop.permute.xlu1 %2939 }
 0xa4a   : > { %16685 = vst [vmem:[#allocation5_spill] sm:$0xff] %v14686_v10 }
 0xa4c   : > { %v14696_v44 = vpop.permute.xlu0 %2943 }
 0xa4d   : > { %v14690_v6 = vpop.permute.xlu1 %2941  ;;  %16688 = vst [vmem:[#allocation8_spill] sm:$0xff] %v14696_v44 }
 0xa4e   : > { %16686 = vst [vmem:[#allocation6_spill] sm:$0xff] %v14690_v6 }
 0xa51   : > { %v14694_v39 = vpop.permute.xlu1 %2945 }
 0xa52   : > { %16687 = vst [vmem:[#allocation7_spill] sm:$0xff] %v14694_v39 }
 0xa55   : > { %v14698_v35 = vpop.permute.xlu1 %2949 }
 0xa56   : > { %16689 = vst [vmem:[#allocation9_spill] sm:$0xff] %v14698_v35 }
 0xaef   : > { %v11642_v2 = vpop.f32.mrb[26].mxu1 }
 0xaf0   : > { %v2646_v31 = vadd.f32 %v11642_v2, %v14596_v11  ;;  %v2640_v56 = vpop.f32.mrb[27].mxu1 }
 0xaf1   : > { %v2641_v3 = vadd.f32 %v14596_v11, %v2640_v56 }
 0xaf2   : > { %13097 = vtanh.f32 %v2646_v31 }
 0xaf3   : > { %13099 = vtanh.f32 %v2641_v3 }
 0xafc   : > { %v14600_v41 = vpop.eup %13097 }
 0xafd   : > { %v14602_v52 = vpop.eup %13099  ;;  %2753 = vrot.lane.b32.xlu1 %v14600_v41, %s13495_s7 }
 0xafe   : > { %2751 = vrot.lane.b32.xlu0 %v14602_v52, %s13495_s7 }
 0xaff   : > { %v11645_v12 = vpop.f32.mrb[28].mxu1 }
 0xb00   : > { %v2656_v36 = vadd.f32 %v11645_v12, %v14596_v11  ;;  %v2650_v5 = vpop.f32.mrb[29].mxu1 }
 0xb01   : > { %v2651_v61 = vadd.f32 %v14596_v11, %v2650_v5 }
 0xb02   : > { %13101 = vtanh.f32 %v2656_v36 }
 0xb03   : > { %13103 = vtanh.f32 %v2651_v61  ;;  %v11648_v24 = vpop.f32.mrb[30].mxu1 }
 0xb04   : > { %v2666_v13 = vadd.f32 %v11648_v24, %v14596_v11  ;;  %v2660_v62 = vpop.f32.mrb[31].mxu1 }
 0xb05   : > { %v2661_v63 = vadd.f32 %v14596_v11, %v2660_v62 }
 0xb06   : > { %13105 = vtanh.f32 %v2666_v13 }
 0xb07   : > { %13107 = vtanh.f32 %v2661_v63  ;;  %v11651_v20 = vpop.f32.mrb[32].mxu1 }
 0xb08   : > { %v2676_v45 = vadd.f32 %v11651_v20, %v14596_v11  ;;  %v2670_v29 = vpop.f32.mrb[33].mxu1 }
 0xb09   : > { %v2671_v4 = vadd.f32 %v14596_v11, %v2670_v29  ;;  %v2991_v29 = vld [vmem:[#allocation2 + $0x138] sm:$0xff] }
 0xb0a   : > { %13109 = vtanh.f32 %v2676_v45 }
 0xb0b   : > { %13111 = vtanh.f32 %v2671_v4  ;;  %v11654_v57 = vpop.f32.mrb[34].mxu1  ;;  %v2992_v4 = vld [vmem:[#allocation2 + $0x140] sm:$0xff] }
 0xb0c   : > { %v14614_v17 = vpop.eup %13101  ;;  %v2686_v18 = vadd.f32 %v11654_v57, %v14596_v11  ;;  %v2680_v19 = vpop.f32.mrb[35].mxu1  ;;  %v12280_v57 = vpack.c.bf16 %v2992_v4, %v2991_v29 }
 0xb0d   : > { %v14617_v33 = vpop.eup %13103  ;;  %v2681_v26 = vadd.f32 %v14596_v11, %v2680_v19  ;;  %2757 = vrot.lane.b32.xlu1 %v14614_v17, %s13495_s7 }
 0xb0e   : > { %13113 = vtanh.f32 %v2686_v18  ;;  %2755 = vrot.lane.b32.xlu0 %v14617_v33, %s13495_s7  ;;  %12281 = vmatprep.subr.bf16.mxu0 %v12280_v57 }
 0xb0f   : > { %13115 = vtanh.f32 %v2681_v26  ;;  %12283 = vmatpush3.bf16.msra.mxu0 %v12280_v57 }
 0xb10   : > { %v14624_v28 = vpop.eup %13105  ;;  %v11657_v60 = vpop.f32.mrb[36].mxu1 }
 0xb11   : > { %v14626_v30 = vpop.eup %13107  ;;  %v2696_v34 = vadd.f32 %v11657_v60, %v14596_v11  ;;  %v2690_v59 = vpop.f32.mrb[37].mxu1  ;;  %2761 = vrot.lane.b32.xlu1 %v14624_v28, %s13495_s7 }
 0xb12   : > { %v2691_v14 = vadd.f32 %v14596_v11, %v2690_v59  ;;  %2759 = vrot.lane.b32.xlu0 %v14626_v30, %s13495_s7 }
 0xb13   : > { %13117 = vtanh.f32 %v2696_v34 }
 0xb14   : > { %v14634_v53 = vpop.eup %13109  ;;  %13119 = vtanh.f32 %v2691_v14  ;;  %v11660_v15 = vpop.f32.mrb[38].mxu1 }
 0xb15   : > { %v14636_v21 = vpop.eup %13111  ;;  %v2706_v9 = vadd.f32 %v11660_v15, %v14596_v11  ;;  %v2700_v37 = vpop.f32.mrb[39].mxu1  ;;  %2765 = vrot.lane.b32.xlu1 %v14634_v53, %s13495_s7 }
 0xb16   : > { %v2701_v8 = vadd.f32 %v14596_v11, %v2700_v37  ;;  %2763 = vrot.lane.b32.xlu0 %v14636_v21, %s13495_s7 }
 0xb17   : > { %13121 = vtanh.f32 %v2706_v9 }
 0xb18   : > { %v14644_v46 = vpop.eup %13113  ;;  %13123 = vtanh.f32 %v2701_v8  ;;  %v11663_v23 = vpop.f32.mrb[40].mxu1 }
 0xb19   : > { %v14646_v55 = vpop.eup %13115  ;;  %v2716_v50 = vadd.f32 %v11663_v23, %v14596_v11  ;;  %v2710_v42 = vpop.f32.mrb[41].mxu1  ;;  %2769 = vrot.lane.b32.xlu1 %v14644_v46, %s13495_s7 }
 0xb1a   : > { %v2711_v51 = vadd.f32 %v14596_v11, %v2710_v42  ;;  %2767 = vrot.lane.b32.xlu0 %v14646_v55, %s13495_s7  ;;  %v14700_v11 = vpop.permute.xlu0 %2947 }
 0xb1b   : > { %13125 = vtanh.f32 %v2716_v50  ;;  %16690 = vst [vmem:[#allocation10_spill] sm:$0xff] %v14700_v11 }
 0xb1c   : > { %13127 = vtanh.f32 %v2711_v51 }
 0xb1d   : > { %v14654_v40 = vpop.eup %13117 }
 0xb1e   : > { %v14656_v27 = vpop.eup %13119  ;;  %2773 = vrot.lane.b32.xlu1 %v14654_v40, %s13495_s7 }
 0xb1f   : > { %2771 = vrot.lane.b32.xlu0 %v14656_v27, %s13495_s7 }
 0xb21   : > { %v14662_v49 = vpop.eup %13121 }
 0xb22   : > { %v14664_v25 = vpop.eup %13123  ;;  %2777 = vrot.lane.b32.xlu1 %v14662_v49, %s13495_s7 }
 0xb23   : > { %2775 = vrot.lane.b32.xlu0 %v14664_v25, %s13495_s7 }
 0xb25   : > { %v14670_v16 = vpop.eup %13125 }
 0xb26   : > { %v14672_v38 = vpop.eup %13127  ;;  %2781 = vrot.lane.b32.xlu1 %v14670_v16, %s13495_s7 }
 0xb27   : > { %2779 = vrot.lane.b32.xlu0 %v14672_v38, %s13495_s7 }
 0xb6f   : > { %v2754_v2 = vpop.permute.xlu1 %2753 }
 0xb70   : > { %v14703_v31 = vadd.f32 %v14600_v41, %v2754_v2  ;;  %v2752_v56 = vpop.permute.xlu0 %2751 }
 0xb71   : > { %v14706_v3 = vadd.f32 %v14602_v52, %v2752_v56 }
 0xb72   : > { %v2816_v12 = vmul.f32 %v14703_v31, %v14703_v31 }
 0xb73   : > { %v2815_v36 = vmul.f32 %v14706_v3, %v14706_v3 }
 0xb74   : > { %v2834_v5 = vsel %vm178_vm0, %v2816_v12, 0.0 }
 0xb75   : > { %2835 = vadd.xlane.f32.xlu1 %v2834_v5  ;;  %v2831_v61 = vsel %vm178_vm0, %v2815_v36, 0.0 }
 0xb76   : > { %2832 = vadd.xlane.f32.xlu0 %v2831_v61 }
 0xb7f   : > { %v2758_v24 = vpop.permute.xlu1 %2757 }
 0xb80   : > { %v14715_v41 = vadd.f32 %v14614_v17, %v2758_v24  ;;  %v2756_v13 = vpop.permute.xlu0 %2755 }
 0xb81   : > { %v14718_v52 = vadd.f32 %v14617_v33, %v2756_v13 }
 0xb82   : > { %v2818_v62 = vmul.f32 %v14715_v41, %v14715_v41 }
 0xb83   : > { %v2817_v20 = vmul.f32 %v14718_v52, %v14718_v52  ;;  %v2762_v18 = vpop.permute.xlu1 %2761 }
 0xb84   : > { %v2840_v63 = vsel %vm178_vm0, %v2818_v62, 0.0  ;;  %v2760_v17 = vpop.permute.xlu0 %2759  ;;  %v14757_v2 = vadd.f32 %v14624_v28, %v2762_v18 }
 0xb85   : > { %2841 = vadd.xlane.f32.xlu0 %v2840_v63  ;;  %v2837_v45 = vsel %vm178_vm0, %v2817_v20, 0.0  ;;  %v14731_v60 = vadd.f32 %v14626_v30, %v2760_v17 }
 0xb86   : > { %2953 = vrot.lane.b32.xlu1 %v14455_v54, %s13492_s4  ;;  %v2820_v36 = vmul.f32 %v14757_v2, %v14757_v2 }
 0xb87   : > { %v2766_v33 = vpop.permute.xlu1 %2765  ;;  %v2819_v59 = vmul.f32 %v14731_v60, %v14731_v60 }
 0xb88   : > { %v2764_v19 = vpop.permute.xlu0 %2763  ;;  %v2846_v61 = vsel %vm178_vm0, %v2820_v36, 0.0 }
 0xb89   : > { %2838 = vadd.xlane.f32.xlu0 %v2837_v45  ;;  %v14734_v34 = vadd.f32 %v14636_v21, %v2764_v19  ;;  %v2843_v9 = vsel %vm178_vm0, %v2819_v59, 0.0 }
 0xb8b   : > { %v2770_v54 = vpop.permute.xlu1 %2769 }
 0xb8c   : > { %v2768_v26 = vpop.permute.xlu0 %2767  ;;  %v14739_v15 = vadd.f32 %v14644_v46, %v2770_v54 }
 0xb8e   : > { %v2824_v23 = vmul.f32 %v14739_v15, %v14739_v15 }
 0xb90   : > { %v2774_v37 = vpop.permute.xlu1 %2773  ;;  %v2858_v50 = vsel %vm178_vm0, %v2824_v23, 0.0 }
 0xb91   : > { %v2772_v14 = vpop.permute.xlu0 %2771  ;;  %v14745_v8 = vadd.f32 %v14654_v40, %v2774_v37 }
 0xb92   : > { %v14781_v62 = vadd.f32 %v14656_v27, %v2772_v14 }
 0xb93   : > { %v2826_v42 = vmul.f32 %v14745_v8, %v14745_v8 }
 0xb94   : > { %v2778_v13 = vpop.permute.xlu1 %2777  ;;  %v2825_v29 = vmul.f32 %v14781_v62, %v14781_v62 }
 0xb95   : > { %v2776_v30 = vpop.permute.xlu0 %2775  ;;  %v2864_v56 = vsel %vm178_vm0, %v2826_v42, 0.0 }
 0xb96   : > { %v14751_v46 = vadd.f32 %v14664_v25, %v2776_v30  ;;  %v14766_v25 = vadd.f32 %v14634_v53, %v2766_v33  ;;  %v2861_v27 = vsel %vm178_vm0, %v2825_v29, 0.0 }
 0xb98   : > { %v2827_v12 = vmul.f32 %v14751_v46, %v14751_v46  ;;  %v2822_v24 = vmul.f32 %v14766_v25, %v14766_v25  ;;  %v2782_v4 = vpop.permute.xlu1 %2781 }
 0xb99   : > { %v2780_v51 = vpop.permute.xlu0 %2779  ;;  %v14793_v57 = vadd.f32 %v14670_v16, %v2782_v4 }
 0xb9a   : > { %v14760_v40 = vadd.f32 %v14672_v38, %v2780_v51  ;;  %v2867_v5 = vsel %vm178_vm0, %v2827_v12, 0.0  ;;  %v14774_v38 = vadd.f32 %v14646_v55, %v2768_v26  ;;  %v2852_v63 = vsel %vm178_vm0, %v2822_v24, 0.0 }
 0xb9b   : > { %v14787_v55 = vadd.f32 %v14662_v49, %v2778_v13  ;;  %v2830_v49 = vmul.f32 %v14793_v57, %v14793_v57 }
 0xb9c   : > { %v2829_v28 = vmul.f32 %v14760_v40, %v14760_v40  ;;  %v2823_v20 = vmul.f32 %v14774_v38, %v14774_v38 }
 0xb9d   : > { %v2828_v17 = vmul.f32 %v14787_v55, %v14787_v55  ;;  %v2876_v19 = vsel %vm178_vm0, %v2830_v49, 0.0 }
 0xb9e   : > { %v2873_v53 = vsel %vm178_vm0, %v2829_v28, 0.0  ;;  %v2855_v45 = vsel %vm178_vm0, %v2823_v20, 0.0 }
 0xb9f   : > { %2951 = vrot.lane.b32.xlu0 %v14446_v58, %s13492_s4  ;;  %v2821_v58 = vmul.f32 %v14734_v34, %v14734_v34  ;;  %v2870_v18 = vsel %vm178_vm0, %v2828_v17, 0.0 }
 0xba1   : > { %v2849_v21 = vsel %vm178_vm0, %v2821_v58, 0.0 }
 0xbaa   : > { %2844 = vadd.xlane.f32.xlu1 %v2843_v9 }
 0xbae   : > { %2850 = vadd.xlane.f32.xlu1 %v2849_v21 }
 0xbb2   : > { %2859 = vadd.xlane.f32.xlu1 %v2858_v50 }
 0xbb6   : > { %2865 = vadd.xlane.f32.xlu1 %v2864_v56 }
 0xbba   : > { %2868 = vadd.xlane.f32.xlu1 %v2867_v5 }
 0xbbe   : > { %2847 = vadd.xlane.f32.xlu0 %v2846_v61  ;;  %2874 = vadd.xlane.f32.xlu1 %v2873_v53 }
 0xbc2   : > { %2853 = vadd.xlane.f32.xlu0 %v2852_v63 }
 0xbc6   : > { %2856 = vadd.xlane.f32.xlu0 %v2855_v45 }
 0xbca   : > { %2862 = vadd.xlane.f32.xlu0 %v2861_v27 }
 0xbce   : > { %2871 = vadd.xlane.f32.xlu0 %v2870_v18 }
 0xbcf   : > { %2957 = vrot.lane.b32.xlu1 %v14477_v7, %s13492_s4 }
 0xbd2   : > { %2877 = vadd.xlane.f32.xlu0 %v2876_v19 }
 0xbe8   : > { %2955 = vrot.lane.b32.xlu0 %v14468_v1, %s13492_s4 }
 0xc02   : > { %v2836_v16 = vpop.xlane.xlu1 %2835 }
 0xc03   : > { %13129 = vrsqrt.f32 %v2836_v16  ;;  %v2833_v33 = vpop.xlane.xlu0 %2832 }
 0xc04   : > { %13131 = vrsqrt.f32 %v2833_v33 }
 0xc06   : > { %v14822_v50 = vpop.permute.xlu1 %2953 }
 0xc07   : > { %16691 = vst [vmem:[#allocation11_spill] sm:$0xff] %v14822_v50 }
 0xc0d   : > { %v13130_v26 = vpop.eup %13129 }
 0xc0e   : > { %v13132_v54 = vpop.eup %13131  ;;  %v2896_v59 = vmul.f32 %v13130_v26, %v14703_v31 }
 0xc0f   : > { %v2895_v14 = vmul.f32 %v13132_v54, %v14706_v3 }
 0xc10   : > { %v2976_v58 = vsel %vm178_vm0, %v2896_v59, %v14684_v22 }
 0xc11   : > { %v2975_v9 = vsel %vm178_vm0, %v2895_v14, %v14678_v0 }
 0xc12   : > { %v2842_v7 = vpop.xlane.xlu0 %2841  ;;  %11668 = vmatprep.mubr.msk.f32.mxu0 %vm363_vm1, %v2975_v9 }
 0xc13   : > { %11669 = vmatmul.mubr.msk.f32.vlgmr.msra.gmra.mrb[54].mxu0 %vm363_vm1, %v2976_v58  ;;  %13133 = vrsqrt.f32 %v2842_v7 }
 0xc16   : > { %v2839_v1 = vpop.xlane.xlu0 %2838 }
 0xc17   : > { %13135 = vrsqrt.f32 %v2839_v1 }
 0xc1a   : > { %v14828_v36 = vpop.permute.xlu0 %2951 }
 0xc1b   : > { %16692 = vst [vmem:[#allocation12_spill] sm:$0xff] %v14828_v36 }
 0xc1d   : > { %v13134_v37 = vpop.eup %13133 }
 0xc1e   : > { %v2898_v31 = vmul.f32 %v13134_v37, %v14715_v41 }
 0xc20   : > { %v2978_v23 = vsel %vm178_vm0, %v2898_v31, %v14688_v43 }
 0xc21   : > { %v13136_v30 = vpop.eup %13135 }
 0xc22   : > { %v2897_v3 = vmul.f32 %v13136_v30, %v14718_v52 }
 0xc24   : > { %v2977_v21 = vsel %vm178_vm0, %v2897_v3, %v14680_v47 }
 0xc25   : > { %11671 = vmatprep.mubr.msk.f32.mxu0 %vm363_vm1, %v2977_v21 }
 0xc26   : > { %11672 = vmatmul.mubr.msk.f32.gmra.mrb[56].mxu0 %vm363_vm1, %v2978_v23 }
 0xc37   : > { %v2845_v42 = vpop.xlane.xlu1 %2844 }
 0xc38   : > { %13137 = vrsqrt.f32 %v2845_v42 }
 0xc3b   : > { %v2851_v51 = vpop.xlane.xlu1 %2850 }
 0xc3c   : > { %13139 = vrsqrt.f32 %v2851_v51 }
 0xc3f   : > { %v2860_v12 = vpop.xlane.xlu1 %2859 }
 0xc42   : > { %v13138_v56 = vpop.eup %13137 }
 0xc43   : > { %v2899_v41 = vmul.f32 %v13138_v56, %v14731_v60  ;;  %v2866_v28 = vpop.xlane.xlu1 %2865  ;;  %v10736_v56 = vld [vmem:[#allocation2 + $0x148] ss:$0 sm:$0xff] }
 0xc45   : > { %v2979_v52 = vsel %vm178_vm0, %v2899_v41, %v14682_v32 }
 0xc46   : > { %11674 = vmatprep.mubr.msk.f32.mxu0 %vm363_vm1, %v2979_v52  ;;  %v13140_v53 = vpop.eup %13139 }
 0xc47   : > { %v2869_v24 = vpop.xlane.xlu1 %2868  ;;  %v2901_v63 = vmul.f32 %v13140_v53, %v14734_v34 }
 0xc49   : > { %v2981_v17 = vsel %vm178_vm0, %v2901_v63, %v14686_v10 }
 0xc4b   : > { %v2848_v5 = vpop.xlane.xlu0 %2847  ;;  %v2875_v29 = vpop.xlane.xlu1 %2874 }
 0xc4c   : > { %13141 = vrsqrt.f32 %v2848_v5 }
 0xc4f   : > { %v2854_v61 = vpop.xlane.xlu0 %2853  ;;  %v14868_v23 = vpop.permute.xlu1 %2957 }
 0xc50   : > { %13143 = vrsqrt.f32 %v2854_v61  ;;  %16694 = vst [vmem:[#allocation14_spill] sm:$0xff] %v14868_v23 }
 0xc51   : > { %13145 = vrsqrt.f32 %v2860_v12 }
 0xc53   : > { %v2857_v13 = vpop.xlane.xlu0 %2856 }
 0xc54   : > { %13147 = vrsqrt.f32 %v2857_v13 }
 0xc55   : > { %13149 = vrsqrt.f32 %v2866_v28 }
 0xc56   : > { %v13142_v60 = vpop.eup %13141  ;;  %13151 = vrsqrt.f32 %v2869_v24 }
 0xc57   : > { %v2863_v20 = vpop.xlane.xlu0 %2862  ;;  %v2900_v45 = vmul.f32 %v13142_v60, %v14757_v2 }
 0xc58   : > { %13153 = vrsqrt.f32 %v2863_v20 }
 0xc59   : > { %v2980_v4 = vsel %vm178_vm0, %v2900_v45, %v14692_v48  ;;  %13155 = vrsqrt.f32 %v2875_v29 }
 0xc5a   : > { %v13144_v27 = vpop.eup %13143  ;;  %11675 = vmatmul.mubr.msk.f32.gmra.mrb[58].mxu0 %vm363_vm1, %v2980_v4 }
 0xc5b   : > { %v13146_v18 = vpop.eup %13145  ;;  %11677 = vmatprep.mubr.msk.f32.mxu0 %vm363_vm1, %v2981_v17  ;;  %v2872_v49 = vpop.xlane.xlu0 %2871  ;;  %v2902_v34 = vmul.f32 %v13144_v27, %v14766_v25 }
 0xc5c   : > { %13157 = vrsqrt.f32 %v2872_v49  ;;  %v2904_v16 = vmul.f32 %v13146_v18, %v14739_v15 }
 0xc5d   : > { %v2982_v2 = vsel %vm178_vm0, %v2902_v34, %v14690_v6 }
 0xc5e   : > { %v13148_v19 = vpop.eup %13147  ;;  %11678 = vmatmul.mubr.msk.f32.gmra.mrb[60].mxu0 %vm363_vm1, %v2982_v2  ;;  %v2984_v25 = vsel %vm178_vm0, %v2904_v16, %v14694_v39 }
 0xc5f   : > { %v13150_v33 = vpop.eup %13149  ;;  %v2878_v26 = vpop.xlane.xlu0 %2877  ;;  %v2903_v54 = vmul.f32 %v13148_v19, %v14774_v38 }
 0xc60   : > { %v13152_v59 = vpop.eup %13151  ;;  %13159 = vrsqrt.f32 %v2878_v26  ;;  %v2906_v7 = vmul.f32 %v13150_v33, %v14745_v8 }
 0xc61   : > { %v2983_v14 = vsel %vm178_vm0, %v2903_v54, %v14696_v44  ;;  %v2907_v58 = vmul.f32 %v13152_v59, %v14751_v46 }
 0xc62   : > { %v13154_v9 = vpop.eup %13153  ;;  %11680 = vmatprep.mubr.msk.f32.mxu0 %vm363_vm1, %v2983_v14  ;;  %v2986_v30 = vsel %vm178_vm0, %v2906_v7, %v14698_v35 }
 0xc63   : > { %11681 = vmatmul.mubr.msk.f32.gmra.mrb[62].mxu0 %vm363_vm1, %v2984_v25  ;;  %v2905_v15 = vmul.f32 %v13154_v9, %v14781_v62  ;;  %v13156_v38 = vpop.eup %13155  ;;  %v2987_v8 = vsel %vm178_vm0, %v2907_v58, %v14828_v36  ;;  %v14862_v62 = vpop.permute.xlu0 %2955 }
 0xc64   : > { %16693 = vst [vmem:[#allocation13_spill] sm:$0xff] %v14862_v62  ;;  %v2909_v3 = vmul.f32 %v13156_v38, %v14760_v40 }
 0xc65   : > { %v2985_v1 = vsel %vm178_vm0, %v2905_v15, %v14700_v11 }
 0xc66   : > { %v13158_v37 = vpop.eup %13157  ;;  %11683 = vmatprep.mubr.msk.f32.mxu0 %vm363_vm1, %v2985_v1  ;;  %v2989_v42 = vsel %vm178_vm0, %v2909_v3, %v14862_v62 }
 0xc67   : > { %11684 = vmatmul.mubr.msk.f32.gmra.mrb[64].mxu0 %vm363_vm1, %v2986_v30  ;;  %v2908_v31 = vmul.f32 %v13158_v37, %v14787_v55 }
 0xc68   : > { %11686 = vmatprep.mubr.msk.f32.mxu0 %vm363_vm1, %v2987_v8 }
 0xc69   : > { %v2988_v46 = vsel %vm178_vm0, %v2908_v31, %v14822_v50 }
 0xc6a   : > { %v13160_v21 = vpop.eup %13159 }
 0xc6b   : > { %11687 = vmatmul.mubr.msk.f32.gmra.mrb[66].mxu0 %vm363_vm1, %v2988_v46  ;;  %v2910_v51 = vmul.f32 %v13160_v21, %v14793_v57 }
 0xc6c   : > { %11689 = vmatprep.mubr.msk.f32.mxu0 %vm363_vm1, %v2989_v42 }
 0xc6d   : > { %v2990_v55 = vsel %vm178_vm0, %v2910_v51, %v14868_v23 }
 0xc6f   : > { %11690 = vmatmul.mubr.msk.f32.gmra.mrb[68].mxu0 %vm363_vm1, %v2990_v55 }
 0xce6   : > { %v11670_v41 = vpop.f32.mrb[54].mxu0 }
 0xce7   : > { %v14878_v40 = vadd.f32 %v11670_v41, %v10736_v56  ;;  %v3112_v52 = vpop.f32.mrb[55].mxu0 }
 0xce8   : > { %v14880_v12 = vadd.f32 %v10736_v56, %v3112_v52 }
 0xcea   : > { %11696 = vmatprep.mubr.msk.f32.mxu1 %vm3197_vm7, %v14880_v12  ;;  %v14886_v57 = vpack.i.bf16 %v14878_v40, %v14880_v12 }
 0xcec   : > { %12650 = vrot.lane.b32.xlu0 %v14886_v57, %s13495_s7 }
 0xcf9   : > { %v11673_v5 = vpop.f32.mrb[56].mxu0 }
 0xcfa   : > { %v14890_v28 = vadd.f32 %v11673_v5, %v10736_v56  ;;  %v3122_v61 = vpop.f32.mrb[57].mxu0 }
 0xcfb   : > { %v14892_v24 = vadd.f32 %v10736_v56, %v3122_v61 }
 0xcfd   : > { %v14896_v53 = vpack.i.bf16 %v14890_v28, %v14892_v24 }
 0xcff   : > { %12655 = vrot.lane.b32.xlu1 %v14896_v53, %s13495_s7 }
 0xd2d   : > { %v11676_v13 = vpop.f32.mrb[58].mxu0 }
 0xd2e   : > { %v14900_v60 = vadd.f32 %v11676_v13, %v10736_v56  ;;  %v3132_v63 = vpop.f32.mrb[59].mxu0 }
 0xd2f   : > { %v14902_v20 = vadd.f32 %v10736_v56, %v3132_v63 }
 0xd31   : > { %v11679_v45 = vpop.f32.mrb[60].mxu0  ;;  %v14906_v29 = vpack.i.bf16 %v14900_v60, %v14902_v20 }
 0xd32   : > { %v14908_v4 = vadd.f32 %v11679_v45, %v10736_v56  ;;  %v3142_v27 = vpop.f32.mrb[61].mxu0 }
 0xd33   : > { %v14910_v17 = vadd.f32 %v10736_v56, %v3142_v27  ;;  %12660 = vrot.lane.b32.xlu0 %v14906_v29, %s13495_s7 }
 0xd35   : > { %v14916_v18 = vpack.i.bf16 %v14908_v4, %v14910_v17 }
 0xd36   : > { %v11682_v49 = vpop.f32.mrb[62].mxu0 }
 0xd37   : > { %v14918_v34 = vadd.f32 %v11682_v49, %v10736_v56  ;;  %12665 = vrot.lane.b32.xlu1 %v14916_v18, %s13495_s7  ;;  %v3152_v2 = vpop.f32.mrb[63].mxu0 }
 0xd38   : > { %v14922_v19 = vadd.f32 %v10736_v56, %v3152_v2 }
 0xd3a   : > { %v11685_v16 = vpop.f32.mrb[64].mxu0  ;;  %11724 = vmatprep.mubr.msk.f32.mxu0 %vm3197_vm7, %v14922_v19  ;;  %v14928_v33 = vpack.i.bf16 %v14918_v34, %v14922_v19 }
 0xd3b   : > { %v14930_v26 = vadd.f32 %v11685_v16, %v10736_v56  ;;  %v3162_v54 = vpop.f32.mrb[65].mxu0 }
 0xd3c   : > { %v14932_v59 = vadd.f32 %v10736_v56, %v3162_v54  ;;  %12670 = vrot.lane.b32.xlu0 %v14928_v33, %s13495_s7 }
 0xd3e   : > { %v11688_v14 = vpop.f32.mrb[66].mxu0  ;;  %v14938_v9 = vpack.i.bf16 %v14930_v26, %v14932_v59 }
 0xd3f   : > { %v14940_v25 = vadd.f32 %v11688_v14, %v10736_v56  ;;  %v3172_v7 = vpop.f32.mrb[67].mxu0 }
 0xd40   : > { %v14942_v15 = vadd.f32 %v10736_v56, %v3172_v7  ;;  %12675 = vrot.lane.b32.xlu1 %v14938_v9, %s13495_s7 }
 0xd42   : > { %v11691_v58 = vpop.f32.mrb[68].mxu0  ;;  %v14948_v38 = vpack.i.bf16 %v14940_v25, %v14942_v15 }
 0xd43   : > { %v14950_v1 = vadd.f32 %v11691_v58, %v10736_v56  ;;  %v3182_v37 = vpop.f32.mrb[69].mxu0 }
 0xd44   : > { %v14952_v30 = vadd.f32 %v10736_v56, %v3182_v37  ;;  %12680 = vrot.lane.b32.xlu0 %v14948_v38, %s13495_s7 }
 0xd46   : > { %v14958_v8 = vpack.i.bf16 %v14950_v1, %v14952_v30 }
 0xd48   : > { %12685 = vrot.lane.b32.xlu1 %v14958_v8, %s13495_s7 }
 0xd5e   : > { %v12651_v31 = vpop.permute.xlu0 %12650 }
 0xd5f   : > { %v12653_v46 = vunpack.i.h.bf16 %v12651_v31  ;;  %v12652_v3 = vunpack.i.l.bf16 %v12651_v31 }
 0xd61   : > { %v12284_v42 = vpack.c.bf16 %v12653_v46, %v12652_v3 }
 0xd63   : > { %12286 = vmatprep.subr.msk.bf16.mxu1 %vm14964_vm8, %v12284_v42 }
 0xd64   : > { %12289 = vmatpush3.bf16.xpose.msk.msra.mxu1 %vm14964_vm8, %v12284_v42 }
 0xd6b   : > { %11697 = vmatmul.mubr.msk.f32.vlgmr.msra.gmra.mrb[42].mxu1 %vm3197_vm7, %v14878_v40 }
 0xd6c   : > { %11703 = vmatprep.mubr.msk.f32.mxu1 %vm3197_vm7, %v14892_v24 }
 0xd71   : > { %v12656_v51 = vpop.permute.xlu1 %12655 }
 0xd72   : > { %v12658_v55 = vunpack.i.h.bf16 %v12656_v51  ;;  %v12657_v56 = vunpack.i.l.bf16 %v12656_v51 }
 0xd74   : > { %v12290_v41 = vpack.c.bf16 %v12658_v55, %v12657_v56 }
 0xd76   : > { %12292 = vmatprep.subr.msk.bf16.mxu1 %vm14964_vm8, %v12290_v41 }
 0xd77   : > { %12295 = vmatpush3.bf16.xpose.msk.msra.mxu1 %vm14964_vm8, %v12290_v41 }
 0xd7e   : > { %11704 = vmatmul.mubr.msk.f32.vlgmr.msra.gmra.mrb[44].mxu1 %vm3197_vm7, %v14890_v28 }
 0xd7f   : > { %11710 = vmatprep.mubr.msk.f32.mxu1 %vm3197_vm7, %v14902_v20 }
 0xda5   : > { %v12661_v52 = vpop.permute.xlu0 %12660 }
 0xda6   : > { %v12663_v5 = vunpack.i.h.bf16 %v12661_v52  ;;  %v12662_v61 = vunpack.i.l.bf16 %v12661_v52 }
 0xda8   : > { %v12296_v13 = vpack.c.bf16 %v12663_v5, %v12662_v61 }
 0xda9   : > { %v12666_v63 = vpop.permute.xlu1 %12665 }
 0xdaa   : > { %v12668_v45 = vunpack.i.h.bf16 %v12666_v63  ;;  %v12667_v27 = vunpack.i.l.bf16 %v12666_v63  ;;  %12298 = vmatprep.subr.msk.bf16.mxu1 %vm14964_vm8, %v12296_v13 }
 0xdab   : > { %12301 = vmatpush3.bf16.xpose.msk.msra.mxu1 %vm14964_vm8, %v12296_v13 }
 0xdac   : > { %v12302_v49 = vpack.c.bf16 %v12668_v45, %v12667_v27 }
 0xdae   : > { %v12671_v2 = vpop.permute.xlu0 %12670  ;;  %12304 = vmatprep.subr.msk.bf16.mxu1 %vm14964_vm8, %v12302_v49 }
 0xdaf   : > { %v12673_v16 = vunpack.i.h.bf16 %v12671_v2  ;;  %v12672_v54 = vunpack.i.l.bf16 %v12671_v2 }
 0xdb1   : > { %v12308_v14 = vpack.c.bf16 %v12673_v16, %v12672_v54 }
 0xdb2   : > { %v12676_v7 = vpop.permute.xlu1 %12675  ;;  %11711 = vmatmul.mubr.msk.f32.vlgmr.msra.gmra.mrb[46].mxu1 %vm3197_vm7, %v14900_v60 }
 0xdb3   : > { %v12678_v58 = vunpack.i.h.bf16 %v12676_v7  ;;  %v12677_v37 = vunpack.i.l.bf16 %v12676_v7  ;;  %12307 = vmatpush3.bf16.xpose.msk.msra.mxu1 %vm14964_vm8, %v12302_v49  ;;  %11717 = vmatprep.mubr.msk.f32.mxu1 %vm3197_vm7, %v14910_v17 }
 0xdb4   : > { %12310 = vmatprep.subr.msk.bf16.mxu0 %vm14964_vm8, %v12308_v14 }
 0xdb5   : > { %v12314_v31 = vpack.c.bf16 %v12678_v58, %v12677_v37  ;;  %12313 = vmatpush3.bf16.xpose.msk.msra.mxu0 %vm14964_vm8, %v12308_v14 }
 0xdb6   : > { %v12681_v46 = vpop.permute.xlu0 %12680 }
 0xdb7   : > { %v12683_v3 = vunpack.i.h.bf16 %v12681_v46  ;;  %v12682_v42 = vunpack.i.l.bf16 %v12681_v46  ;;  %12316 = vmatprep.subr.msk.bf16.mxu1 %vm14964_vm8, %v12314_v31 }
 0xdb9   : > { %v12320_v51 = vpack.c.bf16 %v12683_v3, %v12682_v42 }
 0xdba   : > { %v12686_v55 = vpop.permute.xlu1 %12685  ;;  %11718 = vmatmul.mubr.msk.f32.vlgmr.msra.gmra.mrb[48].mxu1 %vm3197_vm7, %v14908_v4 }
 0xdbb   : > { %v12688_v56 = vunpack.i.h.bf16 %v12686_v55  ;;  %v12687_v41 = vunpack.i.l.bf16 %v12686_v55  ;;  %12319 = vmatpush3.bf16.xpose.msk.msra.mxu1 %vm14964_vm8, %v12314_v31  ;;  %11731 = vmatprep.mubr.msk.f32.mxu1 %vm3197_vm7, %v14932_v59 }
 0xdbc   : > { %11725 = vmatmul.mubr.msk.f32.vlgmr.msra.gmra.mrb[70].mxu0 %vm3197_vm7, %v14918_v34  ;;  %12322 = vmatprep.subr.msk.bf16.mxu0 %vm14964_vm8, %v12320_v51 }
 0xdbd   : > { %v12326_v52 = vpack.c.bf16 %v12688_v56, %v12687_v41  ;;  %12325 = vmatpush3.bf16.xpose.msk.msra.mxu0 %vm14964_vm8, %v12320_v51  ;;  %11738 = vmatprep.mubr.msk.f32.mxu0 %vm3197_vm7, %v14942_v15 }
 0xdbf   : > { %12328 = vmatprep.subr.msk.bf16.mxu1 %vm14964_vm8, %v12326_v52 }
 0xdc2   : > { %11732 = vmatmul.mubr.msk.f32.vlgmr.msra.gmra.mrb[50].mxu1 %vm3197_vm7, %v14930_v26 }
 0xdc3   : > { %12331 = vmatpush3.bf16.xpose.msk.msra.mxu1 %vm14964_vm8, %v12326_v52  ;;  %11745 = vmatprep.mubr.msk.f32.mxu1 %vm3197_vm7, %v14952_v30 }
 0xdc4   : > { %11739 = vmatmul.mubr.msk.f32.vlgmr.msra.gmra.mrb[72].mxu0 %vm3197_vm7, %v14940_v25 }
 0xdca   : > { %11746 = vmatmul.mubr.msk.f32.vlgmr.msra.gmra.mrb[52].mxu1 %vm3197_vm7, %v14950_v1 }
 0xe3e   : > { %v11698_v5 = vpop.f32.mrb[42].mxu1 }
 0xe3f   : > { %v15028_v61 = vmul.f32 0.5, %v11698_v5  ;;  %v3272_v13 = vpop.f32.mrb[43].mxu1 }
 0xe40   : > { %v15030_v63 = vmul.f32 0.5, %v3272_v13 }
 0xe41   : > { %v3923_v45 = vsel %vm363_vm1, %v15028_v61, -inf }
 0xe42   : > { %3924 = vmax.xlane.f32.xlu1 %v3923_v45  ;;  %v3920_v27 = vsel %vm363_vm1, %v15030_v63, -inf }
 0xe43   : > { %3921 = vmax.xlane.f32.xlu0 %v3920_v27 }
 0xe51   : > { %v11705_v49 = vpop.f32.mrb[44].mxu1 }
 0xe52   : > { %v15036_v2 = vmul.f32 0.5, %v11705_v49  ;;  %v3361_v16 = vpop.f32.mrb[45].mxu1 }
 0xe53   : > { %v15038_v54 = vmul.f32 0.5, %v3361_v16 }
 0xe54   : > { %v3929_v14 = vsel %vm363_vm1, %v15036_v2, -inf }
 0xe55   : > { %3930 = vmax.xlane.f32.xlu0 %v3929_v14  ;;  %v3926_v7 = vsel %vm363_vm1, %v15038_v54, -inf }
 0xe59   : > { %3927 = vmax.xlane.f32.xlu0 %v3926_v7 }
 0xe85   : > { %v11712_v58 = vpop.f32.mrb[46].mxu1 }
 0xe86   : > { %v15044_v37 = vmul.f32 0.5, %v11712_v58  ;;  %v3450_v31 = vpop.f32.mrb[47].mxu1 }
 0xe87   : > { %v15046_v46 = vmul.f32 0.5, %v3450_v31 }
 0xe88   : > { %v3935_v3 = vsel %vm363_vm1, %v15044_v37, -inf }
 0xe89   : > { %3936 = vmax.xlane.f32.xlu0 %v3935_v3  ;;  %v3932_v42 = vsel %vm363_vm1, %v15046_v46, -inf }
 0xe8a   : > { %3933 = vmax.xlane.f32.xlu1 %v3932_v42 }
 0xe8d   : > { %v11719_v51 = vpop.f32.mrb[48].mxu1 }
 0xe8e   : > { %v15052_v55 = vmul.f32 0.5, %v11719_v51  ;;  %v3539_v56 = vpop.f32.mrb[49].mxu1 }
 0xe8f   : > { %v11726_v41 = vpop.f32.mrb[70].mxu0  ;;  %v15054_v52 = vmul.f32 0.5, %v3539_v56 }
 0xe90   : > { %v15056_v5 = vmul.f32 0.5, %v11726_v41  ;;  %v3628_v13 = vpop.f32.mrb[71].mxu0  ;;  %v3941_v45 = vsel %vm363_vm1, %v15052_v55, -inf }
 0xe91   : > { %3942 = vmax.xlane.f32.xlu1 %v3941_v45  ;;  %v15060_v27 = vmul.f32 0.5, %v3628_v13  ;;  %v3938_v16 = vsel %vm363_vm1, %v15054_v52, -inf }
 0xe92   : > { %v3947_v49 = vsel %vm363_vm1, %v15056_v5, -inf }
 0xe93   : > { %3948 = vmax.xlane.f32.xlu0 %v3947_v49  ;;  %v3944_v7 = vsel %vm363_vm1, %v15060_v27, -inf }
 0xe95   : > { %3939 = vmax.xlane.f32.xlu1 %v3938_v16  ;;  %v11733_v14 = vpop.f32.mrb[50].mxu1 }
 0xe96   : > { %v3717_v58 = vpop.f32.mrb[51].mxu1  ;;  %v15072_v56 = vmul.f32 0.5, %v11733_v14 }
 0xe97   : > { %v11740_v31 = vpop.f32.mrb[72].mxu0  ;;  %3945 = vmax.xlane.f32.xlu0 %v3944_v7  ;;  %v15076_v13 = vmul.f32 0.5, %v3717_v58 }
 0xe98   : > { %v15068_v3 = vmul.f32 0.5, %v11740_v31  ;;  %v3806_v42 = vpop.f32.mrb[73].mxu0  ;;  %v3953_v7 = vsel %vm363_vm1, %v15072_v56, -inf }
 0xe99   : > { %v15070_v51 = vmul.f32 0.5, %v3806_v42  ;;  %v3950_v14 = vsel %vm363_vm1, %v15076_v13, -inf }
 0xe9a   : > { %v3959_v41 = vsel %vm363_vm1, %v15068_v3, -inf }
 0xe9b   : > { %3960 = vmax.xlane.f32.xlu0 %v3959_v41  ;;  %v3956_v45 = vsel %vm363_vm1, %v15070_v51, -inf }
 0xe9c   : > { %3957 = vmax.xlane.f32.xlu1 %v3956_v45 }
 0xe9d   : > { %v11747_v49 = vpop.f32.mrb[52].mxu1 }
 0xe9e   : > { %v15080_v16 = vmul.f32 0.5, %v11747_v49  ;;  %v3895_v31 = vpop.f32.mrb[53].mxu1 }
 0xe9f   : > { %3954 = vmax.xlane.f32.xlu0 %v3953_v7 }
 0xea0   : > { %3951 = vmax.xlane.f32.xlu1 %v3950_v14  ;;  %v3965_v58 = vsel %vm363_vm1, %v15080_v16, -inf }
 0xea3   : > { %3966 = vmax.xlane.f32.xlu0 %v3965_v58 }
 0xeb1   : > { %12695 = vrot.lane.b32.xlu1 %v14896_v53, %s13496_s8 }
 0xeb5   : > { %12700 = vrot.lane.b32.xlu1 %v14906_v29, %s13496_s8 }
 0xeb9   : > { %12705 = vrot.lane.b32.xlu1 %v14916_v18, %s13496_s8  ;;  %12690 = vrot.lane.b32.xlu0 %v14886_v57, %s13496_s8 }
 0xebd   : > { %12710 = vrot.lane.b32.xlu1 %v14928_v33, %s13496_s8 }
 0xec1   : > { %12715 = vrot.lane.b32.xlu1 %v14938_v9, %s13496_s8 }
 0xec5   : > { %12720 = vrot.lane.b32.xlu1 %v14948_v38, %s13496_s8 }
 0xec9   : > { %12725 = vrot.lane.b32.xlu1 %v14958_v8, %s13496_s8 }
 0xecd   : > { %12730 = vrot.lane.b32.xlu1 %v14886_v57, %s13498_s12 }
 0xecf   : > { %v3925_v42 = vpop.xlane.xlu1 %3924 }
 0xed0   : > { %v3969_v41 = vsub.f32 %v15028_v61, %v3925_v42  ;;  %v3922_v49 = vpop.xlane.xlu0 %3921 }
 0xed1   : > { %v3968_v14 = vsub.f32 %v15030_v63, %v3922_v49 }
 0xed2   : > { %v3986_v45 = vmul.f32 1.442695, %v3969_v41  ;;  %v15114_v41 = vmul.f32 0.5, %v3895_v31 }
 0xed3   : > { %v3984_v23 = vmul.f32 1.442695, %v3968_v14 }
 0xed4   : > { %13161 = vpow2.f32 %v3986_v45  ;;  %v3962_v63 = vsel %vm363_vm1, %v15114_v41, -inf }
 0xed5   : > { %13163 = vpow2.f32 %v3984_v23 }
 0xede   : > { %v15107_v7 = vpop.eup %13161 }
 0xedf   : > { %v4019_v58 = vsel %vm363_vm1, %v15107_v7, 0.0  ;;  %v15116_v45 = vpop.eup %13163 }
 0xee0   : > { %4020 = vadd.xlane.f32.xlu0 %v4019_v58 }
 0xee2   : > { %v3931_v62 = vpop.xlane.xlu0 %3930 }
 0xee3   : > { %v3971_v50 = vsub.f32 %v15036_v2, %v3931_v62 }
 0xee5   : > { %v3990_v36 = vmul.f32 1.442695, %v3971_v50 }
 0xee6   : > { %v3928_v35 = vpop.xlane.xlu0 %3927 }
 0xee7   : > { %13165 = vpow2.f32 %v3990_v36  ;;  %v3970_v61 = vsub.f32 %v15038_v54, %v3928_v35  ;;  %v4016_v36 = vsel %vm363_vm1, %v15116_v45, 0.0 }
 0xee9   : > { %v3988_v42 = vmul.f32 1.442695, %v3970_v61 }
 0xeeb   : > { %13167 = vpow2.f32 %v3988_v42 }
 0xef1   : > { %v15120_v49 = vpop.eup %13165  ;;  %3963 = vmax.xlane.f32.xlu1 %v3962_v63 }
 0xef2   : > { %v4025_v50 = vsel %vm363_vm1, %v15120_v49, 0.0 }
 0xef3   : > { %4026 = vadd.xlane.f32.xlu0 %v4025_v50 }
 0xef5   : > { %v15126_v35 = vpop.eup %13167  ;;  %4017 = vadd.xlane.f32.xlu1 %v4016_v36 }
 0xef6   : > { %v4022_v62 = vsel %vm363_vm1, %v15126_v35, 0.0 }
 0xef9   : > { %4023 = vadd.xlane.f32.xlu1 %v4022_v62 }
 0xf16   : > { %v3937_v23 = vpop.xlane.xlu0 %3936 }
 0xf17   : > { %v3973_v2 = vsub.f32 %v15044_v37, %v3937_v23  ;;  %v3934_v54 = vpop.xlane.xlu1 %3933 }
 0xf18   : > { %v3972_v31 = vsub.f32 %v15046_v46, %v3934_v54 }
 0xf19   : > { %v3994_v14 = vmul.f32 1.442695, %v3973_v2 }
 0xf1a   : > { %v3992_v58 = vmul.f32 1.442695, %v3972_v31 }
 0xf1b   : > { %13169 = vpow2.f32 %v3994_v14 }
 0xf1c   : > { %13171 = vpow2.f32 %v3992_v58 }
 0xf1e   : > { %v3943_v61 = vpop.xlane.xlu1 %3942 }
 0xf1f   : > { %v3975_v42 = vsub.f32 %v15052_v55, %v3943_v61 }
 0xf20   : > { %v3949_v63 = vpop.xlane.xlu0 %3948 }
 0xf21   : > { %v3998_v50 = vmul.f32 1.442695, %v3975_v42  ;;  %v3977_v36 = vsub.f32 %v15056_v5, %v3949_v63 }
 0xf22   : > { %v3940_v62 = vpop.xlane.xlu1 %3939 }
 0xf23   : > { %13173 = vpow2.f32 %v3998_v50  ;;  %v4002_v11 = vmul.f32 1.442695, %v3977_v36  ;;  %v3974_v55 = vsub.f32 %v15054_v52, %v3940_v62 }
 0xf24   : > { %v3946_v39 = vpop.xlane.xlu0 %3945 }
 0xf25   : > { %v15134_v44 = vpop.eup %13169  ;;  %13175 = vpow2.f32 %v4002_v11  ;;  %v3976_v37 = vsub.f32 %v15060_v27, %v3946_v39  ;;  %v3996_v14 = vmul.f32 1.442695, %v3974_v55 }
 0xf26   : > { %v15137_v46 = vpop.eup %13171  ;;  %v4031_v23 = vsel %vm363_vm1, %v15134_v44, 0.0 }
 0xf27   : > { %v4000_v2 = vmul.f32 1.442695, %v3976_v37  ;;  %4032 = vadd.xlane.f32.xlu0 %v4031_v23  ;;  %v4028_v5 = vsel %vm363_vm1, %v15137_v46, 0.0 }
 0xf28   : > { %v3961_v54 = vpop.xlane.xlu0 %3960  ;;  %4029 = vadd.xlane.f32.xlu1 %v4028_v5 }
 0xf29   : > { %13177 = vpow2.f32 %v4000_v2  ;;  %v3981_v31 = vsub.f32 %v15068_v3, %v3961_v54  ;;  %v3958_v11 = vpop.xlane.xlu1 %3957 }
 0xf2a   : > { %v3980_v27 = vsub.f32 %v15070_v51, %v3958_v11 }
 0xf2b   : > { %v4010_v39 = vmul.f32 1.442695, %v3981_v31 }
 0xf2c   : > { %v3955_v58 = vpop.xlane.xlu0 %3954  ;;  %v4008_v3 = vmul.f32 1.442695, %v3980_v27 }
 0xf2d   : > { %v15146_v61 = vpop.eup %13173  ;;  %13179 = vpow2.f32 %v4010_v39  ;;  %v3979_v52 = vsub.f32 %v15072_v56, %v3955_v58  ;;  %v15149_v42 = vpop.xlane.xlu1 %3951 }
 0xf2e   : > { %v4037_v63 = vsel %vm363_vm1, %v15146_v61, 0.0  ;;  %13181 = vpow2.f32 %v3996_v14 }
 0xf2f   : > { %v15153_v50 = vpop.eup %13175  ;;  %v4006_v36 = vmul.f32 1.442695, %v3979_v52  ;;  %4038 = vadd.xlane.f32.xlu1 %v4037_v63 }
 0xf30   : > { %v3967_v62 = vpop.xlane.xlu0 %3966  ;;  %v4043_v51 = vsel %vm363_vm1, %v15153_v50, 0.0 }
 0xf31   : > { %13183 = vpow2.f32 %v4006_v36  ;;  %v12696_v37 = vpop.permute.xlu1 %12695  ;;  %4044 = vadd.xlane.f32.xlu0 %v4043_v51 }
 0xf32   : > { %13185 = vpow2.f32 %v4008_v3  ;;  %v12698_v2 = vunpack.i.h.bf16 %v12696_v37  ;;  %v12697_v5 = vunpack.i.l.bf16 %v12696_v37 }
 0xf33   : > { %v15157_v23 = vpop.eup %13177 }
 0xf34   : > { %v12691_v56 = vpop.permute.xlu0 %12690  ;;  %v4040_v55 = vsel %vm363_vm1, %v15157_v23, 0.0  ;;  %v15171_v63 = vpack.c.bf16 %v12698_v2, %v12697_v5 }
 0xf35   : > { %v12693_v54 = vunpack.i.h.bf16 %v12691_v56  ;;  %v12692_v31 = vunpack.i.l.bf16 %v12691_v56  ;;  %v15161_v11 = vpop.permute.xlu1 %12700  ;;  %4041 = vadd.xlane.f32.xlu0 %v4040_v55 }
 0xf37   : > { %v15163_v14 = vpop.eup %13179  ;;  %v12332_v39 = vpack.c.bf16 %v12693_v54, %v12692_v31 }
 0xf38   : > { %v4055_v27 = vsel %vm363_vm1, %v15163_v14, 0.0  ;;  %v15167_v58 = vpop.eup %13181 }
 0xf39   : > { %v15169_v52 = vpop.permute.xlu1 %12705  ;;  %12333 = vmatprep.subr.bf16.mxu0 %v12332_v39  ;;  %4056 = vadd.xlane.f32.xlu1 %v4055_v27  ;;  %v4034_v51 = vsel %vm363_vm1, %v15167_v58, 0.0 }
 0xf3a   : > { %12335 = vmatpush3.bf16.msra.mxu0 %v12332_v39 }
 0xf3b   : > { %v15173_v3 = vpop.eup %13183  ;;  %12337 = vmatprep.subr.bf16.mxu0 %v15171_v63 }
 0xf3c   : > { %v4049_v36 = vsel %vm363_vm1, %v15173_v3, 0.0  ;;  %v15180_v37 = vpop.eup %13185 }
 0xf3d   : > { %v12711_v56 = vpop.permute.xlu1 %12710  ;;  %4050 = vadd.xlane.f32.xlu0 %v4049_v36  ;;  %4035 = vadd.xlane.f32.xlu1 %v4034_v51  ;;  %v4052_v2 = vsel %vm363_vm1, %v15180_v37, 0.0  ;;  %v3983_v36 = vsub.f32 %v15080_v16, %v3967_v62 }
 0xf3e   : > { %v12713_v55 = vunpack.i.h.bf16 %v12711_v56  ;;  %v12712_v54 = vunpack.i.l.bf16 %v12711_v56 }
 0xf40   : > { %v12348_v5 = vpack.c.bf16 %v12713_v55, %v12712_v54 }
 0xf41   : > { %v15184_v31 = vpop.permute.xlu1 %12715  ;;  %4053 = vadd.xlane.f32.xlu1 %v4052_v2 }
 0xf42   : > { %12349 = vmatprep.subr.bf16.mxu1 %v12348_v5 }
 0xf43   : > { %12351 = vmatpush3.bf16.msra.mxu1 %v12348_v5 }
 0xf45   : > { %v12721_v39 = vpop.permute.xlu1 %12720 }
 0xf46   : > { %v12723_v27 = vunpack.i.h.bf16 %v12721_v39  ;;  %v12722_v6 = vunpack.i.l.bf16 %v12721_v39 }
 0xf48   : > { %v15186_v10 = vpack.c.bf16 %v12723_v27, %v12722_v6  ;;  %v4014_v6 = vmul.f32 1.442695, %v3983_v36  ;;  %v12703_v27 = vunpack.i.h.bf16 %v15161_v11  ;;  %v12702_v36 = vunpack.i.l.bf16 %v15161_v11 }
 0xf49   : > { %v15210_v16 = vpop.permute.xlu1 %12725 }
 0xf4a   : > { %12357 = vmatprep.subr.bf16.mxu1 %v15186_v10  ;;  %13187 = vpow2.f32 %v4014_v6 }
 0xf4d   : > { %v15212_v56 = vpop.permute.xlu1 %12730 }
 0xf52   : > { %12740 = vrot.lane.b32.xlu1 %v14906_v29, %s13498_s12 }
 0xf53   : > { %12735 = vrot.lane.b32.xlu0 %v14896_v53, %s13498_s12 }
 0xf54   : > { %v15204_v51 = vpop.eup %13187 }
 0xf56   : > { %4792 = vrot.lane.b32.xlu1 %v14880_v12, %s13499_s13  ;;  %v4061_v12 = vsel %vm363_vm1, %v15204_v51, 0.0 }
 0xf5a   : > { %4794 = vrot.lane.b32.xlu1 %v14878_v40, %s13499_s13  ;;  %v3978_v40 = vsub.f32 %v15076_v13, %v15149_v42 }
 0xf5c   : > { %v4004_v62 = vmul.f32 1.442695, %v3978_v40 }
 0xf5e   : > { %12745 = vrot.lane.b32.xlu1 %v14916_v18, %s13498_s12  ;;  %13189 = vpow2.f32 %v4004_v62 }
 0xf62   : > { %4883 = vrot.lane.b32.xlu1 %v14892_v24, %s13499_s13 }
 0xf66   : > { %4885 = vrot.lane.b32.xlu1 %v14890_v28, %s13499_s13 }
 0xf68   : > { %v15214_v2 = vpop.eup %13189 }
 0xf69   : > { %v4046_v13 = vsel %vm363_vm1, %v15214_v2, 0.0 }
 0xf6d   : > { %v4021_v55 = vpop.xlane.xlu0 %4020 }
 0xf6e   : > { %13191 = vrcp.f32 %v4021_v55  ;;  %v12707_v55 = vunpack.i.l.bf16 %v15169_v52 }
 0xf72   : > { %4062 = vadd.xlane.f32.xlu0 %v4061_v12 }
 0xf78   : > { %v13192_v42 = vpop.eup %13191 }
 0xf79   : > { %v15230_v40 = vmul.f32 %v13192_v42, %v15107_v7 }
 0xf7b   : > { %vm7632_vm9 = vcmp.eq.f32.partialorder %v15230_v40, 0.0 }
 0xf7e   : > { %v3964_v24 = vpop.xlane.xlu1 %3963 }
 0xf80   : > { %v4027_v28 = vpop.xlane.xlu0 %4026 }
 0xf82   : > { %v4018_v54 = vpop.xlane.xlu1 %4017 }
 0xf83   : > { %13193 = vrcp.f32 %v4018_v54  ;;  %v12718_v54 = vunpack.i.h.bf16 %v15184_v31 }
 0xf84   : > { %13195 = vrcp.f32 %v4027_v28 }
 0xf86   : > { %v4024_v5 = vpop.xlane.xlu1 %4023 }
 0xf87   : > { %13197 = vrcp.f32 %v4024_v5 }
 0xf88   : > { %12750 = vrot.lane.b32.xlu0 %v14928_v33, %s13498_s12 }
 0xf8a   : > { %4047 = vadd.xlane.f32.xlu1 %v4046_v13 }
 0xf8c   : > { %4976 = vrot.lane.b32.xlu0 %v14900_v60, %s13499_s13  ;;  %v12708_v60 = vunpack.i.h.bf16 %v15169_v52 }
 0xf8d   : > { %v13194_v39 = vpop.eup %13193 }
 0xf8e   : > { %v15225_v6 = vmul.f32 %v13194_v39, %v15116_v45  ;;  %v13196_v12 = vpop.eup %13195  ;;  %v12340_v45 = vpack.c.bf16 %v12703_v27, %v12702_v36  ;;  %v12344_v7 = vpack.c.bf16 %v12708_v60, %v12707_v55  ;;  %v12733_v27 = vunpack.i.h.bf16 %v15212_v56 }
 0xf8f   : > { %v12727_v55 = vunpack.i.l.bf16 %v15210_v16 }
 0xf90   : > { %5065 = vrot.lane.b32.xlu0 %v14910_v17, %s13499_s13  ;;  %11752 = vmatprep.mubr.msk.f32.mxu0 %vm363_vm1, %v15225_v6  ;;  %v15245_v17 = vmul.f32 %v13196_v12, %v15120_v49  ;;  %vm7631_vm10 = vcmp.eq.f32.partialorder %v15225_v6, 0.0 }
 0xf91   : > { %v13198_v62 = vpop.eup %13197  ;;  %11753 = vmatmul.mubr.msk.f32.vlgmr.msra.gmra.mrb[74].mxu0 %vm363_vm1, %v15230_v40 }
 0xf92   : > { %v15239_v11 = vmul.f32 %v13198_v62, %v15126_v35  ;;  %12339 = vmatpush3.bf16.msra.mxu0 %v15171_v63  ;;  %vm7634_vm11 = vcmp.eq.f32.partialorder %v15245_v17, 0.0 }
 0xf93   : > { %12341 = vmatprep.subr.bf16.mxu0 %v12340_v45 }
 0xf94   : > { %5156 = vrot.lane.b32.xlu0 %v14922_v19, %s13499_s13  ;;  %11759 = vmatprep.mubr.msk.f32.mxu0 %vm363_vm1, %v15239_v11  ;;  %v3982_v19 = vsub.f32 %v15114_v41, %v3964_v24  ;;  %vm7633_vm12 = vcmp.eq.f32.partialorder %v15239_v11, 0.0 }
 0xf95   : > { %11760 = vmatmul.mubr.msk.f32.vlgmr.msra.gmra.mrb[76].mxu0 %vm363_vm1, %v15245_v17 }
 0xf96   : > { %12343 = vmatpush3.bf16.msra.mxu0 %v12340_v45  ;;  %v4012_v49 = vmul.f32 1.442695, %v3982_v19 }
 0xf97   : > { %12345 = vmatprep.subr.bf16.mxu0 %v12344_v7 }
 0xf98   : > { %5158 = vrot.lane.b32.xlu0 %v14918_v34, %s13499_s13  ;;  %13199 = vpow2.f32 %v4012_v49 }
 0xf9b   : > { %4974 = vrot.lane.b32.xlu1 %v14902_v20, %s13499_s13 }
 0xf9c   : > { %12765 = vrot.lane.b32.xlu0 %v14958_v8, %s13498_s12 }
 0xfa0   : > { %5338 = vrot.lane.b32.xlu0 %v14942_v15, %s13499_s13 }
 0xfa2   : > { %v15264_v35 = vpop.eup %13199 }
 0xfa3   : > { %v4058_v15 = vsel %vm363_vm1, %v15264_v35, 0.0 }
 0xfa4   : > { %5429 = vrot.lane.b32.xlu0 %v14952_v30, %s13499_s13 }
 0xfa8   : > { %12770 = vrot.lane.b32.xlu0 %v14886_v57, %s13500_s14  ;;  %v12717_v57 = vunpack.i.l.bf16 %v15184_v31 }
 0xfaa   : > { %v12352_v13 = vpack.c.bf16 %v12718_v54, %v12717_v57 }
 0xfb4   : > { %v4033_v34 = vpop.xlane.xlu0 %4032 }
 0xfb5   : > { %13201 = vrcp.f32 %v4033_v34  ;;  %v4030_v20 = vpop.xlane.xlu1 %4029 }
 0xfb6   : > { %13203 = vrcp.f32 %v4030_v20 }
 0xfbc   : > { %v4039_v24 = vpop.xlane.xlu1 %4038 }
 0xfbe   : > { %v4045_v52 = vpop.xlane.xlu0 %4044 }
 0xfbf   : > { %v13202_v63 = vpop.eup %13201  ;;  %4059 = vadd.xlane.f32.xlu1 %v4058_v15  ;;  %13205 = vrcp.f32 %v4045_v52 }
 0xfc0   : > { %v13204_v30 = vpop.eup %13203  ;;  %v15274_v5 = vmul.f32 %v13202_v63, %v15134_v44  ;;  %v12732_v44 = vunpack.i.l.bf16 %v15212_v56  ;;  %v12728_v56 = vunpack.i.h.bf16 %v15210_v16 }
 0xfc1   : > { %v15271_v41 = vmul.f32 %v13204_v30, %v15137_v46 }
 0xfc2   : > { %v4042_v28 = vpop.xlane.xlu0 %4041  ;;  %v12364_v60 = vpack.c.bf16 %v12733_v27, %v12732_v44  ;;  %v12360_v16 = vpack.c.bf16 %v12728_v56, %v12727_v55  ;;  %vm7636_vm13 = vcmp.eq.f32.partialorder %v15274_v5, 0.0 }
 0xfc3   : > { %13207 = vrcp.f32 %v4042_v28  ;;  %11766 = vmatprep.mubr.msk.f32.mxu0 %vm363_vm1, %v15271_v41  ;;  %vm7635_vm14 = vcmp.eq.f32.partialorder %v15271_v41, 0.0 }
 0xfc4   : > { %11767 = vmatmul.mubr.msk.f32.vlgmr.msra.gmra.mrb[78].mxu0 %vm363_vm1, %v15274_v5  ;;  %13209 = vrcp.f32 %v4039_v24 }
 0xfc5   : > { %12347 = vmatpush3.bf16.msra.mxu0 %v12344_v7 }
 0xfc6   : > { %12353 = vmatprep.subr.bf16.mxu0 %v12352_v13  ;;  %v4057_v31 = vpop.xlane.xlu1 %4056 }
 0xfc9   : > { %v13206_v46 = vpop.eup %13205 }
 0xfca   : > { %v4036_v42 = vpop.xlane.xlu1 %4035  ;;  %v15286_v62 = vmul.f32 %v13206_v46, %v15153_v50 }
 0xfcb   : > { %13211 = vrcp.f32 %v4036_v42 }
 0xfcc   : > { %13213 = vrcp.f32 %v4057_v31  ;;  %16698 = vst [vmem:[#allocation16_spill] sm:$0xff] %v15286_v62 }
 0xfcd   : > { %v13208_v39 = vpop.eup %13207 }
 0xfce   : > { %v4054_v36 = vpop.xlane.xlu1 %4053  ;;  %v15283_v12 = vmul.f32 %v13208_v39, %v15157_v23  ;;  %v13210_v50 = vpop.eup %13209 }
 0xfcf   : > { %13215 = vrcp.f32 %v4054_v36 }
 0xfd0   : > { %16697 = vst [vmem:[#allocation15_spill] sm:$0xff] %v15283_v12  ;;  %11780 = vmatprep.mubr.msk.f32.mxu1 %vm363_vm1, %v15283_v12  ;;  %12755 = vrot.lane.b32.xlu1 %v14938_v9, %s13498_s12 }
 0xfd1   : > { %11781 = vmatmul.mubr.msk.f32.vlgmr.msra.gmra.mrb[54].mxu1 %vm363_vm1, %v15286_v62 }
 0xfd2   : > { %12359 = vmatpush3.bf16.msra.mxu1 %v15186_v10  ;;  %v12741_v45 = vpop.permute.xlu1 %12740  ;;  %v15307_v10 = vmul.f32 %v13210_v50, %v15146_v61 }
 0xfd3   : > { %12366 = vmatprep.subr.msk.bf16.mxu1 %vm14964_vm8, %v12364_v60  ;;  %v12742_v34 = vunpack.i.l.bf16 %v12741_v45 }
 0xfd4   : > { %5067 = vrot.lane.b32.xlu1 %v14908_v4, %s13499_s13  ;;  %v12743_v4 = vunpack.i.h.bf16 %v12741_v45  ;;  %vm7638_vm15 = vcmp.eq.f32.partialorder %v15307_v10, 0.0 }
 0xfd5   : > { %v13212_v23 = vpop.eup %13211 }
 0xfd6   : > { %v15302_v7 = vmul.f32 %v13212_v23, %v15167_v58  ;;  %v13214_v19 = vpop.eup %13213  ;;  %v12376_v20 = vpack.c.bf16 %v12743_v4, %v12742_v34  ;;  %v4793_v52 = vpop.permute.xlu1 %4792 }
 0xfd7   : > { %v15319_v61 = vmul.f32 %v13214_v19, %v15163_v14  ;;  %v4051_v14 = vpop.xlane.xlu0 %4050 }
 0xfd8   : > { %12760 = vrot.lane.b32.xlu1 %v14948_v38, %s13498_s12  ;;  %11773 = vmatprep.mubr.msk.f32.mxu0 %vm363_vm1, %v15302_v7  ;;  %13217 = vrcp.f32 %v4051_v14  ;;  %vm7637_vm2 = vcmp.eq.f32.partialorder %v15302_v7, 0.0 }
 0xfd9   : > { %v13216_v49 = vpop.eup %13215  ;;  %11774 = vmatmul.mubr.msk.f32.vlgmr.msra.gmra.mrb[80].mxu0 %vm363_vm1, %v15307_v10  ;;  %16700 = vst [vmem:[#allocation18_spill] sm:$0xff] %v15319_v61  ;;  %v16728_v10 = vld [vmem:[#allocation15_spill] sm:$0xff] }
 0xfda   : > { %v15314_v58 = vmul.f32 %v13216_v49, %v15180_v37  ;;  %12355 = vmatpush3.bf16.msra.mxu0 %v12352_v13  ;;  %vm7639_vm4 = vcmp.eq.f32.partialorder %v16728_v10, 0.0 }
 0xfdb   : > { %12361 = vmatprep.subr.bf16.mxu0 %v12360_v16  ;;  %v12736_v37 = vpop.permute.xlu0 %12735 }
 0xfdc   : > { %16699 = vst [vmem:[#allocation17_spill] sm:$0xff] %v15314_v58  ;;  %5247 = vrot.lane.b32.xlu1 %v14932_v59, %s13499_s13  ;;  %11794 = vmatprep.mubr.msk.f32.mxu1 %vm363_vm1, %v15314_v58  ;;  %v4795_v59 = vpop.permute.xlu1 %4794  ;;  %v12738_v44 = vunpack.i.h.bf16 %v12736_v37  ;;  %v12737_v36 = vunpack.i.l.bf16 %v12736_v37 }
 0xfdd   : > { %11795 = vmatmul.mubr.msk.f32.vlgmr.msra.gmra.mrb[56].mxu1 %vm363_vm1, %v15319_v61 }
 0xfde   : > { %12369 = vmatpush3.bf16.xpose.msk.msra.mxu1 %vm14964_vm8, %v12364_v60  ;;  %11808 = vmatprep.mubr.msk.f32.mxu1 %vm3197_vm7, %v4793_v52  ;;  %v12370_v56 = vpack.c.bf16 %v12738_v44, %v12737_v36 }
 0xfdf   : > { %12378 = vmatprep.subr.msk.bf16.mxu1 %vm14964_vm8, %v12376_v20 }
 0xfe0   : > { %5249 = vrot.lane.b32.xlu1 %v14930_v26, %s13499_s13 }
 0xfe2   : > { %v13218_v39 = vpop.eup %13217 }
 0xfe3   : > { %v15356_v50 = vmul.f32 %v13218_v39, %v15173_v3 }
 0xfe4   : > { %5340 = vrot.lane.b32.xlu1 %v14940_v25, %s13499_s13  ;;  %v12746_v25 = vpop.permute.xlu1 %12745 }
 0xfe5   : > { %11809 = vmatmul.mubr.msk.f32.vlgmr.msra.gmra.mrb[58].mxu1 %vm3197_vm7, %v4795_v59  ;;  %16702 = vst [vmem:[#allocation20_spill] sm:$0xff] %v15356_v50  ;;  %v12748_v34 = vunpack.i.h.bf16 %v12746_v25 }
 0xfe6   : > { %12381 = vmatpush3.bf16.xpose.msk.msra.mxu1 %vm14964_vm8, %v12376_v20  ;;  %v12747_v20 = vunpack.i.l.bf16 %v12746_v25 }
 0xfe8   : > { %5431 = vrot.lane.b32.xlu1 %v14950_v1, %s13499_s13  ;;  %v4884_v24 = vpop.permute.xlu1 %4883 }
 0xfec   : > { %12775 = vrot.lane.b32.xlu1 %v14896_v53, %s13500_s14  ;;  %v4886_v13 = vpop.permute.xlu1 %4885 }
 0xfff   : > { %v4063_v15 = vpop.xlane.xlu0 %4062 }
0x1003   : > { %v12751_v63 = vpop.permute.xlu0 %12750 }
0x1004   : > { %v12753_v26 = vunpack.i.h.bf16 %v12751_v63  ;;  %v12752_v30 = vunpack.i.l.bf16 %v12751_v63 }
0x1006   : > { %v12388_v54 = vpack.c.bf16 %v12753_v26, %v12752_v30  ;;  %v12382_v26 = vpack.c.bf16 %v12748_v34, %v12747_v20 }
0x1007   : > { %v4977_v57 = vpop.permute.xlu0 %4976 }
0x1008   : > { %12390 = vmatprep.subr.msk.bf16.mxu1 %vm14964_vm8, %v12388_v54 }
0x100b   : > { %v15343_v28 = vpop.permute.xlu0 %5065 }
0x100f   : > { %v5157_v1 = vpop.permute.xlu0 %5156 }
0x1013   : > { %v5159_v53 = vpop.permute.xlu0 %5158 }
0x1017   : > { %v4048_v31 = vpop.xlane.xlu1 %4047  ;;  %v15350_v46 = vpop.permute.xlu0 %12765 }
0x1018   : > { %13219 = vrcp.f32 %v4048_v31 }
0x1019   : > { %13221 = vrcp.f32 %v4063_v15 }
0x101b   : > { %v4975_v42 = vpop.permute.xlu1 %4974  ;;  %v5339_v23 = vpop.permute.xlu0 %5338 }
0x101c   : > { %11822 = vmatprep.mubr.msk.f32.mxu1 %vm3197_vm7, %v4975_v42  ;;  %v12768_v42 = vunpack.i.h.bf16 %v15350_v46 }
0x101d   : > { %11823 = vmatmul.mubr.msk.f32.vlgmr.msra.gmra.mrb[60].mxu1 %vm3197_vm7, %v4977_v57 }
0x101e   : > { %12393 = vmatpush3.bf16.xpose.msk.msra.mxu1 %vm14964_vm8, %v12388_v54  ;;  %11836 = vmatprep.mubr.msk.f32.mxu1 %vm3197_vm7, %v5157_v1 }
0x101f   : > { %v5430_v3 = vpop.permute.xlu0 %5429 }
0x1022   : > { %v13220_v27 = vpop.eup %13219 }
0x1023   : > { %v15353_v60 = vmul.f32 %v13220_v27, %v15214_v2  ;;  %v13222_v19 = vpop.eup %13221  ;;  %v12771_v49 = vpop.permute.xlu0 %12770 }
0x1024   : > { %v12773_v14 = vunpack.i.h.bf16 %v12771_v49  ;;  %v12772_v37 = vunpack.i.l.bf16 %v12771_v49 }
0x1025   : > { %16701 = vst [vmem:[#allocation19_spill] sm:$0xff] %v15353_v60  ;;  %11837 = vmatmul.mubr.msk.f32.vlgmr.msra.gmra.mrb[62].mxu1 %vm3197_vm7, %v5159_v53  ;;  %11787 = vmatprep.mubr.msk.f32.mxu0 %vm363_vm1, %v15353_v60 }
0x1026   : > { %11850 = vmatprep.mubr.msk.f32.mxu1 %vm3197_vm7, %v5339_v23  ;;  %11788 = vmatmul.mubr.msk.f32.vlgmr.msra.gmra.mrb[82].mxu0 %vm363_vm1, %v15356_v50 }
0x1027   : > { %12363 = vmatpush3.bf16.msra.mxu0 %v12360_v16  ;;  %v15370_v16 = vmul.f32 %v13222_v19, %v15204_v51  ;;  %v12412_v51 = vpack.c.bf16 %v12773_v14, %v12772_v37 }
0x1028   : > { %12372 = vmatprep.subr.msk.bf16.mxu0 %vm14964_vm8, %v12370_v56 }
0x1029   : > { %16704 = vst [vmem:[#allocation22_spill] sm:$0xff] %v15370_v16 }
0x104c   : > { %v4060_v2 = vpop.xlane.xlu1 %4059 }
0x104d   : > { %13223 = vrcp.f32 %v4060_v2 }
0x1050   : > { %v12756_v55 = vpop.permute.xlu1 %12755 }
0x1051   : > { %v12758_v54 = vunpack.i.h.bf16 %v12756_v55  ;;  %v12757_v25 = vunpack.i.l.bf16 %v12756_v55 }
0x1053   : > { %v12394_v1 = vpack.c.bf16 %v12758_v54, %v12757_v25 }
0x1054   : > { %v5068_v45 = vpop.permute.xlu1 %5067 }
0x1057   : > { %v13224_v4 = vpop.eup %13223 }
0x1058   : > { %v12761_v52 = vpop.permute.xlu1 %12760  ;;  %v15367_v59 = vmul.f32 %v13224_v4, %v15264_v35 }
0x1059   : > { %v12763_v15 = vunpack.i.h.bf16 %v12761_v52  ;;  %v12762_v63 = vunpack.i.l.bf16 %v12761_v52 }
0x105a   : > { %16703 = vst [vmem:[#allocation21_spill] sm:$0xff] %v15367_v59  ;;  %11801 = vmatprep.mubr.msk.f32.mxu0 %vm363_vm1, %v15367_v59 }
0x105b   : > { %v12400_v30 = vpack.c.bf16 %v12763_v15, %v12762_v63  ;;  %11802 = vmatmul.mubr.msk.f32.vlgmr.msra.gmra.mrb[84].mxu0 %vm363_vm1, %v15370_v16 }
0x105c   : > { %12375 = vmatpush3.bf16.xpose.msk.msra.mxu0 %vm14964_vm8, %v12370_v56  ;;  %11815 = vmatprep.mubr.msk.f32.mxu0 %vm3197_vm7, %v4884_v24  ;;  %v5248_v35 = vpop.permute.xlu1 %5247 }
0x105d   : > { %12384 = vmatprep.subr.msk.bf16.mxu0 %vm14964_vm8, %v12382_v26  ;;  %12402 = vmatprep.subr.msk.bf16.mxu1 %vm14964_vm8, %v12400_v30 }
0x105e   : > { %12405 = vmatpush3.bf16.xpose.msk.msra.mxu1 %vm14964_vm8, %v12400_v30 }
0x105f   : > { %12413 = vmatprep.subr.bf16.mxu1 %v12412_v51 }
0x1060   : > { %v5250_v57 = vpop.permute.xlu1 %5249 }
0x1063   : > { %11816 = vmatmul.mubr.msk.f32.vlgmr.msra.gmra.mrb[86].mxu0 %vm3197_vm7, %v4886_v13  ;;  %v12767_v13 = vunpack.i.l.bf16 %v15350_v46 }
0x1064   : > { %12387 = vmatpush3.bf16.xpose.msk.msra.mxu0 %vm14964_vm8, %v12382_v26  ;;  %11829 = vmatprep.mubr.msk.f32.mxu0 %vm3197_vm7, %v15343_v28  ;;  %v5341_v24 = vpop.permute.xlu1 %5340  ;;  %v15390_v31 = vpop.f32.mrb[74].mxu0 }
0x1065   : > { %12396 = vmatprep.subr.msk.bf16.mxu0 %vm14964_vm8, %v12394_v1  ;;  %11851 = vmatmul.mubr.msk.f32.vlgmr.msra.gmra.mrb[64].mxu1 %vm3197_vm7, %v5341_v24  ;;  %v15395_v53 = vpop.f32.mrb[75].mxu0  ;;  %v12406_v28 = vpack.c.bf16 %v12768_v42, %v12767_v13 }
0x1066   : > { %12415 = vmatpush3.bf16.msra.mxu1 %v12412_v51 }
0x1068   : > { %v5432_v39 = vpop.permute.xlu1 %5431  ;;  %v15399_v27 = vpop.f32.mrb[76].mxu0 }
0x1069   : > { %v15401_v44 = vpop.f32.mrb[77].mxu0 }
0x106b   : > { %11830 = vmatmul.mubr.msk.f32.vlgmr.msra.gmra.mrb[88].mxu0 %vm3197_vm7, %v5068_v45 }
0x106c   : > { %12399 = vmatpush3.bf16.xpose.msk.msra.mxu0 %vm14964_vm8, %v12394_v1  ;;  %11843 = vmatprep.mubr.msk.f32.mxu0 %vm3197_vm7, %v5248_v35  ;;  %v12776_v36 = vpop.permute.xlu1 %12775 }
0x106d   : > { %12408 = vmatprep.subr.msk.bf16.mxu0 %vm14964_vm8, %v12406_v28  ;;  %v12778_v23 = vunpack.i.h.bf16 %v12776_v36  ;;  %v12777_v56 = vunpack.i.l.bf16 %v12776_v36 }
0x106f   : > { %v12416_v46 = vpack.c.bf16 %v12778_v23, %v12777_v56 }
0x1073   : > { %11844 = vmatmul.mubr.msk.f32.vlgmr.msra.gmra.mrb[90].mxu0 %vm3197_vm7, %v5250_v57 }
0x1074   : > { %12411 = vmatpush3.bf16.xpose.msk.msra.mxu0 %vm14964_vm8, %v12406_v28  ;;  %11857 = vmatprep.mubr.msk.f32.mxu0 %vm3197_vm7, %v5430_v3 }
0x1075   : > { %12417 = vmatprep.subr.bf16.mxu0 %v12416_v46 }
0x107b   : > { %11858 = vmatmul.mubr.msk.f32.vlgmr.msra.gmra.mrb[92].mxu0 %vm3197_vm7, %v5432_v39 }
0x107c   : > { %12419 = vmatpush3.bf16.msra.mxu0 %v12416_v46 }
0x1097   : > { %v15414_v2 = vpop.f32.mrb[78].mxu0 }
0x1098   : > { %v15416_v55 = vpop.f32.mrb[79].mxu0 }
0x10a4   : > { %v15418_v45 = vpop.f32.mrb[54].mxu1 }
0x10a5   : > { %v15420_v19 = vpop.f32.mrb[55].mxu1 }
0x10ac   : > { %v15422_v49 = vpop.f32.mrb[80].mxu0 }
0x10ad   : > { %v15424_v4 = vpop.f32.mrb[81].mxu0 }
0x10b0   : > { %v15426_v34 = vpop.f32.mrb[56].mxu1 }
0x10b1   : > { %v15428_v20 = vpop.f32.mrb[57].mxu1 }
0x10b8   : > { %v11810_v3 = vpop.f32.mrb[58].mxu1 }
0x10b9   : > { %v15430_v52 = vmul.f32 0.5, %v11810_v3  ;;  %v4874_v14 = vpop.f32.mrb[59].mxu1 }
0x10ba   : > { %v15432_v37 = vmul.f32 0.5, %v4874_v14 }
0x10bb   : > { %v5539_v15 = vsel %vm363_vm1, %v15430_v52, -inf }
0x10bc   : > { %5540 = vmax.xlane.f32.xlu1 %v5539_v15  ;;  %v5536_v63 = vsel %vm363_vm1, %v15432_v37, -inf }
0x10bd   : > { %5537 = vmax.xlane.f32.xlu0 %v5536_v63 }
0x10f0   : > { %v11824_v26 = vpop.f32.mrb[60].mxu1 }
0x10f1   : > { %v15438_v30 = vmul.f32 0.5, %v11824_v26  ;;  %v5056_v35 = vpop.f32.mrb[61].mxu1 }
0x10f2   : > { %v15440_v51 = vmul.f32 0.5, %v5056_v35 }
0x10f3   : > { %v5551_v54 = vsel %vm363_vm1, %v15438_v30, -inf }
0x10f4   : > { %5552 = vmax.xlane.f32.xlu1 %v5551_v54  ;;  %v5548_v25 = vsel %vm363_vm1, %v15440_v51, -inf }
0x10f5   : > { %5549 = vmax.xlane.f32.xlu0 %v5548_v25 }
0x10f8   : > { %v11838_v57 = vpop.f32.mrb[62].mxu1 }
0x10f9   : > { %v15446_v1 = vmul.f32 0.5, %v11838_v57  ;;  %v5238_v24 = vpop.f32.mrb[63].mxu1  ;;  %v15448_v42 = vpop.f32.mrb[82].mxu0 }
0x10fa   : > { %v15450_v13 = vpop.f32.mrb[83].mxu0  ;;  %v15464_v26 = vmul.f32 0.5, %v5238_v24 }
0x10fb   : > { %v5563_v39 = vsel %vm363_vm1, %v15446_v1, -inf }
0x10fc   : > { %5564 = vmax.xlane.f32.xlu1 %v5563_v39 }
0x112e   : > { %v15454_v28 = vpop.f32.mrb[84].mxu0 }
0x112f   : > { %v15456_v36 = vpop.f32.mrb[85].mxu0 }
0x1136   : > { %v11817_v23 = vpop.f32.mrb[86].mxu0 }
0x1137   : > { %v15458_v56 = vmul.f32 0.5, %v11817_v23  ;;  %v4965_v46 = vpop.f32.mrb[87].mxu0 }
0x1138   : > { %v11852_v3 = vpop.f32.mrb[64].mxu1  ;;  %v15460_v14 = vmul.f32 0.5, %v4965_v46 }
0x1139   : > { %v5545_v15 = vsel %vm363_vm1, %v15458_v56, -inf  ;;  %v5420_v63 = vpop.f32.mrb[65].mxu1  ;;  %v15470_v39 = vmul.f32 0.5, %v11852_v3 }
0x113a   : > { %5546 = vmax.xlane.f32.xlu0 %v5545_v15  ;;  %v5542_v35 = vsel %vm363_vm1, %v15460_v14, -inf  ;;  %v5560_v15 = vsel %vm363_vm1, %v15464_v26, -inf  ;;  %v15478_v24 = vmul.f32 0.5, %v5420_v63 }
0x113c   : > { %v5572_v63 = vsel %vm363_vm1, %v15478_v24, -inf }
0x113e   : > { %v11831_v54 = vpop.f32.mrb[88].mxu0  ;;  %5543 = vmax.xlane.f32.xlu0 %v5542_v35 }
0x113f   : > { %v15468_v25 = vmul.f32 0.5, %v11831_v54  ;;  %v5147_v57 = vpop.f32.mrb[89].mxu0  ;;  %v5575_v54 = vsel %vm363_vm1, %v15470_v39, -inf }
0x1140   : > { %v15472_v23 = vmul.f32 0.5, %v5147_v57 }
0x1141   : > { %v5557_v46 = vsel %vm363_vm1, %v15468_v25, -inf }
0x1142   : > { %5558 = vmax.xlane.f32.xlu1 %v5557_v46  ;;  %5561 = vmax.xlane.f32.xlu0 %v5560_v15  ;;  %v5554_v35 = vsel %vm363_vm1, %v15472_v23, -inf }
0x1146   : > { %v11845_v3 = vpop.f32.mrb[90].mxu0  ;;  %5555 = vmax.xlane.f32.xlu0 %v5554_v35  ;;  %5576 = vmax.xlane.f32.xlu1 %v5575_v54 }
0x1147   : > { %v15484_v57 = vmul.f32 0.5, %v11845_v3  ;;  %v5329_v59 = vpop.f32.mrb[91].mxu0 }
0x1148   : > { %v15486_v16 = vmul.f32 0.5, %v5329_v59 }
0x1149   : > { %v5569_v46 = vsel %vm363_vm1, %v15484_v57, -inf }
0x114a   : > { %5570 = vmax.xlane.f32.xlu1 %v5569_v46  ;;  %5573 = vmax.xlane.f32.xlu0 %v5572_v63  ;;  %v5566_v15 = vsel %vm363_vm1, %v15486_v16, -inf }
0x114e   : > { %v11859_v58 = vpop.f32.mrb[92].mxu0  ;;  %5567 = vmax.xlane.f32.xlu0 %v5566_v15 }
0x114f   : > { %v5511_v35 = vpop.f32.mrb[93].mxu0  ;;  %v15498_v59 = vmul.f32 0.5, %v11859_v58  ;;  %v5538_v58 = vpop.xlane.xlu0 %5537 }
0x1150   : > { %v15500_v54 = vmul.f32 0.5, %v5511_v35  ;;  %v5584_v15 = vsub.f32 %v15432_v37, %v5538_v58 }
0x1151   : > { %v5581_v3 = vsel %vm363_vm1, %v15498_v59, -inf }
0x1152   : > { %v5578_v46 = vsel %vm363_vm1, %v15500_v54, -inf  ;;  %v5600_v50 = vmul.f32 1.442695, %v5584_v15 }
0x115b   : > { %12785 = vrot.lane.b32.xlu1 %v14916_v18, %s13500_s14  ;;  %v5541_v18 = vpop.xlane.xlu1 %5540 }
0x1164   : > { %12780 = vrot.lane.b32.xlu0 %v14906_v29, %s13500_s14  ;;  %v5585_v29 = vsub.f32 %v15430_v52, %v5541_v18 }
0x1166   : > { %v5602_v35 = vmul.f32 1.442695, %v5585_v29 }
0x1168   : > { %13225 = vpow2.f32 %v5602_v35 }
0x1169   : > { %13227 = vpow2.f32 %v5600_v50 }
0x117f   : > { %5582 = vmax.xlane.f32.xlu1 %v5581_v3 }
0x1181   : > { %v5553_v63 = vpop.xlane.xlu1 %5552 }
0x1182   : > { %v5589_v3 = vsub.f32 %v15438_v30, %v5553_v63  ;;  %v5550_v61 = vpop.xlane.xlu0 %5549 }
0x1183   : > { %5579 = vmax.xlane.f32.xlu0 %v5578_v46  ;;  %v5588_v60 = vsub.f32 %v15440_v51, %v5550_v61 }
0x1184   : > { %v5610_v46 = vmul.f32 1.442695, %v5589_v3 }
0x1186   : > { %13229 = vpow2.f32 %v5610_v46 }
0x1189   : > { %v5565_v51 = vpop.xlane.xlu1 %5564 }
0x118a   : > { %v5593_v29 = vsub.f32 %v15446_v1, %v5565_v51 }
0x118c   : > { %v5618_v15 = vmul.f32 1.442695, %v5593_v29 }
0x1190   : > { %12795 = vrot.lane.b32.xlu1 %v14938_v9, %s13500_s14  ;;  %v5608_v9 = vmul.f32 1.442695, %v5588_v60 }
0x1192   : > { %13231 = vpow2.f32 %v5608_v9 }
0x1199   : > { %12790 = vrot.lane.b32.xlu0 %v14928_v33, %s13500_s14  ;;  %v15514_v33 = vpop.eup %13225 }
0x119a   : > { %v15516_v52 = vpop.eup %13227  ;;  %v5635_v37 = vsel %vm363_vm1, %v15514_v33, 0.0 }
0x119b   : > { %v15520_v18 = vpop.eup %13229  ;;  %v5632_v61 = vsel %vm363_vm1, %v15516_v52, 0.0 }
0x119c   : > { %v5647_v30 = vsel %vm363_vm1, %v15520_v18, 0.0  ;;  %v15526_v50 = vpop.eup %13231 }
0x119d   : > { %v5644_v60 = vsel %vm363_vm1, %v15526_v50, 0.0 }
0x11b4   : > { %5636 = vadd.xlane.f32.xlu1 %v5635_v37 }
0x11b8   : > { %5648 = vadd.xlane.f32.xlu1 %v5647_v30  ;;  %5633 = vadd.xlane.f32.xlu0 %v5632_v61 }
0x11bc   : > { %5645 = vadd.xlane.f32.xlu0 %v5644_v60 }
0x11c7   : > { %v5547_v58 = vpop.xlane.xlu0 %5546 }
0x11c8   : > { %v5587_v63 = vsub.f32 %v15458_v56, %v5547_v58 }
0x11ca   : > { %v5606_v35 = vmul.f32 1.442695, %v5587_v63 }
0x11cb   : > { %v5544_v3 = vpop.xlane.xlu0 %5543 }
0x11cc   : > { %13233 = vpow2.f32 %v5606_v35  ;;  %v5586_v46 = vsub.f32 %v15460_v14, %v5544_v3 }
0x11cd   : > { %13235 = vpow2.f32 %v5618_v15 }
0x11ce   : > { %v5604_v9 = vmul.f32 1.442695, %v5586_v46 }
0x11cf   : > { %v5559_v37 = vpop.xlane.xlu1 %5558  ;;  %v5562_v30 = vpop.xlane.xlu0 %5561 }
0x11d0   : > { %13237 = vpow2.f32 %v5604_v9  ;;  %v5591_v61 = vsub.f32 %v15468_v25, %v5559_v37  ;;  %v5592_v60 = vsub.f32 %v15464_v26, %v5562_v30 }
0x11d2   : > { %v5614_v12 = vmul.f32 1.442695, %v5591_v61  ;;  %v5616_v1 = vmul.f32 1.442695, %v5592_v60 }
0x11d3   : > { %v5556_v51 = vpop.xlane.xlu0 %5555  ;;  %v5577_v62 = vpop.xlane.xlu1 %5576 }
0x11d4   : > { %13239 = vpow2.f32 %v5614_v12  ;;  %v5590_v56 = vsub.f32 %v15472_v23, %v5556_v51  ;;  %v5597_v29 = vsub.f32 %v15470_v39, %v5577_v62 }
0x11d5   : > { %13241 = vpow2.f32 %v5616_v1 }
0x11d6   : > { %v15537_v14 = vpop.eup %13233  ;;  %v5612_v58 = vmul.f32 1.442695, %v5590_v56  ;;  %v5626_v63 = vmul.f32 1.442695, %v5597_v29 }
0x11d7   : > { %v5571_v15 = vpop.xlane.xlu1 %5570  ;;  %v5574_v35 = vpop.xlane.xlu0 %5573  ;;  %v5641_v25 = vsel %vm363_vm1, %v15537_v14, 0.0 }
0x11d8   : > { %v15541_v26 = vpop.eup %13235  ;;  %13243 = vpow2.f32 %v5612_v58  ;;  %v5595_v3 = vsub.f32 %v15484_v57, %v5571_v15  ;;  %v5596_v12 = vsub.f32 %v15478_v24, %v5574_v35  ;;  %5642 = vadd.xlane.f32.xlu1 %v5641_v25 }
0x11d9   : > { %13245 = vpow2.f32 %v5626_v63  ;;  %v5659_v37 = vsel %vm363_vm1, %v15541_v26, 0.0 }
0x11da   : > { %v15545_v62 = vpop.eup %13237  ;;  %v5624_v39 = vmul.f32 1.442695, %v5596_v12  ;;  %v5622_v23 = vmul.f32 1.442695, %v5595_v3 }
0x11db   : > { %v12786_v46 = vpop.permute.xlu1 %12785  ;;  %v5568_v9 = vpop.xlane.xlu0 %5567  ;;  %v5638_v30 = vsel %vm363_vm1, %v15545_v62, 0.0 }
0x11dc   : > { %v12788_v61 = vunpack.i.h.bf16 %v12786_v46  ;;  %v12787_v60 = vunpack.i.l.bf16 %v12786_v46  ;;  %v5594_v57 = vsub.f32 %v15486_v16, %v5568_v9  ;;  %5660 = vadd.xlane.f32.xlu1 %v5659_v37  ;;  %5639 = vadd.xlane.f32.xlu0 %v5638_v30  ;;  %13247 = vpow2.f32 %v5624_v39 }
0x11dd   : > { %13249 = vpow2.f32 %v5622_v23 }
0x11de   : > { %v15552_v24 = vpop.eup %13239  ;;  %v5620_v1 = vmul.f32 1.442695, %v5594_v57  ;;  %v15554_v51 = vpack.c.bf16 %v12788_v61, %v12787_v60 }
0x11df   : > { %v15556_v56 = vpop.eup %13241  ;;  %v12781_v29 = vpop.permute.xlu0 %12780  ;;  %v5653_v58 = vsel %vm363_vm1, %v15552_v24, 0.0 }
0x11e0   : > { %13251 = vpow2.f32 %v5620_v1  ;;  %v12783_v63 = vunpack.i.h.bf16 %v12781_v29  ;;  %v12782_v15 = vunpack.i.l.bf16 %v12781_v29  ;;  %5654 = vadd.xlane.f32.xlu1 %v5653_v58  ;;  %12425 = vmatprep.subr.bf16.mxu0 %v15554_v51  ;;  %v5656_v16 = vsel %vm363_vm1, %v15556_v56, 0.0 }
0x11e1   : > { %5657 = vadd.xlane.f32.xlu0 %v5656_v16 }
0x11e2   : > { %v15563_v35 = vpop.eup %13243  ;;  %v12420_v25 = vpack.c.bf16 %v12783_v63, %v12782_v15 }
0x11e3   : > { %v15565_v3 = vpop.eup %13245  ;;  %v5650_v12 = vsel %vm363_vm1, %v15563_v35, 0.0 }
0x11e4   : > { %v5671_v39 = vsel %vm363_vm1, %v15565_v3, 0.0  ;;  %12421 = vmatprep.subr.bf16.mxu1 %v12420_v25 }
0x11e5   : > { %5672 = vadd.xlane.f32.xlu1 %v5671_v39  ;;  %5651 = vadd.xlane.f32.xlu0 %v5650_v12 }
0x11e6   : > { %v15571_v23 = vpop.eup %13247 }
0x11e7   : > { %v5668_v46 = vsel %vm363_vm1, %v15571_v23, 0.0  ;;  %v15575_v9 = vpop.eup %13249 }
0x11e8   : > { %v5665_v61 = vsel %vm363_vm1, %v15575_v9, 0.0 }
0x11e9   : > { %5669 = vadd.xlane.f32.xlu1 %v5668_v46 }
0x11ea   : > { %v15577_v37 = vpop.eup %13251 }
0x11eb   : > { %v5662_v30 = vsel %vm363_vm1, %v15577_v37, 0.0 }
0x11ec   : > { %5663 = vadd.xlane.f32.xlu0 %v5662_v30 }
0x11ed   : > { %5666 = vadd.xlane.f32.xlu1 %v5665_v61 }
0x120c   : > { %v5583_v60 = vpop.xlane.xlu1 %5582 }
0x120d   : > { %v5599_v57 = vsub.f32 %v15498_v59, %v5583_v60 }
0x120f   : > { %v5630_v1 = vmul.f32 1.442695, %v5599_v57 }
0x1210   : > { %v5580_v29 = vpop.xlane.xlu0 %5579  ;;  %v12796_v59 = vpop.permute.xlu1 %12795 }
0x1211   : > { %13253 = vpow2.f32 %v5630_v1  ;;  %v5598_v58 = vsub.f32 %v15500_v54, %v5580_v29 }
0x1213   : > { %v5628_v63 = vmul.f32 1.442695, %v5598_v58 }
0x1214   : > { %v12791_v54 = vpop.permute.xlu0 %12790 }
0x1215   : > { %13255 = vpow2.f32 %v5628_v63  ;;  %v12793_v29 = vunpack.i.h.bf16 %v12791_v54  ;;  %v12792_v58 = vunpack.i.l.bf16 %v12791_v54 }
0x121b   : > { %v15585_v15 = vpop.eup %13253 }
0x121c   : > { %v5677_v16 = vsel %vm363_vm1, %v15585_v15, 0.0 }
0x121d   : > { %5678 = vadd.xlane.f32.xlu1 %v5677_v16 }
0x121f   : > { %v15589_v12 = vpop.eup %13255 }
0x1220   : > { %v5674_v39 = vsel %vm363_vm1, %v15589_v12, 0.0 }
0x1221   : > { %5675 = vadd.xlane.f32.xlu0 %v5674_v39  ;;  %v12428_v39 = vpack.c.bf16 %v12793_v29, %v12792_v58  ;;  %v12797_v29 = vunpack.i.l.bf16 %v12796_v59 }
0x122e   : > { %12805 = vrot.lane.b32.xlu1 %v14958_v8, %s13500_s14 }
0x1237   : > { %12800 = vrot.lane.b32.xlu0 %v14948_v38, %s13500_s14 }
0x1241   : > { %v5637_v46 = vpop.xlane.xlu1 %5636 }
0x1242   : > { %13257 = vrcp.f32 %v5637_v46 }
0x1245   : > { %v5634_v30 = vpop.xlane.xlu0 %5633  ;;  %v5649_v61 = vpop.xlane.xlu1 %5648 }
0x1246   : > { %13259 = vrcp.f32 %v5634_v30 }
0x1247   : > { %13261 = vrcp.f32 %v5649_v61 }
0x1249   : > { %v5646_v60 = vpop.xlane.xlu0 %5645 }
0x124a   : > { %13263 = vrcp.f32 %v5646_v60 }
0x124c   : > { %v13258_v57 = vpop.eup %13257 }
0x124d   : > { %v15601_v38 = vmul.f32 %v13258_v57, %v15514_v33 }
0x1250   : > { %v13260_v1 = vpop.eup %13259 }
0x1251   : > { %v15598_v63 = vmul.f32 %v13260_v1, %v15516_v52  ;;  %v13262_v8 = vpop.eup %13261  ;;  %v12798_v1 = vunpack.i.h.bf16 %v12796_v59 }
0x1252   : > { %v15613_v52 = vmul.f32 %v13262_v8, %v15520_v18 }
0x1253   : > { %11864 = vmatprep.mubr.msk.f32.mxu1 %vm363_vm1, %v15598_v63 }
0x1254   : > { %v13264_v16 = vpop.eup %13263  ;;  %11865 = vmatmul.mubr.msk.f32.vlgmr.msra.gmra.mrb[66].mxu1 %vm363_vm1, %v15601_v38 }
0x1255   : > { %v15608_v46 = vmul.f32 %v13264_v16, %v15526_v50  ;;  %12423 = vmatpush3.bf16.msra.mxu1 %v12420_v25 }
0x1256   : > { %12429 = vmatprep.subr.bf16.mxu1 %v12428_v39 }
0x1257   : > { %16705 = vst [vmem:[#allocation23_spill] sm:$0xff] %v15608_v46  ;;  %11878 = vmatprep.mubr.msk.f32.mxu1 %vm363_vm1, %v15608_v46 }
0x1258   : > { %11879 = vmatmul.mubr.msk.f32.vlgmr.msra.gmra.mrb[68].mxu1 %vm363_vm1, %v15613_v52 }
0x1259   : > { %12431 = vmatpush3.bf16.msra.mxu1 %v12428_v39 }
0x1265   : > { %v5643_v33 = vpop.xlane.xlu1 %5642 }
0x1266   : > { %13265 = vrcp.f32 %v5643_v33 }
0x1269   : > { %v5661_v54 = vpop.xlane.xlu1 %5660  ;;  %v5640_v30 = vpop.xlane.xlu0 %5639 }
0x126a   : > { %13267 = vrcp.f32 %v5640_v30 }
0x126b   : > { %13269 = vrcp.f32 %v5661_v54  ;;  %v12432_v54 = vpack.c.bf16 %v12798_v1, %v12797_v29 }
0x126d   : > { %v5655_v61 = vpop.xlane.xlu1 %5654 }
0x126e   : > { %v5658_v50 = vpop.xlane.xlu0 %5657 }
0x126f   : > { %13271 = vrcp.f32 %v5658_v50 }
0x1270   : > { %13273 = vrcp.f32 %v5655_v61  ;;  %v13266_v57 = vpop.eup %13265 }
0x1271   : > { %v15621_v16 = vmul.f32 %v13266_v57, %v15537_v14 }
0x1272   : > { %v5673_v25 = vpop.xlane.xlu1 %5672  ;;  %v5652_v60 = vpop.xlane.xlu0 %5651 }
0x1273   : > { %13275 = vrcp.f32 %v5652_v60 }
0x1274   : > { %v13268_v18 = vpop.eup %13267 }
0x1275   : > { %v15618_v8 = vmul.f32 %v13268_v18, %v15545_v62  ;;  %v13270_v39 = vpop.eup %13269 }
0x1276   : > { %v5670_v58 = vpop.xlane.xlu1 %5669  ;;  %v15632_v14 = vmul.f32 %v13270_v39, %v15541_v26 }
0x1277   : > { %16706 = vst [vmem:[#allocation24_spill] sm:$0xff] %v15618_v8  ;;  %13277 = vrcp.f32 %v5670_v58  ;;  %11871 = vmatprep.mubr.msk.f32.mxu0 %vm363_vm1, %v15618_v8 }
0x1278   : > { %11872 = vmatmul.mubr.msk.f32.vlgmr.msra.gmra.mrb[94].mxu0 %vm363_vm1, %v15621_v16  ;;  %16708 = vst [vmem:[#allocation26_spill] sm:$0xff] %v15632_v14 }
0x1279   : > { %v13272_v33 = vpop.eup %13271  ;;  %v5664_v30 = vpop.xlane.xlu0 %5663  ;;  %12427 = vmatpush3.bf16.msra.mxu0 %v15554_v51 }
0x127a   : > { %v5667_v59 = vpop.xlane.xlu1 %5666  ;;  %13279 = vrcp.f32 %v5664_v30  ;;  %v15629_v62 = vmul.f32 %v13272_v33, %v15556_v56  ;;  %12433 = vmatprep.subr.bf16.mxu0 %v12432_v54  ;;  %v13274_v61 = vpop.eup %13273 }
0x127b   : > { %13281 = vrcp.f32 %v5667_v59  ;;  %v15642_v60 = vmul.f32 %v13274_v61, %v15552_v24 }
0x127c   : > { %16707 = vst [vmem:[#allocation25_spill] sm:$0xff] %v15629_v62  ;;  %11892 = vmatprep.mubr.msk.f32.mxu1 %vm363_vm1, %v15629_v62  ;;  %13283 = vrcp.f32 %v5673_v25 }
0x127d   : > { %11893 = vmatmul.mubr.msk.f32.vlgmr.msra.gmra.mrb[70].mxu1 %vm363_vm1, %v15632_v14  ;;  %v13276_v50 = vpop.eup %13275  ;;  %16710 = vst [vmem:[#allocation28_spill] sm:$0xff] %v15642_v60 }
0x127e   : > { %v15639_v51 = vmul.f32 %v13276_v50, %v15563_v35 }
0x1280   : > { %16709 = vst [vmem:[#allocation27_spill] sm:$0xff] %v15639_v51  ;;  %11885 = vmatprep.mubr.msk.f32.mxu0 %vm363_vm1, %v15639_v51 }
0x1281   : > { %v13278_v56 = vpop.eup %13277  ;;  %11886 = vmatmul.mubr.msk.f32.vlgmr.msra.gmra.mrb[96].mxu0 %vm363_vm1, %v15642_v60 }
0x1282   : > { %v15649_v26 = vmul.f32 %v13278_v56, %v15571_v23  ;;  %12435 = vmatpush3.bf16.msra.mxu0 %v12432_v54 }
0x1284   : > { %16711 = vst [vmem:[#allocation29_spill] sm:$0xff] %v15649_v26  ;;  %v13280_v57 = vpop.eup %13279  ;;  %11906 = vmatprep.mubr.msk.f32.mxu1 %vm363_vm1, %v15649_v26 }
0x1285   : > { %v13282_v35 = vpop.eup %13281  ;;  %v15654_v18 = vmul.f32 %v13280_v57, %v15577_v37 }
0x1286   : > { %v15657_v24 = vmul.f32 %v13282_v35, %v15575_v9  ;;  %v13284_v59 = vpop.eup %13283  ;;  %v6488_v35 = vld [vmem:[#allocation2 + $0x150] sm:$0xff] }
0x1287   : > { %16712 = vst [vmem:[#allocation30_spill] sm:$0xff] %v15654_v18  ;;  %11899 = vmatprep.mubr.msk.f32.mxu0 %vm363_vm1, %v15654_v18  ;;  %v15664_v25 = vmul.f32 %v13284_v59, %v15565_v3 }
0x1288   : > { %16713 = vst [vmem:[#allocation31_spill] sm:$0xff] %v15657_v24  ;;  %11900 = vmatmul.mubr.msk.f32.vlgmr.msra.gmra.mrb[98].mxu0 %vm363_vm1, %v15657_v24 }
0x1289   : > { %16714 = vst [vmem:[#allocation32_spill] sm:$0xff] %v15664_v25 }
0x12aa   : > { %v5679_v23 = vpop.xlane.xlu1 %5678 }
0x12ab   : > { %13285 = vrcp.f32 %v5679_v23 }
0x12ae   : > { %v12806_v1 = vpop.permute.xlu1 %12805  ;;  %v5676_v29 = vpop.xlane.xlu0 %5675 }
0x12af   : > { %v12808_v58 = vunpack.i.h.bf16 %v12806_v1  ;;  %v12807_v39 = vunpack.i.l.bf16 %v12806_v1  ;;  %13287 = vrcp.f32 %v5676_v29 }
0x12b1   : > { %v12440_v33 = vpack.c.bf16 %v12808_v58, %v12807_v39 }
0x12b2   : > { %v12801_v37 = vpop.permute.xlu0 %12800 }
0x12b3   : > { %v12803_v54 = vunpack.i.h.bf16 %v12801_v37  ;;  %v12802_v30 = vunpack.i.l.bf16 %v12801_v37  ;;  %12441 = vmatprep.subr.bf16.mxu0 %v12440_v33 }
0x12b4   : > { %12443 = vmatpush3.bf16.msra.mxu0 %v12440_v33 }
0x12b5   : > { %v12436_v9 = vpack.c.bf16 %v12803_v54, %v12802_v30  ;;  %v13286_v61 = vpop.eup %13285 }
0x12b6   : > { %v15672_v57 = vmul.f32 %v13286_v61, %v15585_v15 }
0x12b7   : > { %12437 = vmatprep.subr.bf16.mxu1 %v12436_v9 }
0x12b8   : > { %12439 = vmatpush3.bf16.msra.mxu1 %v12436_v9  ;;  %16716 = vst [vmem:[#allocation34_spill] sm:$0xff] %v15672_v57 }
0x12b9   : > { %v13288_v50 = vpop.eup %13287  ;;  %11916 = vmatprep.subr.mxu1 %v6488_v35 }
0x12ba   : > { %v15667_v56 = vmul.f32 %v13288_v50, %v15589_v12 }
0x12bb   : > { %11907 = vmatmul.mubr.msk.f32.vlgmr.msra.gmra.mrb[72].mxu1 %vm363_vm1, %v15664_v25 }
0x12bc   : > { %16715 = vst [vmem:[#allocation33_spill] sm:$0xff] %v15667_v56  ;;  %11913 = vmatprep.mubr.msk.f32.mxu0 %vm363_vm1, %v15667_v56  ;;  %11917 = vmatpush3.msra.mxu1 %v6488_v35 }
0x12bd   : > { %11914 = vmatmul.mubr.msk.f32.vlgmr.msra.gmra.mrb[100].mxu0 %vm363_vm1, %v15672_v57  ;;  %v16732_v57 = vld [vmem:[#allocation17_spill] sm:$0xff] }
0x1327   : > { %v11866_v3 = vpop.f32.mrb[66].mxu1 }
0x1328   : > { %6426 = vrot.lane.b32.xlu1 %v11866_v3, %s13501_s15  ;;  %v5790_v12 = vpop.f32.mrb[67].mxu1 }
0x1329   : > { %6424 = vrot.lane.b32.xlu0 %v5790_v12, %s13501_s15 }
0x132b   : > { %v11880_v23 = vpop.f32.mrb[68].mxu1 }
0x132c   : > { %v5964_v1 = vpop.f32.mrb[69].mxu1 }
0x134b   : > { %v11873_v15 = vpop.f32.mrb[94].mxu0 }
0x134c   : > { %6430 = vrot.lane.b32.xlu1 %v11873_v15, %s13501_s15  ;;  %v5877_v29 = vpop.f32.mrb[95].mxu0 }
0x134d   : > { %6428 = vrot.lane.b32.xlu0 %v5877_v29, %s13501_s15 }
0x1350   : > { %v11894_v58 = vpop.f32.mrb[70].mxu1  ;;  %6434 = vrot.lane.b32.xlu1 %v11880_v23, %s13501_s15 }
0x1351   : > { %v6138_v39 = vpop.f32.mrb[71].mxu1  ;;  %6432 = vrot.lane.b32.xlu0 %v5964_v1, %s13501_s15 }
0x1354   : > { %v11887_v33 = vpop.f32.mrb[96].mxu0 }
0x1355   : > { %v6051_v37 = vpop.f32.mrb[97].mxu0  ;;  %6438 = vrot.lane.b32.xlu1 %v11887_v33, %s13501_s15 }
0x1356   : > { %6436 = vrot.lane.b32.xlu0 %v6051_v37, %s13501_s15 }
0x1359   : > { %6442 = vrot.lane.b32.xlu1 %v11894_v58, %s13501_s15 }
0x135a   : > { %6440 = vrot.lane.b32.xlu0 %v6138_v39, %s13501_s15 }
0x135b   : > { %v11901_v54 = vpop.f32.mrb[98].mxu0 }
0x135c   : > { %v6225_v30 = vpop.f32.mrb[99].mxu0 }
0x135d   : > { %6446 = vrot.lane.b32.xlu1 %v11901_v54, %s13501_s15 }
0x135e   : > { %6444 = vrot.lane.b32.xlu0 %v6225_v30, %s13501_s15 }
0x138e   : > { %v11908_v9 = vpop.f32.mrb[72].mxu1 }
0x138f   : > { %6450 = vrot.lane.b32.xlu1 %v11908_v9, %s13501_s15  ;;  %v6312_v59 = vpop.f32.mrb[73].mxu1 }
0x1390   : > { %v11915_v61 = vpop.f32.mrb[100].mxu0  ;;  %6448 = vrot.lane.b32.xlu0 %v6312_v59, %s13501_s15 }
0x1391   : > { %v6399_v50 = vpop.f32.mrb[101].mxu0 }
0x1393   : > { %6454 = vrot.lane.b32.xlu1 %v11915_v61, %s13501_s15 }
0x1394   : > { %6452 = vrot.lane.b32.xlu0 %v6399_v50, %s13501_s15  ;;  %v6704_v50 = vld [vmem:[#allocation2 + $0x168] sm:$0xff] }
0x139a   : > { %v6427_v35 = vpop.permute.xlu1 %6426 }
0x139b   : > { %v6425_v3 = vpop.permute.xlu0 %6424  ;;  %v6473_v23 = vsel %vm3197_vm7, %v15390_v31, %v6427_v35 }
0x139c   : > { %v6472_v12 = vsel %vm3197_vm7, %v15395_v53, %v6425_v3 }
0x139d   : > { %11918 = vmatprep.mubr.msk.f32.mxu1 %vm178_vm0, %v6472_v12 }
0x139e   : > { %11919 = vmatmul.mubr.msk.f32.vlgmr.msra.gmra.mrb[74].mxu1 %vm178_vm0, %v6473_v23 }
0x13be   : > { %v6431_v1 = vpop.permute.xlu1 %6430 }
0x13bf   : > { %v6429_v15 = vpop.permute.xlu0 %6428  ;;  %v6475_v58 = vsel %vm3197_vm7, %v15399_v27, %v6431_v1 }
0x13c0   : > { %v6474_v29 = vsel %vm3197_vm7, %v15401_v44, %v6429_v15 }
0x13c1   : > { %11921 = vmatprep.mubr.msk.f32.mxu1 %vm178_vm0, %v6474_v29 }
0x13c2   : > { %11922 = vmatmul.mubr.msk.f32.gmra.mrb[76].mxu1 %vm178_vm0, %v6475_v58  ;;  %v6435_v53 = vpop.permute.xlu1 %6434 }
0x13c3   : > { %v6433_v39 = vpop.permute.xlu0 %6432  ;;  %v6477_v33 = vsel %vm3197_vm7, %v15414_v2, %v6435_v53 }
0x13c4   : > { %v6476_v31 = vsel %vm3197_vm7, %v15416_v55, %v6433_v39 }
0x13c5   : > { %11924 = vmatprep.mubr.msk.f32.mxu1 %vm178_vm0, %v6476_v31 }
0x13c6   : > { %11925 = vmatmul.mubr.msk.f32.gmra.mrb[78].mxu1 %vm178_vm0, %v6477_v33 }
0x13c7   : > { %v6439_v44 = vpop.permute.xlu1 %6438 }
0x13c8   : > { %v6437_v37 = vpop.permute.xlu0 %6436  ;;  %v6479_v54 = vsel %vm3197_vm7, %v15422_v49, %v6439_v44 }
0x13c9   : > { %v6478_v27 = vsel %vm3197_vm7, %v15424_v4, %v6437_v37 }
0x13ca   : > { %11927 = vmatprep.mubr.msk.f32.mxu1 %vm178_vm0, %v6478_v27 }
0x13cb   : > { %11928 = vmatmul.mubr.msk.f32.gmra.mrb[80].mxu1 %vm178_vm0, %v6479_v54  ;;  %v6443_v55 = vpop.permute.xlu1 %6442 }
0x13cc   : > { %v6441_v30 = vpop.permute.xlu0 %6440  ;;  %v6481_v9 = vsel %vm3197_vm7, %v15418_v45, %v6443_v55 }
0x13cd   : > { %v6480_v2 = vsel %vm3197_vm7, %v15420_v19, %v6441_v30  ;;  %v6703_v19 = vld [vmem:[#allocation2 + $0x160] sm:$0xff] }
0x13ce   : > { %11930 = vmatprep.mubr.msk.f32.mxu1 %vm178_vm0, %v6480_v2  ;;  %v12444_v35 = vpack.c.bf16 %v6704_v50, %v6703_v19 }
0x13cf   : > { %v6447_v59 = vpop.permute.xlu1 %6446  ;;  %11931 = vmatmul.mubr.msk.f32.gmra.mrb[82].mxu1 %vm178_vm0, %v6481_v9 }
0x13d0   : > { %v6445_v4 = vpop.permute.xlu0 %6444  ;;  %v6483_v61 = vsel %vm3197_vm7, %v15448_v42, %v6447_v59  ;;  %12445 = vmatprep.subr.bf16.mxu0 %v12444_v35 }
0x13d1   : > { %v6482_v49 = vsel %vm3197_vm7, %v15450_v13, %v6445_v4  ;;  %12447 = vmatpush3.bf16.msra.mxu0 %v12444_v35 }
0x13d2   : > { %11933 = vmatprep.mubr.msk.f32.mxu1 %vm178_vm0, %v6482_v49 }
0x13d3   : > { %11934 = vmatmul.mubr.msk.f32.gmra.mrb[84].mxu1 %vm178_vm0, %v6483_v61  ;;  %v16717_v61 = vld [vmem:[#allocation5_spill] sm:$0xff] }
0x1401   : > { %v6451_v45 = vpop.permute.xlu1 %6450 }
0x1402   : > { %v6449_v3 = vpop.permute.xlu0 %6448  ;;  %v6485_v13 = vsel %vm3197_vm7, %v15426_v34, %v6451_v45 }
0x1403   : > { %v6484_v12 = vsel %vm3197_vm7, %v15428_v20, %v6449_v3  ;;  %v10849_v20 = vld [vmem:[#allocation2 + $0x158] ss:$0 sm:$0xff]  ;;  %v16719_v3 = vld [vmem:[#allocation8_spill] sm:$0xff] }
0x1404   : > { %11936 = vmatprep.mubr.msk.f32.mxu1 %vm178_vm0, %v6484_v12 }
0x1405   : > { %v6455_v42 = vpop.permute.xlu1 %6454  ;;  %11937 = vmatmul.mubr.msk.f32.gmra.mrb[86].mxu1 %vm178_vm0, %v6485_v13 }
0x1406   : > { %v6453_v23 = vpop.permute.xlu0 %6452  ;;  %v6487_v15 = vsel %vm3197_vm7, %v15454_v28, %v6455_v42 }
0x1407   : > { %v6486_v1 = vsel %vm3197_vm7, %v15456_v36, %v6453_v23  ;;  %v16720_v23 = vld [vmem:[#allocation7_spill] sm:$0xff] }
0x1408   : > { %11939 = vmatprep.mubr.msk.f32.mxu1 %vm178_vm0, %v6486_v1 }
0x1409   : > { %11940 = vmatmul.mubr.msk.f32.gmra.mrb[88].mxu1 %vm178_vm0, %v6487_v15 }
0x1471   : > { %v11920_v29 = vpop.f32.mrb[74].mxu1 }
0x1472   : > { %v6614_v58 = vadd.f32 %v11920_v29, %v10849_v20  ;;  %v6608_v34 = vpop.f32.mrb[75].mxu1  ;;  %v16721_v29 = vld [vmem:[#allocation10_spill] sm:$0xff] }
0x1473   : > { %v6609_v53 = vadd.f32 %v10849_v20, %v6608_v34  ;;  %v16722_v34 = vld [vmem:[#allocation9_spill] sm:$0xff] }
0x1474   : > { %v6688_v31 = vsel %vm178_vm0, %v6614_v58, %v14684_v22 }
0x1475   : > { %v6687_v39 = vsel %vm178_vm0, %v6609_v53, %v14678_v0 }
0x1476   : > { %11946 = vmatprep.mubr.msk.f32.mxu0 %vm363_vm1, %v6687_v39 }
0x1477   : > { %11947 = vmatmul.mubr.msk.f32.vlgmr.msra.gmra.mrb[102].mxu0 %vm363_vm1, %v6688_v31 }
0x1495   : > { %v11923_v28 = vpop.f32.mrb[76].mxu1 }
0x1496   : > { %v6624_v36 = vadd.f32 %v11923_v28, %v10849_v20  ;;  %v6618_v33 = vpop.f32.mrb[77].mxu1 }
0x1497   : > { %v6619_v44 = vadd.f32 %v10849_v20, %v6618_v33 }
0x1498   : > { %v6690_v0 = vsel %vm178_vm0, %v6624_v36, %v14688_v43 }
0x1499   : > { %v11926_v37 = vpop.f32.mrb[78].mxu1  ;;  %v6689_v27 = vsel %vm178_vm0, %v6619_v44, %v14680_v47  ;;  %v16723_v44 = vld [vmem:[#allocation12_spill] sm:$0xff] }
0x149a   : > { %v6634_v54 = vadd.f32 %v11926_v37, %v10849_v20  ;;  %v6628_v55 = vpop.f32.mrb[79].mxu1  ;;  %11949 = vmatprep.mubr.msk.f32.mxu0 %vm363_vm1, %v6689_v27 }
0x149b   : > { %v6629_v22 = vadd.f32 %v10849_v20, %v6628_v55  ;;  %11950 = vmatmul.mubr.msk.f32.gmra.mrb[104].mxu0 %vm363_vm1, %v6690_v0  ;;  %v16724_v55 = vld [vmem:[#allocation11_spill] sm:$0xff] }
0x149c   : > { %v6692_v9 = vsel %vm178_vm0, %v6634_v54, %v14692_v48 }
0x149d   : > { %v6691_v30 = vsel %vm178_vm0, %v6629_v22, %v14682_v32  ;;  %v16718_v32 = vld [vmem:[#allocation6_spill] sm:$0xff] }
0x149e   : > { %v11929_v2 = vpop.f32.mrb[80].mxu1  ;;  %11952 = vmatprep.mubr.msk.f32.mxu0 %vm363_vm1, %v6691_v30  ;;  %v16725_v30 = vld [vmem:[#allocation13_spill] sm:$0xff] }
0x149f   : > { %v6644_v47 = vadd.f32 %v11929_v2, %v10849_v20  ;;  %v6638_v59 = vpop.f32.mrb[81].mxu1  ;;  %11953 = vmatmul.mubr.msk.f32.gmra.mrb[106].mxu0 %vm363_vm1, %v6692_v9  ;;  %v16726_v9 = vld [vmem:[#allocation14_spill] sm:$0xff] }
0x14a0   : > { %v6639_v4 = vadd.f32 %v10849_v20, %v6638_v59  ;;  %v10866_v59 = vld [vmem:[#allocation2 + $0x170] ss:$0 sm:$0xff] }
0x14a1   : > { %v6694_v35 = vsel %vm178_vm0, %v6644_v47, %v16718_v32 }
0x14a2   : > { %v11932_v49 = vpop.f32.mrb[82].mxu1  ;;  %v6693_v43 = vsel %vm178_vm0, %v6639_v4, %v16717_v61 }
0x14a3   : > { %v6654_v19 = vadd.f32 %v11932_v49, %v10849_v20  ;;  %v6648_v50 = vpop.f32.mrb[83].mxu1  ;;  %11955 = vmatprep.mubr.msk.f32.mxu0 %vm363_vm1, %v6693_v43 }
0x14a4   : > { %v6649_v45 = vadd.f32 %v10849_v20, %v6648_v50  ;;  %11956 = vmatmul.mubr.msk.f32.gmra.mrb[108].mxu0 %vm363_vm1, %v6694_v35 }
0x14a5   : > { %v6696_v1 = vsel %vm178_vm0, %v6654_v19, %v16720_v23 }
0x14a6   : > { %v11935_v48 = vpop.f32.mrb[84].mxu1  ;;  %v6695_v12 = vsel %vm178_vm0, %v6649_v45, %v16719_v3 }
0x14a7   : > { %v6664_v13 = vadd.f32 %v11935_v48, %v10849_v20  ;;  %v6658_v42 = vpop.f32.mrb[85].mxu1  ;;  %11958 = vmatprep.mubr.msk.f32.mxu0 %vm363_vm1, %v6695_v12 }
0x14a8   : > { %v6659_v15 = vadd.f32 %v10849_v20, %v6658_v42  ;;  %11959 = vmatmul.mubr.msk.f32.gmra.mrb[110].mxu0 %vm363_vm1, %v6696_v1 }
0x14a9   : > { %v6698_v53 = vsel %vm178_vm0, %v6664_v13, %v16722_v34 }
0x14aa   : > { %v6697_v58 = vsel %vm178_vm0, %v6659_v15, %v16721_v29 }
0x14ab   : > { %11961 = vmatprep.mubr.msk.f32.mxu0 %vm363_vm1, %v6697_v58 }
0x14ac   : > { %11962 = vmatmul.mubr.msk.f32.gmra.mrb[112].mxu0 %vm363_vm1, %v6698_v53 }
0x14d8   : > { %v11938_v39 = vpop.f32.mrb[86].mxu1 }
0x14d9   : > { %v6674_v31 = vadd.f32 %v11938_v39, %v10849_v20  ;;  %v6668_v28 = vpop.f32.mrb[87].mxu1 }
0x14da   : > { %v6669_v36 = vadd.f32 %v10849_v20, %v6668_v28 }
0x14db   : > { %v6700_v0 = vsel %vm178_vm0, %v6674_v31, %v16724_v55 }
0x14dc   : > { %v11941_v33 = vpop.f32.mrb[88].mxu1  ;;  %v6699_v37 = vsel %vm178_vm0, %v6669_v36, %v16723_v44 }
0x14dd   : > { %v6684_v27 = vadd.f32 %v11941_v33, %v10849_v20  ;;  %v6678_v54 = vpop.f32.mrb[89].mxu1  ;;  %11964 = vmatprep.mubr.msk.f32.mxu0 %vm363_vm1, %v6699_v37 }
0x14de   : > { %v6679_v22 = vadd.f32 %v10849_v20, %v6678_v54  ;;  %11965 = vmatmul.mubr.msk.f32.gmra.mrb[114].mxu0 %vm363_vm1, %v6700_v0 }
0x14df   : > { %v6702_v47 = vsel %vm178_vm0, %v6684_v27, %v16726_v9 }
0x14e0   : > { %v6701_v2 = vsel %vm178_vm0, %v6679_v22, %v16725_v30 }
0x14e1   : > { %11967 = vmatprep.mubr.msk.f32.mxu0 %vm363_vm1, %v6701_v2 }
0x14e2   : > { %11968 = vmatmul.mubr.msk.f32.gmra.mrb[116].mxu0 %vm363_vm1, %v6702_v47 }
0x154a   : > { %v11948_v4 = vpop.f32.mrb[102].mxu0 }
0x154b   : > { %v15790_v49 = vadd.f32 %v11948_v4, %v10866_v59  ;;  %v6824_v61 = vpop.f32.mrb[103].mxu0 }
0x154c   : > { %v15792_v43 = vadd.f32 %v10866_v59, %v6824_v61 }
0x154e   : > { %11974 = vmatprep.mubr.msk.f32.mxu1 %vm3197_vm7, %v15792_v43  ;;  %v15798_v20 = vpack.i.bf16 %v15790_v49, %v15792_v43 }
0x1550   : > { %12810 = vrot.lane.b32.xlu0 %v15798_v20, %s13495_s7 }
0x156e   : > { %v11951_v19 = vpop.f32.mrb[104].mxu0 }
0x156f   : > { %v15802_v50 = vadd.f32 %v11951_v19, %v10866_v59  ;;  %v6834_v32 = vpop.f32.mrb[105].mxu0 }
0x1570   : > { %v15804_v35 = vadd.f32 %v10866_v59, %v6834_v32 }
0x1572   : > { %v11954_v45 = vpop.f32.mrb[106].mxu0  ;;  %11981 = vmatprep.mubr.msk.f32.mxu0 %vm3197_vm7, %v15804_v35  ;;  %v15810_v48 = vpack.i.bf16 %v15802_v50, %v15804_v35 }
0x1573   : > { %v15812_v3 = vadd.f32 %v11954_v45, %v10866_v59  ;;  %v6844_v12 = vpop.f32.mrb[107].mxu0 }
0x1574   : > { %v15814_v13 = vadd.f32 %v10866_v59, %v6844_v12  ;;  %12815 = vrot.lane.b32.xlu1 %v15810_v48, %s13495_s7 }
0x1576   : > { %v15820_v42 = vpack.i.bf16 %v15812_v3, %v15814_v13 }
0x1577   : > { %v11957_v23 = vpop.f32.mrb[108].mxu0 }
0x1578   : > { %v15822_v1 = vadd.f32 %v11957_v23, %v10866_v59  ;;  %v6854_v15 = vpop.f32.mrb[109].mxu0  ;;  %12820 = vrot.lane.b32.xlu0 %v15820_v42, %s13495_s7 }
0x1579   : > { %v15826_v29 = vadd.f32 %v10866_v59, %v6854_v15 }
0x157b   : > { %v11960_v58 = vpop.f32.mrb[110].mxu0  ;;  %v15830_v34 = vpack.i.bf16 %v15822_v1, %v15826_v29 }
0x157c   : > { %v15832_v53 = vadd.f32 %v11960_v58, %v10866_v59  ;;  %v6864_v39 = vpop.f32.mrb[111].mxu0 }
0x157d   : > { %v15834_v31 = vadd.f32 %v10866_v59, %v6864_v39  ;;  %12825 = vrot.lane.b32.xlu1 %v15830_v34, %s13495_s7 }
0x157f   : > { %v11963_v28 = vpop.f32.mrb[112].mxu0  ;;  %v15840_v36 = vpack.i.bf16 %v15832_v53, %v15834_v31 }
0x1580   : > { %v15842_v33 = vadd.f32 %v11963_v28, %v10866_v59  ;;  %v6874_v44 = vpop.f32.mrb[113].mxu0 }
0x1581   : > { %v15844_v37 = vadd.f32 %v10866_v59, %v6874_v44  ;;  %12830 = vrot.lane.b32.xlu0 %v15840_v36, %s13495_s7 }
0x1583   : > { %v15850_v27 = vpack.i.bf16 %v15842_v33, %v15844_v37 }
0x1585   : > { %12835 = vrot.lane.b32.xlu1 %v15850_v27, %s13495_s7 }
0x15b1   : > { %v11966_v54 = vpop.f32.mrb[114].mxu0 }
0x15b2   : > { %v15854_v55 = vadd.f32 %v11966_v54, %v10866_v59  ;;  %v6884_v0 = vpop.f32.mrb[115].mxu0 }
0x15b3   : > { %v15856_v22 = vadd.f32 %v10866_v59, %v6884_v0 }
0x15b5   : > { %v11969_v30 = vpop.f32.mrb[116].mxu0  ;;  %v15860_v2 = vpack.i.bf16 %v15854_v55, %v15856_v22 }
0x15b6   : > { %v15862_v9 = vadd.f32 %v11969_v30, %v10866_v59  ;;  %v6894_v47 = vpop.f32.mrb[117].mxu0 }
0x15b7   : > { %v15864_v4 = vadd.f32 %v10866_v59, %v6894_v47  ;;  %12840 = vrot.lane.b32.xlu0 %v15860_v2, %s13495_s7 }
0x15b9   : > { %v15870_v61 = vpack.i.bf16 %v15862_v9, %v15864_v4 }
0x15bb   : > { %12845 = vrot.lane.b32.xlu1 %v15870_v61, %s13495_s7  ;;  %12855 = vrot.lane.b32.xlu0 %v15810_v48, %s13496_s8 }
0x15bf   : > { %12850 = vrot.lane.b32.xlu1 %v15798_v20, %s13496_s8  ;;  %12880 = vrot.lane.b32.xlu0 %v15860_v2, %s13496_s8 }
0x15c2   : > { %v12811_v59 = vpop.permute.xlu0 %12810 }
0x15c3   : > { %12860 = vrot.lane.b32.xlu1 %v15820_v42, %s13496_s8  ;;  %12885 = vrot.lane.b32.xlu0 %v15798_v20, %s13498_s12  ;;  %v12813_v19 = vunpack.i.h.bf16 %v12811_v59  ;;  %v12812_v32 = vunpack.i.l.bf16 %v12811_v59 }
0x15c5   : > { %v12448_v45 = vpack.c.bf16 %v12813_v19, %v12812_v32 }
0x15c7   : > { %12865 = vrot.lane.b32.xlu1 %v15830_v34, %s13496_s8  ;;  %12895 = vrot.lane.b32.xlu0 %v15820_v42, %s13498_s12 }
0x15c8   : > { %12450 = vmatprep.subr.msk.bf16.mxu1 %vm14964_vm8, %v12448_v45 }
0x15c9   : > { %12453 = vmatpush3.bf16.xpose.msk.msra.mxu1 %vm14964_vm8, %v12448_v45 }
0x15cb   : > { %12870 = vrot.lane.b32.xlu1 %v15840_v36, %s13496_s8 }
0x15cf   : > { %12875 = vrot.lane.b32.xlu1 %v15850_v27, %s13496_s8 }
0x15d0   : > { %11975 = vmatmul.mubr.msk.f32.vlgmr.msra.gmra.mrb[90].mxu1 %vm3197_vm7, %v15790_v49 }
0x15d1   : > { %11988 = vmatprep.mubr.msk.f32.mxu1 %vm3197_vm7, %v15814_v13 }
0x15d3   : > { %12890 = vrot.lane.b32.xlu1 %v15810_v48, %s13498_s12 }
0x15d7   : > { %12900 = vrot.lane.b32.xlu1 %v15870_v61, %s13496_s8 }
0x15e6   : > { %v12816_v12 = vpop.permute.xlu1 %12815 }
0x15e7   : > { %v12818_v23 = vunpack.i.h.bf16 %v12816_v12  ;;  %v12817_v15 = vunpack.i.l.bf16 %v12816_v12 }
0x15e9   : > { %v12454_v58 = vpack.c.bf16 %v12818_v23, %v12817_v15 }
0x15ea   : > { %v12821_v39 = vpop.permute.xlu0 %12820 }
0x15eb   : > { %v12823_v28 = vunpack.i.h.bf16 %v12821_v39  ;;  %v12822_v44 = vunpack.i.l.bf16 %v12821_v39  ;;  %12456 = vmatprep.subr.msk.bf16.mxu0 %vm14964_vm8, %v12454_v58 }
0x15ec   : > { %12459 = vmatpush3.bf16.xpose.msk.msra.mxu0 %vm14964_vm8, %v12454_v58 }
0x15ed   : > { %v12460_v54 = vpack.c.bf16 %v12823_v28, %v12822_v44 }
0x15ef   : > { %v12826_v0 = vpop.permute.xlu1 %12825  ;;  %12462 = vmatprep.subr.msk.bf16.mxu1 %vm14964_vm8, %v12460_v54 }
0x15f0   : > { %v12828_v30 = vunpack.i.h.bf16 %v12826_v0  ;;  %v12827_v47 = vunpack.i.l.bf16 %v12826_v0  ;;  %12465 = vmatpush3.bf16.xpose.msk.msra.mxu1 %vm14964_vm8, %v12460_v54 }
0x15f2   : > { %v12466_v59 = vpack.c.bf16 %v12828_v30, %v12827_v47 }
0x15f3   : > { %v12831_v19 = vpop.permute.xlu0 %12830  ;;  %11982 = vmatmul.mubr.msk.f32.vlgmr.msra.gmra.mrb[118].mxu0 %vm3197_vm7, %v15802_v50 }
0x15f4   : > { %v12833_v32 = vunpack.i.h.bf16 %v12831_v19  ;;  %v12832_v45 = vunpack.i.l.bf16 %v12831_v19  ;;  %12468 = vmatprep.subr.msk.bf16.mxu0 %vm14964_vm8, %v12466_v59  ;;  %11995 = vmatprep.mubr.msk.f32.mxu0 %vm3197_vm7, %v15826_v29 }
0x15f5   : > { %12471 = vmatpush3.bf16.xpose.msk.msra.mxu0 %vm14964_vm8, %v12466_v59 }
0x15f6   : > { %v12472_v12 = vpack.c.bf16 %v12833_v32, %v12832_v45 }
0x15f7   : > { %v12836_v23 = vpop.permute.xlu1 %12835  ;;  %11989 = vmatmul.mubr.msk.f32.vlgmr.msra.gmra.mrb[92].mxu1 %vm3197_vm7, %v15812_v3 }
0x15f8   : > { %v12838_v15 = vunpack.i.h.bf16 %v12836_v23  ;;  %v12837_v58 = vunpack.i.l.bf16 %v12836_v23  ;;  %12474 = vmatprep.subr.msk.bf16.mxu1 %vm14964_vm8, %v12472_v12  ;;  %12002 = vmatprep.mubr.msk.f32.mxu1 %vm3197_vm7, %v15834_v31 }
0x15f9   : > { %12477 = vmatpush3.bf16.xpose.msk.msra.mxu1 %vm14964_vm8, %v12472_v12 }
0x15fa   : > { %v12478_v39 = vpack.c.bf16 %v12838_v15, %v12837_v58 }
0x15fc   : > { %11996 = vmatmul.mubr.msk.f32.vlgmr.msra.gmra.mrb[120].mxu0 %vm3197_vm7, %v15822_v1  ;;  %12480 = vmatprep.subr.msk.bf16.mxu0 %vm14964_vm8, %v12478_v39 }
0x15fd   : > { %12483 = vmatpush3.bf16.xpose.msk.msra.mxu0 %vm14964_vm8, %v12478_v39  ;;  %12009 = vmatprep.mubr.msk.f32.mxu0 %vm3197_vm7, %v15844_v37 }
0x1600   : > { %12003 = vmatmul.mubr.msk.f32.vlgmr.msra.gmra.mrb[94].mxu1 %vm3197_vm7, %v15832_v53 }
0x1601   : > { %12016 = vmatprep.mubr.msk.f32.mxu1 %vm3197_vm7, %v15856_v22 }
0x1604   : > { %12010 = vmatmul.mubr.msk.f32.vlgmr.msra.gmra.mrb[122].mxu0 %vm3197_vm7, %v15842_v33 }
0x1605   : > { %12023 = vmatprep.mubr.msk.f32.mxu0 %vm3197_vm7, %v15864_v4 }
0x1629   : > { %v12841_v28 = vpop.permute.xlu0 %12840 }
0x162a   : > { %v12843_v44 = vunpack.i.h.bf16 %v12841_v28  ;;  %v12842_v54 = vunpack.i.l.bf16 %v12841_v28 }
0x162c   : > { %v12484_v0 = vpack.c.bf16 %v12843_v44, %v12842_v54 }
0x162d   : > { %v12846_v30 = vpop.permute.xlu1 %12845  ;;  %v12856_v47 = vpop.permute.xlu0 %12855 }
0x162e   : > { %v12848_v59 = vunpack.i.h.bf16 %v12846_v30  ;;  %v12847_v19 = vunpack.i.l.bf16 %v12846_v30  ;;  %v12858_v32 = vunpack.i.h.bf16 %v12856_v47  ;;  %v12857_v45 = vunpack.i.l.bf16 %v12856_v47  ;;  %12486 = vmatprep.subr.msk.bf16.mxu1 %vm14964_vm8, %v12484_v0 }
0x162f   : > { %12489 = vmatpush3.bf16.xpose.msk.msra.mxu1 %vm14964_vm8, %v12484_v0 }
0x1630   : > { %v12490_v12 = vpack.c.bf16 %v12848_v59, %v12847_v19  ;;  %v12500_v39 = vpack.c.bf16 %v12858_v32, %v12857_v45 }
0x1631   : > { %v12851_v23 = vpop.permute.xlu1 %12850 }
0x1632   : > { %v12853_v15 = vunpack.i.h.bf16 %v12851_v23  ;;  %v12852_v58 = vunpack.i.l.bf16 %v12851_v23  ;;  %12492 = vmatprep.subr.msk.bf16.mxu0 %vm14964_vm8, %v12490_v12 }
0x1633   : > { %12495 = vmatpush3.bf16.xpose.msk.msra.mxu0 %vm14964_vm8, %v12490_v12 }
0x1634   : > { %12501 = vmatprep.subr.bf16.mxu0 %v12500_v39  ;;  %v12496_v28 = vpack.c.bf16 %v12853_v15, %v12852_v58 }
0x1635   : > { %v12861_v44 = vpop.permute.xlu1 %12860 }
0x1636   : > { %v12863_v54 = vunpack.i.h.bf16 %v12861_v44  ;;  %v12862_v30 = vunpack.i.l.bf16 %v12861_v44  ;;  %12017 = vmatmul.mubr.msk.f32.vlgmr.msra.gmra.mrb[96].mxu1 %vm3197_vm7, %v15854_v55  ;;  %12497 = vmatprep.subr.bf16.mxu1 %v12496_v28 }
0x1637   : > { %12499 = vmatpush3.bf16.msra.mxu1 %v12496_v28 }
0x1638   : > { %v15954_v0 = vpack.c.bf16 %v12863_v54, %v12862_v30 }
0x1639   : > { %v12866_v47 = vpop.permute.xlu1 %12865 }
0x163a   : > { %v12868_v59 = vunpack.i.h.bf16 %v12866_v47  ;;  %v12867_v19 = vunpack.i.l.bf16 %v12866_v47  ;;  %12024 = vmatmul.mubr.msk.f32.vlgmr.msra.gmra.mrb[124].mxu0 %vm3197_vm7, %v15862_v9  ;;  %12505 = vmatprep.subr.bf16.mxu1 %v15954_v0 }
0x163b   : > { %12503 = vmatpush3.bf16.msra.mxu0 %v12500_v39 }
0x163c   : > { %v15959_v32 = vpack.c.bf16 %v12868_v59, %v12867_v19 }
0x163e   : > { %12509 = vmatprep.subr.bf16.mxu0 %v15959_v32 }
0x16a3   : > { %v11976_v45 = vpop.f32.mrb[90].mxu1 }
0x16a4   : > { %v7616_v12 = vmul.f32 0.5, %v11976_v45  ;;  %v6983_v23 = vpop.f32.mrb[91].mxu1 }
0x16a5   : > { %v7615_v15 = vmul.f32 0.5, %v6983_v23 }
0x16a6   : > { %v15963_v58 = vsel %vm7632_vm9, -9e+15, %v7616_v12 }
0x16a7   : > { %v15966_v28 = vsel %vm7631_vm10, -9e+15, %v7615_v15  ;;  %v7666_v44 = vsel %vm363_vm1, %v15963_v58, -inf  ;;  %vm7643_vm10 = vcmp.eq.f32.partialorder %v16732_v57, 0.0 }
0x16a8   : > { %7667 = vmax.xlane.f32.xlu1 %v7666_v44  ;;  %v7663_v39 = vsel %vm363_vm1, %v15966_v28, -inf }
0x16a9   : > { %7664 = vmax.xlane.f32.xlu0 %v7663_v39 }
0x16c6   : > { %v11983_v54 = vpop.f32.mrb[118].mxu0 }
0x16c7   : > { %v7618_v30 = vmul.f32 0.5, %v11983_v54  ;;  %v7072_v47 = vpop.f32.mrb[119].mxu0 }
0x16c8   : > { %v7617_v40 = vmul.f32 0.5, %v7072_v47 }
0x16c9   : > { %v15973_v59 = vsel %vm7634_vm11, -9e+15, %v7618_v30 }
0x16ca   : > { %v15976_v6 = vsel %vm7633_vm12, -9e+15, %v7617_v40  ;;  %v11990_v19 = vpop.f32.mrb[92].mxu1  ;;  %v7672_v45 = vsel %vm363_vm1, %v15973_v59, -inf }
0x16cb   : > { %v7620_v12 = vmul.f32 0.5, %v11990_v19  ;;  %7673 = vmax.xlane.f32.xlu0 %v7672_v45  ;;  %v7161_v23 = vpop.f32.mrb[93].mxu1  ;;  %v7669_v11 = vsel %vm363_vm1, %v15976_v6, -inf }
0x16cc   : > { %v7619_v15 = vmul.f32 0.5, %v7161_v23 }
0x16cd   : > { %v15981_v44 = vsel %vm7636_vm13, -9e+15, %v7620_v12  ;;  %vm9279_vm13 = vcmp.eq.f32.partialorder %v15598_v63, 0.0 }
0x16ce   : > { %v15984_v17 = vsel %vm7635_vm14, -9e+15, %v7619_v15  ;;  %v7678_v39 = vsel %vm363_vm1, %v15981_v44, -inf  ;;  %v16727_v15 = vld [vmem:[#allocation16_spill] sm:$0xff]  ;;  %vm9282_vm14 = vcmp.eq.f32.partialorder %v15621_v16, 0.0 }
0x16cf   : > { %v11997_v54 = vpop.f32.mrb[120].mxu0  ;;  %7670 = vmax.xlane.f32.xlu0 %v7669_v11  ;;  %7679 = vmax.xlane.f32.xlu1 %v7678_v39  ;;  %v7675_v41 = vsel %vm363_vm1, %v15984_v17, -inf  ;;  %vm7640_vm3 = vcmp.eq.f32.partialorder %v16727_v15, 0.0  ;;  %v16729_v15 = vld [vmem:[#allocation19_spill] sm:$0xff] }
0x16d0   : > { %v7622_v30 = vmul.f32 0.5, %v11997_v54  ;;  %v7250_v47 = vpop.f32.mrb[121].mxu0  ;;  %vm7641_vm5 = vcmp.eq.f32.partialorder %v16729_v15, 0.0 }
0x16d1   : > { %v7621_v5 = vmul.f32 0.5, %v7250_v47 }
0x16d2   : > { %v15991_v40 = vsel %vm7638_vm15, -9e+15, %v7622_v30  ;;  %vm9284_vm15 = vcmp.eq.f32.partialorder %v15613_v52, 0.0 }
0x16d3   : > { %v15996_v19 = vsel %vm7637_vm2, -9e+15, %v7621_v5  ;;  %v12004_v45 = vpop.f32.mrb[94].mxu1  ;;  %7676 = vmax.xlane.f32.xlu0 %v7675_v41  ;;  %v7684_v54 = vsel %vm363_vm1, %v15991_v40, -inf }
0x16d4   : > { %v7624_v12 = vmul.f32 0.5, %v12004_v45  ;;  %v7339_v23 = vpop.f32.mrb[95].mxu1 }
0x16d5   : > { %v7623_v11 = vmul.f32 0.5, %v7339_v23  ;;  %v16730_v23 = vld [vmem:[#allocation20_spill] sm:$0xff] }
0x16d6   : > { %v15999_v39 = vsel %vm7640_vm3, -9e+15, %v7624_v12  ;;  %v7681_v12 = vsel %vm363_vm1, %v15996_v19, -inf  ;;  %vm7642_vm6 = vcmp.eq.f32.partialorder %v16730_v23, 0.0 }
0x16d7   : > { %v16004_v7 = vsel %vm7639_vm4, -9e+15, %v7623_v11  ;;  %v12011_v30 = vpop.f32.mrb[122].mxu0  ;;  %7685 = vmax.xlane.f32.xlu0 %v7684_v54  ;;  %v7690_v47 = vsel %vm363_vm1, %v15999_v39, -inf }
0x16d8   : > { %v7626_v5 = vmul.f32 0.5, %v12011_v30  ;;  %v7428_v41 = vpop.f32.mrb[123].mxu0  ;;  %7691 = vmax.xlane.f32.xlu1 %v7690_v47  ;;  %v7687_v11 = vsel %vm363_vm1, %v16004_v7, -inf }
0x16d9   : > { %v7625_v45 = vmul.f32 0.5, %v7428_v41 }
0x16da   : > { %v16016_v54 = vsel %vm7642_vm6, -9e+15, %v7626_v5 }
0x16db   : > { %v16012_v10 = vsel %vm7641_vm5, -9e+15, %v7625_v45  ;;  %7682 = vmax.xlane.f32.xlu0 %v7681_v12  ;;  %v7696_v47 = vsel %vm363_vm1, %v16016_v54, -inf  ;;  %v16731_v45 = vld [vmem:[#allocation18_spill] sm:$0xff] }
0x16dc   : > { %7688 = vmax.xlane.f32.xlu1 %v7687_v11  ;;  %v7693_v30 = vsel %vm363_vm1, %v16012_v10, -inf  ;;  %vm7644_vm9 = vcmp.eq.f32.partialorder %v16731_v45, 0.0 }
0x16df   : > { %7694 = vmax.xlane.f32.xlu0 %v7693_v30 }
0x16e0   : > { %7697 = vmax.xlane.f32.xlu1 %v7696_v47 }
0x1709   : > { %v12018_v41 = vpop.f32.mrb[96].mxu1 }
0x170a   : > { %v7628_v15 = vmul.f32 0.5, %v12018_v41  ;;  %v7517_v23 = vpop.f32.mrb[97].mxu1  ;;  %v16733_v41 = vld [vmem:[#allocation22_spill] sm:$0xff] }
0x170b   : > { %v7627_v12 = vmul.f32 0.5, %v7517_v23  ;;  %vm7646_vm11 = vcmp.eq.f32.partialorder %v16733_v41, 0.0  ;;  %v16734_v23 = vld [vmem:[#allocation21_spill] sm:$0xff] }
0x170c   : > { %v16023_v56 = vsel %vm7644_vm9, -9e+15, %v7628_v15  ;;  %vm7645_vm12 = vcmp.eq.f32.partialorder %v16734_v23, 0.0 }
0x170d   : > { %v16026_v5 = vsel %vm7643_vm10, -9e+15, %v7627_v12  ;;  %v12025_v11 = vpop.f32.mrb[124].mxu0  ;;  %v7702_v30 = vsel %vm363_vm1, %v16023_v56, -inf }
0x170e   : > { %v7630_v26 = vmul.f32 0.5, %v12025_v11  ;;  %v7606_v18 = vpop.f32.mrb[125].mxu0  ;;  %7703 = vmax.xlane.f32.xlu1 %v7702_v30  ;;  %v7699_v47 = vsel %vm363_vm1, %v16026_v5, -inf  ;;  %v16042_v30 = vpop.permute.xlu1 %12870 }
0x170f   : > { %v7629_v45 = vmul.f32 0.5, %v7606_v18  ;;  %7700 = vmax.xlane.f32.xlu0 %v7699_v47  ;;  %v16046_v18 = vpop.permute.xlu0 %12880 }
0x1710   : > { %v16033_v15 = vsel %vm7646_vm11, -9e+15, %v7630_v26 }
0x1711   : > { %v16036_v57 = vsel %vm7645_vm12, -9e+15, %v7629_v45  ;;  %v7708_v12 = vsel %vm363_vm1, %v16033_v15, -inf }
0x1712   : > { %7709 = vmax.xlane.f32.xlu1 %v7708_v12  ;;  %v7705_v11 = vsel %vm363_vm1, %v16036_v57, -inf  ;;  %v16048_v26 = vpop.permute.xlu1 %12875 }
0x1713   : > { %7706 = vmax.xlane.f32.xlu0 %v7705_v11  ;;  %v16056_v47 = vpop.permute.xlu0 %12885 }
0x1716   : > { %v16058_v41 = vpop.permute.xlu1 %12890 }
0x171a   : > { %v16064_v45 = vpop.permute.xlu1 %12900 }
0x1723   : > { %8535 = vrot.lane.b32.xlu1 %v15792_v43, %s13499_s13  ;;  %v16062_v43 = vpop.permute.xlu0 %12895 }
0x1727   : > { %12905 = vrot.lane.b32.xlu1 %v15830_v34, %s13498_s12 }
0x1729   : > { %8537 = vrot.lane.b32.xlu0 %v15790_v49, %s13499_s13 }
0x172b   : > { %8628 = vrot.lane.b32.xlu1 %v15802_v50, %s13499_s13 }
0x172d   : > { %8626 = vrot.lane.b32.xlu0 %v15804_v35, %s13499_s13 }
0x1735   : > { %v7668_v23 = vpop.xlane.xlu1 %7667 }
0x1736   : > { %v7665_v12 = vpop.xlane.xlu0 %7664  ;;  %v7712_v49 = vsub.f32 %v15963_v58, %v7668_v23 }
0x1737   : > { %v7711_v11 = vsub.f32 %v15966_v28, %v7665_v12 }
0x1738   : > { %v7729_v24 = vmul.f32 1.442695, %v7712_v49 }
0x1739   : > { %v7727_v25 = vmul.f32 1.442695, %v7711_v11 }
0x173b   : > { %13289 = vpow2.f32 %v7727_v25 }
0x173c   : > { %13291 = vpow2.f32 %v7729_v24 }
0x1745   : > { %v16068_v50 = vpop.eup %13289 }
0x1746   : > { %v16070_v62 = vpop.eup %13291  ;;  %v7759_v35 = vsel %vm363_vm1, %v16068_v50, 0.0 }
0x1747   : > { %v7762_v51 = vsel %vm363_vm1, %v16070_v62, 0.0 }
0x174c   : > { %7760 = vadd.xlane.f32.xlu0 %v7759_v35 }
0x174f   : > { %7763 = vadd.xlane.f32.xlu1 %v7762_v51 }
0x1758   : > { %v7674_v14 = vpop.xlane.xlu0 %7673 }
0x1759   : > { %v7714_v28 = vsub.f32 %v15973_v59, %v7674_v14 }
0x175b   : > { %v7733_v58 = vmul.f32 1.442695, %v7714_v28 }
0x175c   : > { %v7671_v23 = vpop.xlane.xlu0 %7670  ;;  %v7680_v12 = vpop.xlane.xlu1 %7679 }
0x175d   : > { %13293 = vpow2.f32 %v7733_v58  ;;  %v7713_v24 = vsub.f32 %v15976_v6, %v7671_v23  ;;  %v7716_v25 = vsub.f32 %v15981_v44, %v7680_v12 }
0x175f   : > { %v7731_v11 = vmul.f32 1.442695, %v7713_v24  ;;  %v7737_v49 = vmul.f32 1.442695, %v7716_v25 }
0x1760   : > { %v7677_v60 = vpop.xlane.xlu0 %7676 }
0x1761   : > { %13295 = vpow2.f32 %v7731_v11  ;;  %v7715_v35 = vsub.f32 %v15984_v17, %v7677_v60 }
0x1762   : > { %13297 = vpow2.f32 %v7737_v49 }
0x1763   : > { %v7735_v46 = vmul.f32 1.442695, %v7715_v35 }
0x1764   : > { %v7686_v51 = vpop.xlane.xlu0 %7685 }
0x1765   : > { %13299 = vpow2.f32 %v7735_v46  ;;  %v7718_v14 = vsub.f32 %v15991_v40, %v7686_v51  ;;  %v7692_v59 = vpop.xlane.xlu1 %7691 }
0x1766   : > { %v7720_v28 = vsub.f32 %v15999_v39, %v7692_v59 }
0x1767   : > { %v16082_v58 = vpop.eup %13293  ;;  %v7741_v6 = vmul.f32 1.442695, %v7718_v14 }
0x1768   : > { %v7745_v23 = vmul.f32 1.442695, %v7720_v28  ;;  %v7683_v44 = vpop.xlane.xlu0 %7682  ;;  %v7768_v12 = vsel %vm363_vm1, %v16082_v58, 0.0 }
0x1769   : > { %13301 = vpow2.f32 %v7741_v6  ;;  %v7717_v60 = vsub.f32 %v15996_v19, %v7683_v44  ;;  %v7689_v17 = vpop.xlane.xlu1 %7688  ;;  %7769 = vadd.xlane.f32.xlu0 %v7768_v12 }
0x176a   : > { %13303 = vpow2.f32 %v7745_v23  ;;  %v7719_v46 = vsub.f32 %v16004_v7, %v7689_v17 }
0x176b   : > { %v16088_v40 = vpop.eup %13295  ;;  %v7739_v24 = vmul.f32 1.442695, %v7717_v60 }
0x176c   : > { %v16090_v39 = vpop.eup %13297  ;;  %v7743_v25 = vmul.f32 1.442695, %v7719_v46  ;;  %v7695_v11 = vpop.xlane.xlu0 %7694  ;;  %v7765_v49 = vsel %vm363_vm1, %v16088_v40, 0.0 }
0x176d   : > { %13305 = vpow2.f32 %v7739_v24  ;;  %v7721_v35 = vsub.f32 %v16012_v10, %v7695_v11  ;;  %v7698_v51 = vpop.xlane.xlu1 %7697  ;;  %v7774_v19 = vsel %vm363_vm1, %v16090_v39, 0.0  ;;  %7766 = vadd.xlane.f32.xlu0 %v7765_v49 }
0x176e   : > { %13307 = vpow2.f32 %v7743_v25  ;;  %v7722_v7 = vsub.f32 %v16016_v54, %v7698_v51  ;;  %7775 = vadd.xlane.f32.xlu1 %v7774_v19 }
0x176f   : > { %v16098_v14 = vpop.eup %13299  ;;  %v7747_v59 = vmul.f32 1.442695, %v7721_v35 }
0x1770   : > { %v7749_v28 = vmul.f32 1.442695, %v7722_v7  ;;  %v7771_v6 = vsel %vm363_vm1, %v16098_v14, 0.0 }
0x1771   : > { %13309 = vpow2.f32 %v7747_v59 }
0x1772   : > { %13311 = vpow2.f32 %v7749_v28  ;;  %7772 = vadd.xlane.f32.xlu1 %v7771_v6 }
0x1773   : > { %v16102_v10 = vpop.eup %13301 }
0x1774   : > { %v16104_v23 = vpop.eup %13303  ;;  %v7780_v44 = vsel %vm363_vm1, %v16102_v10, 0.0 }
0x1775   : > { %v7786_v54 = vsel %vm363_vm1, %v16104_v23, 0.0  ;;  %7781 = vadd.xlane.f32.xlu0 %v7780_v44 }
0x1776   : > { %7787 = vadd.xlane.f32.xlu1 %v7786_v54 }
0x1777   : > { %v16110_v12 = vpop.eup %13305 }
0x1778   : > { %v16112_v60 = vpop.eup %13307  ;;  %v7777_v17 = vsel %vm363_vm1, %v16110_v12, 0.0 }
0x1779   : > { %v7783_v46 = vsel %vm363_vm1, %v16112_v60, 0.0  ;;  %7778 = vadd.xlane.f32.xlu0 %v7777_v17 }
0x177a   : > { %7784 = vadd.xlane.f32.xlu1 %v7783_v46 }
0x177b   : > { %v16118_v24 = vpop.eup %13309 }
0x177c   : > { %v16120_v25 = vpop.eup %13311  ;;  %v7789_v11 = vsel %vm363_vm1, %v16118_v24, 0.0 }
0x177d   : > { %v7792_v49 = vsel %vm363_vm1, %v16120_v25, 0.0  ;;  %7790 = vadd.xlane.f32.xlu0 %v7789_v11 }
0x177e   : > { %7793 = vadd.xlane.f32.xlu1 %v7792_v49 }
0x179b   : > { %v7704_v35 = vpop.xlane.xlu1 %7703 }
0x179c   : > { %v7724_v51 = vsub.f32 %v16023_v56, %v7704_v35  ;;  %v7701_v19 = vpop.xlane.xlu0 %7700 }
0x179d   : > { %v7723_v7 = vsub.f32 %v16026_v5, %v7701_v19 }
0x179e   : > { %v7753_v59 = vmul.f32 1.442695, %v7724_v51 }
0x179f   : > { %v7751_v28 = vmul.f32 1.442695, %v7723_v7  ;;  %v7710_v6 = vpop.xlane.xlu1 %7709 }
0x17a0   : > { %13313 = vpow2.f32 %v7753_v59  ;;  %v7726_v44 = vsub.f32 %v16033_v15, %v7710_v6  ;;  %v7707_v54 = vpop.xlane.xlu0 %7706 }
0x17a1   : > { %13315 = vpow2.f32 %v7751_v28  ;;  %v7725_v17 = vsub.f32 %v16036_v57, %v7707_v54 }
0x17a2   : > { %v7757_v46 = vmul.f32 1.442695, %v7726_v44 }
0x17a3   : > { %v7755_v8 = vmul.f32 1.442695, %v7725_v17  ;;  %v16156_v51 = vpop.permute.xlu1 %8535 }
0x17a4   : > { %13317 = vpow2.f32 %v7757_v46  ;;  %v16160_v19 = vpop.permute.xlu0 %8537 }
0x17a5   : > { %13319 = vpow2.f32 %v7755_v8 }
0x17aa   : > { %v16130_v11 = vpop.eup %13313 }
0x17ab   : > { %v16132_v56 = vpop.eup %13315  ;;  %v7798_v5 = vsel %vm363_vm1, %v16130_v11, 0.0 }
0x17ac   : > { %7799 = vadd.xlane.f32.xlu1 %v7798_v5  ;;  %v7795_v49 = vsel %vm363_vm1, %v16132_v56, 0.0 }
0x17ad   : > { %7796 = vadd.xlane.f32.xlu0 %v7795_v49  ;;  %v12883_v49 = vunpack.i.h.bf16 %v16046_v18 }
0x17ae   : > { %v16138_v15 = vpop.eup %13317 }
0x17af   : > { %v7804_v57 = vsel %vm363_vm1, %v16138_v15, 0.0  ;;  %v16142_v35 = vpop.eup %13319 }
0x17b0   : > { %v7801_v8 = vsel %vm363_vm1, %v16142_v35, 0.0 }
0x17b1   : > { %7805 = vadd.xlane.f32.xlu0 %v7804_v57 }
0x17b5   : > { %7802 = vadd.xlane.f32.xlu0 %v7801_v8 }
0x17bd   : > { %8717 = vrot.lane.b32.xlu1 %v15814_v13, %s13499_s13  ;;  %v16166_v13 = vpop.permute.xlu1 %12905 }
0x17c1   : > { %12915 = vrot.lane.b32.xlu1 %v15850_v27, %s13498_s12 }
0x17c5   : > { %8810 = vrot.lane.b32.xlu1 %v15822_v1, %s13499_s13  ;;  %v16170_v1 = vpop.permute.xlu0 %8626 }
0x17c9   : > { %8899 = vrot.lane.b32.xlu1 %v15834_v31, %s13499_s13  ;;  %v16176_v31 = vpop.permute.xlu1 %8628 }
0x17cb   : > { %12910 = vrot.lane.b32.xlu0 %v15840_v36, %s13498_s12 }
0x17cd   : > { %12925 = vrot.lane.b32.xlu1 %v15870_v61, %s13498_s12 }
0x17cf   : > { %8719 = vrot.lane.b32.xlu0 %v15812_v3, %s13499_s13 }
0x17d1   : > { %8992 = vrot.lane.b32.xlu1 %v15842_v33, %s13499_s13 }
0x17d3   : > { %8808 = vrot.lane.b32.xlu0 %v15826_v29, %s13499_s13 }
0x17d5   : > { %9083 = vrot.lane.b32.xlu1 %v15854_v55, %s13499_s13 }
0x17d7   : > { %12920 = vrot.lane.b32.xlu0 %v15860_v2, %s13498_s12 }
0x17d9   : > { %9174 = vrot.lane.b32.xlu1 %v15862_v9, %s13499_s13  ;;  %v7761_v3 = vpop.xlane.xlu0 %7760  ;;  %v12873_v9 = vunpack.i.h.bf16 %v16042_v30 }
0x17da   : > { %13321 = vrcp.f32 %v7761_v3 }
0x17db   : > { %8901 = vrot.lane.b32.xlu0 %v15832_v53, %s13499_s13  ;;  %v12872_v53 = vunpack.i.l.bf16 %v16042_v30 }
0x17dc   : > { %v7764_v33 = vpop.xlane.xlu1 %7763 }
0x17dd   : > { %13323 = vrcp.f32 %v7764_v33  ;;  %12935 = vrot.lane.b32.xlu1 %v15810_v48, %s13500_s14 }
0x17df   : > { %8990 = vrot.lane.b32.xlu0 %v15844_v37, %s13499_s13 }
0x17e1   : > { %12945 = vrot.lane.b32.xlu1 %v15830_v34, %s13500_s14  ;;  %v12512_v34 = vpack.c.bf16 %v12873_v9, %v12872_v53 }
0x17e3   : > { %9081 = vrot.lane.b32.xlu0 %v15856_v22, %s13499_s13 }
0x17e4   : > { %v13322_v29 = vpop.eup %13321 }
0x17e5   : > { %v7808_v55 = vmul.f32 %v13322_v29, %v16068_v50 }
0x17e7   : > { %v13324_v7 = vpop.eup %13323  ;;  %9172 = vrot.lane.b32.xlu0 %v15864_v4, %s13499_s13  ;;  %12030 = vmatprep.mubr.msk.f32.mxu1 %vm363_vm1, %v7808_v55  ;;  %v12902_v55 = vunpack.i.l.bf16 %v16064_v45 }
0x17e8   : > { %v7810_v48 = vmul.f32 %v13324_v7, %v16070_v62 }
0x17ea   : > { %12031 = vmatmul.mubr.msk.f32.vlgmr.msra.gmra.mrb[98].mxu1 %vm363_vm1, %v7810_v48 }
0x17eb   : > { %12507 = vmatpush3.bf16.msra.mxu1 %v15954_v0  ;;  %12930 = vrot.lane.b32.xlu0 %v15798_v20, %s13500_s14  ;;  %v12878_v0 = vunpack.i.h.bf16 %v16048_v26  ;;  %v12877_v20 = vunpack.i.l.bf16 %v16048_v26  ;;  %v12882_v26 = vunpack.i.l.bf16 %v16046_v18 }
0x17ec   : > { %12513 = vmatprep.subr.bf16.mxu1 %v12512_v34 }
0x17ed   : > { %v12516_v46 = vpack.c.bf16 %v12878_v0, %v12877_v20  ;;  %v12520_v3 = vpack.c.bf16 %v12883_v49, %v12882_v26  ;;  %v12898_v0 = vunpack.i.h.bf16 %v16062_v43  ;;  %v12897_v20 = vunpack.i.l.bf16 %v16062_v43 }
0x17ee   : > { %v12907_v26 = vunpack.i.l.bf16 %v16166_v13 }
0x17ef   : > { %12940 = vrot.lane.b32.xlu0 %v15820_v42, %s13500_s14 }
0x17f6   : > { %v7770_v37 = vpop.xlane.xlu0 %7769 }
0x17f7   : > { %13325 = vrcp.f32 %v7770_v37 }
0x17fa   : > { %v7767_v22 = vpop.xlane.xlu0 %7766 }
0x17fb   : > { %v7776_v4 = vpop.xlane.xlu1 %7775  ;;  %13327 = vrcp.f32 %v7767_v22  ;;  %v12893_v22 = vunpack.i.h.bf16 %v16058_v41 }
0x17fc   : > { %13329 = vrcp.f32 %v7776_v4 }
0x17ff   : > { %v7773_v30 = vpop.xlane.xlu1 %7772 }
0x1800   : > { %13331 = vrcp.f32 %v7773_v30 }
0x1801   : > { %v13326_v59 = vpop.eup %13325 }
0x1802   : > { %v7782_v62 = vpop.xlane.xlu0 %7781  ;;  %v7814_v44 = vmul.f32 %v13326_v59, %v16082_v58 }
0x1803   : > { %v7788_v50 = vpop.xlane.xlu1 %7787  ;;  %13333 = vrcp.f32 %v7782_v62 }
0x1804   : > { %13335 = vrcp.f32 %v7788_v50 }
0x1805   : > { %v13328_v28 = vpop.eup %13327 }
0x1806   : > { %v7779_v6 = vpop.xlane.xlu0 %7778  ;;  %v7812_v42 = vmul.f32 %v13328_v28, %v16088_v40  ;;  %v13330_v17 = vpop.eup %13329 }
0x1807   : > { %v7785_v54 = vpop.xlane.xlu1 %7784  ;;  %13337 = vrcp.f32 %v7779_v6  ;;  %v7818_v8 = vmul.f32 %v13330_v17, %v16090_v39  ;;  %v12887_v39 = vunpack.i.l.bf16 %v16056_v47  ;;  %v12540_v17 = vpack.c.bf16 %v12898_v0, %v12897_v20 }
0x1808   : > { %13339 = vrcp.f32 %v7785_v54  ;;  %12037 = vmatprep.mubr.msk.f32.mxu0 %vm363_vm1, %v7812_v42 }
0x1809   : > { %12038 = vmatmul.mubr.msk.f32.vlgmr.msra.gmra.mrb[126].mxu0 %vm363_vm1, %v7814_v44 }
0x180a   : > { %v13332_v5 = vpop.eup %13331  ;;  %12511 = vmatpush3.bf16.msra.mxu0 %v15959_v32  ;;  %v7791_v57 = vpop.xlane.xlu0 %7790  ;;  %v12903_v32 = vunpack.i.h.bf16 %v16064_v45  ;;  %v12892_v45 = vunpack.i.l.bf16 %v16058_v41 }
0x180b   : > { %v7794_v40 = vpop.xlane.xlu1 %7793  ;;  %12517 = vmatprep.subr.bf16.mxu0 %v12516_v46  ;;  %13341 = vrcp.f32 %v7791_v57  ;;  %v7816_v58 = vmul.f32 %v13332_v5, %v16098_v14  ;;  %v12888_v14 = vunpack.i.h.bf16 %v16056_v47 }
0x180c   : > { %13343 = vrcp.f32 %v7794_v40  ;;  %v12524_v47 = vpack.c.bf16 %v12903_v32, %v12902_v55  ;;  %v12534_v41 = vpack.c.bf16 %v12893_v22, %v12892_v45 }
0x180d   : > { %12044 = vmatprep.mubr.msk.f32.mxu1 %vm363_vm1, %v7816_v58  ;;  %v13334_v33 = vpop.eup %13333 }
0x180e   : > { %12045 = vmatmul.mubr.msk.f32.vlgmr.msra.gmra.mrb[100].mxu1 %vm363_vm1, %v7818_v8  ;;  %v13336_v29 = vpop.eup %13335  ;;  %v7822_v7 = vmul.f32 %v13334_v33, %v16102_v10 }
0x180f   : > { %12515 = vmatpush3.bf16.msra.mxu1 %v12512_v34  ;;  %v7826_v34 = vmul.f32 %v13336_v29, %v16104_v23 }
0x1810   : > { %12521 = vmatprep.subr.bf16.mxu1 %v12520_v3 }
0x1811   : > { %v13338_v18 = vpop.eup %13337 }
0x1812   : > { %v13340_v9 = vpop.eup %13339  ;;  %v7820_v53 = vmul.f32 %v13338_v18, %v16110_v12  ;;  %v12528_v12 = vpack.c.bf16 %v12888_v14, %v12887_v39 }
0x1813   : > { %v7824_v48 = vmul.f32 %v13340_v9, %v16112_v60 }
0x1814   : > { %12051 = vmatprep.mubr.msk.f32.mxu0 %vm363_vm1, %v7820_v53 }
0x1815   : > { %v13342_v37 = vpop.eup %13341  ;;  %12058 = vmatprep.mubr.msk.f32.mxu1 %vm363_vm1, %v7824_v48  ;;  %12052 = vmatmul.mubr.msk.f32.vlgmr.msra.gmra.mrb[128].mxu0 %vm363_vm1, %v7822_v7 }
0x1816   : > { %v13344_v4 = vpop.eup %13343  ;;  %12059 = vmatmul.mubr.msk.f32.vlgmr.msra.gmra.mrb[102].mxu1 %vm363_vm1, %v7826_v34  ;;  %12519 = vmatpush3.bf16.msra.mxu0 %v12516_v46  ;;  %v7828_v10 = vmul.f32 %v13342_v37, %v16118_v24 }
0x1817   : > { %v7830_v23 = vmul.f32 %v13344_v4, %v16120_v25  ;;  %12523 = vmatpush3.bf16.msra.mxu1 %v12520_v3  ;;  %12525 = vmatprep.subr.bf16.mxu0 %v12524_v47 }
0x1818   : > { %12530 = vmatprep.subr.msk.bf16.mxu1 %vm14964_vm8, %v12528_v12  ;;  %12065 = vmatprep.mubr.msk.f32.mxu0 %vm363_vm1, %v7828_v10 }
0x1819   : > { %12066 = vmatmul.mubr.msk.f32.vlgmr.msra.gmra.mrb[130].mxu0 %vm363_vm1, %v7830_v23 }
0x181a   : > { %12527 = vmatpush3.bf16.msra.mxu0 %v12524_v47 }
0x181b   : > { %12536 = vmatprep.subr.msk.bf16.mxu0 %vm14964_vm8, %v12534_v41 }
0x1839   : > { %v7800_v60 = vpop.xlane.xlu1 %7799 }
0x183a   : > { %13345 = vrcp.f32 %v7800_v60  ;;  %v7797_v30 = vpop.xlane.xlu0 %7796 }
0x183b   : > { %13347 = vrcp.f32 %v7797_v30 }
0x183d   : > { %v8718_v24 = vpop.permute.xlu1 %8717 }
0x183e   : > { %v7806_v25 = vpop.xlane.xlu0 %7805 }
0x183f   : > { %13349 = vrcp.f32 %v7806_v25 }
0x1841   : > { %v12916_v62 = vpop.permute.xlu1 %12915 }
0x1842   : > { %v7803_v50 = vpop.xlane.xlu0 %7802 }
0x1843   : > { %13351 = vrcp.f32 %v7803_v50 }
0x1844   : > { %v13346_v59 = vpop.eup %13345 }
0x1845   : > { %v13348_v28 = vpop.eup %13347  ;;  %v8811_v6 = vpop.permute.xlu1 %8810  ;;  %v7834_v54 = vmul.f32 %v13346_v59, %v16130_v11  ;;  %v12908_v11 = vunpack.i.h.bf16 %v16166_v13 }
0x1846   : > { %v12911_v42 = vpop.permute.xlu0 %12910  ;;  %v7832_v44 = vmul.f32 %v13348_v28, %v16132_v56 }
0x1847   : > { %v12913_v57 = vunpack.i.h.bf16 %v12911_v42  ;;  %v12912_v40 = vunpack.i.l.bf16 %v12911_v42  ;;  %v12546_v33 = vpack.c.bf16 %v12908_v11, %v12907_v26 }
0x1848   : > { %12072 = vmatprep.mubr.msk.f32.mxu1 %vm363_vm1, %v7832_v44 }
0x1849   : > { %v8900_v46 = vpop.permute.xlu1 %8899  ;;  %12073 = vmatmul.mubr.msk.f32.vlgmr.msra.gmra.mrb[104].mxu1 %vm363_vm1, %v7834_v54  ;;  %v13350_v43 = vpop.eup %13349  ;;  %v12552_v29 = vpack.c.bf16 %v12913_v57, %v12912_v40 }
0x184a   : > { %12533 = vmatpush3.bf16.xpose.msk.msra.mxu1 %vm14964_vm8, %v12528_v12  ;;  %12086 = vmatprep.mubr.msk.f32.mxu1 %vm3197_vm7, %v16156_v51  ;;  %v8720_v5 = vpop.permute.xlu0 %8719  ;;  %v7838_v3 = vmul.f32 %v13350_v43, %v16138_v15  ;;  %v12918_v15 = vunpack.i.h.bf16 %v12916_v62 }
0x184b   : > { %12542 = vmatprep.subr.msk.bf16.mxu1 %vm14964_vm8, %v12540_v17 }
0x184d   : > { %v13352_v56 = vpop.eup %13351  ;;  %v12926_v49 = vpop.permute.xlu1 %12925 }
0x184e   : > { %v8809_v58 = vpop.permute.xlu0 %8808  ;;  %v7836_v8 = vmul.f32 %v13352_v56, %v16142_v35  ;;  %v12917_v35 = vunpack.i.l.bf16 %v12916_v62  ;;  %v12927_v53 = vunpack.i.l.bf16 %v12926_v49 }
0x1850   : > { %12079 = vmatprep.mubr.msk.f32.mxu0 %vm363_vm1, %v7836_v8  ;;  %v12558_v9 = vpack.c.bf16 %v12918_v15, %v12917_v35 }
0x1851   : > { %12087 = vmatmul.mubr.msk.f32.vlgmr.msra.gmra.mrb[106].mxu1 %vm3197_vm7, %v16160_v19  ;;  %v8993_v51 = vpop.permute.xlu1 %8992  ;;  %12080 = vmatmul.mubr.msk.f32.vlgmr.msra.gmra.mrb[132].mxu0 %vm363_vm1, %v7838_v3 }
0x1852   : > { %12539 = vmatpush3.bf16.xpose.msk.msra.mxu0 %vm14964_vm8, %v12534_v41  ;;  %12545 = vmatpush3.bf16.xpose.msk.msra.mxu1 %vm14964_vm8, %v12540_v17  ;;  %v12921_v13 = vpop.permute.xlu0 %12920 }
0x1853   : > { %12100 = vmatprep.mubr.msk.f32.mxu1 %vm3197_vm7, %v8718_v24  ;;  %12093 = vmatprep.mubr.msk.f32.mxu0 %vm3197_vm7, %v16170_v1  ;;  %v12923_v19 = vunpack.i.h.bf16 %v12921_v13  ;;  %v12922_v18 = vunpack.i.l.bf16 %v12921_v13 }
0x1854   : > { %12548 = vmatprep.subr.msk.bf16.mxu0 %vm14964_vm8, %v12546_v33  ;;  %12554 = vmatprep.subr.msk.bf16.mxu1 %vm14964_vm8, %v12552_v29 }
0x1855   : > { %v9084_v32 = vpop.permute.xlu1 %9083  ;;  %v12564_v14 = vpack.c.bf16 %v12923_v19, %v12922_v18 }
0x1856   : > { %v8902_v55 = vpop.permute.xlu0 %8901 }
0x1859   : > { %12094 = vmatmul.mubr.msk.f32.vlgmr.msra.gmra.mrb[134].mxu0 %vm3197_vm7, %v16176_v31  ;;  %12101 = vmatmul.mubr.msk.f32.vlgmr.msra.gmra.mrb[108].mxu1 %vm3197_vm7, %v8720_v5  ;;  %v9175_v39 = vpop.permute.xlu1 %9174  ;;  %v12928_v31 = vunpack.i.h.bf16 %v12926_v49 }
0x185a   : > { %12551 = vmatpush3.bf16.xpose.msk.msra.mxu0 %vm14964_vm8, %v12546_v33  ;;  %12107 = vmatprep.mubr.msk.f32.mxu0 %vm3197_vm7, %v8809_v58  ;;  %v8991_v1 = vpop.permute.xlu0 %8990 }
0x185b   : > { %12557 = vmatpush3.bf16.xpose.msk.msra.mxu1 %vm14964_vm8, %v12552_v29  ;;  %12114 = vmatprep.mubr.msk.f32.mxu1 %vm3197_vm7, %v8900_v46  ;;  %v12570_v48 = vpack.c.bf16 %v12928_v31, %v12927_v53 }
0x185c   : > { %12560 = vmatprep.subr.msk.bf16.mxu0 %vm14964_vm8, %v12558_v9  ;;  %12566 = vmatprep.subr.msk.bf16.mxu1 %vm14964_vm8, %v12564_v14 }
0x185d   : > { %v12936_v34 = vpop.permute.xlu1 %12935 }
0x185e   : > { %v9082_v7 = vpop.permute.xlu0 %9081  ;;  %v12938_v22 = vunpack.i.h.bf16 %v12936_v34  ;;  %v12937_v45 = vunpack.i.l.bf16 %v12936_v34 }
0x1860   : > { %v12580_v10 = vpack.c.bf16 %v12938_v22, %v12937_v45  ;;  %v16737_v22 = vld [vmem:[#allocation28_spill] sm:$0xff] }
0x1861   : > { %12108 = vmatmul.mubr.msk.f32.vlgmr.msra.gmra.mrb[136].mxu0 %vm3197_vm7, %v8811_v6  ;;  %v12946_v41 = vpop.permute.xlu1 %12945  ;;  %vm9286_vm4 = vcmp.eq.f32.partialorder %v16737_v22, 0.0 }
0x1862   : > { %12115 = vmatmul.mubr.msk.f32.vlgmr.msra.gmra.mrb[110].mxu1 %vm3197_vm7, %v8902_v55  ;;  %12563 = vmatpush3.bf16.xpose.msk.msra.mxu0 %vm14964_vm8, %v12558_v9  ;;  %v9173_v37 = vpop.permute.xlu0 %9172  ;;  %v12948_v25 = vunpack.i.h.bf16 %v12946_v41  ;;  %v12947_v62 = vunpack.i.l.bf16 %v12946_v41 }
0x1863   : > { %12121 = vmatprep.mubr.msk.f32.mxu0 %vm3197_vm7, %v8991_v1  ;;  %12569 = vmatpush3.bf16.xpose.msk.msra.mxu1 %vm14964_vm8, %v12564_v14  ;;  %v16735_v14 = vld [vmem:[#allocation24_spill] sm:$0xff]  ;;  %v16736_v1 = vld [vmem:[#allocation23_spill] sm:$0xff] }
0x1864   : > { %12128 = vmatprep.mubr.msk.f32.mxu1 %vm3197_vm7, %v9082_v7  ;;  %12572 = vmatprep.subr.msk.bf16.mxu0 %vm14964_vm8, %v12570_v48  ;;  %v16300_v59 = vpack.c.bf16 %v12948_v25, %v12947_v62  ;;  %vm9281_vm2 = vcmp.eq.f32.partialorder %v16735_v14, 0.0  ;;  %vm9283_vm3 = vcmp.eq.f32.partialorder %v16736_v1, 0.0  ;;  %v16744_v1 = vld [vmem:[#allocation29_spill] sm:$0xff] }
0x1866   : > { %v12931_v47 = vpop.permute.xlu0 %12930 }
0x1867   : > { %v12933_v4 = vunpack.i.h.bf16 %v12931_v47  ;;  %v12932_v12 = vunpack.i.l.bf16 %v12931_v47  ;;  %v16738_v47 = vld [vmem:[#allocation26_spill] sm:$0xff] }
0x1868   : > { %vm9288_vm5 = vcmp.eq.f32.partialorder %v16738_v47, 0.0 }
0x1869   : > { %v12576_v23 = vpack.c.bf16 %v12933_v4, %v12932_v12  ;;  %12122 = vmatmul.mubr.msk.f32.vlgmr.msra.gmra.mrb[138].mxu0 %vm3197_vm7, %v8993_v51 }
0x186a   : > { %12129 = vmatmul.mubr.msk.f32.vlgmr.msra.gmra.mrb[112].mxu1 %vm3197_vm7, %v9084_v32  ;;  %12575 = vmatpush3.bf16.xpose.msk.msra.mxu0 %vm14964_vm8, %v12570_v48  ;;  %v12941_v60 = vpop.permute.xlu0 %12940  ;;  %vm9280_vm8 = vcmp.eq.f32.partialorder %v15601_v38, 0.0 }
0x186b   : > { %12135 = vmatprep.mubr.msk.f32.mxu0 %vm3197_vm7, %v9173_v37  ;;  %12581 = vmatprep.subr.bf16.mxu0 %v12580_v10  ;;  %v12943_v30 = vunpack.i.h.bf16 %v12941_v60  ;;  %v12942_v24 = vunpack.i.l.bf16 %v12941_v60  ;;  %v16740_v60 = vld [vmem:[#allocation25_spill] sm:$0xff] }
0x186c   : > { %12577 = vmatprep.subr.bf16.mxu1 %v12576_v23  ;;  %vm9287_vm9 = vcmp.eq.f32.partialorder %v16740_v60, 0.0 }
0x186d   : > { %v16297_v50 = vpack.c.bf16 %v12943_v30, %v12942_v24  ;;  %12579 = vmatpush3.bf16.msra.mxu1 %v12576_v23  ;;  %v16739_v23 = vld [vmem:[#allocation27_spill] sm:$0xff] }
0x186e   : > { %vm9285_vm6 = vcmp.eq.f32.partialorder %v16739_v23, 0.0 }
0x186f   : > { %12585 = vmatprep.subr.bf16.mxu1 %v16297_v50 }
0x1871   : > { %12136 = vmatmul.mubr.msk.f32.vlgmr.msra.gmra.mrb[140].mxu0 %vm3197_vm7, %v9175_v39 }
0x1872   : > { %12583 = vmatpush3.bf16.msra.mxu0 %v12580_v10 }
0x1873   : > { %12589 = vmatprep.subr.bf16.mxu0 %v16300_v59 }
0x18bd   : > { %v16304_v21 = vpop.f32.mrb[98].mxu1 }
0x18be   : > { %v16306_v28 = vpop.f32.mrb[99].mxu1 }
0x18dc   : > { %v16308_v0 = vpop.f32.mrb[126].mxu0 }
0x18dd   : > { %v16310_v20 = vpop.f32.mrb[127].mxu0 }
0x18e1   : > { %v16312_v6 = vpop.f32.mrb[100].mxu1 }
0x18e2   : > { %v16314_v42 = vpop.f32.mrb[101].mxu1 }
0x18e8   : > { %v16316_v44 = vpop.f32.mrb[128].mxu0 }
0x18e9   : > { %v16318_v54 = vpop.f32.mrb[102].mxu1  ;;  %v16320_v17 = vpop.f32.mrb[129].mxu0 }
0x18ea   : > { %v16322_v46 = vpop.f32.mrb[103].mxu1 }
0x18ec   : > { %v16324_v5 = vpop.f32.mrb[130].mxu0 }
0x18ed   : > { %v16326_v43 = vpop.f32.mrb[131].mxu0 }
0x191c   : > { %v16328_v56 = vpop.f32.mrb[104].mxu1 }
0x191d   : > { %v16330_v11 = vpop.f32.mrb[105].mxu1 }
0x1924   : > { %v12088_v49 = vpop.f32.mrb[106].mxu1  ;;  %v16332_v26 = vpop.f32.mrb[132].mxu0 }
0x1925   : > { %v9264_v57 = vmul.f32 0.5, %v12088_v49  ;;  %v8617_v40 = vpop.f32.mrb[107].mxu1  ;;  %v16334_v58 = vpop.f32.mrb[133].mxu0 }
0x1926   : > { %v9263_v8 = vmul.f32 0.5, %v8617_v40 }
0x1927   : > { %v16337_v3 = vsel %vm9280_vm8, -9e+15, %v9264_v57  ;;  %vm9291_vm8 = vcmp.eq.f32.partialorder %v16744_v1, 0.0 }
0x1928   : > { %v16340_v51 = vsel %vm9279_vm13, -9e+15, %v9263_v8  ;;  %v9314_v33 = vsel %vm363_vm1, %v16337_v3, -inf }
0x1929   : > { %9315 = vmax.xlane.f32.xlu1 %v9314_v33  ;;  %v9311_v29 = vsel %vm363_vm1, %v16340_v51, -inf }
0x192a   : > { %9312 = vmax.xlane.f32.xlu0 %v9311_v29 }
0x192c   : > { %v12095_v13 = vpop.f32.mrb[134].mxu0  ;;  %v12102_v15 = vpop.f32.mrb[108].mxu1 }
0x192d   : > { %v9266_v35 = vmul.f32 0.5, %v12095_v13  ;;  %v9268_v19 = vmul.f32 0.5, %v12102_v15  ;;  %v8708_v38 = vpop.f32.mrb[135].mxu0  ;;  %v8799_v18 = vpop.f32.mrb[109].mxu1  ;;  %v16741_v15 = vld [vmem:[#allocation31_spill] sm:$0xff] }
0x192e   : > { %v9265_v63 = vmul.f32 0.5, %v8708_v38  ;;  %v9267_v32 = vmul.f32 0.5, %v8799_v18  ;;  %vm9290_vm10 = vcmp.eq.f32.partialorder %v16741_v15, 0.0 }
0x192f   : > { %v16348_v55 = vsel %vm9282_vm14, -9e+15, %v9266_v35  ;;  %v16350_v9 = vsel %vm9284_vm15, -9e+15, %v9268_v19  ;;  %v16742_v19 = vld [vmem:[#allocation32_spill] sm:$0xff]  ;;  %vm10546_vm15 = vcmask 1043459  }
0x1930   : > { %v16354_v39 = vsel %vm9281_vm2, -9e+15, %v9265_v63  ;;  %v16356_v31 = vsel %vm9283_vm3, -9e+15, %v9267_v32  ;;  %v9320_v53 = vsel %vm363_vm1, %v16348_v55, -inf  ;;  %v9326_v52 = vsel %vm363_vm1, %v16350_v9, -inf }
0x1931   : > { %9321 = vmax.xlane.f32.xlu0 %v9320_v53  ;;  %9327 = vmax.xlane.f32.xlu1 %v9326_v52  ;;  %v9317_v7 = vsel %vm363_vm1, %v16354_v39, -inf  ;;  %v9323_v25 = vsel %vm363_vm1, %v16356_v31, -inf  ;;  %vm9292_vm11 = vcmp.eq.f32.partialorder %v16742_v19, 0.0  ;;  %v16743_v32 = vld [vmem:[#allocation30_spill] sm:$0xff]  ;;  %vm10548_vm2 = vcmask 1044484  }
0x1932   : > { %vm9289_vm12 = vcmp.eq.f32.partialorder %v16743_v32, 0.0  ;;  %vm10550_vm3 = vcmask 1045509  }
0x1934   : > { %v12109_v16 = vpop.f32.mrb[136].mxu0 }
0x1935   : > { %v9270_v48 = vmul.f32 0.5, %v12109_v16  ;;  %v12116_v34 = vpop.f32.mrb[110].mxu1  ;;  %9318 = vmax.xlane.f32.xlu0 %v9317_v7  ;;  %v8890_v37 = vpop.f32.mrb[137].mxu0 }
0x1936   : > { %v9272_v45 = vmul.f32 0.5, %v12116_v34  ;;  %v9269_v4 = vmul.f32 0.5, %v8890_v37  ;;  %v8981_v12 = vpop.f32.mrb[111].mxu1 }
0x1937   : > { %v16366_v10 = vsel %vm9286_vm4, -9e+15, %v9270_v48  ;;  %v9271_v41 = vmul.f32 0.5, %v8981_v12  ;;  %vm10552_vm4 = vcmask 1046534  }
0x1938   : > { %v16370_v30 = vsel %vm9288_vm5, -9e+15, %v9272_v45  ;;  %v16372_v24 = vsel %vm9285_vm6, -9e+15, %v9269_v4  ;;  %v9332_v62 = vsel %vm363_vm1, %v16366_v10, -inf  ;;  %v16745_v4 = vld [vmem:[#allocation34_spill] sm:$0xff] }
0x1939   : > { %v16378_v49 = vsel %vm9287_vm9, -9e+15, %v9271_v41  ;;  %9324 = vmax.xlane.f32.xlu0 %v9323_v25  ;;  %9333 = vmax.xlane.f32.xlu1 %v9332_v62  ;;  %v9329_v40 = vsel %vm363_vm1, %v16372_v24, -inf  ;;  %v9338_v8 = vsel %vm363_vm1, %v16370_v30, -inf  ;;  %vm9294_vm13 = vcmp.eq.f32.partialorder %v16745_v4, 0.0  ;;  %v16746_v41 = vld [vmem:[#allocation33_spill] sm:$0xff] }
0x193a   : > { %v9335_v7 = vsel %vm363_vm1, %v16378_v49, -inf  ;;  %vm9293_vm14 = vcmp.eq.f32.partialorder %v16746_v41, 0.0  ;;  %vm10554_vm5 = vcmask 1047559  }
0x193c   : > { %v12123_v57 = vpop.f32.mrb[138].mxu0 }
0x193d   : > { %v9274_v33 = vmul.f32 0.5, %v12123_v57  ;;  %v12130_v29 = vpop.f32.mrb[112].mxu1  ;;  %9330 = vmax.xlane.f32.xlu0 %v9329_v40  ;;  %v9072_v13 = vpop.f32.mrb[139].mxu0  ;;  %9339 = vmax.xlane.f32.xlu1 %v9338_v8 }
0x193e   : > { %v9276_v35 = vmul.f32 0.5, %v12130_v29  ;;  %v9273_v38 = vmul.f32 0.5, %v9072_v13  ;;  %v9163_v18 = vpop.f32.mrb[113].mxu1 }
0x193f   : > { %v16386_v63 = vsel %vm9290_vm10, -9e+15, %v9274_v33  ;;  %v9275_v14 = vmul.f32 0.5, %v9163_v18 }
0x1940   : > { %v16390_v53 = vsel %vm9292_vm11, -9e+15, %v9276_v35  ;;  %v16392_v52 = vsel %vm9289_vm12, -9e+15, %v9273_v38  ;;  %v9344_v16 = vsel %vm363_vm1, %v16386_v63, -inf }
0x1941   : > { %v16398_v48 = vsel %vm9291_vm8, -9e+15, %v9275_v14  ;;  %9345 = vmax.xlane.f32.xlu1 %v9344_v16  ;;  %9336 = vmax.xlane.f32.xlu0 %v9335_v7  ;;  %v9341_v37 = vsel %vm363_vm1, %v16392_v52, -inf  ;;  %v9350_v22 = vsel %vm363_vm1, %v16390_v53, -inf }
0x1942   : > { %v9347_v62 = vsel %vm363_vm1, %v16398_v48, -inf }
0x1944   : > { %v12137_v34 = vpop.f32.mrb[140].mxu0 }
0x1945   : > { %v9278_v45 = vmul.f32 0.5, %v12137_v34  ;;  %v9254_v47 = vpop.f32.mrb[141].mxu0  ;;  %9342 = vmax.xlane.f32.xlu0 %v9341_v37  ;;  %9351 = vmax.xlane.f32.xlu1 %v9350_v22 }
0x1946   : > { %v9277_v12 = vmul.f32 0.5, %v9254_v47 }
0x1947   : > { %v16405_v23 = vsel %vm9294_vm13, -9e+15, %v9278_v45 }
0x1948   : > { %v16408_v60 = vsel %vm9293_vm14, -9e+15, %v9277_v12  ;;  %v9356_v25 = vsel %vm363_vm1, %v16405_v23, -inf }
0x1949   : > { %9357 = vmax.xlane.f32.xlu1 %v9356_v25  ;;  %9348 = vmax.xlane.f32.xlu0 %v9347_v62  ;;  %v9353_v57 = vsel %vm363_vm1, %v16408_v60, -inf }
0x194d   : > { %9354 = vmax.xlane.f32.xlu0 %v9353_v57 }
0x195a   : > { %12955 = vrot.lane.b32.xlu1 %v15850_v27, %s13500_s14 }
0x1963   : > { %12950 = vrot.lane.b32.xlu0 %v15840_v36, %s13500_s14 }
0x19b6   : > { %v9316_v40 = vpop.xlane.xlu1 %9315 }
0x19b7   : > { %v9360_v8 = vsub.f32 %v16337_v3, %v9316_v40  ;;  %v9313_v33 = vpop.xlane.xlu0 %9312 }
0x19b8   : > { %v9359_v29 = vsub.f32 %v16340_v51, %v9313_v33 }
0x19b9   : > { %v9377_v13 = vmul.f32 1.442695, %v9360_v8 }
0x19ba   : > { %v9375_v15 = vmul.f32 1.442695, %v9359_v29 }
0x19bb   : > { %13353 = vpow2.f32 %v9377_v13 }
0x19bc   : > { %13355 = vpow2.f32 %v9375_v15 }
0x19be   : > { %v9328_v35 = vpop.xlane.xlu1 %9327  ;;  %v9322_v19 = vpop.xlane.xlu0 %9321 }
0x19bf   : > { %v9364_v38 = vsub.f32 %v16350_v9, %v9328_v35  ;;  %v9362_v18 = vsub.f32 %v16348_v55, %v9322_v19 }
0x19c1   : > { %v9381_v27 = vmul.f32 1.442695, %v9362_v18  ;;  %v9385_v32 = vmul.f32 1.442695, %v9364_v38 }
0x19c2   : > { %v9319_v14 = vpop.xlane.xlu0 %9318 }
0x19c3   : > { %v9361_v36 = vsub.f32 %v16354_v39, %v9319_v14  ;;  %13357 = vpow2.f32 %v9381_v27 }
0x19c4   : > { %13359 = vpow2.f32 %v9385_v32 }
0x19c5   : > { %v16425_v3 = vpop.eup %13353  ;;  %v9379_v1 = vmul.f32 1.442695, %v9361_v36 }
0x19c6   : > { %v16427_v51 = vpop.eup %13355  ;;  %v9334_v16 = vpop.xlane.xlu1 %9333  ;;  %v9410_v34 = vsel %vm363_vm1, %v16425_v3, 0.0 }
0x19c7   : > { %v9325_v7 = vpop.xlane.xlu0 %9324  ;;  %13361 = vpow2.f32 %v9379_v1  ;;  %v9366_v55 = vsub.f32 %v16366_v10, %v9334_v16  ;;  %9411 = vadd.xlane.f32.xlu1 %v9410_v34  ;;  %v9407_v39 = vsel %vm363_vm1, %v16427_v51, 0.0 }
0x19c8   : > { %v9363_v9 = vsub.f32 %v16356_v31, %v9325_v7  ;;  %9408 = vadd.xlane.f32.xlu0 %v9407_v39 }
0x19c9   : > { %v9389_v37 = vmul.f32 1.442695, %v9366_v55 }
0x19ca   : > { %v9383_v22 = vmul.f32 1.442695, %v9363_v9  ;;  %v9340_v47 = vpop.xlane.xlu1 %9339 }
0x19cb   : > { %v9331_v45 = vpop.xlane.xlu0 %9330  ;;  %13363 = vpow2.f32 %v9389_v37  ;;  %v9368_v12 = vsub.f32 %v16370_v30, %v9340_v47 }
0x19cc   : > { %v9365_v4 = vsub.f32 %v16372_v24, %v9331_v45  ;;  %13365 = vpow2.f32 %v9383_v22 }
0x19cd   : > { %v9393_v25 = vmul.f32 1.442695, %v9368_v12  ;;  %v16437_v10 = vpop.eup %13357 }
0x19ce   : > { %v9387_v41 = vmul.f32 1.442695, %v9365_v4  ;;  %v9346_v31 = vpop.xlane.xlu1 %9345  ;;  %v9416_v8 = vsel %vm363_vm1, %v16437_v10, 0.0  ;;  %v16443_v33 = vpop.eup %13359 }
0x19cf   : > { %v9337_v62 = vpop.xlane.xlu0 %9336  ;;  %v9370_v57 = vsub.f32 %v16386_v63, %v9346_v31  ;;  %9417 = vadd.xlane.f32.xlu1 %v9416_v8  ;;  %v9422_v19 = vsel %vm363_vm1, %v16443_v33, 0.0 }
0x19d0   : > { %13367 = vpow2.f32 %v9387_v41  ;;  %v9367_v40 = vsub.f32 %v16378_v49, %v9337_v62 }
0x19d1   : > { %13369 = vpow2.f32 %v9393_v25  ;;  %v16445_v30 = vpop.eup %13361  ;;  %v9397_v24 = vmul.f32 1.442695, %v9370_v57 }
0x19d2   : > { %v9391_v29 = vmul.f32 1.442695, %v9367_v40  ;;  %v9352_v15 = vpop.xlane.xlu1 %9351  ;;  %v9413_v35 = vsel %vm363_vm1, %v16445_v30, 0.0 }
0x19d3   : > { %v9343_v13 = vpop.xlane.xlu0 %9342  ;;  %13371 = vpow2.f32 %v9397_v24  ;;  %v9372_v49 = vsub.f32 %v16390_v53, %v9352_v15  ;;  %9414 = vadd.xlane.f32.xlu0 %v9413_v35  ;;  %9423 = vadd.xlane.f32.xlu1 %v9422_v19 }
0x19d4   : > { %v9369_v63 = vsub.f32 %v16392_v52, %v9343_v13  ;;  %13373 = vpow2.f32 %v9391_v29 }
0x19d5   : > { %v16453_v38 = vpop.eup %13363  ;;  %v9401_v27 = vmul.f32 1.442695, %v9372_v49 }
0x19d6   : > { %v9395_v18 = vmul.f32 1.442695, %v9369_v63  ;;  %v16455_v32 = vpop.eup %13365  ;;  %v9358_v14 = vpop.xlane.xlu1 %9357  ;;  %v9428_v1 = vsel %vm363_vm1, %v16453_v38, 0.0 }
0x19d7   : > { %v9349_v36 = vpop.xlane.xlu0 %9348  ;;  %v9374_v53 = vsub.f32 %v16405_v23, %v9358_v14  ;;  %v9419_v16 = vsel %vm363_vm1, %v16455_v32, 0.0  ;;  %9429 = vadd.xlane.f32.xlu1 %v9428_v1 }
0x19d8   : > { %13375 = vpow2.f32 %v9395_v18  ;;  %v9371_v52 = vsub.f32 %v16398_v48, %v9349_v36  ;;  %9420 = vadd.xlane.f32.xlu0 %v9419_v16 }
0x19d9   : > { %13377 = vpow2.f32 %v9401_v27  ;;  %v9405_v9 = vmul.f32 1.442695, %v9374_v53 }
0x19da   : > { %v16463_v7 = vpop.eup %13367  ;;  %v9399_v34 = vmul.f32 1.442695, %v9371_v52  ;;  %v12956_v13 = vpop.permute.xlu1 %12955 }
0x19db   : > { %v16465_v55 = vpop.eup %13369  ;;  %v9355_v39 = vpop.xlane.xlu0 %9354  ;;  %v9425_v37 = vsel %vm363_vm1, %v16463_v7, 0.0 }
0x19dc   : > { %v9373_v23 = vsub.f32 %v16408_v60, %v9355_v39  ;;  %13379 = vpow2.f32 %v9399_v34  ;;  %v9434_v48 = vsel %vm363_vm1, %v16465_v55, 0.0  ;;  %9426 = vadd.xlane.f32.xlu0 %v9425_v37  ;;  %v12958_v37 = vunpack.i.h.bf16 %v12956_v13 }
0x19dd   : > { %v16472_v22 = vpop.eup %13371  ;;  %9435 = vadd.xlane.f32.xlu1 %v9434_v48  ;;  %13381 = vpow2.f32 %v9405_v9 }
0x19de   : > { %v9403_v45 = vmul.f32 1.442695, %v9373_v23  ;;  %v16474_v47 = vpop.eup %13373  ;;  %v9440_v4 = vsel %vm363_vm1, %v16472_v22, 0.0 }
0x19df   : > { %v9431_v12 = vsel %vm363_vm1, %v16474_v47, 0.0  ;;  %v12951_v15 = vpop.permute.xlu0 %12950 }
0x19e0   : > { %13383 = vpow2.f32 %v9403_v45  ;;  %9432 = vadd.xlane.f32.xlu0 %v9431_v12  ;;  %v12953_v27 = vunpack.i.h.bf16 %v12951_v15  ;;  %v12952_v14 = vunpack.i.l.bf16 %v12951_v15 }
0x19e1   : > { %9441 = vadd.xlane.f32.xlu1 %v9440_v4 }
0x19e2   : > { %v16480_v60 = vpop.eup %13375 }
0x19e3   : > { %v16482_v41 = vpop.eup %13377  ;;  %v9437_v25 = vsel %vm363_vm1, %v16480_v60, 0.0 }
0x19e4   : > { %v9446_v31 = vsel %vm363_vm1, %v16482_v41, 0.0  ;;  %9438 = vadd.xlane.f32.xlu0 %v9437_v25 }
0x19e5   : > { %9447 = vadd.xlane.f32.xlu1 %v9446_v31 }
0x19e6   : > { %v16488_v62 = vpop.eup %13379 }
0x19e7   : > { %v9443_v57 = vsel %vm363_vm1, %v16488_v62, 0.0  ;;  %v16492_v40 = vpop.eup %13381 }
0x19e8   : > { %v9452_v29 = vsel %vm363_vm1, %v16492_v40, 0.0 }
0x19e9   : > { %9444 = vadd.xlane.f32.xlu1 %v9443_v57 }
0x19ea   : > { %v16494_v8 = vpop.eup %13383 }
0x19eb   : > { %v9449_v24 = vsel %vm363_vm1, %v16494_v8, 0.0 }
0x19ec   : > { %9450 = vadd.xlane.f32.xlu0 %v9449_v24 }
0x19ed   : > { %9453 = vadd.xlane.f32.xlu1 %v9452_v29 }
0x19fe   : > { %12965 = vrot.lane.b32.xlu1 %v15870_v61, %s13500_s14 }
0x1a02   : > { %12960 = vrot.lane.b32.xlu0 %v15860_v2, %s13500_s14  ;;  %v12592_v2 = vpack.c.bf16 %v12953_v27, %v12952_v14 }
0x1a54   : > { %v9412_v35 = vpop.xlane.xlu1 %9411 }
0x1a55   : > { %13385 = vrcp.f32 %v9412_v35  ;;  %v9409_v63 = vpop.xlane.xlu0 %9408 }
0x1a56   : > { %13387 = vrcp.f32 %v9409_v63 }
0x1a5c   : > { %v9418_v49 = vpop.xlane.xlu1 %9417 }
0x1a5d   : > { %13389 = vrcp.f32 %v9418_v49 }
0x1a5f   : > { %v13386_v19 = vpop.eup %13385 }
0x1a60   : > { %v13388_v18 = vpop.eup %13387  ;;  %v9415_v36 = vpop.xlane.xlu0 %9414  ;;  %v9458_v53 = vmul.f32 %v13386_v19, %v16425_v3  ;;  %v12957_v3 = vunpack.i.l.bf16 %v12956_v13 }
0x1a61   : > { %v9424_v1 = vpop.xlane.xlu1 %9423  ;;  %13391 = vrcp.f32 %v9415_v36  ;;  %v9456_v61 = vmul.f32 %v13388_v18, %v16427_v51 }
0x1a62   : > { %13393 = vrcp.f32 %v9424_v1 }
0x1a63   : > { %12142 = vmatprep.mubr.msk.f32.mxu1 %vm363_vm1, %v9456_v61 }
0x1a64   : > { %12143 = vmatmul.mubr.msk.f32.vlgmr.msra.gmra.mrb[114].mxu1 %vm363_vm1, %v9458_v53 }
0x1a65   : > { %v9430_v52 = vpop.xlane.xlu1 %9429  ;;  %12587 = vmatpush3.bf16.msra.mxu1 %v16297_v50  ;;  %v9421_v16 = vpop.xlane.xlu0 %9420  ;;  %v12596_v50 = vpack.c.bf16 %v12958_v37, %v12957_v3  ;;  %v10263_v37 = vld [vmem:[#allocation2 + $0x178] sm:$0xff] }
0x1a66   : > { %12593 = vmatprep.subr.bf16.mxu1 %v12592_v2  ;;  %13395 = vrcp.f32 %v9421_v16 }
0x1a67   : > { %13397 = vrcp.f32 %v9430_v52  ;;  %v13390_v9 = vpop.eup %13389 }
0x1a68   : > { %v9462_v48 = vmul.f32 %v13390_v9, %v16437_v10 }
0x1a69   : > { %v9427_v34 = vpop.xlane.xlu0 %9426 }
0x1a6a   : > { %v9436_v39 = vpop.xlane.xlu1 %9435  ;;  %13399 = vrcp.f32 %v9427_v34 }
0x1a6b   : > { %v13392_v51 = vpop.eup %13391  ;;  %13401 = vrcp.f32 %v9436_v39 }
0x1a6c   : > { %v9460_v23 = vmul.f32 %v13392_v51, %v16445_v30  ;;  %v13394_v12 = vpop.eup %13393 }
0x1a6d   : > { %v9433_v45 = vpop.xlane.xlu0 %9432  ;;  %v9466_v24 = vmul.f32 %v13394_v12, %v16443_v33 }
0x1a6e   : > { %v9442_v4 = vpop.xlane.xlu1 %9441  ;;  %13403 = vrcp.f32 %v9433_v45  ;;  %12149 = vmatprep.mubr.msk.f32.mxu0 %vm363_vm1, %v9460_v23 }
0x1a6f   : > { %12150 = vmatmul.mubr.msk.f32.vlgmr.msra.gmra.mrb[142].mxu0 %vm363_vm1, %v9462_v48  ;;  %13405 = vrcp.f32 %v9442_v4 }
0x1a70   : > { %12591 = vmatpush3.bf16.msra.mxu0 %v16300_v59  ;;  %v13396_v25 = vpop.eup %13395 }
0x1a71   : > { %12597 = vmatprep.subr.bf16.mxu0 %v12596_v50  ;;  %v9439_v31 = vpop.xlane.xlu0 %9438  ;;  %v9464_v10 = vmul.f32 %v13396_v25, %v16455_v32  ;;  %v13398_v30 = vpop.eup %13397 }
0x1a72   : > { %v9448_v57 = vpop.xlane.xlu1 %9447  ;;  %13407 = vrcp.f32 %v9439_v31  ;;  %v9470_v59 = vmul.f32 %v13398_v30, %v16453_v38 }
0x1a73   : > { %12156 = vmatprep.mubr.msk.f32.mxu1 %vm363_vm1, %v9464_v10  ;;  %13409 = vrcp.f32 %v9448_v57 }
0x1a74   : > { %v13400_v29 = vpop.eup %13399  ;;  %12157 = vmatmul.mubr.msk.f32.vlgmr.msra.gmra.mrb[116].mxu1 %vm363_vm1, %v9466_v24 }
0x1a75   : > { %v9468_v13 = vmul.f32 %v13400_v29, %v16463_v7  ;;  %12595 = vmatpush3.bf16.msra.mxu1 %v12592_v2  ;;  %v13402_v35 = vpop.eup %13401 }
0x1a76   : > { %v9445_v15 = vpop.xlane.xlu1 %9444  ;;  %v9474_v49 = vmul.f32 %v13402_v35, %v16465_v55 }
0x1a77   : > { %13411 = vrcp.f32 %v9445_v15  ;;  %12163 = vmatprep.mubr.msk.f32.mxu0 %vm363_vm1, %v9468_v13 }
0x1a78   : > { %v13404_v32 = vpop.eup %13403  ;;  %12164 = vmatmul.mubr.msk.f32.vlgmr.msra.gmra.mrb[144].mxu0 %vm363_vm1, %v9470_v59 }
0x1a79   : > { %v9451_v33 = vpop.xlane.xlu0 %9450  ;;  %12599 = vmatpush3.bf16.msra.mxu0 %v12596_v50  ;;  %v9472_v63 = vmul.f32 %v13404_v32, %v16474_v47  ;;  %v13406_v19 = vpop.eup %13405 }
0x1a7a   : > { %13413 = vrcp.f32 %v9451_v33  ;;  %v9454_v7 = vpop.xlane.xlu1 %9453  ;;  %v9478_v1 = vmul.f32 %v13406_v19, %v16472_v22 }
0x1a7b   : > { %13415 = vrcp.f32 %v9454_v7  ;;  %12170 = vmatprep.mubr.msk.f32.mxu1 %vm363_vm1, %v9472_v63 }
0x1a7c   : > { %v13408_v38 = vpop.eup %13407  ;;  %12171 = vmatmul.mubr.msk.f32.vlgmr.msra.gmra.mrb[118].mxu1 %vm363_vm1, %v9474_v49 }
0x1a7d   : > { %v12961_v18 = vpop.permute.xlu0 %12960  ;;  %v9476_v36 = vmul.f32 %v13408_v38, %v16480_v60  ;;  %v13410_v55 = vpop.eup %13409 }
0x1a7e   : > { %v12963_v27 = vunpack.i.h.bf16 %v12961_v18  ;;  %v12962_v14 = vunpack.i.l.bf16 %v12961_v18  ;;  %v12966_v61 = vpop.permute.xlu1 %12965  ;;  %v9482_v60 = vmul.f32 %v13410_v55, %v16482_v41 }
0x1a7f   : > { %v12968_v53 = vunpack.i.h.bf16 %v12966_v61  ;;  %v12967_v47 = vunpack.i.l.bf16 %v12966_v61  ;;  %12177 = vmatprep.mubr.msk.f32.mxu0 %vm363_vm1, %v9476_v36 }
0x1a80   : > { %v12600_v2 = vpack.c.bf16 %v12963_v27, %v12962_v14  ;;  %12178 = vmatmul.mubr.msk.f32.vlgmr.msra.gmra.mrb[146].mxu0 %vm363_vm1, %v9478_v1 }
0x1a81   : > { %v13412_v52 = vpop.eup %13411  ;;  %v12604_v16 = vpack.c.bf16 %v12968_v53, %v12967_v47 }
0x1a82   : > { %12601 = vmatprep.subr.bf16.mxu1 %v12600_v2  ;;  %v9480_v34 = vmul.f32 %v13412_v52, %v16488_v62 }
0x1a83   : > { %12603 = vmatpush3.bf16.msra.mxu1 %v12600_v2  ;;  %12605 = vmatprep.subr.bf16.mxu0 %v12604_v16 }
0x1a84   : > { %v13414_v9 = vpop.eup %13413  ;;  %12184 = vmatprep.mubr.msk.f32.mxu1 %vm363_vm1, %v9480_v34  ;;  %12607 = vmatpush3.bf16.msra.mxu0 %v12604_v16 }
0x1a85   : > { %v9484_v22 = vmul.f32 %v13414_v9, %v16494_v8  ;;  %v13416_v39 = vpop.eup %13415  ;;  %12194 = vmatprep.subr.mxu1 %v10263_v37 }
0x1a86   : > { %12185 = vmatmul.mubr.msk.f32.vlgmr.msra.gmra.mrb[120].mxu1 %vm363_vm1, %v9482_v60  ;;  %v9486_v51 = vmul.f32 %v13416_v39, %v16492_v40 }
0x1a87   : > { %12191 = vmatprep.mubr.msk.f32.mxu0 %vm363_vm1, %v9484_v22  ;;  %12195 = vmatpush3.msra.mxu1 %v10263_v37 }
0x1a88   : > { %12192 = vmatmul.mubr.msk.f32.vlgmr.msra.gmra.mrb[148].mxu0 %vm363_vm1, %v9486_v51  ;;  %vm10542_vm1 = vcmask 1041409  }
0x1b37   : > { %v12144_v62 = vpop.f32.mrb[114].mxu1 }
0x1b38   : > { %10201 = vrot.lane.b32.xlu1 %v12144_v62, %s13501_s15  ;;  %v9565_v41 = vpop.f32.mrb[115].mxu1 }
0x1b39   : > { %10199 = vrot.lane.b32.xlu0 %v9565_v41, %s13501_s15 }
0x1b42   : > { %v12151_v3 = vpop.f32.mrb[142].mxu0 }
0x1b43   : > { %10205 = vrot.lane.b32.xlu1 %v12151_v3, %s13501_s15  ;;  %v9652_v8 = vpop.f32.mrb[143].mxu0 }
0x1b44   : > { %10203 = vrot.lane.b32.xlu0 %v9652_v8, %s13501_s15 }
0x1b47   : > { %v12158_v40 = vpop.f32.mrb[116].mxu1 }
0x1b48   : > { %10209 = vrot.lane.b32.xlu1 %v12158_v40, %s13501_s15  ;;  %v9739_v23 = vpop.f32.mrb[117].mxu1 }
0x1b49   : > { %10207 = vrot.lane.b32.xlu0 %v9739_v23, %s13501_s15 }
0x1b4b   : > { %v12165_v48 = vpop.f32.mrb[144].mxu0 }
0x1b4c   : > { %v9826_v45 = vpop.f32.mrb[145].mxu0  ;;  %10213 = vrot.lane.b32.xlu1 %v12165_v48, %s13501_s15 }
0x1b4d   : > { %10211 = vrot.lane.b32.xlu0 %v9826_v45, %s13501_s15 }
0x1b4f   : > { %v12172_v4 = vpop.f32.mrb[118].mxu1 }
0x1b50   : > { %v9913_v50 = vpop.f32.mrb[119].mxu1  ;;  %10217 = vrot.lane.b32.xlu1 %v12172_v4, %s13501_s15 }
0x1b51   : > { %10215 = vrot.lane.b32.xlu0 %v9913_v50, %s13501_s15 }
0x1b53   : > { %v12179_v12 = vpop.f32.mrb[146].mxu0 }
0x1b54   : > { %v10000_v25 = vpop.f32.mrb[147].mxu0  ;;  %10221 = vrot.lane.b32.xlu1 %v12179_v12, %s13501_s15 }
0x1b55   : > { %10219 = vrot.lane.b32.xlu0 %v10000_v25, %s13501_s15 }
0x1b59   : > { %v12186_v31 = vpop.f32.mrb[120].mxu1 }
0x1b5a   : > { %10225 = vrot.lane.b32.xlu1 %v12186_v31, %s13501_s15  ;;  %v10087_v57 = vpop.f32.mrb[121].mxu1 }
0x1b5b   : > { %10223 = vrot.lane.b32.xlu0 %v10087_v57, %s13501_s15  ;;  %v12193_v10 = vpop.f32.mrb[148].mxu0 }
0x1b5c   : > { %v10174_v30 = vpop.f32.mrb[149].mxu0 }
0x1b5e   : > { %10229 = vrot.lane.b32.xlu1 %v12193_v10, %s13501_s15 }
0x1b5f   : > { %10227 = vrot.lane.b32.xlu0 %v10174_v30, %s13501_s15 }
0x1baa   : > { %v10202_v24 = vpop.permute.xlu1 %10201 }
0x1bab   : > { %v10200_v29 = vpop.permute.xlu0 %10199  ;;  %v10248_v59 = vsel %vm3197_vm7, %v16304_v21, %v10202_v24 }
0x1bac   : > { %v10247_v13 = vsel %vm3197_vm7, %v16306_v28, %v10200_v29 }
0x1bad   : > { %12196 = vmatprep.mubr.msk.f32.mxu1 %vm178_vm0, %v10247_v13 }
0x1bae   : > { %12197 = vmatmul.mubr.msk.f32.vlgmr.msra.gmra.mrb[122].mxu1 %vm178_vm0, %v10248_v59 }
0x1bb5   : > { %v10206_v15 = vpop.permute.xlu1 %10205 }
0x1bb6   : > { %v10204_v35 = vpop.permute.xlu0 %10203  ;;  %v10250_v33 = vsel %vm3197_vm7, %v16308_v0, %v10206_v15 }
0x1bb7   : > { %v10249_v32 = vsel %vm3197_vm7, %v16310_v20, %v10204_v35 }
0x1bb8   : > { %12199 = vmatprep.mubr.msk.f32.mxu1 %vm178_vm0, %v10249_v32 }
0x1bb9   : > { %12200 = vmatmul.mubr.msk.f32.gmra.mrb[124].mxu1 %vm178_vm0, %v10250_v33 }
0x1bba   : > { %v10210_v28 = vpop.permute.xlu1 %10209 }
0x1bbb   : > { %v10208_v63 = vpop.permute.xlu0 %10207  ;;  %v10252_v49 = vsel %vm3197_vm7, %v16312_v6, %v10210_v28 }
0x1bbc   : > { %v10251_v21 = vsel %vm3197_vm7, %v16314_v42, %v10208_v63 }
0x1bbd   : > { %12202 = vmatprep.mubr.msk.f32.mxu1 %vm178_vm0, %v10251_v21 }
0x1bbe   : > { %v10214_v7 = vpop.permute.xlu1 %10213  ;;  %12203 = vmatmul.mubr.msk.f32.gmra.mrb[126].mxu1 %vm178_vm0, %v10252_v49 }
0x1bbf   : > { %v10212_v20 = vpop.permute.xlu0 %10211  ;;  %v10254_v19 = vsel %vm3197_vm7, %v16316_v44, %v10214_v7 }
0x1bc0   : > { %v10253_v0 = vsel %vm3197_vm7, %v16320_v17, %v10212_v20 }
0x1bc1   : > { %12205 = vmatprep.mubr.msk.f32.mxu1 %vm178_vm0, %v10253_v0 }
0x1bc2   : > { %12206 = vmatmul.mubr.msk.f32.gmra.mrb[128].mxu1 %vm178_vm0, %v10254_v19  ;;  %v10218_v42 = vpop.permute.xlu1 %10217 }
0x1bc3   : > { %v10216_v38 = vpop.permute.xlu0 %10215  ;;  %v10256_v18 = vsel %vm3197_vm7, %v16318_v54, %v10218_v42 }
0x1bc4   : > { %v10255_v6 = vsel %vm3197_vm7, %v16322_v46, %v10216_v38 }
0x1bc5   : > { %12208 = vmatprep.mubr.msk.f32.mxu1 %vm178_vm0, %v10255_v6 }
0x1bc6   : > { %v10222_v27 = vpop.permute.xlu1 %10221  ;;  %12209 = vmatmul.mubr.msk.f32.gmra.mrb[130].mxu1 %vm178_vm0, %v10256_v18 }
0x1bc7   : > { %v10220_v17 = vpop.permute.xlu0 %10219  ;;  %v10258_v14 = vsel %vm3197_vm7, %v16324_v5, %v10222_v27 }
0x1bc8   : > { %v10257_v44 = vsel %vm3197_vm7, %v16326_v43, %v10220_v17 }
0x1bc9   : > { %12211 = vmatprep.mubr.msk.f32.mxu1 %vm178_vm0, %v10257_v44 }
0x1bca   : > { %12212 = vmatmul.mubr.msk.f32.gmra.mrb[132].mxu1 %vm178_vm0, %v10258_v14 }
0x1bcc   : > { %v10226_v46 = vpop.permute.xlu1 %10225 }
0x1bcd   : > { %v10224_v36 = vpop.permute.xlu0 %10223  ;;  %v10260_v1 = vsel %vm3197_vm7, %v16328_v56, %v10226_v46 }
0x1bce   : > { %v10259_v54 = vsel %vm3197_vm7, %v16330_v11, %v10224_v36  ;;  %v16602_v11 = vld [vmem:[#allocation2 + $0x180] ss:$0 sm:$0xff] }
0x1bcf   : > { %12214 = vmatprep.mubr.msk.f32.mxu1 %vm178_vm0, %v10259_v54 }
0x1bd0   : > { %v10230_v61 = vpop.permute.xlu1 %10229  ;;  %12215 = vmatmul.mubr.msk.f32.gmra.mrb[134].mxu1 %vm178_vm0, %v10260_v1 }
0x1bd1   : > { %v10228_v43 = vpop.permute.xlu0 %10227  ;;  %v10262_v53 = vsel %vm3197_vm7, %v16332_v26, %v10230_v61 }
0x1bd2   : > { %v10261_v5 = vsel %vm3197_vm7, %v16334_v58, %v10228_v43  ;;  %vm10544_vm7 = vcmask 1042434  }
0x1bd3   : > { %12217 = vmatprep.mubr.msk.f32.mxu1 %vm178_vm0, %v10261_v5 }
0x1bd4   : > { %12218 = vmatmul.mubr.msk.f32.gmra.mrb[136].mxu1 %vm178_vm0, %v10262_v53 }
0x1c81   : > { %v12198_v47 = vpop.f32.mrb[122].mxu1 }
0x1c82   : > { %v10389_v56 = vadd.f32 %v12198_v47, %v16602_v11  ;;  %v10383_v2 = vpop.f32.mrb[123].mxu1 }
0x1c83   : > { %v10384_v55 = vadd.f32 %v16602_v11, %v10383_v2 }
0x1c84   : > { %v10463_v52 = vsel %vm178_vm0, %v10389_v56, 0.0 }
0x1c85   : > { %v10462_v16 = vsel %vm178_vm0, %v10384_v55, 0.0 }
0x1c86   : > { %v10464_v58 = vadd.f32 %v10463_v52, %v10462_v16 }
0x1c88   : > { %v10465_v34 = vrot.slane %v10464_v58, 4 }
0x1c8a   : > { %v10466_v9 = vadd.f32 %v10465_v34, %v10464_v58 }
0x1c8c   : > { %v12201_v26 = vpop.f32.mrb[124].mxu1  ;;  %v10467_v37 = vrot.slane %v10466_v9, 2 }
0x1c8d   : > { %v10399_v60 = vadd.f32 %v12201_v26, %v16602_v11  ;;  %v10393_v22 = vpop.f32.mrb[125].mxu1 }
0x1c8e   : > { %v10394_v39 = vadd.f32 %v16602_v11, %v10393_v22  ;;  %v10468_v48 = vadd.f32 %v10467_v37, %v10466_v9 }
0x1c8f   : > { %v10472_v51 = vsel %vm178_vm0, %v10399_v60, 0.0 }
0x1c90   : > { %v10471_v62 = vsel %vm178_vm0, %v10394_v39, 0.0  ;;  %v10469_v24 = vrot.slane %v10468_v48, 1 }
0x1c91   : > { %v10473_v41 = vadd.f32 %v10472_v51, %v10471_v62  ;;  %v12204_v3 = vpop.f32.mrb[126].mxu1 }
0x1c92   : > { %v10409_v40 = vadd.f32 %v12204_v3, %v16602_v11  ;;  %v10403_v23 = vpop.f32.mrb[127].mxu1  ;;  %v10470_v7 = vadd.f32 %v10469_v24, %v10468_v48 }
0x1c93   : > { %v10474_v8 = vrot.slane %v10473_v41, 4  ;;  %v10404_v45 = vadd.f32 %v16602_v11, %v10403_v23 }
0x1c94   : > { %v10481_v50 = vsel %vm178_vm0, %v10409_v40, 0.0 }
0x1c95   : > { %v10475_v4 = vadd.f32 %v10474_v8, %v10473_v41  ;;  %v10480_v12 = vsel %vm178_vm0, %v10404_v45, 0.0  ;;  %v12207_v25 = vpop.f32.mrb[128].mxu1 }
0x1c96   : > { %v10482_v57 = vadd.f32 %v10481_v50, %v10480_v12  ;;  %v10419_v10 = vadd.f32 %v12207_v25, %v16602_v11  ;;  %v10413_v30 = vpop.f32.mrb[129].mxu1 }
0x1c97   : > { %v10476_v31 = vrot.slane %v10475_v4, 2  ;;  %v10414_v29 = vadd.f32 %v16602_v11, %v10413_v30 }
0x1c98   : > { %v10483_v59 = vrot.slane %v10482_v57, 4  ;;  %v10490_v15 = vsel %vm178_vm0, %v10419_v10, 0.0 }
0x1c99   : > { %v10477_v13 = vadd.f32 %v10476_v31, %v10475_v4  ;;  %v10489_v35 = vsel %vm178_vm0, %v10414_v29, 0.0  ;;  %v12210_v32 = vpop.f32.mrb[130].mxu1 }
0x1c9a   : > { %v10484_v28 = vadd.f32 %v10483_v59, %v10482_v57  ;;  %v10491_v63 = vadd.f32 %v10490_v15, %v10489_v35  ;;  %v10429_v21 = vadd.f32 %v12210_v32, %v16602_v11  ;;  %v10423_v49 = vpop.f32.mrb[131].mxu1 }
0x1c9b   : > { %v10478_v33 = vrot.slane %v10477_v13, 1  ;;  %v10424_v20 = vadd.f32 %v16602_v11, %v10423_v49 }
0x1c9c   : > { %v10485_v19 = vrot.slane %v10484_v28, 2  ;;  %v10492_v42 = vrot.slane %v10491_v63, 4  ;;  %v10499_v38 = vsel %vm178_vm0, %v10429_v21, 0.0 }
0x1c9d   : > { %v10479_v0 = vadd.f32 %v10478_v33, %v10477_v13  ;;  %v10498_v6 = vsel %vm178_vm0, %v10424_v20, 0.0  ;;  %v12213_v18 = vpop.f32.mrb[132].mxu1 }
0x1c9e   : > { %v10486_v17 = vadd.f32 %v10485_v19, %v10484_v28  ;;  %v10493_v44 = vadd.f32 %v10492_v42, %v10491_v63  ;;  %v10500_v14 = vadd.f32 %v10499_v38, %v10498_v6  ;;  %v10433_v46 = vpop.f32.mrb[133].mxu1  ;;  %v10439_v36 = vadd.f32 %v12213_v18, %v16602_v11 }
0x1c9f   : > { %v10543_v27 = vsel %vm10542_vm1, %v10479_v0, %v10470_v7  ;;  %v10434_v54 = vadd.f32 %v16602_v11, %v10433_v46 }
0x1ca0   : > { %v10487_v1 = vrot.slane %v10486_v17, 1  ;;  %v10494_v61 = vrot.slane %v10493_v44, 2  ;;  %v10501_v43 = vrot.slane %v10500_v14, 4  ;;  %v10508_v5 = vsel %vm178_vm0, %v10439_v36, 0.0 }
0x1ca1   : > { %v10507_v53 = vsel %vm178_vm0, %v10434_v54, 0.0 }
0x1ca2   : > { %v10488_v56 = vadd.f32 %v10487_v1, %v10486_v17  ;;  %v10495_v2 = vadd.f32 %v10494_v61, %v10493_v44  ;;  %v10502_v55 = vadd.f32 %v10501_v43, %v10500_v14  ;;  %v10509_v52 = vadd.f32 %v10508_v5, %v10507_v53 }
0x1ca3   : > { %v12216_v47 = vpop.f32.mrb[134].mxu1 }
0x1ca4   : > { %v10443_v16 = vpop.f32.mrb[135].mxu1  ;;  %v10449_v58 = vadd.f32 %v12216_v47, %v16602_v11  ;;  %v10545_v9 = vsel %vm10544_vm7, %v10488_v56, %v10543_v27  ;;  %v10496_v26 = vrot.slane %v10495_v2, 1  ;;  %v10503_v60 = vrot.slane %v10502_v55, 2 }
0x1ca5   : > { %v10444_v34 = vadd.f32 %v16602_v11, %v10443_v16  ;;  %v10510_v22 = vrot.slane %v10509_v52, 4 }
0x1ca6   : > { %v10517_v39 = vsel %vm178_vm0, %v10449_v58, 0.0  ;;  %v10497_v62 = vadd.f32 %v10496_v26, %v10495_v2  ;;  %v10504_v41 = vadd.f32 %v10503_v60, %v10502_v55 }
0x1ca7   : > { %v10516_v51 = vsel %vm178_vm0, %v10444_v34, 0.0  ;;  %v12219_v37 = vpop.f32.mrb[136].mxu1  ;;  %v10511_v3 = vadd.f32 %v10510_v22, %v10509_v52 }
0x1ca8   : > { %v10518_v8 = vadd.f32 %v10517_v39, %v10516_v51  ;;  %v10453_v40 = vpop.f32.mrb[137].mxu1  ;;  %v10459_v23 = vadd.f32 %v12219_v37, %v16602_v11  ;;  %v10547_v45 = vsel %vm10546_vm15, %v10497_v62, %v10545_v9  ;;  %v10505_v4 = vrot.slane %v10504_v41, 1 }
0x1ca9   : > { %v10454_v48 = vadd.f32 %v16602_v11, %v10453_v40  ;;  %v10512_v50 = vrot.slane %v10511_v3, 2 }
0x1caa   : > { %v10519_v12 = vrot.slane %v10518_v8, 4  ;;  %v10526_v25 = vsel %vm178_vm0, %v10459_v23, 0.0  ;;  %v10506_v57 = vadd.f32 %v10505_v4, %v10504_v41 }
0x1cab   : > { %v10525_v31 = vsel %vm178_vm0, %v10454_v48, 0.0  ;;  %v10513_v10 = vadd.f32 %v10512_v50, %v10511_v3 }
0x1cac   : > { %v10520_v30 = vadd.f32 %v10519_v12, %v10518_v8  ;;  %v10527_v24 = vadd.f32 %v10526_v25, %v10525_v31  ;;  %v10549_v29 = vsel %vm10548_vm2, %v10506_v57, %v10547_v45 }
0x1cad   : > { %v10514_v13 = vrot.slane %v10513_v10, 1 }
0x1cae   : > { %v10521_v59 = vrot.slane %v10520_v30, 2  ;;  %v10528_v15 = vrot.slane %v10527_v24, 4 }
0x1caf   : > { %v10515_v11 = vadd.f32 %v10514_v13, %v10513_v10 }
0x1cb0   : > { %v10522_v35 = vadd.f32 %v10521_v59, %v10520_v30  ;;  %v10529_v32 = vadd.f32 %v10528_v15, %v10527_v24 }
0x1cb1   : > { %v10551_v33 = vsel %vm10550_vm3, %v10515_v11, %v10549_v29 }
0x1cb2   : > { %v10523_v28 = vrot.slane %v10522_v35, 1  ;;  %v10530_v63 = vrot.slane %v10529_v32, 2 }
0x1cb4   : > { %v10524_v21 = vadd.f32 %v10523_v28, %v10522_v35  ;;  %v10531_v49 = vadd.f32 %v10530_v63, %v10529_v32 }
0x1cb6   : > { %v10553_v7 = vsel %vm10552_vm4, %v10524_v21, %v10551_v33  ;;  %v10532_v20 = vrot.slane %v10531_v49, 1 }
0x1cb8   : > { %v10533_v0 = vadd.f32 %v10532_v20, %v10531_v49 }
0x1cba   : > { %v10555_v19 = vsel %vm10554_vm5, %v10533_v0, %v10553_v7 }
0x1cbb   : > { %10557 = vst.msk [vmem:[%s161_s19] sm:$0xff] %vm178_vm0, %v10555_v19 }
0x1cbc PF: > { %s13_s9 = sadd.s32 1, %s13487_s9  }
0x1cbd   : > { %p10_p5 = scmp.ge.s32.totalorder %s13_s9, 4  }
0x1cbf   :  { %12 = sbr.rel (!%p10_p5) target bundleno = 1 (0x1), region = 63 }
0x1cc6   :  { %10577 = vsyncpa [#allocation3], 1 }
0x1cc7   :  { %10579 = vsyncpa [#allocation3 + $0x1], 1 }

</bundles_post_ra>
